<compile_context>
chip_gen: v7x
topology: tpu7x:2x2x1
jax: 0.10.0
libtpu: 0.0.40
codegen_flags: <defaults>
</compile_context>

<pallas_src>
import functools

import jax
import jax.numpy as jnp
from jax.experimental import pallas as pl
from jax.experimental.pallas import tpu as pltpu


_FUSE_TAPS_MAX_CIN = 256   # per-tap path only for Cin >= this (v6e/v7x MXU depth)


# ---------------------------------------------------------------------------
# Small helpers (wrapper-side glue only)
# ---------------------------------------------------------------------------
def _round_up(v, m):
    return ((v + m - 1) // m) * m


def _pick_row_tile(Ho, Wo_pad, min_grid_rows=1, target_m=512):
    """Output rows per grid step: largest divisor of Ho with th*Wo_pad ~ target_m."""
    cap = max(1, min(Ho, max(1, target_m // Wo_pad)))
    best = 1
    for t in range(cap, 0, -1):
        if Ho % t == 0:
            best = t
            break
    if min_grid_rows > 1 and Ho // best < min_grid_rows and Ho >= min_grid_rows:
        cap2 = min(cap, max(1, Ho // min_grid_rows))
        for t in range(cap2, 0, -1):
            if Ho % t == 0:
                return t
    return best


def _phase_split(x, s, Ho, Wo_pad, cin_pad):
    """Zero-pad (conv pad=1 + alignment + channel pad) and split NHWC `x` into
    the s*s stride phases (space-to-depth), n-major / phase-minor.

    Tap (dy, dx) of output pixel (ho, wo) of image n lives at
        planes[n*s*s + (dy % s)*s + (dx % s), ho + dy//s, wo + dx//s, :].
    For s == 1 this is just zero padding (single phase).
    """
    N, H, W, C = x.shape
    halo = 2 // s                      # max(dy // s) for dy in {0,1,2}, s in {1,2}
    Hq = Ho + halo
    Wq = Wo_pad + halo
    xp = jnp.pad(x, ((0, 0),
                     (1, s * Hq - H - 1),        # >= 1 for k=3 / pad=1
                     (1, s * Wq - W - 1),
                     (0, cin_pad - C)))
    xp = xp.reshape(N, Hq, s, Wq, s, cin_pad)
    xp = jnp.transpose(xp, (0, 2, 4, 1, 3, 5))   # (N, s, s, Hq, Wq, C)
    return xp.reshape(N * s * s, Hq, Wq, cin_pad)


# ---------------------------------------------------------------------------
# Pallas kernel: fused 3x3 conv + ReLU
# ---------------------------------------------------------------------------
def _conv3x3_relu_kernel(x_ref, w_ref, o_ref, *scratch,
                         stride, th, wo_pad, cin, fused):
    # x_ref: (s*s, Hq, Wq, cin)    all phase planes of one image (resident)
    # w_ref: fused -> (9*cin, tn)  |  per-tap -> (3, 3, cin, tn)
    # o_ref: (1, th*wo_pad, tn)    output rows [r*th, r*th+th), flattened
    s = stride
    row0 = pl.program_id(1) * th

    def tap_slab(dy, dx):
        p = (dy % s) * s + (dx % s)
        slab = x_ref[p, pl.ds(row0 + dy // s, th), pl.ds(dx // s, wo_pad), :]
        return slab.reshape(th * wo_pad, cin)

    if fused:
        # Lane-concat the 9 taps -> one deep matmul (K = 9*cin, cin % 128 == 0
        # so every concat offset is lane-tile aligned).
        patch = jnp.concatenate(
            [tap_slab(dy, dx) for dy in range(3) for dx in range(3)], axis=-1)
        acc = jnp.dot(patch, w_ref[...], preferred_element_type=jnp.float32)
    else:
        # Large Cin: per-tap matmuls already fill the MXU; accumulate into a
        # VMEM f32 scratch to avoid carrying a huge live accumulator in vregs.
        (acc_ref,) = scratch
        acc_ref[...] = jnp.zeros_like(acc_ref)
        for dy in range(3):
            for dx in range(3):
                acc_ref[...] += jnp.dot(tap_slab(dy, dx), w_ref[dy, dx],
                                        preferred_element_type=jnp.float32)
        acc = acc_ref[...]

    o_ref[0] = jnp.maximum(acc, 0.0).astype(o_ref.dtype)


def conv3x3_relu(x, w_oihw, *, stride, out_dtype):
    """relu(conv2d(x, w, k=3, stride, pad=1, bias=False)).

    x: NHWC (bf16 recommended), w_oihw: (Cout, Cin, 3, 3) PyTorch layout.
    Returns NHWC in `out_dtype`.
    """
    N, H, W, Cin = x.shape
    Cout = int(w_oihw.shape[0])
    s = int(stride)
    Ho = (H + 2 - 3) // s + 1
    Wo = (W + 2 - 3) // s + 1

    fused = Cin < _FUSE_TAPS_MAX_CIN
    cin_pad = _round_up(Cin, 128) if fused else Cin
    cout_pad = _round_up(Cout, 128)
    # sublane packing of the activation dtype (bf16 -> 16) so the in-kernel
    # (th, Wo, C) -> (th*Wo, C) collapse is tile-aligned.
    align = 8 if jnp.dtype(x.dtype).itemsize >= 4 else 16
    wo_pad = _round_up(Wo, align)

    xph = _phase_split(x, s, Ho, wo_pad, cin_pad)      # (N*s*s, Hq, Wq, cin_pad)
    P = s * s
    _, Hq, Wq, _ = xph.shape

    # Cout tiling (lane-dense, bounds accumulator, extra parallel axis).
    tn = 256 if cout_pad % 256 == 0 else 128
    n_co = cout_pad // tn
    min_rows = 2 if (N * n_co) < 2 else 1              # keep 2 TCs busy on v7x
    th = _pick_row_tile(Ho, wo_pad, min_grid_rows=min_rows)
    M = th * wo_pad
    grid = (N, Ho // th, n_co)

    # Weights: (Cout, Cin, 3, 3) -> (3, 3, Cin, Cout), bf16, zero-padded.
    wt = jnp.transpose(w_oihw, (2, 3, 1, 0)).astype(jnp.bfloat16)
    wt = jnp.pad(wt, ((0, 0), (0, 0), (0, cin_pad - Cin), (0, cout_pad - Cout)))
    if fused:
        wt = wt.reshape(9 * cin_pad, cout_pad)
        w_spec = pl.BlockSpec((9 * cin_pad, tn), lambda n, r, c: (0, c))
    else:
        w_spec = pl.BlockSpec((3, 3, cin_pad, tn), lambda n, r, c: (0, 0, 0, c))

    scratch_shapes = [] if fused else [pltpu.VMEM((M, tn), jnp.float32)]

    kernel = functools.partial(_conv3x3_relu_kernel, stride=s, th=th,
                               wo_pad=wo_pad, cin=cin_pad, fused=fused)

    # VMEM budget: double-buffered blocks + scratch + fused patch, with slack.
    x_bytes = P * Hq * Wq * cin_pad * 2
    w_bytes = int(wt.size) * 2
    o_bytes = M * tn * jnp.dtype(out_dtype).itemsize
    need = (2 * x_bytes + 2 * w_bytes + 2 * o_bytes
            + (M * 9 * cin_pad * 2 if fused else M * tn * 4))
    vmem_limit = int(min(max(2 * need, 32 << 20), 64 << 20))

    out = pl.pallas_call(
        kernel,
        out_shape=jax.ShapeDtypeStruct((N, Ho * wo_pad, cout_pad), out_dtype),
        grid=grid,
        in_specs=[
            # all phase planes of image n; resident across row-tile / Cout axes
            pl.BlockSpec((P, Hq, Wq, cin_pad), lambda n, r, c: (n, 0, 0, 0)),
            # weights; resident across the batch / row-tile axes
            w_spec,
        ],
        out_specs=pl.BlockSpec((1, M, tn), lambda n, r, c: (n, r, c)),
        scratch_shapes=scratch_shapes,
        compiler_params=pltpu.CompilerParams(
            dimension_semantics=("parallel", "parallel", "parallel"),
            vmem_limit_bytes=vmem_limit),
    )(xph, wt)

    out = out.reshape(N, Ho, wo_pad, cout_pad)
    return out[:, :, :Wo, :Cout]                       # crop alignment/channel pad


# ---------------------------------------------------------------------------
# BasicBlock_noshortcut_nobatchnorm forward (Pallas)
# ---------------------------------------------------------------------------
def basicblock_forward_nhwc(x_nhwc, params, stride=1, out_dtype=jnp.float32):
    """NHWC entry point (use this when chaining blocks: stays NHWC / bf16)."""
    x = x_nhwc.astype(jnp.bfloat16)
    out = conv3x3_relu(x, params["w1"], stride=stride, out_dtype=jnp.bfloat16)
    out = conv3x3_relu(out, params["w2"], stride=1, out_dtype=out_dtype)
    return out


def basicblock_forward(x_nchw, params, stride=1):
    """NCHW boundary wrapper matching the PyTorch module's layout/dtype."""
    x = jnp.transpose(x_nchw, (0, 2, 3, 1))                       # NCHW -> NHWC
    out = basicblock_forward_nhwc(x, params, stride=stride, out_dtype=jnp.float32)
    return jnp.transpose(out, (0, 3, 1, 2))                       # NHWC -> NCHW


# ---------------------------------------------------------------------------
# Pure-JAX reference (mirrors the bf16-storage / f32-accumulate policy)
# ---------------------------------------------------------------------------
def basicblock_ref(x_nchw, params, stride=1):
    f32 = jnp.float32
    x = x_nchw.astype(jnp.bfloat16).astype(f32)
    w1 = params["w1"].astype(jnp.bfloat16).astype(f32)
    w2 = params["w2"].astype(jnp.bfloat16).astype(f32)

    def conv(a, w, s):
        return jax.lax.conv_general_dilated(
            a, w, (s, s), ((1, 1), (1, 1)),
            dimension_numbers=("NCHW", "OIHW", "NCHW"),
            precision=jax.lax.Precision.HIGHEST)

    out = jax.nn.relu(conv(x, w1, stride))
    out = out.astype(jnp.bfloat16).astype(f32)   # kernel stores conv1 output in bf16
    out = jax.nn.relu(conv(out, w2, 1))
    return out


# ---------------------------------------------------------------------------
# Deterministic parameter init (matches nn.Conv2d shapes, bias=False, no BN)
# ---------------------------------------------------------------------------
def init_params(key, in_planes, planes):
    k1, k2 = jax.random.split(key)

    def conv_w(k, co, ci):
        fan_in = ci * 9
        return (jax.random.normal(k, (co, ci, 3, 3), jnp.float32)
                / jnp.sqrt(fan_in))

    return {"w1": conv_w(k1, planes, in_planes),
            "w2": conv_w(k2, planes, planes)}


# ---------------------------------------------------------------------------
if __name__ == "__main__":
    key = jax.random.PRNGKey(0)

    # (N, in_planes, planes, H, W, strides)
    configs = [
        (2, 4, 4, 16, 16, (1, 2)),   # tiny channels -> fused K=9*Cin path
        (1, 4, 4, 7, 7, (1,)),       # odd spatial  -> Wo alignment pad + crop
        (1, 256, 256, 8, 8, (1, 2)), # large Cin    -> per-tap + VMEM accumulator
    ]

    for (N, cin, cout, H, W, strides) in configs:
        key, k_x, k_p = jax.random.split(key, 3)
        x = jax.random.normal(k_x, (N, cin, H, W), jnp.float32)   # NCHW
        params = init_params(k_p, cin, cout)

        for stride in strides:
            fwd = jax.jit(functools.partial(basicblock_forward, stride=stride))
            out = jax.block_until_ready(fwd(x, params))
            ref = jax.block_until_ready(basicblock_ref(x, params, stride))

            Ho = (H + 2 - 3) // stride + 1
            Wo = (W + 2 - 3) // stride + 1
            assert out.shape == ref.shape == (N, cout, Ho, Wo), (out.shape, ref.shape)
            err = float(jnp.max(jnp.abs(out - ref)))
            assert err < 1e-2, (
                f"cfg=({N},{cin},{cout},{H},{W}) stride={stride}: max abs diff={err:e}")

    print("KERNEL_OK")
</pallas_src>

<mosaic_0001>
module attributes {stable_mosaic.version = 11 : i64} {
  func.func @_conv3x3_relu_kernel(%arg0: i32, %arg1: i32, %arg2: i32, %arg3: memref<1x18x18x128xbf16, #tpu.memory_space<vmem>>, %arg4: memref<1152x128xbf16, #tpu.memory_space<vmem>>, %arg5: memref<1x256x128xbf16, #tpu.memory_space<vmem>>) attributes {dimension_semantics = [#tpu.dimension_semantics<parallel>, #tpu.dimension_semantics<parallel>, #tpu.dimension_semantics<parallel>], iteration_bounds = array<i64: 2, 1, 1>, scalar_prefetch = 0 : i64, scratch_operands = 0 : i64, tpu.core_type = #tpu.core_type<tc>, window_params = [{transform_indices = @transform_0, window_bounds = array<i64: 1, 18, 18, 128>}, {transform_indices = @transform_1, window_bounds = array<i64: 1152, 128>}, {transform_indices = @transform_2, window_bounds = array<i64: 1, 256, 128>}]} {
    %c16_i32 = arith.constant 16 : i32
    %0 = arith.muli %arg1, %c16_i32 : i32
    %c0_i32 = arith.constant 0 : i32
    %1 = arith.addi %0, %c0_i32 : i32
    %c0 = arith.constant 0 : index
    %2 = arith.index_cast %1 : i32 to index
    %c0_0 = arith.constant 0 : index
    %c0_1 = arith.constant 0 : index
    %3 = vector.load %arg3[%c0, %2, %c0_0, %c0_1] : memref<1x18x18x128xbf16, #tpu.memory_space<vmem>>, vector<1x16x16x128xbf16>
    %4 = vector.shape_cast %3 : vector<1x16x16x128xbf16> to vector<16x16x128xbf16>
    %5 = vector.shape_cast %4 : vector<16x16x128xbf16> to vector<256x128xbf16>
    %c0_i32_2 = arith.constant 0 : i32
    %6 = arith.addi %0, %c0_i32_2 : i32
    %c0_3 = arith.constant 0 : index
    %7 = arith.index_cast %6 : i32 to index
    %c1 = arith.constant 1 : index
    %c0_4 = arith.constant 0 : index
    %8 = vector.load %arg3[%c0_3, %7, %c1, %c0_4] : memref<1x18x18x128xbf16, #tpu.memory_space<vmem>>, vector<1x16x16x128xbf16>
    %9 = vector.shape_cast %8 : vector<1x16x16x128xbf16> to vector<16x16x128xbf16>
    %10 = vector.shape_cast %9 : vector<16x16x128xbf16> to vector<256x128xbf16>
    %c0_i32_5 = arith.constant 0 : i32
    %11 = arith.addi %0, %c0_i32_5 : i32
    %c0_6 = arith.constant 0 : index
    %12 = arith.index_cast %11 : i32 to index
    %c2 = arith.constant 2 : index
    %c0_7 = arith.constant 0 : index
    %13 = vector.load %arg3[%c0_6, %12, %c2, %c0_7] : memref<1x18x18x128xbf16, #tpu.memory_space<vmem>>, vector<1x16x16x128xbf16>
    %14 = vector.shape_cast %13 : vector<1x16x16x128xbf16> to vector<16x16x128xbf16>
    %15 = vector.shape_cast %14 : vector<16x16x128xbf16> to vector<256x128xbf16>
    %c1_i32 = arith.constant 1 : i32
    %16 = arith.addi %0, %c1_i32 : i32
    %c0_8 = arith.constant 0 : index
    %17 = arith.index_cast %16 : i32 to index
    %c0_9 = arith.constant 0 : index
    %c0_10 = arith.constant 0 : index
    %18 = vector.load %arg3[%c0_8, %17, %c0_9, %c0_10] : memref<1x18x18x128xbf16, #tpu.memory_space<vmem>>, vector<1x16x16x128xbf16>
    %19 = vector.shape_cast %18 : vector<1x16x16x128xbf16> to vector<16x16x128xbf16>
    %20 = vector.shape_cast %19 : vector<16x16x128xbf16> to vector<256x128xbf16>
    %c1_i32_11 = arith.constant 1 : i32
    %21 = arith.addi %0, %c1_i32_11 : i32
    %c0_12 = arith.constant 0 : index
    %22 = arith.index_cast %21 : i32 to index
    %c1_13 = arith.constant 1 : index
    %c0_14 = arith.constant 0 : index
    %23 = vector.load %arg3[%c0_12, %22, %c1_13, %c0_14] : memref<1x18x18x128xbf16, #tpu.memory_space<vmem>>, vector<1x16x16x128xbf16>
    %24 = vector.shape_cast %23 : vector<1x16x16x128xbf16> to vector<16x16x128xbf16>
    %25 = vector.shape_cast %24 : vector<16x16x128xbf16> to vector<256x128xbf16>
    %c1_i32_15 = arith.constant 1 : i32
    %26 = arith.addi %0, %c1_i32_15 : i32
    %c0_16 = arith.constant 0 : index
    %27 = arith.index_cast %26 : i32 to index
    %c2_17 = arith.constant 2 : index
    %c0_18 = arith.constant 0 : index
    %28 = vector.load %arg3[%c0_16, %27, %c2_17, %c0_18] : memref<1x18x18x128xbf16, #tpu.memory_space<vmem>>, vector<1x16x16x128xbf16>
    %29 = vector.shape_cast %28 : vector<1x16x16x128xbf16> to vector<16x16x128xbf16>
    %30 = vector.shape_cast %29 : vector<16x16x128xbf16> to vector<256x128xbf16>
    %c2_i32 = arith.constant 2 : i32
    %31 = arith.addi %0, %c2_i32 : i32
    %c0_19 = arith.constant 0 : index
    %32 = arith.index_cast %31 : i32 to index
    %c0_20 = arith.constant 0 : index
    %c0_21 = arith.constant 0 : index
    %33 = vector.load %arg3[%c0_19, %32, %c0_20, %c0_21] : memref<1x18x18x128xbf16, #tpu.memory_space<vmem>>, vector<1x16x16x128xbf16>
    %34 = vector.shape_cast %33 : vector<1x16x16x128xbf16> to vector<16x16x128xbf16>
    %35 = vector.shape_cast %34 : vector<16x16x128xbf16> to vector<256x128xbf16>
    %c2_i32_22 = arith.constant 2 : i32
    %36 = arith.addi %0, %c2_i32_22 : i32
    %c0_23 = arith.constant 0 : index
    %37 = arith.index_cast %36 : i32 to index
    %c1_24 = arith.constant 1 : index
    %c0_25 = arith.constant 0 : index
    %38 = vector.load %arg3[%c0_23, %37, %c1_24, %c0_25] : memref<1x18x18x128xbf16, #tpu.memory_space<vmem>>, vector<1x16x16x128xbf16>
    %39 = vector.shape_cast %38 : vector<1x16x16x128xbf16> to vector<16x16x128xbf16>
    %40 = vector.shape_cast %39 : vector<16x16x128xbf16> to vector<256x128xbf16>
    %c2_i32_26 = arith.constant 2 : i32
    %41 = arith.addi %0, %c2_i32_26 : i32
    %c0_27 = arith.constant 0 : index
    %42 = arith.index_cast %41 : i32 to index
    %c2_28 = arith.constant 2 : index
    %c0_29 = arith.constant 0 : index
    %43 = vector.load %arg3[%c0_27, %42, %c2_28, %c0_29] : memref<1x18x18x128xbf16, #tpu.memory_space<vmem>>, vector<1x16x16x128xbf16>
    %44 = vector.shape_cast %43 : vector<1x16x16x128xbf16> to vector<16x16x128xbf16>
    %45 = vector.shape_cast %44 : vector<16x16x128xbf16> to vector<256x128xbf16>
    %46 = tpu.concatenate %5, %10, %15, %20, %25, %30, %35, %40, %45 in 1 : vector<256x128xbf16>, vector<256x128xbf16>, vector<256x128xbf16>, vector<256x128xbf16>, vector<256x128xbf16>, vector<256x128xbf16>, vector<256x128xbf16>, vector<256x128xbf16>, vector<256x128xbf16> -> vector<256x1152xbf16>
    %c0_30 = arith.constant 0 : index
    %c0_31 = arith.constant 0 : index
    %47 = vector.load %arg4[%c0_30, %c0_31] : memref<1152x128xbf16, #tpu.memory_space<vmem>>, vector<1152x128xbf16>
    %cst = arith.constant dense<0.000000e+00> : vector<256x128xf32>
    %48 = tpu.matmul %46, %47, %cst {dimension_numbers = #tpu.dot_dimension_numbers<[1], [0], [0], [1], [0, 0, 1, 1], [], []>} : vector<256x1152xbf16>, vector<1152x128xbf16>, vector<256x128xf32> -> vector<256x128xf32>
    %cst_32 = arith.constant 0.000000e+00 : f32
    %49 = vector.broadcast %cst_32 : f32 to vector<256x128xf32>
    %50 = arith.maximumf %48, %49 : vector<256x128xf32>
    %51 = arith.truncf %50 : vector<256x128xf32> to vector<256x128xbf16>
    %c0_33 = arith.constant 0 : index
    %c0_34 = arith.constant 0 : index
    %c0_35 = arith.constant 0 : index
    %52 = vector.load %arg5[%c0_33, %c0_34, %c0_35] : memref<1x256x128xbf16, #tpu.memory_space<vmem>>, vector<1x256x128xbf16>
    %53 = vector.shape_cast %52 : vector<1x256x128xbf16> to vector<256x128xbf16>
    %54 = vector.shape_cast %51 : vector<256x128xbf16> to vector<1x256x128xbf16>
    tpu.vector_store %arg5[%c0_33, %c0_34, %c0_35], %54 {strides = array<i32>} : memref<1x256x128xbf16, #tpu.memory_space<vmem>>, vector<1x256x128xbf16>,
    return
  }
  func.func @transform_0(%arg0: i32, %arg1: i32, %arg2: i32) -> (i32, i32, i32, i32) {
    %c0_i32 = arith.constant 0 : i32
    %c0_i32_0 = arith.constant 0 : i32
    %c0_i32_1 = arith.constant 0 : i32
    %c0_i32_2 = arith.constant 0 : i32
    return %arg0, %c0_i32, %c0_i32_0, %c0_i32_1 : i32, i32, i32, i32
  }
  func.func @transform_1(%arg0: i32, %arg1: i32, %arg2: i32) -> (i32, i32) {
    %c0_i32 = arith.constant 0 : i32
    %c0_i32_0 = arith.constant 0 : i32
    return %c0_i32, %arg2 : i32, i32
  }
  func.func @transform_2(%arg0: i32, %arg1: i32, %arg2: i32) -> (i32, i32, i32) {
    %c0_i32 = arith.constant 0 : i32
    return %arg0, %arg1, %arg2 : i32, i32, i32
  }
}

module attributes {stable_mosaic.version = 11 : i64} {
  func.func @_conv3x3_relu_kernel(%arg0: i32, %arg1: i32, %arg2: i32, %arg3: memref<1x18x18x128xbf16, #tpu.memory_space<vmem>>, %arg4: memref<1152x128xbf16, #tpu.memory_space<vmem>>, %arg5: memref<1x256x128xf32, #tpu.memory_space<vmem>>) attributes {dimension_semantics = [#tpu.dimension_semantics<parallel>, #tpu.dimension_semantics<parallel>, #tpu.dimension_semantics<parallel>], iteration_bounds = array<i64: 2, 1, 1>, scalar_prefetch = 0 : i64, scratch_operands = 0 : i64, tpu.core_type = #tpu.core_type<tc>, window_params = [{transform_indices = @transform_0, window_bounds = array<i64: 1, 18, 18, 128>}, {transform_indices = @transform_1, window_bounds = array<i64: 1152, 128>}, {transform_indices = @transform_2, window_bounds = array<i64: 1, 256, 128>}]} {
    %c16_i32 = arith.constant 16 : i32
    %0 = arith.muli %arg1, %c16_i32 : i32
    %c0_i32 = arith.constant 0 : i32
    %1 = arith.addi %0, %c0_i32 : i32
    %c0 = arith.constant 0 : index
    %2 = arith.index_cast %1 : i32 to index
    %c0_0 = arith.constant 0 : index
    %c0_1 = arith.constant 0 : index
    %3 = vector.load %arg3[%c0, %2, %c0_0, %c0_1] : memref<1x18x18x128xbf16, #tpu.memory_space<vmem>>, vector<1x16x16x128xbf16>
    %4 = vector.shape_cast %3 : vector<1x16x16x128xbf16> to vector<16x16x128xbf16>
    %5 = vector.shape_cast %4 : vector<16x16x128xbf16> to vector<256x128xbf16>
    %c0_i32_2 = arith.constant 0 : i32
    %6 = arith.addi %0, %c0_i32_2 : i32
    %c0_3 = arith.constant 0 : index
    %7 = arith.index_cast %6 : i32 to index
    %c1 = arith.constant 1 : index
    %c0_4 = arith.constant 0 : index
    %8 = vector.load %arg3[%c0_3, %7, %c1, %c0_4] : memref<1x18x18x128xbf16, #tpu.memory_space<vmem>>, vector<1x16x16x128xbf16>
    %9 = vector.shape_cast %8 : vector<1x16x16x128xbf16> to vector<16x16x128xbf16>
    %10 = vector.shape_cast %9 : vector<16x16x128xbf16> to vector<256x128xbf16>
    %c0_i32_5 = arith.constant 0 : i32
    %11 = arith.addi %0, %c0_i32_5 : i32
    %c0_6 = arith.constant 0 : index
    %12 = arith.index_cast %11 : i32 to index
    %c2 = arith.constant 2 : index
    %c0_7 = arith.constant 0 : index
    %13 = vector.load %arg3[%c0_6, %12, %c2, %c0_7] : memref<1x18x18x128xbf16, #tpu.memory_space<vmem>>, vector<1x16x16x128xbf16>
    %14 = vector.shape_cast %13 : vector<1x16x16x128xbf16> to vector<16x16x128xbf16>
    %15 = vector.shape_cast %14 : vector<16x16x128xbf16> to vector<256x128xbf16>
    %c1_i32 = arith.constant 1 : i32
    %16 = arith.addi %0, %c1_i32 : i32
    %c0_8 = arith.constant 0 : index
    %17 = arith.index_cast %16 : i32 to index
    %c0_9 = arith.constant 0 : index
    %c0_10 = arith.constant 0 : index
    %18 = vector.load %arg3[%c0_8, %17, %c0_9, %c0_10] : memref<1x18x18x128xbf16, #tpu.memory_space<vmem>>, vector<1x16x16x128xbf16>
    %19 = vector.shape_cast %18 : vector<1x16x16x128xbf16> to vector<16x16x128xbf16>
    %20 = vector.shape_cast %19 : vector<16x16x128xbf16> to vector<256x128xbf16>
    %c1_i32_11 = arith.constant 1 : i32
    %21 = arith.addi %0, %c1_i32_11 : i32
    %c0_12 = arith.constant 0 : index
    %22 = arith.index_cast %21 : i32 to index
    %c1_13 = arith.constant 1 : index
    %c0_14 = arith.constant 0 : index
    %23 = vector.load %arg3[%c0_12, %22, %c1_13, %c0_14] : memref<1x18x18x128xbf16, #tpu.memory_space<vmem>>, vector<1x16x16x128xbf16>
    %24 = vector.shape_cast %23 : vector<1x16x16x128xbf16> to vector<16x16x128xbf16>
    %25 = vector.shape_cast %24 : vector<16x16x128xbf16> to vector<256x128xbf16>
    %c1_i32_15 = arith.constant 1 : i32
    %26 = arith.addi %0, %c1_i32_15 : i32
    %c0_16 = arith.constant 0 : index
    %27 = arith.index_cast %26 : i32 to index
    %c2_17 = arith.constant 2 : index
    %c0_18 = arith.constant 0 : index
    %28 = vector.load %arg3[%c0_16, %27, %c2_17, %c0_18] : memref<1x18x18x128xbf16, #tpu.memory_space<vmem>>, vector<1x16x16x128xbf16>
    %29 = vector.shape_cast %28 : vector<1x16x16x128xbf16> to vector<16x16x128xbf16>
    %30 = vector.shape_cast %29 : vector<16x16x128xbf16> to vector<256x128xbf16>
    %c2_i32 = arith.constant 2 : i32
    %31 = arith.addi %0, %c2_i32 : i32
    %c0_19 = arith.constant 0 : index
    %32 = arith.index_cast %31 : i32 to index
    %c0_20 = arith.constant 0 : index
    %c0_21 = arith.constant 0 : index
    %33 = vector.load %arg3[%c0_19, %32, %c0_20, %c0_21] : memref<1x18x18x128xbf16, #tpu.memory_space<vmem>>, vector<1x16x16x128xbf16>
    %34 = vector.shape_cast %33 : vector<1x16x16x128xbf16> to vector<16x16x128xbf16>
    %35 = vector.shape_cast %34 : vector<16x16x128xbf16> to vector<256x128xbf16>
    %c2_i32_22 = arith.constant 2 : i32
    %36 = arith.addi %0, %c2_i32_22 : i32
    %c0_23 = arith.constant 0 : index
    %37 = arith.index_cast %36 : i32 to index
    %c1_24 = arith.constant 1 : index
    %c0_25 = arith.constant 0 : index
    %38 = vector.load %arg3[%c0_23, %37, %c1_24, %c0_25] : memref<1x18x18x128xbf16, #tpu.memory_space<vmem>>, vector<1x16x16x128xbf16>
    %39 = vector.shape_cast %38 : vector<1x16x16x128xbf16> to vector<16x16x128xbf16>
    %40 = vector.shape_cast %39 : vector<16x16x128xbf16> to vector<256x128xbf16>
    %c2_i32_26 = arith.constant 2 : i32
    %41 = arith.addi %0, %c2_i32_26 : i32
    %c0_27 = arith.constant 0 : index
    %42 = arith.index_cast %41 : i32 to index
    %c2_28 = arith.constant 2 : index
    %c0_29 = arith.constant 0 : index
    %43 = vector.load %arg3[%c0_27, %42, %c2_28, %c0_29] : memref<1x18x18x128xbf16, #tpu.memory_space<vmem>>, vector<1x16x16x128xbf16>
    %44 = vector.shape_cast %43 : vector<1x16x16x128xbf16> to vector<16x16x128xbf16>
    %45 = vector.shape_cast %44 : vector<16x16x128xbf16> to vector<256x128xbf16>
    %46 = tpu.concatenate %5, %10, %15, %20, %25, %30, %35, %40, %45 in 1 : vector<256x128xbf16>, vector<256x128xbf16>, vector<256x128xbf16>, vector<256x128xbf16>, vector<256x128xbf16>, vector<256x128xbf16>, vector<256x128xbf16>, vector<256x128xbf16>, vector<256x128xbf16> -> vector<256x1152xbf16>
    %c0_30 = arith.constant 0 : index
    %c0_31 = arith.constant 0 : index
    %47 = vector.load %arg4[%c0_30, %c0_31] : memref<1152x128xbf16, #tpu.memory_space<vmem>>, vector<1152x128xbf16>
    %cst = arith.constant dense<0.000000e+00> : vector<256x128xf32>
    %48 = tpu.matmul %46, %47, %cst {dimension_numbers = #tpu.dot_dimension_numbers<[1], [0], [0], [1], [0, 0, 1, 1], [], []>} : vector<256x1152xbf16>, vector<1152x128xbf16>, vector<256x128xf32> -> vector<256x128xf32>
    %cst_32 = arith.constant 0.000000e+00 : f32
    %49 = vector.broadcast %cst_32 : f32 to vector<256x128xf32>
    %50 = arith.maximumf %48, %49 : vector<256x128xf32>
    %c0_33 = arith.constant 0 : index
    %c0_34 = arith.constant 0 : index
    %c0_35 = arith.constant 0 : index
    %51 = vector.load %arg5[%c0_33, %c0_34, %c0_35] : memref<1x256x128xf32, #tpu.memory_space<vmem>>, vector<1x256x128xf32>
    %52 = vector.shape_cast %51 : vector<1x256x128xf32> to vector<256x128xf32>
    %53 = vector.shape_cast %50 : vector<256x128xf32> to vector<1x256x128xf32>
    tpu.vector_store %arg5[%c0_33, %c0_34, %c0_35], %53 {strides = array<i32>} : memref<1x256x128xf32, #tpu.memory_space<vmem>>, vector<1x256x128xf32>,
    return
  }
  func.func @transform_0(%arg0: i32, %arg1: i32, %arg2: i32) -> (i32, i32, i32, i32) {
    %c0_i32 = arith.constant 0 : i32
    %c0_i32_0 = arith.constant 0 : i32
    %c0_i32_1 = arith.constant 0 : i32
    %c0_i32_2 = arith.constant 0 : i32
    return %arg0, %c0_i32, %c0_i32_0, %c0_i32_1 : i32, i32, i32, i32
  }
  func.func @transform_1(%arg0: i32, %arg1: i32, %arg2: i32) -> (i32, i32) {
    %c0_i32 = arith.constant 0 : i32
    %c0_i32_0 = arith.constant 0 : i32
    return %c0_i32, %arg2 : i32, i32
  }
  func.func @transform_2(%arg0: i32, %arg1: i32, %arg2: i32) -> (i32, i32, i32) {
    %c0_i32 = arith.constant 0 : i32
    return %arg0, %arg1, %arg2 : i32, i32, i32
  }
}

</mosaic_0001>

<bundles_post_ra>
// kernel: basicblock_forward.2
= control target key start
LH: loop header
LB: loop body
LE: loop exit
PB: predicated region body
PF: predicated region fallthrough
CT: control target
= control target key end

     0   :  { %s5648_s9 = smov 0   ;;  %s5650_s10 = smov 0   ;;  %s7669_s0 = inlined_call_operand.vmem [shape: bf16[2,18,18,128], index: 0, kind: input, shape index: {}]   ;;  %s7670_s1 = inlined_call_operand.vmem [shape: bf16[1152,128], index: 1, kind: input, shape index: {}]   ;;  %s7671_s2 = inlined_call_operand.vmem [shape: bf16[2,256,128], index: 2, kind: output, shape index: {}]  }
   0x1   :  { %s5652_s11 = smov 0  }
   0x2 LB: > { %s31_s12 = sadd.s32 1, %s5627_s10  ;;  %p4363_p0 = scmp.ge.s32.totalorder %s5631_s11, 1  ;;  %s5631_s11 = sphi %s5652_s11, %s12_s11   ;;  %s5627_s10 = sphi %s5650_s10, %s7687_s10   ;;  %s5623_s9 = sphi %s5648_s9, %s7686_s9  }
   0x3   : > { %p33_p1 = scmp.ge.s32.totalorder %s31_s12, 2  ;;  %p144_p2 = scmp.lt.s32.totalorder %s5631_s11, 3 }
   0x5   : > { %s7689_s12 = smov (%p33_p1, %s31_s12), 0  ;;  %p145_p3 = pnand %p4363_p0, %p144_p2 }
   0x6   : > { %v5482_v0 = vld [vmem:[%s7670_s1 + $0x40] sm:$0xff] (!%p145_p3)   ;;  %p177_p4 = scmp.lt.s32.totalorder (!%p145_p3), %s5623_s9, 1  ;;  %v5484_v2 = vld [vmem:[%s7670_s1 + $0x48] sm:$0xff] (!%p145_p3)   ;;  %v5486_v4 = vld [vmem:[%s7670_s1 + $0x50] sm:$0xff] (!%p145_p3)   ;;  %vm252_vm0 = vsmask.f32 (!%p145_p3), 3328 }
   0x7   : > { %148 = sbr.rel (%p145_p3) target bundleno = 562 (0x232), region = 28  ;;  %v5483_v1 = vld [vmem:[%s7670_s1] sm:$0xff] (!%p145_p3)   ;;  %4921 = vmatprep.subr.bf16.mxu0 (!%p145_p3), %v5482_v0  ;;  %5441 = vmatprep.subr.bf16.mxu1 (!%p145_p3), %v5482_v0  ;;  %v5485_v3 = vld [vmem:[%s7670_s1 + $0x8] sm:$0xff] (!%p145_p3)   ;;  %v5487_v5 = vld [vmem:[%s7670_s1 + $0x10] sm:$0xff] (!%p145_p3)   ;;  %vm253_vm1 = vsmask.f32 (!%p145_p3), 7440 }
   0x8   : > { %4922 = vmatpush3.bf16.msra.mxu0 (!%p145_p3), %v5483_v1  ;;  %5449 = vmatpush3.bf16.msra.mxu1 (!%p145_p3), %v5483_v1  ;;  %v5488_v6 = vld [vmem:[%s7670_s1 + $0x58] sm:$0xff] (!%p145_p3)   ;;  %v5490_v8 = vld [vmem:[%s7670_s1 + $0x60] sm:$0xff] (!%p145_p3)   ;;  %v5492_v10 = vld [vmem:[%s7670_s1 + $0x68] sm:$0xff] (!%p145_p3)   ;;  %vm703_vm3 = vcmask (!%p145_p3), 1042432   ;;  %vm704_vm4 = vcmask (!%p145_p3), 1046532  }
   0x9   : > { %4923 = vmatprep.subr.bf16.mxu0 (!%p145_p3), %v5484_v2  ;;  %5442 = vmatprep.subr.bf16.mxu1 (!%p145_p3), %v5484_v2  ;;  %v5489_v7 = vld [vmem:[%s7670_s1 + $0x18] sm:$0xff] (!%p145_p3)   ;;  %v5491_v9 = vld [vmem:[%s7670_s1 + $0x20] sm:$0xff] (!%p145_p3)   ;;  %v5493_v20 = vld [vmem:[%s7670_s1 + $0x28] sm:$0xff] (!%p145_p3)  }
   0xa   : > { %v5494_v25 = vld [vmem:[%s7670_s1 + $0x70] sm:$0xff] (!%p145_p3)   ;;  %vm5741_vm2 = vmor (!%p145_p3), %vm252_vm0, %vm253_vm1  ;;  %v5496_v42 = vld [vmem:[%s7670_s1 + $0x78] sm:$0xff] (!%p145_p3)  }
   0xb   : > { %v5495_v38 = vld [vmem:[%s7670_s1 + $0x30] sm:$0xff] (!%p145_p3)   ;;  %v5497_v45 = vld [vmem:[%s7670_s1 + $0x38] sm:$0xff] (!%p145_p3)   ;;  %v5500_v55 = vld [vmem:[%s7670_s1 + $0xc0] sm:$0xff] (!%p145_p3)  }
   0xc   : > { %4924 = vmatpush3.bf16.msra.mxu0 (!%p145_p3), %v5485_v3  ;;  %5450 = vmatpush3.bf16.msra.mxu1 (!%p145_p3), %v5485_v3  ;;  %v5503_v58 = vld [vmem:[%s7670_s1 + $0x140] sm:$0xff] (!%p145_p3)   ;;  %vm5935_vm5 = vmor (!%p145_p3), %vm703_vm3, %vm704_vm4 }
   0xd   : > { %4925 = vmatprep.subr.bf16.mxu0 (!%p145_p3), %v5486_v4  ;;  %5443 = vmatprep.subr.bf16.mxu1 (!%p145_p3), %v5486_v4  ;;  %v5501_v62 = vld [vmem:[%s7670_s1 + $0x80] sm:$0xff] (!%p145_p3)   ;;  %v5502_v4 = vld [vmem:[%s7670_s1 + $0xc8] sm:$0xff] (!%p145_p3)  }
   0xe   : > { %s7691_s9 = smov (!%p177_p4, %s5623_s9), 1 }
   0xf   : > { %s5457_s27 = smul.u32 216, %s7691_s9 }
  0x10   : > { %4926 = vmatpush3.bf16.msra.mxu0 %v5487_v5  ;;  %5451 = vmatpush3.bf16.msra.mxu1 %v5487_v5  ;;  %v5505_v5 = vld [vmem:[%s7670_s1 + $0x100] sm:$0xff]  }
  0x11   : > { %4927 = vmatprep.subr.bf16.mxu0 %v5488_v6  ;;  %5444 = vmatprep.subr.bf16.mxu1 %v5488_v6  ;;  %s5699_s6 = scalar_lea.vmem %s7669_s0, %s5457_s27 }
  0x12   : > { %v5708_v11 = vld [vmem:[%s5699_s6] sm:$0xf]  ;;  %v5711_v12 = vld [vmem:[%s5699_s6 + $0x4] sm:$0xf]  ;;  %v5714_v13 = vld [vmem:[%s5699_s6 + $0x8] sm:$0x1] }
  0x13   : > { %v256_v14 = vshrl.u32 %v5708_v11, 16  ;;  %v259_v15 = vshll.u32 %v5708_v11, 16  ;;  %v265_v16 = vshll.u32 %v5711_v12, 16  ;;  %v269_v17 = vshrl.u32 %v5711_v12, 16  ;;  %v5722_v19 = vld [vmem:[%s5699_s6 + $0x90] sm:$0xf] }
  0x14   : > { %4928 = vmatpush3.bf16.msra.mxu0 %v5489_v7  ;;  %5452 = vmatpush3.bf16.msra.mxu1 %v5489_v7  ;;  %v275_v18 = vshll.u32 %v5714_v13, 16  ;;  %v5728_v23 = vld [vmem:[%s5699_s6 + $0x94] sm:$0xf]  ;;  %v544_v24 = vshrl.u32 %v5722_v19, 16  ;;  %v5735_v29 = vld [vmem:[%s5699_s6 + $0x98] sm:$0x1]  ;;  %v4543_v57 = vcombine.low %v5708_v11, %v5711_v12 }
  0x15   : > { %4929 = vmatprep.subr.bf16.mxu0 %v5490_v8  ;;  %5445 = vmatprep.subr.bf16.mxu1 %v5490_v8  ;;  %v258_v21 = vrot.slane %v256_v14, 4  ;;  %v261_v22 = vrot.slane %v259_v15, 5  ;;  %v267_v26 = vrot.slane %v265_v16, 5  ;;  %v271_v27 = vrot.slane %v269_v17, 4  ;;  %v5771_v59 = vld [vmem:[%s5699_s6 + $0xc] sm:$0xf] }
  0x16   : > { %v277_v28 = vrot.slane %v275_v18, 5  ;;  %v546_v31 = vrot.slane %v544_v24, 4  ;;  %v547_v32 = vshll.u32 %v5722_v19, 16  ;;  %v553_v33 = vshll.u32 %v5728_v23, 16  ;;  %v5781_v63 = vld [vmem:[%s5699_s6 + $0x10] sm:$0xf] }
  0x17   : > { %v262_v30 = vor.u32 %v261_v22, %v258_v21  ;;  %v272_v35 = vor.u32 %v271_v27, %v267_v26  ;;  %v557_v36 = vshrl.u32 %v5728_v23, 16  ;;  %v563_v37 = vshll.u32 %v5735_v29, 16  ;;  %v5784_v0 = vld [vmem:[%s5699_s6 + $0x14] sm:$0x1]  ;;  %v5803_v15 = vld [vmem:[%s5699_s6 + $0xa0] sm:$0xf] }
  0x18   : > { %4930 = vmatpush3.bf16.msra.mxu0 %v5491_v9  ;;  %5453 = vmatpush3.bf16.msra.mxu1 %v5491_v9  ;;  %v549_v40 = vrot.slane %v547_v32, 5  ;;  %v555_v41 = vrot.slane %v553_v33, 5  ;;  %v708_v47 = vrot.slane %v5711_v12, 5  ;;  %v711_v50 = vrot.slane %v5714_v13, 5  ;;  %v5800_v9 = vld [vmem:[%s5699_s6 + $0x9c] sm:$0xf] }
  0x19   : > { %4931 = vmatprep.subr.bf16.mxu0 %v5492_v10  ;;  %5446 = vmatprep.subr.bf16.mxu1 %v5492_v10  ;;  %v263_v39 = vrot.slane %v262_v30, 4  ;;  %v273_v43 = vrot.slane %v272_v35, 4  ;;  %v559_v44 = vrot.slane %v557_v36, 4  ;;  %v565_v52 = vrot.slane %v563_v37, 5  ;;  %v249_v16 = vld [vmem:[%s5699_s6 + $0xa4] sm:$0x1] }
  0x1a   : > { %v550_v48 = vor.u32 %v549_v40, %v546_v31  ;;  %v4555_v61 = vcombine.low %v5722_v19, %v5728_v23  ;;  %v280_v1 = vshrl.u32 %v5771_v59, 16  ;;  %v283_v2 = vshll.u32 %v5771_v59, 16  ;;  %v5504_v21 = vld [vmem:[%s7670_s1 + $0x88] sm:$0xff]   ;;  %v5967_v13 = vld [vmem:[%s5699_s6 + $0x34] sm:$0xf] }
  0x1b   : > { %v268_v46 = vsel %vm5741_vm2, %v263_v39, %v267_v26  ;;  %v278_v49 = vsel %vm5741_vm2, %v273_v43, %v277_v28  ;;  %v560_v51 = vor.u32 %v559_v44, %v555_v41  ;;  %v289_v6 = vshll.u32 %v5781_v63, 16  ;;  %v5509_v43 = vld [vmem:[%s7670_s1 + $0x90] sm:$0xff]   ;;  %v5828_v44 = vld [vmem:[%s5699_s6 + $0x18] sm:$0xf] }
  0x1c   : > { %4932 = vmatpush3.bf16.msra.mxu0 %v5493_v20  ;;  %5454 = vmatpush3.bf16.msra.mxu1 %v5493_v20  ;;  %v4559_v53 = vcombine.low %v268_v46, %v278_v49  ;;  %v551_v54 = vrot.slane %v550_v48, 4  ;;  %v293_v7 = vshrl.u32 %v5781_v63, 16  ;;  %v299_v8 = vshll.u32 %v5784_v0, 16  ;;  %v5835_v48 = vld [vmem:[%s5699_s6 + $0x1c] sm:$0xf] }
  0x1d   : > { %4933 = vmatprep.subr.bf16.mxu0 %v5494_v25  ;;  %5447 = vmatprep.subr.bf16.mxu1 %v5494_v25  ;;  %v561_v56 = vrot.slane %v560_v51, 4  ;;  %v282_v11 = vrot.slane %v280_v1, 4  ;;  %v285_v14 = vrot.slane %v283_v2, 5  ;;  %v291_v17 = vrot.slane %v289_v6, 5  ;;  %v5838_v49 = vld [vmem:[%s5699_s6 + $0x20] sm:$0x1] }
  0x1e   : > { %3274 = vmatprep.mubr.bf16.mxu0 %v4559_v53  ;;  %v556_v60 = vsel %vm5741_vm2, %v551_v54, %v555_v41  ;;  %v295_v18 = vrot.slane %v293_v7, 4  ;;  %v301_v19 = vrot.slane %v299_v8, 5  ;;  %v568_v20 = vshrl.u32 %v5800_v9, 16  ;;  %v5852_v1 = vld [vmem:[%s5699_s6 + $0xac] sm:$0xf] }
  0x1f   : > { %v566_v3 = vsel %vm5741_vm2, %v561_v56, %v565_v52  ;;  %v286_v22 = vor.u32 %v285_v14, %v282_v11  ;;  %v571_v23 = vshll.u32 %v5800_v9, 16  ;;  %v577_v24 = vshll.u32 %v5803_v15, 16  ;;  %v5510_v56 = vld [vmem:[%s7670_s1 + $0xd8] sm:$0xff]   ;;  %v250_v6 = vld [vmem:[%s5699_s6 + $0xb0] sm:$0x1]  ;;  %v5514_v11 = vld [vmem:[%s7670_s1 + $0xe0] sm:$0xff]  }
  0x20   : > { %4934 = vmatpush3.bf16.msra.mxu0 %v5495_v38  ;;  %5455 = vmatpush3.bf16.msra.mxu1 %v5495_v38  ;;  %v4571_v10 = vcombine.low %v556_v60, %v566_v3  ;;  %v581_v25 = vshrl.u32 %v5803_v15, 16  ;;  %v296_v26 = vor.u32 %v295_v18, %v291_v17  ;;  %v570_v27 = vrot.slane %v568_v20, 4  ;;  %v5508_v38 = vld [vmem:[%s7670_s1 + $0xd0] sm:$0xff]  }
  0x21   : > { %4935 = vmatprep.subr.bf16.mxu0 %v5496_v42  ;;  %5448 = vmatprep.subr.bf16.mxu1 %v5496_v42  ;;  %v587_v28 = vshll.u32 %v249_v16, 16  ;;  %v287_v30 = vrot.slane %v286_v22, 4  ;;  %v573_v31 = vrot.slane %v571_v23, 5  ;;  %v579_v32 = vrot.slane %v577_v24, 5  ;;  %v5515_v22 = vld [vmem:[%s7670_s1 + $0x148] sm:$0xff]  }
  0x22   : > { %3370 = vmatprep.mubr.bf16.mxu1 %v4571_v10  ;;  %v583_v33 = vrot.slane %v581_v25, 4  ;;  %v5815_v35 = vrot.slane %v708_v47, 4  ;;  %v297_v36 = vrot.slane %v296_v26, 4  ;;  %v4544_v42 = vcombine.low %v5771_v59, %v5781_v63  ;;  %v5517_v26 = vld [vmem:[%s7670_s1 + $0x108] sm:$0xff]  }
  0x23   : > { %v589_v37 = vrot.slane %v587_v28, 5  ;;  %v292_v39 = vsel %vm5741_vm2, %v287_v30, %v291_v17  ;;  %v574_v40 = vor.u32 %v573_v31, %v570_v27  ;;  %v4556_v46 = vcombine.low %v5800_v9, %v5803_v15  ;;  %v645_v27 = vld [vmem:[%s5699_s6 + $0x48] sm:$0xe] }
  0x24   : > { %4936 = vmatpush3.bf16.msra.mxu0 %v5497_v45  ;;  %5456 = vmatpush3.bf16.msra.mxu1 %v5497_v45  ;;  %v584_v41 = vor.u32 %v583_v33, %v579_v32  ;;  %v302_v45 = vsel %vm5741_vm2, %v297_v36, %v301_v19  ;;  %v304_v51 = vshrl.u32 %v5828_v44, 16  ;;  %v307_v52 = vshll.u32 %v5828_v44, 16  ;;  %v5516_v36 = vld [vmem:[%s7670_s1 + $0xa0] sm:$0xff]  }
  0x25   : > { %5033 = vmatprep.subr.bf16.mxu1 %v5500_v55  ;;  %5145 = vmatprep.subr.bf16.mxu0 %v5503_v58  ;;  %v4560_v53 = vcombine.low %v292_v39, %v302_v45  ;;  %v575_v54 = vrot.slane %v574_v40, 4  ;;  %v5847_v58 = vld [vmem:[%s5699_s6 + $0xa8] sm:$0xf]  ;;  %v601_v16 = vshll.u32 %v5852_v1, 16  ;;  %v605_v17 = vshrl.u32 %v5852_v1, 16 }
  0x26   : > { %v585_v55 = vrot.slane %v584_v41, 4  ;;  %v306_v59 = vrot.slane %v304_v51, 4  ;;  %v309_v60 = vrot.slane %v307_v52, 5  ;;  %v592_v7 = vshrl.u32 %v5847_v58, 16  ;;  %v5518_v39 = vld [vmem:[%s7670_s1 + $0xe8] sm:$0xff]  }
  0x27   : > { %3275 = vmatmul.mubr.bf16.vlgmr.msra.gmra.mrb[0].mxu0 %v4543_v57  ;;  %3371 = vmatmul.mubr.bf16.vlgmr.msra.gmra.mrb[0].mxu1 %v4555_v61  ;;  %v313_v57 = vshll.u32 %v5835_v48, 16  ;;  %v317_v61 = vshrl.u32 %v5835_v48, 16  ;;  %v580_v2 = vsel %vm5741_vm2, %v575_v54, %v579_v32  ;;  %v595_v15 = vshll.u32 %v5847_v58, 16  ;;  %v5895_v51 = vld [vmem:[%s5699_s6 + $0x28] sm:$0xf] }
  0x28   : > { %5034 = vmatpush3.bf16.msra.mxu1 %v5501_v62  ;;  %5146 = vmatpush3.bf16.msra.mxu0 %v5505_v5  ;;  %v323_v62 = vshll.u32 %v5838_v49, 16  ;;  %v590_v3 = vsel %vm5741_vm2, %v585_v55, %v589_v37  ;;  %v310_v9 = vor.u32 %v309_v60, %v306_v59  ;;  %v594_v14 = vrot.slane %v592_v7, 4  ;;  %v5901_v52 = vld [vmem:[%s5699_s6 + $0x2c] sm:$0x1]  ;;  %v5913_v60 = vld [vmem:[%s5699_s6 + $0xb4] sm:$0xf] }
  0x29   : > { %5035 = vmatprep.subr.bf16.mxu1 %v5502_v4  ;;  %3282 = vmatprep.mubr.bf16.mxu0 %v4560_v53  ;;  %v5511_v4 = vld [vmem:[%s7670_s1 + $0x98] sm:$0xff]   ;;  %v315_v5 = vrot.slane %v313_v57, 5  ;;  %v4572_v8 = vcombine.low %v580_v2, %v590_v3  ;;  %v319_v10 = vrot.slane %v317_v61, 4  ;;  %v597_v23 = vrot.slane %v595_v15, 5 }
  0x2a   : > { %v311_v18 = vrot.slane %v310_v9, 4  ;;  %v325_v20 = vrot.slane %v323_v62, 5  ;;  %v603_v24 = vrot.slane %v601_v16, 5  ;;  %v607_v25 = vrot.slane %v605_v17, 4  ;;  %5147 = vmatprep.subr.bf16.mxu0 %v5515_v22  ;;  %v5916_v61 = vld [vmem:[%s5699_s6 + $0xb8] sm:$0xf] }
  0x2b   : > { %3378 = vmatprep.mubr.bf16.mxu1 %v4572_v8  ;;  %v320_v19 = vor.u32 %v319_v10, %v315_v5  ;;  %v598_v31 = vor.u32 %v597_v23, %v594_v14  ;;  %v715_v40 = vrot.slane %v5781_v63, 5  ;;  %v4557_v45 = vcombine.low %v5847_v58, %v5852_v1  ;;  %v5523_v17 = vld [vmem:[%s7670_s1 + $0xb0] sm:$0xff]  }
  0x2c   : > { %5036 = vmatpush3.bf16.msra.mxu1 %v5504_v21  ;;  %v611_v21 = vshll.u32 %v250_v6, 16  ;;  %v316_v28 = vsel %vm5741_vm2, %v311_v18, %v315_v5  ;;  %v608_v32 = vor.u32 %v607_v25, %v603_v24  ;;  %5148 = vmatpush3.bf16.msra.mxu0 %v5517_v26  ;;  %v337_v55 = vshll.u32 %v5895_v51, 16  ;;  %v251_v5 = vld [vmem:[%s5699_s6 + $0xbc] sm:$0x1]  ;;  %v5522_v6 = vld [vmem:[%s7670_s1 + $0xf0] sm:$0xff]  }
  0x2d   : > { %5037 = vmatprep.subr.bf16.mxu1 %v5508_v38  ;;  %v321_v30 = vrot.slane %v320_v19, 4  ;;  %v4545_v38 = vcombine.low %v5828_v44, %v5835_v48  ;;  %v5519_v44 = vld [vmem:[%s7670_s1 + $0xa8] sm:$0xff]   ;;  %v347_v59 = vshll.u32 %v5901_v52, 16  ;;  %v718_v62 = vrot.slane %v5784_v0, 5 }
  0x2e   : > { %v613_v33 = vrot.slane %v611_v21, 5  ;;  %v616_v9 = vshrl.u32 %v5913_v60, 16  ;;  %v619_v10 = vshll.u32 %v5913_v60, 16  ;;  %v625_v14 = vshll.u32 %v5916_v61, 16  ;;  %v5524_v21 = vld [vmem:[%s7670_s1 + $0xf8] sm:$0xff]  }
  0x2f   : > { %3283 = vmatmul.mubr.bf16.gmra.mrb[4].mxu0 %v4544_v42  ;;  %3379 = vmatmul.mubr.bf16.gmra.mrb[4].mxu1 %v4556_v46  ;;  %v326_v37 = vsel %vm5741_vm2, %v321_v30, %v325_v20  ;;  %v599_v42 = vrot.slane %v598_v31, 4  ;;  %v5892_v46 = vld [vmem:[%s5699_s6 + $0x24] sm:$0xf]  ;;  %v349_v8 = vrot.slane %v347_v59, 5  ;;  %v629_v15 = vshrl.u32 %v5916_v61, 16  ;;  %v5525_v31 = vld [vmem:[%s7670_s1 + $0x150] sm:$0xff]  }
  0x30   : > { %5038 = vmatpush3.bf16.msra.mxu1 %v5509_v43  ;;  %v4561_v41 = vcombine.low %v316_v28, %v326_v37  ;;  %v609_v43 = vrot.slane %v608_v32, 4  ;;  %v328_v53 = vshrl.u32 %v5892_v46, 16  ;;  %v331_v54 = vshll.u32 %v5892_v46, 16  ;;  %5149 = vmatprep.subr.bf16.mxu0 %v5525_v31 }
  0x31   : > { %5039 = vmatprep.subr.bf16.mxu1 %v5510_v56  ;;  %v341_v56 = vshrl.u32 %v5895_v51, 16  ;;  %v604_v57 = vsel %vm5741_vm2, %v599_v42, %v603_v24  ;;  %v635_v16 = vshll.u32 %v251_v5, 16  ;;  %v618_v19 = vrot.slane %v616_v9, 4 }
  0x32   : > { %3290 = vmatprep.mubr.bf16.mxu0 %v4561_v41  ;;  %v614_v58 = vsel %vm5741_vm2, %v609_v43, %v613_v33  ;;  %v330_v2 = vrot.slane %v328_v53, 4  ;;  %v333_v3 = vrot.slane %v331_v54, 5  ;;  %v621_v20 = vrot.slane %v619_v10, 5 }
  0x33   : > { %v4573_v1 = vcombine.low %v604_v57, %v614_v58  ;;  %v343_v7 = vrot.slane %v341_v56, 4  ;;  %v627_v24 = vrot.slane %v625_v14, 5  ;;  %v631_v25 = vrot.slane %v629_v15, 4  ;;  %v5530_v56 = vld [vmem:[%s7670_s1 + $0x1c0] sm:$0xff]  }
  0x34   : > { %5040 = vmatpush3.bf16.msra.mxu1 %v5511_v4  ;;  %v339_v4 = vrot.slane %v337_v55, 5  ;;  %v637_v26 = vrot.slane %v635_v16, 5  ;;  %v622_v30 = vor.u32 %v621_v20, %v618_v19  ;;  %v5956_v41 = vsel %vm5935_vm5, %v5815_v35, %v711_v50  ;;  %v5972_v35 = vld [vmem:[%s5699_s6 + $0x38] sm:$0x1] }
  0x35   : > { %5041 = vmatprep.subr.bf16.mxu1 %v5514_v11  ;;  %3386 = vmatprep.mubr.bf16.mxu1 %v4573_v1  ;;  %v334_v11 = vor.u32 %v333_v3, %v330_v2  ;;  %v632_v33 = vor.u32 %v631_v25, %v627_v24  ;;  %v361_v55 = vshll.u32 %v5967_v13, 16  ;;  %v365_v58 = vshrl.u32 %v5967_v13, 16 }
  0x36   : > { %v344_v18 = vor.u32 %v343_v7, %v339_v4  ;;  %v623_v37 = vrot.slane %v622_v30, 4  ;;  %v371_v59 = vshll.u32 %v5972_v35, 16 }
  0x37   : > { %3291 = vmatmul.mubr.bf16.gmra.mrb[8].mxu0 %v4545_v38  ;;  %3387 = vmatmul.mubr.bf16.gmra.mrb[8].mxu1 %v4557_v45  ;;  %v335_v23 = vrot.slane %v334_v11, 4  ;;  %v4546_v38 = vcombine.low %v5892_v46, %v5895_v51  ;;  %v633_v43 = vrot.slane %v632_v33, 4  ;;  %v4558_v45 = vcombine.low %v5913_v60, %v5916_v61  ;;  %v5527_v46 = vld [vmem:[%s7670_s1 + $0x110] sm:$0xff]   ;;  %v4383_v60 = vld [vmem:[%s5699_s6 + $0xc] sm:$0xf] }
  0x38   : > { %5042 = vmatpush3.bf16.msra.mxu1 %v5516_v36  ;;  %v345_v28 = vrot.slane %v344_v18, 4  ;;  %v628_v50 = vsel %vm5741_vm2, %v623_v37, %v627_v24  ;;  %5150 = vmatpush3.bf16.msra.mxu0 %v5527_v46  ;;  %v5986_v61 = vld [vmem:[%s5699_s6 + $0x10] sm:$0xf]  ;;  %v363_v5 = vrot.slane %v361_v55, 5  ;;  %v367_v7 = vrot.slane %v365_v58, 4 }
  0x39   : > { %5043 = vmatprep.subr.bf16.mxu1 %v5518_v39  ;;  %v340_v32 = vsel %vm5741_vm2, %v335_v23, %v339_v4  ;;  %v5526_v39 = vld [vmem:[%s7670_s1 + $0xb8] sm:$0xff]   ;;  %v638_v57 = vsel %vm5741_vm2, %v633_v43, %v637_v26  ;;  %v871_v9 = vshrl.u32 %v4383_v60, 16  ;;  %v874_v10 = vshll.u32 %v4383_v60, 16  ;;  %v6009_v33 = vld [vmem:[%s5699_s6 + $0x40] sm:$0xf] }
  0x3a   : > { %v350_v36 = vsel %vm5741_vm2, %v345_v28, %v349_v8  ;;  %v4574_v2 = vcombine.low %v628_v50, %v638_v57  ;;  %v373_v8 = vrot.slane %v371_v59, 5  ;;  %v880_v14 = vshll.u32 %v5986_v61, 16  ;;  %v6000_v26 = vld [vmem:[%s5699_s6 + $0x3c] sm:$0xf]  ;;  %v4385_v43 = vld [vmem:[%s5699_s6 + $0x18] sm:$0xf] }
  0x3b   : > { %v4562_v42 = vcombine.low %v340_v32, %v350_v36  ;;  %v884_v15 = vshrl.u32 %v5986_v61, 16  ;;  %v4591_v16 = vcombine.low %v4383_v60, %v5986_v61  ;;  %v873_v18 = vrot.slane %v871_v9, 4  ;;  %v6012_v36 = vld [vmem:[%s5699_s6 + $0x44] sm:$0x1]  ;;  %v640_v55 = vld [vmem:[%s5699_s6 + $0xc] sm:$0xe] }
  0x3c   : > { %5044 = vmatpush3.bf16.msra.mxu1 %v5519_v44  ;;  %v5964_v44 = vld [vmem:[%s5699_s6 + $0x30] sm:$0xf]  ;;  %3394 = vmatprep.mubr.bf16.mxu1 %v4574_v2  ;;  %v876_v19 = vrot.slane %v874_v10, 5  ;;  %v5997_v24 = vrot.slane %v880_v14, 5  ;;  %v717_v28 = vrot.slane %v715_v40, 4  ;;  %v376_v37 = vshrl.u32 %v6000_v26, 16 }
  0x3d   : > { %5045 = vmatprep.subr.bf16.mxu1 %v5522_v6  ;;  %v352_v53 = vshrl.u32 %v5964_v44, 16  ;;  %v355_v54 = vshll.u32 %v5964_v44, 16  ;;  %3298 = vmatprep.mubr.bf16.mxu0 %v4562_v42  ;;  %v4547_v1 = vcombine.low %v5964_v44, %v5967_v13  ;;  %v639_v6 = vld [vmem:[%s5699_s6] sm:$0xe]  ;;  %v886_v25 = vrot.slane %v884_v15, 4  ;;  %v5538_v60 = vld [vmem:[%s7670_s1 + $0x1c8] sm:$0xff]  }
  0x3e   : > { %v4367_v20 = vrot.slane %v639_v6, 9  ;;  %v877_v31 = vor.u32 %v876_v19, %v873_v18  ;;  %v379_v12 = vshll.u32 %v6000_v26, 16  ;;  %v389_v59 = vshrl.u32 %v6009_v33, 16  ;;  %v5539_v10 = vld [vmem:[%s7670_s1 + $0x188] sm:$0xff]   ;;  %v5540_v18 = vld [vmem:[%s7670_s1 + $0x160] sm:$0xff]  }
  0x3f   : > { %3299 = vmatmul.mubr.bf16.gmra.mrb[12].mxu0 %v4546_v38  ;;  %v354_v3 = vrot.slane %v352_v53, 4  ;;  %v357_v4 = vrot.slane %v355_v54, 5  ;;  %3395 = vmatmul.mubr.bf16.gmra.mrb[12].mxu1 %v4558_v45  ;;  %v6022_v45 = vld [vmem:[%s5699_s6 + $0x1c] sm:$0xf]  ;;  %v5531_v53 = vld [vmem:[%s7670_s1 + $0x180] sm:$0xff]   ;;  %v378_v54 = vrot.slane %v376_v37, 4 }
  0x40   : > { %5046 = vmatpush3.bf16.msra.mxu1 %v5523_v17  ;;  %v368_v17 = vor.u32 %v367_v7, %v363_v5  ;;  %3435 = vmatprep.mubr.bf16.mxu1 %v4591_v16  ;;  %v709_v32 = vsel %vm5935_vm5, %v4367_v20, %v708_v47  ;;  %v5535_v47 = vld [vmem:[%s7670_s1 + $0x118] sm:$0xff]   ;;  %v6029_v50 = vrot.slane %v877_v31, 4  ;;  %v381_v58 = vrot.slane %v379_v12, 5 }
  0x41   : > { %5047 = vmatprep.subr.bf16.mxu1 %v5524_v21  ;;  %v358_v11 = vor.u32 %v357_v4, %v354_v3  ;;  %v5534_v21 = vld [vmem:[%s7670_s1 + $0x158] sm:$0xff]   ;;  %v4575_v42 = vcombine.low %v709_v32, %v5956_v41  ;;  %v385_v41 = vshll.u32 %v6009_v33, 16  ;;  %v395_v3 = vshll.u32 %v6012_v36, 16  ;;  %v4387_v32 = vld [vmem:[%s5699_s6 + $0x24] sm:$0xf] }
  0x42   : > { %v369_v30 = vrot.slane %v368_v17, 4  ;;  %5151 = vmatprep.subr.bf16.mxu0 %v5534_v21  ;;  %v895_v4 = vshrl.u32 %v4385_v43, 16  ;;  %v382_v6 = vor.u32 %v381_v58, %v378_v54  ;;  %v391_v7 = vrot.slane %v389_v59, 4  ;;  %v6058_v17 = vld [vmem:[%s5699_s6 + $0x48] sm:$0xf] }
  0x43   : > { %v359_v23 = vrot.slane %v358_v11, 4  ;;  %5152 = vmatpush3.bf16.msra.mxu0 %v5535_v47  ;;  %v387_v2 = vrot.slane %v385_v41, 5  ;;  %v4592_v9 = vcombine.low %v4385_v43, %v6022_v45  ;;  %v397_v11 = vrot.slane %v395_v3, 5  ;;  %v6068_v21 = vld [vmem:[%s5699_s6 + $0x4c] sm:$0xf] }
  0x44   : > { %5048 = vmatpush3.bf16.msra.mxu1 %v5526_v39  ;;  %v887_v39 = vor.u32 %v886_v25, %v5997_v24  ;;  %v374_v46 = vsel %vm5741_vm2, %v369_v30, %v373_v8  ;;  %v6051_v14 = vrot.slane %v895_v4, 4  ;;  %v4548_v16 = vcombine.low %v6000_v26, %v6009_v33  ;;  %5153 = vmatprep.subr.bf16.mxu0 %v5540_v18  ;;  %v6111_v18 = vld [vmem:[%s5699_s6 + $0x54] sm:$0xf] }
  0x45   : > { %5257 = vmatprep.subr.bf16.mxu1 %v5530_v56  ;;  %v364_v38 = vsel %vm5741_vm2, %v359_v23, %v363_v5  ;;  %v898_v5 = vshll.u32 %v4385_v43, 16  ;;  %v383_v44 = vrot.slane %v382_v6, 4  ;;  %v392_v19 = vor.u32 %v391_v7, %v387_v2  ;;  %v6071_v23 = vld [vmem:[%s5699_s6 + $0x50] sm:$0x1] }
  0x46   : > { %v4563_v56 = vcombine.low %v364_v38, %v374_v46  ;;  %v6036_v57 = vrot.slane %v887_v39, 4  ;;  %v719_v20 = vsel %vm5935_vm5, %v717_v28, %v718_v62  ;;  %v400_v25 = vshrl.u32 %v6058_v17, 16  ;;  %v6086_v38 = vld [vmem:[%s5699_s6 + $0x28] sm:$0xf]  ;;  %v641_v39 = vld [vmem:[%s5699_s6 + $0x18] sm:$0xe] }
  0x47   : > { %3436 = vmatmul.mubr.bf16.vlgmr.msra.gmra.mrb[16].mxu1 %v4575_v42  ;;  %v6053_v15 = vrot.slane %v898_v5, 5  ;;  %v403_v26 = vshll.u32 %v6058_v17, 16  ;;  %v409_v30 = vshll.u32 %v6068_v21, 16  ;;  %v413_v31 = vshrl.u32 %v6068_v21, 16  ;;  %v5541_v46 = vld [vmem:[%s7670_s1 + $0x120] sm:$0xff]   ;;  %v5547_v5 = vld [vmem:[%s7670_s1 + $0x1d0] sm:$0xff]  }
  0x48   : > { %3306 = vmatprep.mubr.bf16.mxu0 %v4563_v56  ;;  %5258 = vmatpush3.bf16.msra.mxu1 %v5531_v53  ;;  %v388_v0 = vsel %vm5741_vm2, %v383_v44, %v387_v2  ;;  %v393_v37 = vrot.slane %v392_v19, 4  ;;  %v419_v28 = vshll.u32 %v6071_v23, 16  ;;  %v402_v12 = vrot.slane %v400_v25, 4  ;;  %v4415_v19 = vld [vmem:[%s5699_s6 + $0x14] sm:$0x1] }
  0x49   : > { %3307 = vmatmul.mubr.bf16.gmra.mrb[16].mxu0 %v4547_v1  ;;  %3443 = vmatprep.mubr.bf16.mxu1 %v4592_v9  ;;  %v4368_v1 = vrot.slane %v640_v55, 9  ;;  %v405_v43 = vrot.slane %v403_v26, 5  ;;  %v411_v47 = vrot.slane %v409_v30, 5  ;;  %v415_v63 = vrot.slane %v413_v31, 4  ;;  %v4431_v44 = vld [vmem:[%s5699_s6 + $0xc] sm:$0xe] }
  0x4a   : > { %5259 = vmatprep.subr.bf16.mxu1 %v5538_v60  ;;  %v398_v53 = vsel %vm5741_vm2, %v393_v37, %v397_v11  ;;  %v421_v54 = vrot.slane %v419_v28, 5  ;;  %v919_v41 = vshrl.u32 %v4387_v32, 16  ;;  %v922_v58 = vshll.u32 %v4387_v32, 16  ;;  %5154 = vmatpush3.bf16.msra.mxu0 %v5541_v46 }
  0x4b   : > { %v716_v62 = vsel %vm5935_vm5, %v4368_v1, %v715_v40  ;;  %v5546_v40 = vld [vmem:[%s7670_s1 + $0x168] sm:$0xff]   ;;  %v4564_v55 = vcombine.low %v388_v0, %v398_v53  ;;  %v406_v56 = vor.u32 %v405_v43, %v402_v12  ;;  %v416_v60 = vor.u32 %v415_v63, %v411_v47  ;;  %v6143_v12 = vld [vmem:[%s5699_s6 + $0x34] sm:$0xf]  ;;  %v642_v63 = vld [vmem:[%s5699_s6 + $0x24] sm:$0xe] }
  0x4c   : > { %v4576_v42 = vcombine.low %v716_v62, %v719_v20  ;;  %5260 = vmatpush3.bf16.msra.mxu1 %v5539_v10  ;;  %v6098_v2 = vrot.slane %v919_v41, 4  ;;  %v4593_v3 = vcombine.low %v4387_v32, %v6086_v38  ;;  %v4549_v4 = vcombine.low %v6058_v17, %v6068_v21  ;;  %5155 = vmatprep.subr.bf16.mxu0 %v5546_v40  ;;  %v6127_v20 = vld [vmem:[%s5699_s6 + $0x5c] sm:$0x1]  ;;  %v5548_v0 = vld [vmem:[%s7670_s1 + $0x128] sm:$0xff]  }
  0x4d   : > { %3314 = vmatprep.mubr.bf16.mxu0 %v4564_v55  ;;  %v407_v6 = vrot.slane %v406_v56, 4  ;;  %v6106_v7 = vrot.slane %v922_v58, 5  ;;  %v4369_v9 = vrot.slane %v641_v39, 9  ;;  %v722_v10 = vrot.slane %v5835_v48, 5  ;;  %5261 = vmatprep.subr.bf16.mxu1 %v5547_v5  ;;  %v6151_v58 = vld [vmem:[%s5699_s6 + $0x60] sm:$0xf] }
  0x4e   : > { %v417_v11 = vrot.slane %v416_v60, 4  ;;  %v725_v17 = vrot.slane %v5838_v49, 5  ;;  %v6124_v49 = vld [vmem:[%s5699_s6 + $0x58] sm:$0xf]  ;;  %v424_v25 = vshrl.u32 %v6111_v18, 16  ;;  %v427_v30 = vshll.u32 %v6111_v18, 16  ;;  %5156 = vmatpush3.bf16.msra.mxu0 %v5548_v0 }
  0x4f   : > { %3444 = vmatmul.mubr.bf16.gmra.mrb[20].mxu1 %v4576_v42  ;;  %v412_v1 = vsel %vm5741_vm2, %v407_v6, %v411_v47  ;;  %v723_v48 = vsel %vm5935_vm5, %v4369_v9, %v722_v10  ;;  %v433_v31 = vshll.u32 %v6124_v49, 16  ;;  %v437_v32 = vshrl.u32 %v6124_v49, 16  ;;  %v4389_v42 = vld [vmem:[%s5699_s6 + $0x30] sm:$0xf]  ;;  %v6157_v9 = vld [vmem:[%s5699_s6 + $0x64] sm:$0xf] }
  0x50   : > { %3451 = vmatprep.mubr.bf16.mxu1 %v4593_v3  ;;  %v422_v26 = vsel %vm5741_vm2, %v417_v11, %v421_v54  ;;  %v426_v28 = vrot.slane %v424_v25, 4  ;;  %v443_v39 = vshll.u32 %v6127_v20, 16  ;;  %v429_v47 = vrot.slane %v427_v30, 5  ;;  %v5549_v54 = vld [vmem:[%s7670_s1 + $0x190] sm:$0xff]   ;;  %v4391_v30 = vld [vmem:[%s5699_s6 + $0x3c] sm:$0xf] }
  0x51   : > { %3315 = vmatmul.mubr.bf16.gmra.mrb[20].mxu0 %v4548_v16  ;;  %v724_v16 = vrot.slane %v722_v10, 4  ;;  %v4565_v37 = vcombine.low %v412_v1, %v422_v26  ;;  %v435_v46 = vrot.slane %v433_v31, 5  ;;  %v439_v53 = vrot.slane %v437_v32, 4  ;;  %5262 = vmatpush3.bf16.msra.mxu1 %v5549_v54  ;;  %v6171_v31 = vld [vmem:[%s5699_s6 + $0x40] sm:$0xf] }
  0x52   : > { %v445_v41 = vrot.slane %v443_v39, 5  ;;  %v943_v40 = vshrl.u32 %v4389_v42, 16  ;;  %v946_v55 = vshll.u32 %v4389_v42, 16  ;;  %v430_v60 = vor.u32 %v429_v47, %v426_v28  ;;  %v6284_v56 = vld [vmem:[%s5699_s6 + $0x84] sm:$0xf] }
  0x53   : > { %v726_v62 = vsel %vm5935_vm5, %v724_v16, %v725_v17  ;;  %3322 = vmatprep.mubr.bf16.mxu0 %v4565_v37  ;;  %v440_v3 = vor.u32 %v439_v53, %v435_v46  ;;  %v4594_v5 = vcombine.low %v4389_v42, %v6143_v12  ;;  %v4550_v6 = vcombine.low %v6111_v18, %v6124_v49  ;;  %v643_v42 = vld [vmem:[%s5699_s6 + $0x30] sm:$0xe] }
  0x54   : > { %v4577_v43 = vcombine.low %v723_v48, %v726_v62  ;;  %v6159_v10 = vrot.slane %v943_v40, 4  ;;  %v6161_v11 = vrot.slane %v946_v55, 5  ;;  %v4370_v17 = vrot.slane %v642_v63, 9  ;;  %v6165_v48 = vld [vmem:[%s5699_s6 + $0x68] sm:$0x1] }
  0x55   : > { %v729_v1 = vrot.slane %v5895_v51, 5  ;;  %v431_v16 = vrot.slane %v430_v60, 4  ;;  %v441_v25 = vrot.slane %v440_v3, 4  ;;  %v732_v18 = vrot.slane %v5901_v52, 5 }
  0x56   : > { %v448_v26 = vshrl.u32 %v6151_v58, 16  ;;  %v451_v51 = vshll.u32 %v6151_v58, 16  ;;  %v457_v37 = vshll.u32 %v6157_v9, 16  ;;  %v461_v39 = vshrl.u32 %v6157_v9, 16 }
  0x57   : > { %3452 = vmatmul.mubr.bf16.gmra.mrb[24].mxu1 %v4577_v43  ;;  %v730_v32 = vsel %vm5935_vm5, %v4370_v17, %v729_v1  ;;  %v731_v0 = vrot.slane %v729_v1, 4  ;;  %v436_v52 = vsel %vm5741_vm2, %v431_v16, %v435_v46  ;;  %v446_v62 = vsel %vm5741_vm2, %v441_v25, %v445_v41  ;;  %v5553_v41 = vld [vmem:[%s7670_s1 + $0x130] sm:$0xff]   ;;  %v6195_v1 = vld [vmem:[%s5699_s6 + $0x6c] sm:$0xf] }
  0x58   : > { %3459 = vmatprep.mubr.bf16.mxu1 %v4594_v5  ;;  %v450_v28 = vrot.slane %v448_v26, 4  ;;  %v4566_v43 = vcombine.low %v436_v52, %v446_v62  ;;  %v453_v53 = vrot.slane %v451_v51, 5  ;;  %v459_v63 = vrot.slane %v457_v37, 5 }
  0x59   : > { %3323 = vmatmul.mubr.bf16.gmra.mrb[24].mxu0 %v4549_v4  ;;  %v5552_v4 = vld [vmem:[%s7670_s1 + $0x170] sm:$0xff]   ;;  %v733_v47 = vsel %vm5935_vm5, %v731_v0, %v732_v18  ;;  %v463_v40 = vrot.slane %v461_v39, 4  ;;  %v467_v46 = vshll.u32 %v6165_v48, 16  ;;  %v967_v55 = vshrl.u32 %v4391_v30, 16  ;;  %v4393_v39 = vld [vmem:[%s5699_s6 + $0x48] sm:$0xf] }
  0x5a   : > { %5157 = vmatprep.subr.bf16.mxu0 %v5552_v4  ;;  %v4578_v54 = vcombine.low %v730_v32, %v733_v47  ;;  %3330 = vmatprep.mubr.bf16.mxu0 %v4566_v43  ;;  %v454_v60 = vor.u32 %v453_v53, %v450_v28  ;;  %v970_v3 = vshll.u32 %v4391_v30, 16  ;;  %v4595_v17 = vcombine.low %v4391_v30, %v6171_v31  ;;  %v6202_v32 = vld [vmem:[%s5699_s6 + $0x70] sm:$0xf]  ;;  %v6208_v4 = vld [vmem:[%s5699_s6 + $0x74] sm:$0x1] }
  0x5b   : > { %v464_v16 = vor.u32 %v463_v40, %v459_v63  ;;  %v469_v25 = vrot.slane %v467_v46, 5  ;;  %v6197_v18 = vrot.slane %v967_v55, 4  ;;  %v4551_v26 = vcombine.low %v6151_v58, %v6157_v9  ;;  %5158 = vmatpush3.bf16.msra.mxu0 %v5553_v41 }
  0x5c   : > { %v455_v0 = vrot.slane %v454_v60, 4  ;;  %v6204_v51 = vrot.slane %v970_v3, 5  ;;  %v4371_v37 = vrot.slane %v643_v42, 9  ;;  %v736_v30 = vrot.slane %v5967_v13, 5 }
  0x5d   : > { %v465_v52 = vrot.slane %v464_v16, 4  ;;  %v739_v62 = vrot.slane %v5972_v35, 5  ;;  %v472_v58 = vshrl.u32 %v6195_v1, 16  ;;  %v475_v28 = vshll.u32 %v6195_v1, 16 }
  0x5e   : > { %v460_v43 = vsel %vm5741_vm2, %v455_v0, %v459_v63  ;;  %v737_v42 = vsel %vm5935_vm5, %v4371_v37, %v736_v30  ;;  %v738_v47 = vrot.slane %v736_v30, 4  ;;  %v481_v13 = vshll.u32 %v6202_v32, 16  ;;  %v5556_v63 = vld [vmem:[%s7670_s1 + $0x1d8] sm:$0xff]  }
  0x5f   : > { %3460 = vmatmul.mubr.bf16.gmra.mrb[28].mxu1 %v4578_v54  ;;  %v470_v35 = vsel %vm5741_vm2, %v465_v52, %v469_v25  ;;  %v474_v53 = vrot.slane %v472_v58, 4  ;;  %v477_v54 = vrot.slane %v475_v28, 5  ;;  %v485_v40 = vshrl.u32 %v6202_v32, 16  ;;  %v644_v0 = vld [vmem:[%s5699_s6 + $0x3c] sm:$0xe]  ;;  %5263 = vmatprep.subr.bf16.mxu1 %v5556_v63 }
  0x60   : > { %3467 = vmatprep.mubr.bf16.mxu1 %v4595_v17  ;;  %v4567_v46 = vcombine.low %v460_v43, %v470_v35  ;;  %v740_v55 = vsel %vm5935_vm5, %v738_v47, %v739_v62  ;;  %v483_v41 = vrot.slane %v481_v13, 5  ;;  %v491_v60 = vshll.u32 %v6208_v4, 16  ;;  %v6235_v28 = vld [vmem:[%s5699_s6 + $0x78] sm:$0xf]  ;;  %v6245_v35 = vld [vmem:[%s5699_s6 + $0x7c] sm:$0xf] }
  0x61   : > { %3331 = vmatmul.mubr.bf16.gmra.mrb[28].mxu0 %v4550_v6  ;;  %v6220_v6 = vld [vmem:[%s5699_s6 + $0x4c] sm:$0xf]  ;;  %v4579_v3 = vcombine.low %v737_v42, %v740_v55  ;;  %v478_v17 = vor.u32 %v477_v54, %v474_v53  ;;  %v487_v16 = vrot.slane %v485_v40, 4  ;;  %v991_v25 = vshrl.u32 %v4393_v39, 16  ;;  %v5557_v62 = vld [vmem:[%s7670_s1 + $0x198] sm:$0xff]  }
  0x62   : > { %3338 = vmatprep.mubr.bf16.mxu0 %v4567_v46  ;;  %v493_v37 = vrot.slane %v491_v60, 5  ;;  %v994_v30 = vshll.u32 %v4393_v39, 16  ;;  %v4596_v58 = vcombine.low %v4393_v39, %v6220_v6  ;;  %v4552_v13 = vcombine.low %v6195_v1, %v6202_v32  ;;  %v6252_v63 = vld [vmem:[%s5699_s6 + $0x80] sm:$0x1]  ;;  %5264 = vmatpush3.bf16.msra.mxu1 %v5557_v62 }
  0x63   : > { %v479_v43 = vrot.slane %v478_v17, 4  ;;  %v488_v42 = vor.u32 %v487_v16, %v483_v41  ;;  %v6240_v47 = vrot.slane %v991_v25, 4  ;;  %v4372_v39 = vrot.slane %v644_v0, 9  ;;  %v6260_v17 = vld [vmem:[%s5699_s6 + $0x58] sm:$0xf] }
  0x64   : > { %v6247_v53 = vrot.slane %v994_v30, 5  ;;  %v743_v54 = vrot.slane %v6009_v33, 5  ;;  %v746_v40 = vrot.slane %v6012_v36, 5  ;;  %v496_v1 = vshrl.u32 %v6235_v28, 16  ;;  %v5560_v33 = vld [vmem:[%s7670_s1 + $0x178] sm:$0xff]  }
  0x65   : > { %v484_v46 = vsel %vm5741_vm2, %v479_v43, %v483_v41  ;;  %v489_v55 = vrot.slane %v488_v42, 4  ;;  %v499_v60 = vshll.u32 %v6235_v28, 16  ;;  %v505_v41 = vshll.u32 %v6245_v35, 16  ;;  %v5561_v25 = vld [vmem:[%s7670_s1 + $0x138] sm:$0xff]   ;;  %5159 = vmatprep.subr.bf16.mxu0 %v5560_v33  ;;  %v5563_v42 = vld [vmem:[%s7670_s1 + $0x1e0] sm:$0xff]  }
  0x66   : > { %v744_v36 = vsel %vm5935_vm5, %v4372_v39, %v743_v54  ;;  %v509_v16 = vshrl.u32 %v6245_v35, 16  ;;  %v498_v30 = vrot.slane %v496_v1, 4  ;;  %v515_v43 = vshll.u32 %v6252_v63, 16  ;;  %5160 = vmatpush3.bf16.msra.mxu0 %v5561_v25  ;;  %5265 = vmatprep.subr.bf16.mxu1 %v5563_v42  ;;  %v6294_v25 = vld [vmem:[%s5699_s6 + $0x8c] sm:$0x1] }
  0x67   : > { %3468 = vmatmul.mubr.bf16.gmra.mrb[32].mxu1 %v4579_v3  ;;  %v4395_v3 = vld [vmem:[%s5699_s6 + $0x54] sm:$0xf]  ;;  %v494_v0 = vsel %vm5741_vm2, %v489_v55, %v493_v37 }
  0x68   : > { %3475 = vmatprep.mubr.bf16.mxu1 %v4596_v58  ;;  %v501_v58 = vrot.slane %v499_v60, 5  ;;  %v4568_v39 = vcombine.low %v484_v46, %v494_v0  ;;  %v511_v52 = vrot.slane %v509_v16, 4  ;;  %v517_v1 = vrot.slane %v515_v43, 5  ;;  %v6335_v46 = vld [vmem:[%s5699_s6 + $0x6c] sm:$0xf] }
  0x69   : > { %3339 = vmatmul.mubr.bf16.gmra.mrb[32].mxu0 %v4551_v26  ;;  %v745_v26 = vrot.slane %v743_v54, 4  ;;  %v507_v54 = vrot.slane %v505_v41, 5  ;;  %v1015_v60 = vshrl.u32 %v4395_v3, 16  ;;  %v1018_v5 = vshll.u32 %v4395_v3, 16 }
  0x6a   : > { %v502_v55 = vor.u32 %v501_v58, %v498_v30  ;;  %3346 = vmatprep.mubr.bf16.mxu0 %v4568_v39  ;;  %v4597_v0 = vcombine.low %v4395_v3, %v6260_v17  ;;  %v4373_v16 = vrot.slane %v645_v27, 9  ;;  %v750_v58 = vrot.slane %v6068_v21, 5 }
  0x6b   : > { %v747_v62 = vsel %vm5935_vm5, %v745_v26, %v746_v40  ;;  %v512_v33 = vor.u32 %v511_v52, %v507_v54  ;;  %v6287_v40 = vld [vmem:[%s5699_s6 + $0x88] sm:$0xf]  ;;  %v6289_v41 = vrot.slane %v1015_v60, 4  ;;  %v5564_v52 = vld [vmem:[%s7670_s1 + $0x1a0] sm:$0xff]   ;;  %v6299_v30 = vrot.slane %v1018_v5, 5 }
  0x6c   : > { %v4580_v37 = vcombine.low %v744_v36, %v747_v62  ;;  %v503_v26 = vrot.slane %v502_v55, 4  ;;  %v4553_v36 = vcombine.low %v6235_v28, %v6245_v35  ;;  %v753_v43 = vrot.slane %v6071_v23, 5  ;;  %v4397_v62 = vld [vmem:[%s5699_s6 + $0x60] sm:$0xf]  ;;  %5266 = vmatpush3.bf16.msra.mxu1 %v5564_v52 }
  0x6d   : > { %v513_v3 = vrot.slane %v512_v33, 4  ;;  %v520_v27 = vshrl.u32 %v6284_v56, 16  ;;  %v523_v28 = vshll.u32 %v6284_v56, 16  ;;  %v529_v39 = vshll.u32 %v6287_v40, 16  ;;  %v6312_v5 = vld [vmem:[%s7670_s1 + $0x200] sm:$0xff]  }
  0x6e   : > { %v508_v42 = vsel %vm5741_vm2, %v503_v26, %v507_v54  ;;  %v751_v23 = vsel %vm5935_vm5, %v4373_v16, %v750_v58  ;;  %v533_v54 = vshrl.u32 %v6287_v40, 16  ;;  %5393 = vmatprep.subr.bf16.mxu0 %v6312_v5  ;;  %v539_v52 = vshll.u32 %v6294_v25, 16 }
  0x6f   : > { %3476 = vmatmul.mubr.bf16.gmra.mrb[36].mxu1 %v4580_v37  ;;  %v518_v21 = vsel %vm5741_vm2, %v513_v3, %v517_v1  ;;  %v522_v55 = vrot.slane %v520_v27, 4  ;;  %v525_v60 = vrot.slane %v523_v28, 5  ;;  %v531_v33 = vrot.slane %v529_v39, 5  ;;  %v5568_v1 = vld [vmem:[%s7670_s1 + $0x1e8] sm:$0xff]  }
  0x70   : > { %3483 = vmatprep.mubr.bf16.mxu1 %v4597_v0  ;;  %v4569_v37 = vcombine.low %v508_v42, %v518_v21  ;;  %v6320_v0 = vld [vmem:[%s5699_s6 + $0x64] sm:$0xf]  ;;  %v535_v16 = vrot.slane %v533_v54, 4  ;;  %v1039_v3 = vshrl.u32 %v4397_v62, 16  ;;  %v5569_v42 = vld [vmem:[%s7670_s1 + $0x1a8] sm:$0xff]   ;;  %v1042_v39 = vshll.u32 %v4397_v62, 16  ;;  %5267 = vmatprep.subr.bf16.mxu1 %v5568_v1 }
  0x71   : > { %3347 = vmatmul.mubr.bf16.gmra.mrb[36].mxu0 %v4552_v13  ;;  %v752_v13 = vrot.slane %v750_v58, 4  ;;  %v646_v58 = vld [vmem:[%s5699_s6 + $0x54] sm:$0xe]  ;;  %v526_v28 = vor.u32 %v525_v60, %v522_v55  ;;  %v541_v54 = vrot.slane %v539_v52, 5  ;;  %v4598_v8 = vcombine.low %v4397_v62, %v6320_v0  ;;  %5268 = vmatpush3.bf16.msra.mxu1 %v5569_v42 }
  0x72   : > { %3354 = vmatprep.mubr.bf16.mxu0 %v4569_v37  ;;  %v6340_v59 = vrot.slane %v1039_v3, 4  ;;  %v6345_v37 = vrot.slane %v1042_v39, 5  ;;  %v4554_v55 = vcombine.low %v6284_v56, %v6287_v40  ;;  %v4374_v60 = vrot.slane %v646_v58, 9  ;;  %v5573_v39 = vld [vmem:[%s7670_s1 + $0x1f0] sm:$0xff]  }
  0x73   : > { %v754_v26 = vsel %vm5935_vm5, %v752_v13, %v753_v43  ;;  %v6338_v43 = vld [vmem:[%s5699_s6 + $0x70] sm:$0xf]  ;;  %v536_v13 = vor.u32 %v535_v16, %v531_v33  ;;  %v757_v1 = vrot.slane %v6124_v49, 5  ;;  %v760_v16 = vrot.slane %v6127_v20, 5  ;;  %5269 = vmatprep.subr.bf16.mxu1 %v5573_v39 }
  0x74   : > { %v4581_v27 = vcombine.low %v751_v23, %v754_v26  ;;  %v527_v23 = vrot.slane %v526_v28, 4  ;;  %v647_v26 = vld [vmem:[%s5699_s6 + $0x60] sm:$0xe]  ;;  %v1063_v52 = vshrl.u32 %v6335_v46, 16  ;;  %v1066_v3 = vshll.u32 %v6335_v46, 16 }
  0x75   : > { %v537_v21 = vrot.slane %v536_v13, 4  ;;  %v1076_v56 = vshrl.u32 %v6338_v43, 16  ;;  %v4599_v58 = vcombine.low %v6335_v46, %v6338_v43  ;;  %v758_v20 = vsel %vm5935_vm5, %v4374_v60, %v757_v1  ;;  %v5574_v60 = vld [vmem:[%s7670_s1 + $0x1b0] sm:$0xff]  }
  0x76   : > { %v532_v62 = vsel %vm5741_vm2, %v527_v23, %v531_v33  ;;  %v759_v42 = vrot.slane %v757_v1, 4  ;;  %v890_v33 = vshll.u32 %v4415_v19, 16  ;;  %v4447_v28 = vrot.slane %v4431_v44, 9  ;;  %v6374_v23 = vld [vmem:[%s5699_s6 + $0x78] sm:$0xf]  ;;  %5270 = vmatpush3.bf16.msra.mxu1 %v5574_v60 }
  0x77   : > { %3484 = vmatmul.mubr.bf16.gmra.mrb[40].mxu1 %v4581_v27  ;;  %v542_v49 = vsel %vm5741_vm2, %v537_v21, %v541_v54  ;;  %v1320_v21 = vrot.slane %v5986_v61, 5  ;;  %v1323_v13 = vrot.slane %v4415_v19, 5  ;;  %v4375_v54 = vrot.slane %v647_v26, 9 }
  0x78   : > { %3491 = vmatprep.mubr.bf16.mxu1 %v4598_v8  ;;  %v4570_v27 = vcombine.low %v532_v62, %v542_v49  ;;  %v6365_v8 = vrot.slane %v1066_v3, 5  ;;  %v761_v46 = vsel %vm5935_vm5, %v759_v42, %v760_v16  ;;  %v892_v1 = vrot.slane %v890_v33, 5  ;;  %v6382_v62 = vld [vmem:[%s5699_s6 + $0x7c] sm:$0xf]  ;;  %v4432_v49 = vld [vmem:[%s5699_s6 + $0x18] sm:$0xe] }
  0x79   : > { %3355 = vmatmul.mubr.bf16.gmra.mrb[40].mxu0 %v4553_v36  ;;  %v6363_v36 = vrot.slane %v1063_v52, 4  ;;  %v4582_v44 = vcombine.low %v758_v20, %v761_v46  ;;  %v764_v52 = vrot.slane %v6157_v9, 5  ;;  %v767_v16 = vrot.slane %v6165_v48, 5  ;;  %v5578_v9 = vld [vmem:[%s7670_s1 + $0x1f8] sm:$0xff]   ;;  %v4416_v33 = vld [vmem:[%s5699_s6 + $0x20] sm:$0x1] }
  0x7a   : > { %3362 = vmatprep.mubr.bf16.mxu0 %v4570_v27  ;;  %v1321_v61 = vsel %vm5935_vm5, %v4447_v28, %v1320_v21  ;;  %v1322_v19 = vrot.slane %v1320_v21, 4  ;;  %v1087_v26 = vshrl.u32 %v6374_v23, 16  ;;  %v1090_v3 = vshll.u32 %v6374_v23, 16  ;;  %v648_v28 = vld [vmem:[%s5699_s6 + $0x6c] sm:$0xe]  ;;  %5271 = vmatprep.subr.bf16.mxu1 %v5578_v9 }
  0x7b   : > { %v765_v48 = vsel %vm5935_vm5, %v4375_v54, %v764_v52  ;;  %v766_v20 = vrot.slane %v764_v52, 4  ;;  %v893_v42 = vsel %vm5741_vm2, %v6036_v57, %v892_v1  ;;  %v1100_v27 = vshrl.u32 %v6382_v62, 16 }
  0x7c   : > { %v1324_v39 = vsel %vm5935_vm5, %v1322_v19, %v1323_v13  ;;  %v7676_v46 = vsel %vm5741_vm2, %v6029_v50, %v5997_v24  ;;  %v6407_v54 = vrot.slane %v1087_v26, 4  ;;  %v6409_v60 = vrot.slane %v1090_v3, 5  ;;  %v5579_v24 = vld [vmem:[%s7670_s1 + $0x1b8] sm:$0xff]   ;;  %v6420_v19 = vld [vmem:[%s5699_s6 + $0x84] sm:$0xf] }
  0x7d   : > { %v4607_v21 = vcombine.low %v7676_v46, %v893_v42  ;;  %v4623_v57 = vcombine.low %v1321_v61, %v1324_v39  ;;  %v4600_v13 = vcombine.low %v6374_v23, %v6382_v62  ;;  %v4448_v1 = vrot.slane %v4432_v49, 9  ;;  %v6429_v49 = vld [vmem:[%s5699_s6 + $0x88] sm:$0xf]  ;;  %5272 = vmatpush3.bf16.msra.mxu1 %v5579_v24 }
  0x7e   : > { %v1327_v52 = vrot.slane %v6022_v45, 5  ;;  %v774_v61 = vrot.slane %v6208_v4, 5  ;;  %v7677_v23 = vor.u32 %v6053_v15, %v6051_v14  ;;  %v904_v3 = vshll.u32 %v6022_v45, 16  ;;  %v4433_v4 = vld [vmem:[%s5699_s6 + $0x24] sm:$0xe] }
  0x7f   : > { %3492 = vmatmul.mubr.bf16.gmra.mrb[44].mxu1 %v4582_v44  ;;  %v768_v44 = vsel %vm5935_vm5, %v766_v20, %v767_v16  ;;  %v771_v16 = vrot.slane %v6202_v32, 5  ;;  %v7678_v20 = vshrl.u32 %v6022_v45, 16  ;;  %v914_v32 = vshll.u32 %v4416_v33, 16 }
  0x80   : > { %3499 = vmatprep.mubr.bf16.mxu1 %v4599_v58  ;;  %v4583_v50 = vcombine.low %v765_v48, %v768_v44  ;;  %v4376_v58 = vrot.slane %v648_v28, 9  ;;  %v902_v26 = vrot.slane %v7677_v23, 4  ;;  %v1328_v9 = vsel %vm5935_vm5, %v4448_v1, %v1327_v52  ;;  %v4417_v28 = vld [vmem:[%s5699_s6 + $0x2c] sm:$0x1] }
  0x81   : > { %3363 = vmatmul.mubr.bf16.gmra.mrb[44].mxu0 %v4554_v55  ;;  %v1330_v55 = vrot.slane %v4416_v33, 5  ;;  %v1329_v48 = vrot.slane %v1327_v52, 4  ;;  %v910_v42 = vrot.slane %v7678_v20, 4  ;;  %v773_v15 = vrot.slane %v771_v16, 4  ;;  %v5570_v23 = vld [vmem:[%s7670_s1 + $0x208] sm:$0xff]  }
  0x82   : > { %3596 = vmatprep.mubr.bf16.mxu0 %v4623_v57  ;;  %v772_v14 = vsel %vm5935_vm5, %v4376_v58, %v771_v16  ;;  %v906_v39 = vrot.slane %v904_v3, 5  ;;  %v1111_v46 = vshrl.u32 %v6420_v19, 16  ;;  %v916_v44 = vrot.slane %v914_v32, 5  ;;  %v649_v16 = vld [vmem:[%s5699_s6 + $0x78] sm:$0xe] }
  0x83   : > { %v1331_v57 = vsel %vm5935_vm5, %v1329_v48, %v1330_v55  ;;  %v1114_v1 = vshll.u32 %v6420_v19, 16  ;;  %v1124_v45 = vshrl.u32 %v6429_v49, 16  ;;  %v775_v33 = vsel %vm5935_vm5, %v773_v15, %v774_v61  ;;  %v6473_v15 = vld [vmem:[%s5699_s6 + $0x90] sm:$0xf] }
  0x84   : > { %v4624_v24 = vcombine.low %v1328_v9, %v1331_v57  ;;  %v907_v52 = vsel %vm5741_vm2, %v902_v26, %v906_v39  ;;  %v911_v58 = vor.u32 %v910_v42, %v906_v39  ;;  %v4584_v55 = vcombine.low %v772_v14, %v775_v33  ;;  %v4418_v57 = vld [vmem:[%s5699_s6 + $0x38] sm:$0x1] }
  0x85   : > { %v6452_v3 = vrot.slane %v1111_v46, 4  ;;  %v6454_v48 = vrot.slane %v1114_v1, 5  ;;  %v4601_v9 = vcombine.low %v6420_v19, %v6429_v49  ;;  %v4449_v26 = vrot.slane %v4433_v4, 9 }
  0x86   : > { %v912_v61 = vrot.slane %v911_v58, 4  ;;  %v1334_v20 = vrot.slane %v6086_v38, 5  ;;  %v1337_v42 = vrot.slane %v4417_v28, 5  ;;  %v778_v32 = vrot.slane %v6245_v35, 5 }
  0x87   : > { %3500 = vmatmul.mubr.bf16.gmra.mrb[48].mxu1 %v4583_v50  ;;  %v4377_v50 = vrot.slane %v649_v16, 9  ;;  %v781_v14 = vrot.slane %v6252_v63, 5  ;;  %v928_v35 = vshll.u32 %v6086_v38, 16  ;;  %v6476_v63 = vld [vmem:[%s5699_s6 + $0x94] sm:$0xf]  ;;  %v7679_v33 = vshrl.u32 %v6086_v38, 16 }
  0x88   : > { %3507 = vmatprep.mubr.bf16.mxu1 %v4600_v13  ;;  %v5575_v13 = vld [vmem:[%s7670_s1 + $0x210] sm:$0xff]   ;;  %v917_v19 = vsel %vm5741_vm2, %v912_v61, %v916_v44  ;;  %v1336_v4 = vrot.slane %v1334_v20, 4  ;;  %v780_v39 = vrot.slane %v778_v32, 4  ;;  %v938_v16 = vshll.u32 %v4417_v28, 16  ;;  %v650_v61 = vld [vmem:[%s5699_s6 + $0x84] sm:$0xe] }
  0x89   : > { %3597 = vmatmul.mubr.bf16.vlgmr.msra.gmra.mrb[48].mxu0 %v4607_v21  ;;  %v925_v21 = vor.u32 %v6106_v7, %v6098_v2  ;;  %v4608_v2 = vcombine.low %v907_v52, %v917_v19  ;;  %v6480_v7 = vsel %vm5935_vm5, %v4377_v50, %v778_v32  ;;  %v4434_v44 = vld [vmem:[%s5699_s6 + $0x30] sm:$0xe]  ;;  %v934_v58 = vrot.slane %v7679_v33, 4  ;;  %v5580_v38 = vld [vmem:[%s7670_s1 + $0x218] sm:$0xff]  }
  0x8a   : > { %5394 = vmatpush3.bf16.msra.mxu0 %v6312_v5  ;;  %3604 = vmatprep.mubr.bf16.mxu0 %v4624_v24  ;;  %v1335_v5 = vsel %vm5935_vm5, %v4449_v26, %v1334_v20  ;;  %v1338_v1 = vsel %vm5935_vm5, %v1336_v4, %v1337_v42  ;;  %v930_v24 = vrot.slane %v928_v35, 5  ;;  %v782_v52 = vsel %vm5935_vm5, %v780_v39, %v781_v14  ;;  %v6524_v33 = vld [vmem:[%s5699_s6 + $0x9c] sm:$0xf] }
  0x8b   : > { %5395 = vmatprep.subr.bf16.mxu0 %v5570_v23  ;;  %v926_v46 = vrot.slane %v925_v21, 4  ;;  %v4625_v26 = vcombine.low %v1335_v5, %v1338_v1  ;;  %v1135_v20 = vshrl.u32 %v6473_v15, 16  ;;  %v1138_v50 = vshll.u32 %v6473_v15, 16 }
  0x8c   : > { %v4585_v32 = vcombine.low %v6480_v7, %v782_v52  ;;  %v935_v21 = vor.u32 %v934_v58, %v930_v24  ;;  %v940_v19 = vrot.slane %v938_v16, 5  ;;  %v1148_v14 = vshrl.u32 %v6476_v63, 16  ;;  %v6527_v58 = vld [vmem:[%s5699_s6 + $0xa0] sm:$0xf] }
  0x8d   : > { %v931_v42 = vsel %vm5741_vm2, %v926_v46, %v930_v24  ;;  %v6499_v28 = vrot.slane %v1135_v20, 4  ;;  %v4602_v5 = vcombine.low %v6473_v15, %v6476_v63  ;;  %v4450_v35 = vrot.slane %v4434_v44, 9 }
  0x8e   : > { %5396 = vmatpush3.bf16.msra.mxu0 %v5570_v23  ;;  %v6501_v23 = vrot.slane %v1138_v50, 5  ;;  %v936_v4 = vrot.slane %v935_v21, 4  ;;  %v1341_v7 = vrot.slane %v6143_v12, 5  ;;  %v1344_v39 = vrot.slane %v4418_v57, 5  ;;  %v4419_v50 = vld [vmem:[%s5699_s6 + $0x44] sm:$0x1] }
  0x8f   : > { %5397 = vmatprep.subr.bf16.mxu0 %v5575_v13  ;;  %3508 = vmatmul.mubr.bf16.gmra.mrb[52].mxu1 %v4584_v55  ;;  %v4378_v46 = vrot.slane %v650_v61, 9  ;;  %v785_v55 = vrot.slane %v6287_v40, 5  ;;  %v788_v1 = vrot.slane %v6294_v25, 5  ;;  %v949_v24 = vor.u32 %v6161_v11, %v6159_v10  ;;  %v5583_v40 = vld [vmem:[%s7670_s1 + $0x220] sm:$0xff]  }
  0x90   : > { %3515 = vmatprep.mubr.bf16.mxu1 %v4601_v9  ;;  %v941_v9 = vsel %vm5741_vm2, %v936_v4, %v940_v19  ;;  %v1342_v15 = vsel %vm5935_vm5, %v4450_v35, %v1341_v7  ;;  %v952_v44 = vshll.u32 %v6143_v12, 16  ;;  %v962_v20 = vshll.u32 %v4418_v57, 16  ;;  %v4435_v35 = vld [vmem:[%s5699_s6 + $0x3c] sm:$0xe]  ;;  %v5586_v57 = vld [vmem:[%s7670_s1 + $0x228] sm:$0xff]  }
  0x91   : > { %3605 = vmatmul.mubr.bf16.gmra.mrb[52].mxu0 %v4608_v2  ;;  %v1343_v2 = vrot.slane %v1341_v7, 4  ;;  %v4609_v25 = vcombine.low %v931_v42, %v941_v9  ;;  %v6521_v10 = vsel %vm5935_vm5, %v4378_v46, %v785_v55  ;;  %v787_v11 = vrot.slane %v785_v55, 4  ;;  %v651_v7 = vld [vmem:[%s5699_s6 + $0x90] sm:$0xe] }
  0x92   : > { %3612 = vmatprep.mubr.bf16.mxu0 %v4625_v26  ;;  %5398 = vmatpush3.bf16.msra.mxu0 %v5575_v13  ;;  %v950_v13 = vrot.slane %v949_v24, 4  ;;  %v954_v61 = vrot.slane %v952_v44, 5  ;;  %v7680_v26 = vshrl.u32 %v6143_v12, 16  ;;  %v1159_v19 = vshrl.u32 %v6524_v33, 16 }
  0x93   : > { %5399 = vmatprep.subr.bf16.mxu0 %v5580_v38  ;;  %v1345_v16 = vsel %vm5935_vm5, %v1343_v2, %v1344_v39  ;;  %v789_v21 = vsel %vm5935_vm5, %v787_v11, %v788_v1  ;;  %v1162_v4 = vshll.u32 %v6524_v33, 16  ;;  %v964_v55 = vrot.slane %v962_v20, 5  ;;  %v5589_v20 = vld [vmem:[%s7670_s1 + $0x230] sm:$0xff]  }
  0x94   : > { %v958_v52 = vrot.slane %v7680_v26, 4  ;;  %v4626_v42 = vcombine.low %v1342_v15, %v1345_v16  ;;  %v4586_v46 = vcombine.low %v6521_v10, %v789_v21  ;;  %v955_v39 = vsel %vm5741_vm2, %v950_v13, %v954_v61  ;;  %v6572_v21 = vld [vmem:[%s5699_s6 + $0xa8] sm:$0xf] }
  0x95   : > { %v6546_v1 = vrot.slane %v1159_v19, 4  ;;  %v6548_v24 = vrot.slane %v1162_v4, 5  ;;  %v4603_v9 = vcombine.low %v6524_v33, %v6527_v58  ;;  %v4451_v2 = vrot.slane %v4435_v35, 9  ;;  %v6575_v19 = vld [vmem:[%s5699_s6 + $0xac] sm:$0xf] }
  0x96   : > { %5400 = vmatpush3.bf16.msra.mxu0 %v5580_v38  ;;  %v959_v12 = vor.u32 %v958_v52, %v954_v61  ;;  %v1172_v38 = vshrl.u32 %v6527_v58, 16  ;;  %v1348_v44 = vrot.slane %v6171_v31, 5  ;;  %v1351_v10 = vrot.slane %v4419_v50, 5 }
  0x97   : > { %5401 = vmatprep.subr.bf16.mxu0 %v5583_v40  ;;  %3516 = vmatmul.mubr.bf16.gmra.mrb[56].mxu1 %v4585_v32  ;;  %v4379_v11 = vrot.slane %v651_v7, 9  ;;  %v5602_v32 = vld [vmem:[%s5699_s6 + $0x94] sm:$0xf]  ;;  %v973_v16 = vor.u32 %v6204_v51, %v6197_v18  ;;  %v976_v61 = vshll.u32 %v6171_v31, 16  ;;  %v7681_v26 = vshrl.u32 %v6171_v31, 16 }
  0x98   : > { %3523 = vmatprep.mubr.bf16.mxu1 %v4602_v5  ;;  %v960_v15 = vrot.slane %v959_v12, 4  ;;  %v792_v13 = vrot.slane %v5602_v32, 5  ;;  %v1350_v33 = vrot.slane %v1348_v44, 4  ;;  %v986_v35 = vshll.u32 %v4419_v50, 16  ;;  %v4436_v12 = vld [vmem:[%s5699_s6 + $0x48] sm:$0xe] }
  0x99   : > { %3613 = vmatmul.mubr.bf16.gmra.mrb[56].mxu0 %v4609_v25  ;;  %v1349_v25 = vsel %vm5935_vm5, %v4451_v2, %v1348_v44  ;;  %v982_v52 = vrot.slane %v7681_v26, 4  ;;  %v978_v4 = vrot.slane %v976_v61, 5  ;;  %v1183_v7 = vshrl.u32 %v6572_v21, 16  ;;  %v652_v32 = vld [vmem:[%s5699_s6 + $0x9c] sm:$0xe] }
  0x9a   : > { %3620 = vmatprep.mubr.bf16.mxu0 %v4626_v42  ;;  %5402 = vmatpush3.bf16.msra.mxu0 %v5583_v40  ;;  %v965_v5 = vsel %vm5741_vm2, %v960_v15, %v964_v55  ;;  %v6569_v51 = vsel %vm5935_vm5, %v4379_v11, %v792_v13  ;;  %v794_v40 = vrot.slane %v792_v13, 4  ;;  %v974_v42 = vrot.slane %v973_v16, 4  ;;  %v4420_v11 = vld [vmem:[%s5699_s6 + $0x50] sm:$0x1] }
  0x9b   : > { %5403 = vmatprep.subr.bf16.mxu0 %v5586_v57  ;;  %v4610_v18 = vcombine.low %v955_v39, %v965_v5  ;;  %v1352_v31 = vsel %vm5935_vm5, %v1350_v33, %v1351_v10  ;;  %v7682_v55 = vrot.slane %v5735_v29, 5  ;;  %v1186_v2 = vshll.u32 %v6572_v21, 16  ;;  %v5592_v29 = vld [vmem:[%s7670_s1 + $0x238] sm:$0xff]  }
  0x9c   : > { %v4627_v39 = vcombine.low %v1349_v25, %v1352_v31  ;;  %v1196_v44 = vshrl.u32 %v6575_v19, 16  ;;  %v979_v50 = vsel %vm5741_vm2, %v974_v42, %v978_v4  ;;  %v983_v13 = vor.u32 %v982_v52, %v978_v4 }
  0x9d   : > { %v796_v15 = vsel %vm5935_vm5, %v794_v40, %v7682_v55  ;;  %v988_v16 = vrot.slane %v986_v35, 5  ;;  %v6595_v61 = vrot.slane %v1183_v7, 4  ;;  %v6597_v5 = vrot.slane %v1186_v2, 5  ;;  %v5603_v40 = vld [vmem:[%s5699_s6 + $0xa0] sm:$0xf] }
  0x9e   : > { %5404 = vmatpush3.bf16.msra.mxu0 %v5586_v57  ;;  %v4587_v10 = vcombine.low %v6569_v51, %v796_v15  ;;  %v4604_v57 = vcombine.low %v6572_v21, %v6575_v19  ;;  %v4452_v25 = vrot.slane %v4436_v12, 9  ;;  %v984_v33 = vrot.slane %v983_v13, 4  ;;  %v6618_v55 = vld [vmem:[%s5699_s6 + $0xb4] sm:$0xf]  ;;  %v6621_v15 = vld [vmem:[%s5699_s6 + $0xb8] sm:$0xf] }
  0x9f   : > { %5405 = vmatprep.subr.bf16.mxu0 %v5589_v20  ;;  %3524 = vmatmul.mubr.bf16.gmra.mrb[60].mxu1 %v4586_v46  ;;  %v1355_v26 = vrot.slane %v6220_v6, 5  ;;  %v1358_v52 = vrot.slane %v4420_v11, 5  ;;  %v4380_v51 = vrot.slane %v652_v32, 9  ;;  %v799_v42 = vrot.slane %v5603_v40, 5  ;;  %v5604_v46 = vld [vmem:[%s5699_s6 + $0xa4] sm:$0x1] }
  0xa0   : > { %3531 = vmatprep.mubr.bf16.mxu1 %v4603_v9  ;;  %v802_v31 = vrot.slane %v5604_v46, 5  ;;  %v997_v4 = vor.u32 %v6247_v53, %v6240_v47  ;;  %v1000_v21 = vshll.u32 %v6220_v6, 16  ;;  %v989_v9 = vsel %vm5741_vm2, %v984_v33, %v988_v16  ;;  %v4437_v16 = vld [vmem:[%s5699_s6 + $0x54] sm:$0xe]  ;;  %v653_v40 = vld [vmem:[%s5699_s6 + $0xa8] sm:$0xe] }
  0xa1   : > { %3621 = vmatmul.mubr.bf16.gmra.mrb[60].mxu0 %v4610_v18  ;;  %v1356_v18 = vsel %vm5935_vm5, %v4452_v25, %v1355_v26  ;;  %v1357_v35 = vrot.slane %v1355_v26, 4  ;;  %v7683_v7 = vshrl.u32 %v6220_v6, 16  ;;  %v6615_v47 = vsel %vm5935_vm5, %v4380_v51, %v799_v42  ;;  %v4421_v51 = vld [vmem:[%s5699_s6 + $0x5c] sm:$0x1] }
  0xa2   : > { %3628 = vmatprep.mubr.bf16.mxu0 %v4627_v39  ;;  %5406 = vmatpush3.bf16.msra.mxu0 %v5589_v20  ;;  %v4611_v39 = vcombine.low %v979_v50, %v989_v9  ;;  %v801_v53 = vrot.slane %v799_v42, 4  ;;  %v998_v20 = vrot.slane %v997_v4, 4  ;;  %v1002_v32 = vrot.slane %v1000_v21, 5 }
  0xa3   : > { %v1006_v12 = vrot.slane %v7683_v7, 4  ;;  %5407 = vmatprep.subr.bf16.mxu0 %v5592_v29  ;;  %v1359_v2 = vsel %vm5935_vm5, %v1357_v35, %v1358_v52  ;;  %v1010_v6 = vshll.u32 %v4420_v11, 16  ;;  %v1207_v13 = vshrl.u32 %v6618_v55, 16 }
  0xa4   : > { %v4628_v50 = vcombine.low %v1356_v18, %v1359_v2  ;;  %v803_v25 = vsel %vm5935_vm5, %v801_v53, %v802_v31  ;;  %v1210_v33 = vshll.u32 %v6618_v55, 16  ;;  %v1220_v26 = vshrl.u32 %v6621_v15, 16 }
  0xa5   : > { %v4588_v42 = vcombine.low %v6615_v47, %v803_v25  ;;  %v1003_v11 = vsel %vm5741_vm2, %v998_v20, %v1002_v32  ;;  %v1007_v52 = vor.u32 %v1006_v12, %v1002_v32  ;;  %v1012_v46 = vrot.slane %v1010_v6, 5  ;;  %v5605_v12 = vld [vmem:[%s5699_s6 + $0xac] sm:$0xf]  ;;  %v5606_v47 = vld [vmem:[%s5699_s6 + $0xb0] sm:$0x1] }
  0xa6   : > { %5408 = vmatpush3.bf16.msra.mxu0 %v5592_v29  ;;  %v6636_v4 = vrot.slane %v1207_v13, 4  ;;  %v6638_v31 = vrot.slane %v1210_v33, 5  ;;  %v4605_v21 = vcombine.low %v6618_v55, %v6621_v15  ;;  %v4453_v9 = vrot.slane %v4437_v16, 9  ;;  %v6662_v25 = vld [vmem:[%s5699_s6 + $0xc4] sm:$0xf] }
  0xa7   : > { %3532 = vmatmul.mubr.bf16.gmra.mrb[64].mxu1 %v4587_v10  ;;  %v1008_v29 = vrot.slane %v1007_v52, 4  ;;  %v1362_v18 = vrot.slane %v6260_v17, 5  ;;  %v1365_v35 = vrot.slane %v4421_v51, 5  ;;  %v4381_v7 = vrot.slane %v653_v40, 9 }
  0xa8   : > { %3539 = vmatprep.mubr.bf16.mxu1 %v4604_v57  ;;  %v806_v10 = vrot.slane %v5605_v12, 5  ;;  %v809_v53 = vrot.slane %v5606_v47, 5  ;;  %v1021_v20 = vor.u32 %v6299_v30, %v6289_v41  ;;  %v1024_v55 = vshll.u32 %v6260_v17, 16  ;;  %v654_v12 = vld [vmem:[%s5699_s6 + $0xb4] sm:$0xe] }
  0xa9   : > { %3629 = vmatmul.mubr.bf16.gmra.mrb[64].mxu0 %v4611_v39  ;;  %v1013_v57 = vsel %vm5741_vm2, %v1008_v29, %v1012_v46  ;;  %v1363_v39 = vsel %vm5935_vm5, %v4453_v9, %v1362_v18  ;;  %v1364_v2 = vrot.slane %v1362_v18, 4  ;;  %v7684_v32 = vshrl.u32 %v6260_v17, 16  ;;  %v4438_v46 = vld [vmem:[%s5699_s6 + $0x60] sm:$0xe] }
  0xaa   : > { %3636 = vmatprep.mubr.bf16.mxu0 %v4628_v50  ;;  %v4612_v13 = vcombine.low %v1003_v11, %v1013_v57  ;;  %v6656_v16 = vsel %vm5935_vm5, %v4381_v7, %v806_v10  ;;  %v808_v41 = vrot.slane %v806_v10, 4  ;;  %v1022_v30 = vrot.slane %v1021_v20, 4  ;;  %v6659_v50 = vld [vmem:[%s5699_s6 + $0xc0] sm:$0xf]  ;;  %v4422_v7 = vld [vmem:[%s5699_s6 + $0x68] sm:$0x1] }
  0xab   : > { %v1030_v6 = vrot.slane %v7684_v32, 4  ;;  %v1366_v33 = vsel %vm5935_vm5, %v1364_v2, %v1365_v35  ;;  %v1026_v40 = vrot.slane %v1024_v55, 5  ;;  %v1034_v52 = vshll.u32 %v4421_v51, 16 }
  0xac   : > { %v1231_v17 = vshrl.u32 %v6659_v50, 16  ;;  %v4629_v11 = vcombine.low %v1363_v39, %v1366_v33  ;;  %v810_v9 = vsel %vm5935_vm5, %v808_v41, %v809_v53  ;;  %v1234_v29 = vshll.u32 %v6659_v50, 16  ;;  %v5607_v41 = vld [vmem:[%s5699_s6 + $0xb8] sm:$0xf] }
  0xad   : > { %v1244_v18 = vshrl.u32 %v6662_v25, 16  ;;  %v4589_v10 = vcombine.low %v6656_v16, %v810_v9  ;;  %v1027_v35 = vsel %vm5741_vm2, %v1022_v30, %v1026_v40  ;;  %v1031_v51 = vor.u32 %v1030_v6, %v1026_v40  ;;  %v4439_v6 = vld [vmem:[%s5699_s6 + $0x6c] sm:$0xe]  ;;  %v5608_v30 = vld [vmem:[%s5699_s6 + $0xbc] sm:$0x1] }
  0xae   : > { %v1036_v47 = vrot.slane %v1034_v52, 5  ;;  %v6677_v20 = vrot.slane %v1231_v17, 4  ;;  %v6679_v53 = vrot.slane %v1234_v29, 5  ;;  %v4606_v55 = vcombine.low %v6659_v50, %v6662_v25 }
  0xaf   : > { %3540 = vmatmul.mubr.bf16.gmra.mrb[68].mxu1 %v4588_v42  ;;  %v4454_v57 = vrot.slane %v4438_v46, 9  ;;  %v1032_v39 = vrot.slane %v1031_v51, 4  ;;  %v1369_v2 = vrot.slane %v6320_v0, 5  ;;  %v1372_v32 = vrot.slane %v4422_v7, 5 }
  0xb0   : > { %3547 = vmatprep.mubr.bf16.mxu1 %v4605_v21  ;;  %v4382_v16 = vrot.slane %v654_v12, 9  ;;  %v813_v42 = vrot.slane %v5607_v41, 5  ;;  %v816_v33 = vrot.slane %v5608_v30, 5  ;;  %v1045_v40 = vor.u32 %v6345_v37, %v6340_v59  ;;  %v6708_v30 = vld [vmem:[%s5699_s6 + $0x1c] sm:$0xf] }
  0xb1   : > { %3637 = vmatmul.mubr.bf16.gmra.mrb[68].mxu0 %v4612_v13  ;;  %v1048_v50 = vshll.u32 %v6320_v0, 16  ;;  %v1037_v21 = vsel %vm5741_vm2, %v1032_v39, %v1036_v47  ;;  %v1370_v13 = vsel %vm5935_vm5, %v4454_v57, %v1369_v2  ;;  %v1371_v52 = vrot.slane %v1369_v2, 4  ;;  %v6702_v57 = vld [vmem:[%s5699_s6 + $0x18] sm:$0xf] }
  0xb2   : > { %3644 = vmatprep.mubr.bf16.mxu0 %v4629_v11  ;;  %v7685_v17 = vshrl.u32 %v6320_v0, 16  ;;  %v4423_v11 = vld [vmem:[%s5699_s6 + $0x74] sm:$0x1]  ;;  %v4613_v9 = vcombine.low %v1027_v35, %v1037_v21  ;;  %v814_v29 = vsel %vm5935_vm5, %v4382_v16, %v813_v42  ;;  %v815_v59 = vrot.slane %v813_v42, 4  ;;  %v6711_v16 = vld [vmem:[%s5699_s6 + $0x20] sm:$0x1] }
  0xb3   : > { %v1046_v37 = vrot.slane %v1045_v40, 4  ;;  %v1373_v12 = vsel %vm5935_vm5, %v1371_v52, %v1372_v32  ;;  %v1050_v51 = vrot.slane %v1048_v50, 5  ;;  %v1058_v47 = vshll.u32 %v4422_v7, 16 }
  0xb4   : > { %v1054_v46 = vrot.slane %v7685_v17, 4  ;;  %v4455_v39 = vrot.slane %v4439_v6, 9  ;;  %v4630_v2 = vcombine.low %v1370_v13, %v1373_v12  ;;  %v817_v0 = vsel %vm5935_vm5, %v815_v59, %v816_v33 }
  0xb5   : > { %v1376_v41 = vrot.slane %v6338_v43, 5  ;;  %v1379_v35 = vrot.slane %v4423_v11, 5  ;;  %v4590_v42 = vcombine.low %v814_v29, %v817_v0  ;;  %v1051_v32 = vsel %vm5741_vm2, %v1046_v37, %v1050_v51 }
  0xb6   : > { %v1055_v40 = vor.u32 %v1054_v46, %v1050_v51  ;;  %v1060_v7 = vrot.slane %v1058_v47, 5  ;;  %v1483_v33 = vshrl.u32 %v6702_v57, 16  ;;  %v1486_v21 = vshll.u32 %v6702_v57, 16  ;;  %v4440_v47 = vld [vmem:[%s5699_s6 + $0x78] sm:$0xe] }
  0xb7   : > { %3548 = vmatmul.mubr.bf16.gmra.mrb[72].mxu1 %v4589_v10  ;;  %v1377_v6 = vsel %vm5935_vm5, %v4455_v39, %v1376_v41  ;;  %v1378_v50 = vrot.slane %v1376_v41, 4  ;;  %v1492_v52 = vshll.u32 %v6708_v30, 16  ;;  %v1496_v17 = vshrl.u32 %v6708_v30, 16 }
  0xb8   : > { %3555 = vmatprep.mubr.bf16.mxu1 %v4606_v55  ;;  %v1056_v13 = vrot.slane %v1055_v40, 4  ;;  %v1502_v46 = vshll.u32 %v6711_v16, 16  ;;  %v1485_v29 = vrot.slane %v1483_v33, 4  ;;  %v1488_v59 = vrot.slane %v1486_v21, 5  ;;  %v6730_v40 = vld [vmem:[%s5699_s6 + $0x80] sm:$0x1] }
  0xb9   : > { %3645 = vmatmul.mubr.bf16.gmra.mrb[72].mxu0 %v4613_v9  ;;  %v1380_v10 = vsel %vm5935_vm5, %v1378_v50, %v1379_v35  ;;  %v1069_v37 = vor.u32 %v6365_v8, %v6363_v36  ;;  %v1494_v12 = vrot.slane %v1492_v52, 5  ;;  %v1498_v51 = vrot.slane %v1496_v17, 4  ;;  %v6736_v33 = vld [vmem:[%s5699_s6 + $0x24] sm:$0xf] }
  0xba   : > { %3652 = vmatprep.mubr.bf16.mxu0 %v4630_v2  ;;  %v1061_v55 = vsel %vm5741_vm2, %v1056_v13, %v1060_v7  ;;  %v4631_v9 = vcombine.low %v1377_v6, %v1380_v10  ;;  %v1489_v0 = vor.u32 %v1488_v59, %v1485_v29  ;;  %v1504_v41 = vrot.slane %v1502_v46, 5  ;;  %v6743_v10 = vld [vmem:[%s5699_s6 + $0x28] sm:$0xf] }
  0xbb   : > { %v4614_v39 = vcombine.low %v1051_v32, %v1061_v55  ;;  %v1070_v2 = vrot.slane %v1069_v37, 4  ;;  %v1499_v35 = vor.u32 %v1498_v51, %v1494_v12  ;;  %v1072_v50 = vshll.u32 %v6338_v43, 16  ;;  %v6755_v55 = vld [vmem:[%s5699_s6 + $0x2c] sm:$0x1] }
  0xbc   : > { %v1078_v36 = vrot.slane %v1076_v56, 4  ;;  %v1082_v8 = vshll.u32 %v4423_v11, 16  ;;  %v1490_v7 = vrot.slane %v1489_v0, 4  ;;  %v4639_v6 = vcombine.low %v6702_v57, %v6708_v30 }
  0xbd   : > { %v4456_v32 = vrot.slane %v4440_v47, 9  ;;  %v1383_v21 = vrot.slane %v6382_v62, 5  ;;  %v1500_v13 = vrot.slane %v1499_v35, 4  ;;  %v1074_v52 = vrot.slane %v1072_v50, 5 }
  0xbe   : > { %v1084_v17 = vrot.slane %v1082_v8, 5  ;;  %v1386_v46 = vrot.slane %v6730_v40, 5  ;;  %v1495_v43 = vsel %vm5741_vm2, %v1490_v7, %v1494_v12  ;;  %v1507_v57 = vshrl.u32 %v6736_v33, 16 }
  0xbf   : > { %3556 = vmatmul.mubr.bf16.gmra.mrb[76].mxu1 %v4590_v42  ;;  %v1384_v56 = vsel %vm5935_vm5, %v4456_v32, %v1383_v21  ;;  %v1385_v11 = vrot.slane %v1383_v21, 4  ;;  %v1505_v29 = vsel %vm5741_vm2, %v1500_v13, %v1504_v41  ;;  %v1075_v59 = vsel %vm5741_vm2, %v1070_v2, %v1074_v52 }
  0xc0   : > { %v1079_v37 = vor.u32 %v1078_v36, %v1074_v52  ;;  %v1510_v42 = vshll.u32 %v6736_v33, 16  ;;  %v4655_v12 = vcombine.low %v1495_v43, %v1505_v29  ;;  %v1509_v47 = vrot.slane %v1507_v57, 4  ;;  %v4425_v52 = vld [vmem:[%s5699_s6 + $0x8c] sm:$0x1] }
  0xc1   : > { %3653 = vmatmul.mubr.bf16.gmra.mrb[76].mxu0 %v4614_v39  ;;  %v1387_v51 = vsel %vm5935_vm5, %v1385_v11, %v1386_v46  ;;  %v1516_v39 = vshll.u32 %v6743_v10, 16  ;;  %v1520_v2 = vshrl.u32 %v6743_v10, 16  ;;  %v1526_v36 = vshll.u32 %v6755_v55, 16  ;;  %v4441_v46 = vld [vmem:[%s5699_s6 + $0x84] sm:$0xe] }
  0xc2   : > { %3660 = vmatprep.mubr.bf16.mxu0 %v4631_v9  ;;  %v1080_v0 = vrot.slane %v1079_v37, 4  ;;  %v4632_v41 = vcombine.low %v1384_v56, %v1387_v51  ;;  %v1512_v35 = vrot.slane %v1510_v42, 5  ;;  %3757 = vmatprep.mubr.bf16.mxu1 %v4655_v12  ;;  %v1942_v9 = vrot.slane %v6755_v55, 5 }
  0xc3   : > { %v1518_v50 = vrot.slane %v1516_v39, 5  ;;  %v1093_v8 = vor.u32 %v6409_v60, %v6407_v54  ;;  %v1522_v21 = vrot.slane %v1520_v2, 4  ;;  %v1096_v13 = vshll.u32 %v6382_v62, 16  ;;  %v6775_v60 = vld [vmem:[%s5699_s6 + $0x30] sm:$0xf] }
  0xc4   : > { %v1085_v7 = vsel %vm5741_vm2, %v1080_v0, %v1084_v17  ;;  %v1513_v32 = vor.u32 %v1512_v35, %v1509_v47  ;;  %v1528_v56 = vrot.slane %v1526_v36, 5  ;;  %v1102_v57 = vrot.slane %v1100_v27, 4  ;;  %v6781_v47 = vld [vmem:[%s5699_s6 + $0x34] sm:$0xf] }
  0xc5   : > { %v4615_v43 = vcombine.low %v1075_v59, %v1085_v7  ;;  %v1094_v11 = vrot.slane %v1093_v8, 4  ;;  %v1523_v37 = vor.u32 %v1522_v21, %v1518_v50  ;;  %v1098_v42 = vrot.slane %v1096_v13, 5  ;;  %v6793_v8 = vld [vmem:[%s5699_s6 + $0x38] sm:$0x1] }
  0xc6   : > { %v1514_v29 = vrot.slane %v1513_v32, 4  ;;  %v1106_v54 = vshll.u32 %v6730_v40, 16  ;;  %v4640_v17 = vcombine.low %v6736_v33, %v6743_v10  ;;  %v4457_v12 = vrot.slane %v4441_v46, 9 }
  0xc7   : > { %3758 = vmatmul.mubr.bf16.vlgmr.msra.gmra.mrb[80].mxu1 %v4639_v6  ;;  %v1390_v59 = vrot.slane %v6429_v49, 5  ;;  %v1393_v51 = vrot.slane %v4425_v52, 5  ;;  %v1524_v27 = vrot.slane %v1523_v37, 4  ;;  %v1099_v40 = vsel %vm5741_vm2, %v1094_v11, %v1098_v42 }
  0xc8   : > { %v1519_v62 = vsel %vm5741_vm2, %v1514_v29, %v1518_v50  ;;  %v1103_v39 = vor.u32 %v1102_v57, %v1098_v42  ;;  %v1108_v6 = vrot.slane %v1106_v54, 5  ;;  %v1531_v35 = vshrl.u32 %v6775_v60, 16  ;;  %v6806_v54 = vld [vmem:[%s5699_s6 + $0x98] sm:$0x1] }
  0xc9   : > { %3661 = vmatmul.mubr.bf16.gmra.mrb[80].mxu0 %v4615_v43  ;;  %v1391_v33 = vsel %vm5935_vm5, %v4457_v12, %v1390_v59  ;;  %v1392_v0 = vrot.slane %v1390_v59, 4  ;;  %v1529_v2 = vsel %vm5741_vm2, %v1524_v27, %v1528_v56  ;;  %v1534_v50 = vshll.u32 %v6775_v60, 16  ;;  %v4442_v12 = vld [vmem:[%s5699_s6 + $0x90] sm:$0xe] }
  0xca   : > { %3668 = vmatprep.mubr.bf16.mxu0 %v4632_v41  ;;  %v1104_v36 = vrot.slane %v1103_v39, 4  ;;  %v1540_v7 = vshll.u32 %v6781_v47, 16  ;;  %v4656_v41 = vcombine.low %v1519_v62, %v1529_v2  ;;  %v1533_v21 = vrot.slane %v1531_v35, 4  ;;  %v6813_v39 = vld [vmem:[%s5699_s6 + $0x3c] sm:$0xf] }
  0xcb   : > { %v1394_v32 = vsel %vm5935_vm5, %v1392_v0, %v1393_v51  ;;  %v1544_v13 = vshrl.u32 %v6781_v47, 16  ;;  %v1536_v56 = vrot.slane %v1534_v50, 5  ;;  %v1550_v37 = vshll.u32 %v6793_v8, 16 }
  0xcc   : > { %v1109_v46 = vsel %vm5741_vm2, %v1104_v36, %v1108_v6  ;;  %v4633_v43 = vcombine.low %v1391_v33, %v1394_v32  ;;  %v1542_v11 = vrot.slane %v1540_v7, 5  ;;  %3765 = vmatprep.mubr.bf16.mxu1 %v4656_v41  ;;  %v1117_v42 = vor.u32 %v6454_v48, %v6452_v3  ;;  %v6820_v36 = vld [vmem:[%s5699_s6 + $0x40] sm:$0xf]  ;;  %v6828_v41 = vld [vmem:[%s5699_s6 + $0x44] sm:$0x1] }
  0xcd   : > { %v4616_v57 = vcombine.low %v1099_v40, %v1109_v46  ;;  %v1546_v29 = vrot.slane %v1544_v13, 4  ;;  %v1537_v59 = vor.u32 %v1536_v56, %v1533_v21  ;;  %v1120_v51 = vshll.u32 %v6429_v49, 16 }
  0xce   : > { %v1126_v62 = vrot.slane %v1124_v45, 4  ;;  %v1130_v27 = vshll.u32 %v4425_v52, 16  ;;  %v1552_v6 = vrot.slane %v1550_v37, 5  ;;  %v1118_v33 = vrot.slane %v1117_v42, 4 }
  0xcf   : > { %3766 = vmatmul.mubr.bf16.gmra.mrb[84].mxu1 %v4640_v17  ;;  %v1547_v40 = vor.u32 %v1546_v29, %v1542_v11  ;;  %v4641_v3 = vcombine.low %v6775_v60, %v6781_v47  ;;  %v1538_v48 = vrot.slane %v1537_v59, 4  ;;  %v1122_v0 = vrot.slane %v1120_v51, 5 }
  0xd0   : > { %v1132_v35 = vrot.slane %v1130_v27, 5  ;;  %v4458_v2 = vrot.slane %v4442_v12, 9  ;;  %v1397_v45 = vrot.slane %v6476_v63, 5  ;;  %v1400_v52 = vrot.slane %v6806_v54, 5 }
  0xd1   : > { %3669 = vmatmul.mubr.bf16.gmra.mrb[84].mxu0 %v4616_v57  ;;  %v1548_v49 = vrot.slane %v1547_v40, 4  ;;  %v1555_v17 = vshrl.u32 %v6813_v39, 16  ;;  %v1543_v50 = vsel %vm5741_vm2, %v1538_v48, %v1542_v11  ;;  %v1123_v60 = vsel %vm5741_vm2, %v1118_v33, %v1122_v0 }
  0xd2   : > { %3676 = vmatprep.mubr.bf16.mxu0 %v4633_v43  ;;  %v1127_v7 = vor.u32 %v1126_v62, %v1122_v0  ;;  %v1558_v32 = vshll.u32 %v6813_v39, 16  ;;  %v1398_v13 = vsel %vm5935_vm5, %v4458_v2, %v1397_v45  ;;  %v1399_v46 = vrot.slane %v1397_v45, 4 }
  0xd3   : > { %v1553_v21 = vsel %vm5741_vm2, %v1548_v49, %v1552_v6  ;;  %v1557_v43 = vrot.slane %v1555_v17, 4  ;;  %v1564_v29 = vshll.u32 %v6820_v36, 16  ;;  %v1568_v42 = vshrl.u32 %v6820_v36, 16  ;;  %v4443_v6 = vld [vmem:[%s5699_s6 + $0x9c] sm:$0xe] }
  0xd4   : > { %v4657_v56 = vcombine.low %v1543_v50, %v1553_v21  ;;  %v1128_v57 = vrot.slane %v1127_v7, 4  ;;  %v1560_v11 = vrot.slane %v1558_v32, 5  ;;  %v1401_v37 = vsel %vm5935_vm5, %v1399_v46, %v1400_v52  ;;  %v6846_v49 = vld [vmem:[%s5699_s6 + $0xa4] sm:$0x1]  ;;  %v6853_v52 = vld [vmem:[%s5699_s6 + $0x48] sm:$0xf] }
  0xd5   : > { %v1574_v12 = vshll.u32 %v6828_v41, 16  ;;  %v1141_v59 = vor.u32 %v6501_v23, %v6499_v28  ;;  %v4634_v62 = vcombine.low %v1398_v13, %v1401_v37  ;;  %v1566_v40 = vrot.slane %v1564_v29, 5  ;;  %v6859_v7 = vld [vmem:[%s5699_s6 + $0x4c] sm:$0xf] }
  0xd6   : > { %3773 = vmatprep.mubr.bf16.mxu1 %v4657_v56  ;;  %v1133_v51 = vsel %vm5741_vm2, %v1128_v57, %v1132_v35  ;;  %v1561_v27 = vor.u32 %v1560_v11, %v1557_v43  ;;  %v1570_v48 = vrot.slane %v1568_v42, 4  ;;  %v1144_v28 = vshll.u32 %v6476_v63, 16  ;;  %v6870_v57 = vld [vmem:[%s5699_s6 + $0x50] sm:$0x1] }
  0xd7   : > { %v4617_v33 = vcombine.low %v1123_v60, %v1133_v51  ;;  %3774 = vmatmul.mubr.bf16.gmra.mrb[88].mxu1 %v4641_v3  ;;  %v1576_v0 = vrot.slane %v1574_v12, 5  ;;  %v1142_v2 = vrot.slane %v1141_v59, 4  ;;  %v1150_v23 = vrot.slane %v1148_v14, 4 }
  0xd8   : > { %v1562_v45 = vrot.slane %v1561_v27, 4  ;;  %v1154_v35 = vshll.u32 %v6806_v54, 16  ;;  %v1571_v17 = vor.u32 %v1570_v48, %v1566_v40  ;;  %v4642_v3 = vcombine.low %v6813_v39, %v6820_v36 }
  0xd9   : > { %3677 = vmatmul.mubr.bf16.gmra.mrb[88].mxu0 %v4617_v33  ;;  %v4459_v50 = vrot.slane %v4443_v6, 9  ;;  %v1404_v60 = vrot.slane %v6527_v58, 5  ;;  %v1146_v14 = vrot.slane %v1144_v28, 5  ;;  %v1407_v54 = vrot.slane %v6846_v49, 5 }
  0xda   : > { %3684 = vmatprep.mubr.bf16.mxu0 %v4634_v62  ;;  %v1567_v63 = vsel %vm5741_vm2, %v1562_v45, %v1566_v40  ;;  %v1156_v32 = vrot.slane %v1154_v35, 5  ;;  %v1572_v21 = vrot.slane %v1571_v17, 4  ;;  %v1579_v39 = vshrl.u32 %v6853_v52, 16  ;;  %v4428_v35 = vld [vmem:[%s5699_s6 + $0xb0] sm:$0x1] }
  0xdb   : > { %v1405_v13 = vsel %vm5935_vm5, %v4459_v50, %v1404_v60  ;;  %v1406_v46 = vrot.slane %v1404_v60, 4  ;;  %v1147_v43 = vsel %vm5741_vm2, %v1142_v2, %v1146_v14  ;;  %v1151_v56 = vor.u32 %v1150_v23, %v1146_v14  ;;  %v4444_v17 = vld [vmem:[%s5699_s6 + $0xa8] sm:$0xe] }
  0xdc   : > { %v1582_v11 = vshll.u32 %v6853_v52, 16  ;;  %v1588_v29 = vshll.u32 %v6859_v7, 16  ;;  %v1577_v37 = vsel %vm5741_vm2, %v1572_v21, %v1576_v0  ;;  %v1581_v12 = vrot.slane %v1579_v39, 4  ;;  %v6893_v21 = vld [vmem:[%s5699_s6 + $0x54] sm:$0xf] }
  0xdd   : > { %v1408_v42 = vsel %vm5935_vm5, %v1406_v46, %v1407_v54  ;;  %v1592_v59 = vshrl.u32 %v6859_v7, 16  ;;  %v4658_v51 = vcombine.low %v1567_v63, %v1577_v37  ;;  %v1152_v62 = vrot.slane %v1151_v56, 4 }
  0xde   : > { %v4635_v27 = vcombine.low %v1405_v13, %v1408_v42  ;;  %v1584_v40 = vrot.slane %v1582_v11, 5  ;;  %v1590_v6 = vrot.slane %v1588_v29, 5  ;;  %v1598_v48 = vshll.u32 %v6870_v57, 16 }
  0xdf   : > { %v1594_v33 = vrot.slane %v1592_v59, 4  ;;  %v1165_v2 = vor.u32 %v6548_v24, %v6546_v1  ;;  %3781 = vmatprep.mubr.bf16.mxu1 %v4658_v51  ;;  %v1157_v0 = vsel %vm5741_vm2, %v1152_v62, %v1156_v32  ;;  %v1168_v28 = vshll.u32 %v6527_v58, 16 }
  0xe0   : > { %v1585_v45 = vor.u32 %v1584_v40, %v1581_v12  ;;  %v1174_v23 = vrot.slane %v1172_v38, 4  ;;  %v4618_v50 = vcombine.low %v1147_v43, %v1157_v0  ;;  %3782 = vmatmul.mubr.bf16.gmra.mrb[92].mxu1 %v4642_v3  ;;  %v1600_v63 = vrot.slane %v1598_v48, 5  ;;  %v6897_v3 = vld [vmem:[%s5699_s6 + $0x58] sm:$0xf] }
  0xe1   : > { %v1595_v60 = vor.u32 %v1594_v33, %v1590_v6  ;;  %v1166_v14 = vrot.slane %v1165_v2, 4  ;;  %v1170_v24 = vrot.slane %v1168_v28, 5  ;;  %v1178_v54 = vshll.u32 %v6846_v49, 16  ;;  %v4445_v28 = vld [vmem:[%s5699_s6 + $0xb4] sm:$0xe] }
  0xe2   : > { %v1586_v1 = vrot.slane %v1585_v45, 4  ;;  %v4643_v32 = vcombine.low %v6853_v52, %v6859_v7  ;;  %3685 = vmatmul.mubr.bf16.gmra.mrb[92].mxu0 %v4618_v50  ;;  %v4460_v38 = vrot.slane %v4444_v17, 9  ;;  %v1411_v13 = vrot.slane %v6575_v19, 5  ;;  %v6904_v52 = vld [vmem:[%s5699_s6 + $0x5c] sm:$0x1] }
  0xe3   : > { %v1596_v58 = vrot.slane %v1595_v60, 4  ;;  %v1414_v46 = vrot.slane %v4428_v35, 5  ;;  %3692 = vmatprep.mubr.bf16.mxu0 %v4635_v27  ;;  %v1171_v49 = vsel %vm5741_vm2, %v1166_v14, %v1170_v24  ;;  %v1175_v43 = vor.u32 %v1174_v23, %v1170_v24 }
  0xe4   : > { %v1591_v39 = vsel %vm5741_vm2, %v1586_v1, %v1590_v6  ;;  %v1180_v56 = vrot.slane %v1178_v54, 5  ;;  %v1412_v29 = vsel %vm5935_vm5, %v4460_v38, %v1411_v13  ;;  %v1413_v37 = vrot.slane %v1411_v13, 4 }
  0xe5   : > { %v1601_v11 = vsel %vm5741_vm2, %v1596_v58, %v1600_v63  ;;  %v1603_v42 = vshrl.u32 %v6893_v21, 16  ;;  %v1176_v59 = vrot.slane %v1175_v43, 4  ;;  %v1606_v51 = vshll.u32 %v6893_v21, 16  ;;  %v6923_v63 = vld [vmem:[%s5699_s6 + $0xbc] sm:$0x1] }
  0xe6   : > { %v4659_v12 = vcombine.low %v1591_v39, %v1601_v11  ;;  %v1612_v62 = vshll.u32 %v6897_v3, 16  ;;  %v1415_v27 = vsel %vm5935_vm5, %v1413_v37, %v1414_v46  ;;  %v1616_v6 = vshrl.u32 %v6897_v3, 16  ;;  %v6929_v58 = vld [vmem:[%s5699_s6 + $0x60] sm:$0xf] }
  0xe7   : > { %v1605_v40 = vrot.slane %v1603_v42, 4  ;;  %v1622_v33 = vshll.u32 %v6904_v52, 16  ;;  %v1181_v48 = vsel %vm5741_vm2, %v1176_v59, %v1180_v56  ;;  %v4636_v2 = vcombine.low %v1412_v29, %v1415_v27  ;;  %v6947_v42 = vld [vmem:[%s5699_s6 + $0x68] sm:$0x1] }
  0xe8   : > { %3789 = vmatprep.mubr.bf16.mxu1 %v4659_v12  ;;  %v1608_v0 = vrot.slane %v1606_v51, 5  ;;  %v1614_v45 = vrot.slane %v1612_v62, 5  ;;  %v4619_v23 = vcombine.low %v1171_v49, %v1181_v48  ;;  %v1618_v17 = vrot.slane %v1616_v6, 4 }
  0xe9   : > { %3790 = vmatmul.mubr.bf16.gmra.mrb[96].mxu1 %v4643_v32  ;;  %v1624_v50 = vrot.slane %v1622_v33, 5  ;;  %v1189_v60 = vor.u32 %v6597_v5, %v6595_v61  ;;  %v1192_v1 = vshll.u32 %v6575_v19, 16  ;;  %v1198_v24 = vrot.slane %v1196_v44, 4 }
  0xea   : > { %v1609_v14 = vor.u32 %v1608_v0, %v1605_v40  ;;  %v1202_v54 = vshll.u32 %v4428_v35, 16  ;;  %3693 = vmatmul.mubr.bf16.gmra.mrb[96].mxu0 %v4619_v23  ;;  %v1619_v38 = vor.u32 %v1618_v17, %v1614_v45  ;;  %v4644_v13 = vcombine.low %v6893_v21, %v6897_v3  ;;  %v6936_v35 = vld [vmem:[%s5699_s6 + $0x64] sm:$0xf] }
  0xeb   : > { %v1190_v32 = vrot.slane %v1189_v60, 4  ;;  %v4461_v61 = vrot.slane %v4445_v28, 9  ;;  %3700 = vmatprep.mubr.bf16.mxu0 %v4636_v2  ;;  %v1194_v46 = vrot.slane %v1192_v1, 5  ;;  %v1418_v49 = vrot.slane %v6621_v15, 5  ;;  %v6961_v1 = vld [vmem:[%s5699_s6 + $0xc8] sm:$0x1] }
  0xec   : > { %v1610_v5 = vrot.slane %v1609_v14, 4  ;;  %v1204_v39 = vrot.slane %v1202_v54, 5  ;;  %v1620_v19 = vrot.slane %v1619_v38, 4  ;;  %v1421_v44 = vrot.slane %v6923_v63, 5  ;;  %v6965_v54 = vld [vmem:[%s5699_s6 + $0x6c] sm:$0xf] }
  0xed   : > { %v1627_v43 = vshrl.u32 %v6929_v58, 16  ;;  %v1630_v56 = vshll.u32 %v6929_v58, 16  ;;  %v1195_v11 = vsel %vm5741_vm2, %v1190_v32, %v1194_v46  ;;  %v1199_v29 = vor.u32 %v1198_v24, %v1194_v46  ;;  %v4446_v24 = vld [vmem:[%s5699_s6 + $0xc0] sm:$0xe] }
  0xee   : > { %v1615_v21 = vsel %vm5741_vm2, %v1610_v5, %v1614_v45  ;;  %v1419_v37 = vsel %vm5935_vm5, %v4461_v61, %v1418_v49  ;;  %v1625_v12 = vsel %vm5741_vm2, %v1620_v19, %v1624_v50  ;;  %v1420_v59 = vrot.slane %v1418_v49, 4 }
  0xef   : > { %v1629_v51 = vrot.slane %v1627_v43, 4  ;;  %v1632_v62 = vrot.slane %v1630_v56, 5  ;;  %v4660_v27 = vcombine.low %v1615_v21, %v1625_v12  ;;  %v1200_v40 = vrot.slane %v1199_v29, 4 }
  0xf0   : > { %v1636_v6 = vshll.u32 %v6936_v35, 16  ;;  %v1640_v33 = vshrl.u32 %v6936_v35, 16  ;;  %v1422_v48 = vsel %vm5935_vm5, %v1420_v59, %v1421_v44  ;;  %v1646_v0 = vshll.u32 %v6947_v42, 16 }
  0xf1   : > { %v1633_v2 = vor.u32 %v1632_v62, %v1629_v51  ;;  %v1213_v45 = vor.u32 %v6638_v31, %v6636_v4  ;;  %3797 = vmatprep.mubr.bf16.mxu1 %v4660_v27  ;;  %v1205_v28 = vsel %vm5741_vm2, %v1200_v40, %v1204_v39  ;;  %v4637_v23 = vcombine.low %v1419_v37, %v1422_v48  ;;  %v6984_v27 = vld [vmem:[%s5699_s6 + $0x70] sm:$0xf]  ;;  %v6992_v48 = vld [vmem:[%s5699_s6 + $0x74] sm:$0x1] }
  0xf2   : > { %v1638_v17 = vrot.slane %v1636_v6, 5  ;;  %v1642_v50 = vrot.slane %v1640_v33, 4  ;;  %v4620_v38 = vcombine.low %v1195_v11, %v1205_v28  ;;  %3798 = vmatmul.mubr.bf16.gmra.mrb[100].mxu1 %v4644_v13  ;;  %v1648_v61 = vrot.slane %v1646_v0, 5 }
  0xf3   : > { %v1634_v32 = vrot.slane %v1633_v2, 4  ;;  %v1214_v5 = vrot.slane %v1213_v45, 4  ;;  %v1216_v39 = vshll.u32 %v6621_v15, 16  ;;  %v1222_v49 = vrot.slane %v1220_v26, 4 }
  0xf4   : > { %v1643_v46 = vor.u32 %v1642_v50, %v1638_v17  ;;  %v1226_v19 = vshll.u32 %v6923_v63, 16  ;;  %3701 = vmatmul.mubr.bf16.gmra.mrb[100].mxu0 %v4620_v38  ;;  %v4645_v56 = vcombine.low %v6929_v58, %v6936_v35  ;;  %v4462_v59 = vrot.slane %v4446_v24, 9 }
  0xf5   : > { %v1639_v13 = vsel %vm5741_vm2, %v1634_v32, %v1638_v17  ;;  %3708 = vmatprep.mubr.bf16.mxu0 %v4637_v23  ;;  %v1218_v63 = vrot.slane %v1216_v39, 5  ;;  %v1425_v51 = vrot.slane %v6662_v25, 5  ;;  %v1428_v62 = vrot.slane %v6961_v1, 5 }
  0xf6   : > { %v1644_v26 = vrot.slane %v1643_v46, 4  ;;  %v1228_v37 = vrot.slane %v1226_v19, 5  ;;  %v1651_v58 = vshrl.u32 %v6965_v54, 16  ;;  %v1654_v2 = vshll.u32 %v6965_v54, 16 }
  0xf7   : > { %v1219_v6 = vsel %vm5741_vm2, %v1214_v5, %v1218_v63  ;;  %v1223_v33 = vor.u32 %v1222_v49, %v1218_v63  ;;  %v1426_v45 = vsel %vm5935_vm5, %v4462_v59, %v1425_v51  ;;  %v1427_v28 = vrot.slane %v1425_v51, 4 }
  0xf8   : > { %v1649_v40 = vsel %vm5741_vm2, %v1644_v26, %v1648_v61  ;;  %v1653_v23 = vrot.slane %v1651_v58, 4  ;;  %v1656_v50 = vrot.slane %v1654_v2, 5  ;;  %v1670_v32 = vshll.u32 %v6992_v48, 16 }
  0xf9   : > { %v4661_v0 = vcombine.low %v1639_v13, %v1649_v40  ;;  %v1224_v17 = vrot.slane %v1223_v33, 4  ;;  %v1429_v38 = vsel %vm5935_vm5, %v1427_v28, %v1428_v62  ;;  %v1237_v5 = vor.u32 %v6679_v53, %v6677_v20  ;;  %v7012_v13 = vld [vmem:[%s5699_s6 + $0x7c] sm:$0xf] }
  0xfa   : > { %v5009_v60 = vpop.f32.mrb[0].mxu1  ;;  %v4937_v14 = vpop.f32.mrb[0].mxu0  ;;  %v4638_v46 = vcombine.low %v1426_v45, %v1429_v38  ;;  %v1657_v39 = vor.u32 %v1656_v50, %v1653_v23  ;;  %v1240_v53 = vshll.u32 %v6662_v25, 16  ;;  %v4646_v58 = vcombine.low %v6965_v54, %v6984_v27  ;;  %v4511_v50 = vld [vmem:[%s5699_s6 + $0x18] sm:$0xe] }
  0xfb   : > { %v5010_v4 = vpop.f32.mrb[1].mxu1  ;;  %v4938_v31 = vpop.f32.mrb[1].mxu0  ;;  %3805 = vmatprep.mubr.bf16.mxu1 %v4661_v0  ;;  %v1688_v38 = vshrl.u32 %v7012_v13, 16 }
  0xfc   : > { %v5012_v44 = vpop.f32.mrb[2].mxu1  ;;  %v4940_v43 = vpop.f32.mrb[2].mxu0  ;;  %v6975_v21 = vadd.f32 %v5010_v4, %v5009_v60  ;;  %v6977_v11 = vadd.f32 %v4938_v31, %v4937_v14  ;;  %v1660_v60 = vshll.u32 %v6984_v27, 16  ;;  %v1664_v14 = vshrl.u32 %v6984_v27, 16  ;;  %3806 = vmatmul.mubr.bf16.gmra.mrb[104].mxu1 %v4645_v56 }
  0xfd   : > { %v5013_v29 = vpop.f32.mrb[3].mxu1  ;;  %v4941_v15 = vpop.f32.mrb[3].mxu0  ;;  %v1229_v31 = vsel %vm5741_vm2, %v1224_v17, %v1228_v37  ;;  %v1658_v20 = vrot.slane %v1657_v39, 4  ;;  %v1246_v56 = vrot.slane %v1244_v18, 4  ;;  %v1250_v37 = vshll.u32 %v6961_v1, 16 }
  0xfe   : > { %v6979_v12 = vadd.f32 %v5013_v29, %v5012_v44  ;;  %v7002_v61 = vadd.f32 %v4941_v15, %v4940_v43  ;;  %v1662_v49 = vrot.slane %v1660_v60, 5  ;;  %v7009_v44 = vld [vmem:[%s5699_s6 + $0x78] sm:$0xf]  ;;  %v4621_v29 = vcombine.low %v1219_v6, %v1229_v31  ;;  %v7027_v1 = vld [vmem:[%s5699_s6 + $0x80] sm:$0x1] }
  0xff   : > { %v1666_v26 = vrot.slane %v1664_v14, 4  ;;  %v1672_v43 = vrot.slane %v1670_v32, 5  ;;  %v1238_v15 = vrot.slane %v1237_v5, 4  ;;  %v1242_v25 = vrot.slane %v1240_v53, 5 }
 0x100   : > { %3709 = vmatmul.mubr.bf16.gmra.mrb[104].mxu0 %v4621_v29  ;;  %v1663_v2 = vsel %vm5741_vm2, %v1658_v20, %v1662_v49  ;;  %v1252_v18 = vrot.slane %v1250_v37, 5  ;;  %v1675_v45 = vshrl.u32 %v7009_v44, 16  ;;  %v1678_v54 = vshll.u32 %v7009_v44, 16 }
 0x101   : > { %v1667_v62 = vor.u32 %v1666_v26, %v1662_v49  ;;  %3716 = vmatprep.mubr.bf16.mxu0 %v4638_v46  ;;  %v1684_v17 = vshll.u32 %v7012_v13, 16  ;;  %v1243_v60 = vsel %vm5741_vm2, %v1238_v15, %v1242_v25  ;;  %v1247_v14 = vor.u32 %v1246_v56, %v1242_v25  ;;  %v4512_v56 = vld [vmem:[%s5699_s6 + $0x24] sm:$0xe] }
 0x102   : > { %v4943_v24 = vpop.f32.mrb[4].mxu0  ;;  %v5015_v63 = vpop.f32.mrb[4].mxu1  ;;  %v1680_v5 = vrot.slane %v1678_v54, 5  ;;  %v1694_v31 = vshll.u32 %v7027_v1, 16  ;;  %v1690_v49 = vrot.slane %v1688_v38, 4  ;;  %v4527_v29 = vrot.slane %v4511_v50, 9 }
 0x103   : > { %v4944_v4 = vpop.f32.mrb[5].mxu0  ;;  %v5016_v51 = vpop.f32.mrb[5].mxu1  ;;  %v1668_v28 = vrot.slane %v1667_v62, 4  ;;  %v1248_v39 = vrot.slane %v1247_v14, 4  ;;  %v1932_v20 = vrot.slane %v6708_v30, 5  ;;  %v1935_v53 = vrot.slane %v6711_v16, 5 }
 0x104   : > { %v4946_v19 = vpop.f32.mrb[6].mxu0  ;;  %v7020_v40 = vadd.f32 %v5016_v51, %v5015_v63  ;;  %v5018_v6 = vpop.f32.mrb[6].mxu1  ;;  %v7022_v33 = vadd.f32 %v4944_v4, %v4943_v24  ;;  %v1677_v24 = vrot.slane %v1675_v45, 4  ;;  %v1686_v4 = vrot.slane %v1684_v17, 5  ;;  %v7051_v25 = vld [vmem:[%s5699_s6 + $0x84] sm:$0xf] }
 0x105   : > { %v4947_v59 = vpop.f32.mrb[7].mxu0  ;;  %v5019_v0 = vpop.f32.mrb[7].mxu1  ;;  %v1673_v32 = vsel %vm5741_vm2, %v1668_v28, %v1672_v43  ;;  %v1696_v15 = vrot.slane %v1694_v31, 5  ;;  %v1253_v43 = vsel %vm5741_vm2, %v1248_v39, %v1252_v18  ;;  %v1933_v16 = vsel %vm5935_vm5, %v4527_v29, %v1932_v20  ;;  %v7068_v38 = vld [vmem:[%s5699_s6 + $0x8c] sm:$0x1] }
 0x106   : > { %v7030_v23 = vadd.f32 %v5019_v0, %v5018_v6  ;;  %v4662_v46 = vcombine.low %v1663_v2, %v1673_v32  ;;  %v1681_v63 = vor.u32 %v1680_v5, %v1677_v24  ;;  %v1691_v51 = vor.u32 %v1690_v49, %v1686_v4  ;;  %v7065_v24 = vld [vmem:[%s5699_s6 + $0x88] sm:$0xf]  ;;  %v4513_v39 = vld [vmem:[%s5699_s6 + $0x30] sm:$0xe] }
 0x107   : > { %v7046_v62 = vadd.f32 %v4947_v59, %v4946_v19  ;;  %v4647_v6 = vcombine.low %v7009_v44, %v7012_v13  ;;  %v4622_v0 = vcombine.low %v1243_v60, %v1253_v43  ;;  %v1934_v45 = vrot.slane %v1932_v20, 4 }
 0x108   : > { %3813 = vmatprep.mubr.bf16.mxu1 %v4662_v46  ;;  %v1682_v30 = vrot.slane %v1681_v63, 4  ;;  %v1692_v54 = vrot.slane %v1691_v51, 4  ;;  %v4528_v19 = vrot.slane %v4512_v56, 9  ;;  %v1939_v59 = vrot.slane %v6743_v10, 5 }
 0x109   : > { %3814 = vmatmul.mubr.bf16.gmra.mrb[108].mxu1 %v4646_v58  ;;  %3717 = vmatmul.mubr.bf16.gmra.mrb[108].mxu0 %v4622_v0  ;;  %v1936_v50 = vsel %vm5935_vm5, %v1934_v45, %v1935_v53  ;;  %v1699_v10 = vshrl.u32 %v7051_v25, 16  ;;  %v1702_v63 = vshll.u32 %v7051_v25, 16  ;;  %v1708_v20 = vshll.u32 %v7065_v24, 16 }
 0x10a   : > { %v4949_v26 = vpop.f32.mrb[8].mxu0  ;;  %v5021_v28 = vpop.f32.mrb[8].mxu1  ;;  %v1687_v58 = vsel %vm5741_vm2, %v1682_v30, %v1686_v4  ;;  %v1697_v32 = vsel %vm5741_vm2, %v1692_v54, %v1696_v15  ;;  %v4671_v5 = vcombine.low %v1933_v16, %v1936_v50  ;;  %v1940_v31 = vsel %vm5935_vm5, %v4528_v19, %v1939_v59  ;;  %v4514_v30 = vld [vmem:[%s5699_s6 + $0x3c] sm:$0xe] }
 0x10b   : > { %v4950_v37 = vpop.f32.mrb[9].mxu0  ;;  %v5022_v44 = vpop.f32.mrb[9].mxu1  ;;  %v1941_v4 = vrot.slane %v1939_v59, 4  ;;  %v4663_v49 = vcombine.low %v1687_v58, %v1697_v32  ;;  %v1712_v53 = vshrl.u32 %v7065_v24, 16  ;;  %v1718_v56 = vshll.u32 %v7068_v38, 16 }
 0x10c   : > { %v4952_v2 = vpop.f32.mrb[10].mxu0  ;;  %v7056_v17 = vadd.f32 %v4950_v37, %v4949_v26  ;;  %v7062_v60 = vadd.f32 %v5022_v44, %v5021_v28  ;;  %v5024_v14 = vpop.f32.mrb[10].mxu1  ;;  %v1701_v26 = vrot.slane %v1699_v10, 4  ;;  %5409 = vmatprep.mubr.bf16.mxu0 %v4671_v5  ;;  %v1704_v43 = vrot.slane %v1702_v63, 5  ;;  %v7094_v58 = vld [vmem:[%s5699_s6 + $0x90] sm:$0xf] }
 0x10d   : > { %v4953_v18 = vpop.f32.mrb[11].mxu0  ;;  %v5025_v46 = vpop.f32.mrb[11].mxu1  ;;  %v1943_v15 = vsel %vm5935_vm5, %v1941_v4, %v1942_v9  ;;  %3821 = vmatprep.mubr.bf16.mxu1 %v4663_v49  ;;  %v4529_v51 = vrot.slane %v4513_v39, 9  ;;  %v1946_v0 = vrot.slane %v6781_v47, 5  ;;  %v1710_v16 = vrot.slane %v1708_v20, 5 }
 0x10e   : > { %v7076_v29 = vadd.f32 %v5025_v46, %v5024_v14  ;;  %v4672_v37 = vcombine.low %v1940_v31, %v1943_v15  ;;  %v1714_v55 = vrot.slane %v1712_v53, 4  ;;  %v1720_v45 = vrot.slane %v1718_v56, 5  ;;  %v7112_v15 = vld [vmem:[%s5699_s6 + $0x98] sm:$0x1] }
 0x10f   : > { %v1949_v9 = vrot.slane %v6793_v8, 5  ;;  %v1705_v28 = vor.u32 %v1704_v43, %v1701_v26  ;;  %v1947_v54 = vsel %vm5935_vm5, %v4529_v51, %v1946_v0  ;;  %v1948_v19 = vrot.slane %v1946_v0, 4  ;;  %v7100_v8 = vld [vmem:[%s5699_s6 + $0x94] sm:$0xf] }
 0x110   : > { %v7091_v59 = vadd.f32 %v4953_v18, %v4952_v2  ;;  %v1715_v50 = vor.u32 %v1714_v55, %v1710_v16  ;;  %v4648_v47 = vcombine.low %v7051_v25, %v7065_v24  ;;  %v4530_v14 = vrot.slane %v4514_v30, 9  ;;  %v4515_v30 = vld [vmem:[%s5699_s6 + $0x48] sm:$0xe] }
 0x111   : > { %3822 = vmatmul.mubr.bf16.gmra.mrb[112].mxu1 %v4647_v6  ;;  %v1953_v10 = vrot.slane %v6820_v36, 5  ;;  %5410 = vmatmul.mubr.bf16.vlgmr.msra.gmra.mrb[112].mxu0 %v4672_v37  ;;  %v1706_v6 = vrot.slane %v1705_v28, 4  ;;  %v1950_v2 = vsel %vm5935_vm5, %v1948_v19, %v1949_v9  ;;  %v1956_v18 = vrot.slane %v6828_v41, 5 }
 0x112   : > { %v4955_v44 = vpop.f32.mrb[12].mxu0  ;;  %v1716_v4 = vrot.slane %v1715_v50, 4  ;;  %v4673_v46 = vcombine.low %v1947_v54, %v1950_v2  ;;  %v5027_v39 = vpop.f32.mrb[12].mxu1  ;;  %v1723_v41 = vshrl.u32 %v7094_v58, 16  ;;  %v1726_v20 = vshll.u32 %v7094_v58, 16 }
 0x113   : > { %v4956_v32 = vpop.f32.mrb[13].mxu0  ;;  %v1954_v25 = vsel %vm5935_vm5, %v4530_v14, %v1953_v10  ;;  %v1955_v36 = vrot.slane %v1953_v10, 4  ;;  %v1711_v26 = vsel %vm5741_vm2, %v1706_v6, %v1710_v16  ;;  %v5028_v63 = vpop.f32.mrb[13].mxu1  ;;  %v1732_v53 = vshll.u32 %v7100_v8, 16  ;;  %v4516_v14 = vld [vmem:[%s5699_s6 + $0x54] sm:$0xe] }
 0x114   : > { %v7105_v5 = vadd.f32 %v4956_v32, %v4955_v44  ;;  %v4958_v31 = vpop.f32.mrb[14].mxu0  ;;  %v1721_v56 = vsel %vm5741_vm2, %v1716_v4, %v1720_v45  ;;  %5413 = vmatprep.mubr.bf16.mxu0 %v4673_v46  ;;  %v7121_v43 = vadd.f32 %v5028_v63, %v5027_v39  ;;  %v5030_v51 = vpop.f32.mrb[14].mxu1  ;;  %v1736_v0 = vshrl.u32 %v7100_v8, 16  ;;  %v7139_v39 = vld [vmem:[%s5699_s6 + $0xa0] sm:$0xf] }
 0x115   : > { %v4959_v49 = vpop.f32.mrb[15].mxu0  ;;  %v1957_v37 = vsel %vm5935_vm5, %v1955_v36, %v1956_v18  ;;  %v4664_v16 = vcombine.low %v1711_v26, %v1721_v56  ;;  %v5031_v9 = vpop.f32.mrb[15].mxu1  ;;  %v1725_v28 = vrot.slane %v1723_v41, 4  ;;  %v1728_v54 = vrot.slane %v1726_v20, 5  ;;  %v7132_v18 = vld [vmem:[%s5699_s6 + $0x9c] sm:$0xf] }
 0x116   : > { %v4674_v55 = vcombine.low %v1954_v25, %v1957_v37  ;;  %v7125_v19 = vadd.f32 %v5031_v9, %v5030_v51  ;;  %v1734_v45 = vrot.slane %v1732_v53, 5  ;;  %v1738_v44 = vrot.slane %v1736_v0, 4 }
 0x117   : > { %v1742_v50 = vshll.u32 %v7112_v15, 16  ;;  %3829 = vmatprep.mubr.bf16.mxu1 %v4664_v16  ;;  %v1729_v10 = vor.u32 %v1728_v54, %v1725_v28  ;;  %v4531_v32 = vrot.slane %v4515_v30, 9  ;;  %v1960_v6 = vrot.slane %v6859_v7, 5  ;;  %v7157_v54 = vld [vmem:[%s5699_s6 + $0xa4] sm:$0x1] }
 0x118   : > { %v1963_v2 = vrot.slane %v6870_v57, 5  ;;  %v1739_v4 = vor.u32 %v1738_v44, %v1734_v45  ;;  %v7134_v25 = vadd.f32 %v4959_v49, %v4958_v31  ;;  %v4649_v36 = vcombine.low %v7094_v58, %v7100_v8 }
 0x119   : > { %3830 = vmatmul.mubr.bf16.gmra.mrb[116].mxu1 %v4648_v47  ;;  %v1744_v46 = vrot.slane %v1742_v50, 5  ;;  %5414 = vmatmul.mubr.bf16.gmra.mrb[116].mxu0 %v4674_v55  ;;  %v1730_v26 = vrot.slane %v1729_v10, 4  ;;  %v1961_v63 = vsel %vm5935_vm5, %v4531_v32, %v1960_v6  ;;  %v1962_v7 = vrot.slane %v1960_v6, 4  ;;  %v4517_v32 = vld [vmem:[%s5699_s6 + $0x60] sm:$0xe] }
 0x11a   : > { %v4532_v41 = vrot.slane %v4516_v14, 9  ;;  %v1740_v57 = vrot.slane %v1739_v4, 4  ;;  %v1967_v20 = vrot.slane %v6897_v3, 5  ;;  %v1970_v47 = vrot.slane %v6904_v52, 5  ;;  %v5049_v31 = vpop.f32.mrb[16].mxu1 }
 0x11b   : > { %v1747_v53 = vshrl.u32 %v7132_v18, 16  ;;  %v1735_v58 = vsel %vm5741_vm2, %v1730_v26, %v1734_v45  ;;  %v1964_v56 = vsel %vm5935_vm5, %v1962_v7, %v1963_v2  ;;  %v5050_v37 = vpop.f32.mrb[17].mxu1  ;;  %v1750_v0 = vshll.u32 %v7132_v18, 16 }
 0x11c   : > { %v4961_v49 = vpop.f32.mrb[16].mxu0  ;;  %v1756_v3 = vshll.u32 %v7139_v39, 16  ;;  %v1745_v52 = vsel %vm5741_vm2, %v1740_v57, %v1744_v46  ;;  %v4675_v30 = vcombine.low %v1961_v63, %v1964_v56  ;;  %v1968_v16 = vsel %vm5935_vm5, %v4532_v41, %v1967_v20  ;;  %v5052_v9 = vpop.f32.mrb[18].mxu1 }
 0x11d   : > { %v4962_v51 = vpop.f32.mrb[17].mxu0  ;;  %v1969_v55 = vrot.slane %v1967_v20, 4  ;;  %v4665_v45 = vcombine.low %v1735_v58, %v1745_v52  ;;  %v5051_v44 = vadd.f32 %v5050_v37, %v5049_v31  ;;  %v5053_v14 = vpop.f32.mrb[19].mxu1  ;;  %v1749_v10 = vrot.slane %v1747_v53, 4  ;;  %v4518_v53 = vld [vmem:[%s5699_s6 + $0x6c] sm:$0xe] }
 0x11e   : > { %v4964_v28 = vpop.f32.mrb[18].mxu0  ;;  %v7159_v50 = vadd.f32 %v4962_v51, %v4961_v49  ;;  %5417 = vmatprep.mubr.bf16.mxu0 %v4675_v30  ;;  %v5054_v4 = vadd.f32 %v5053_v14, %v5052_v9  ;;  %v1752_v46 = vrot.slane %v1750_v0, 5  ;;  %v1758_v26 = vrot.slane %v1756_v3, 5  ;;  %v7178_v51 = vld [vmem:[%s5699_s6 + $0xa8] sm:$0xf] }
 0x11f   : > { %v4965_v6 = vpop.f32.mrb[19].mxu0  ;;  %v1971_v2 = vsel %vm5935_vm5, %v1969_v55, %v1970_v47  ;;  %3837 = vmatprep.mubr.bf16.mxu1 %v4665_v45  ;;  %v7165_v7 = vadd.f32 %v5051_v44, %v6977_v11  ;;  %v1760_v41 = vshrl.u32 %v7139_v39, 16  ;;  %v1766_v57 = vshll.u32 %v7157_v54, 16 }
 0x120   : > { %v4676_v63 = vcombine.low %v1968_v16, %v1971_v2  ;;  %v7170_v20 = vadd.f32 %v5054_v4, %v7002_v61  ;;  %v1753_v31 = vor.u32 %v1752_v46, %v1749_v10  ;;  %v4533_v49 = vrot.slane %v4517_v32, 9  ;;  %v7191_v10 = vld [vmem:[%s5699_s6 + $0xac] sm:$0xf] }
 0x121   : > { %3838 = vmatmul.mubr.bf16.gmra.mrb[120].mxu1 %v4649_v36  ;;  %v1974_v47 = vrot.slane %v6936_v35, 5  ;;  %v1762_v58 = vrot.slane %v1760_v41, 4  ;;  %v1768_v56 = vrot.slane %v1766_v57, 5  ;;  %v1977_v37 = vrot.slane %v6947_v42, 5  ;;  %v7202_v57 = vld [vmem:[%s5699_s6 + $0xb0] sm:$0x1] }
 0x122   : > { %5418 = vmatmul.mubr.bf16.gmra.mrb[120].mxu0 %v4676_v63  ;;  %v7175_v11 = vadd.f32 %v4965_v6, %v4964_v28  ;;  %v1754_v0 = vrot.slane %v1753_v31, 4  ;;  %v4650_v3 = vcombine.low %v7132_v18, %v7139_v39  ;;  %v5055_v35 = vpop.f32.mrb[20].mxu1  ;;  %v4534_v30 = vrot.slane %v4518_v53, 9 }
 0x123   : > { %v1975_v61 = vsel %vm5935_vm5, %v4533_v49, %v1974_v47  ;;  %v1976_v36 = vrot.slane %v1974_v47, 4  ;;  %v1763_v52 = vor.u32 %v1762_v58, %v1758_v26  ;;  %v1981_v16 = vrot.slane %v6984_v27, 5  ;;  %v5056_v55 = vpop.f32.mrb[21].mxu1  ;;  %v4519_v49 = vld [vmem:[%s5699_s6 + $0x78] sm:$0xe] }
 0x124   : > { %v1984_v42 = vrot.slane %v6992_v48, 5  ;;  %v4967_v9 = vpop.f32.mrb[20].mxu0  ;;  %v1759_v28 = vsel %vm5741_vm2, %v1754_v0, %v1758_v26  ;;  %v5057_v44 = vadd.f32 %v5056_v55, %v5055_v35  ;;  %v5058_v14 = vpop.f32.mrb[22].mxu1  ;;  %v1771_v32 = vshrl.u32 %v7178_v51, 16 }
 0x125   : > { %v1978_v45 = vsel %vm5935_vm5, %v1976_v36, %v1977_v37  ;;  %v4968_v18 = vpop.f32.mrb[21].mxu0  ;;  %v1764_v27 = vrot.slane %v1763_v52, 4  ;;  %v1982_v48 = vsel %vm5935_vm5, %v4534_v30, %v1981_v16  ;;  %v1983_v2 = vrot.slane %v1981_v16, 4  ;;  %v5059_v4 = vpop.f32.mrb[23].mxu1  ;;  %v4520_v52 = vld [vmem:[%s5699_s6 + $0x84] sm:$0xe] }
 0x126   : > { %v4677_v6 = vcombine.low %v1975_v61, %v1978_v45  ;;  %v4970_v46 = vpop.f32.mrb[22].mxu0  ;;  %v7197_v26 = vadd.f32 %v5057_v44, %v7022_v33  ;;  %v7199_v63 = vadd.f32 %v4968_v18, %v4967_v9  ;;  %v5060_v41 = vadd.f32 %v5059_v4, %v5058_v14 }
 0x127   : > { %v1773_v31 = vrot.slane %v1771_v32, 4  ;;  %v4971_v47 = vpop.f32.mrb[23].mxu0  ;;  %v1769_v53 = vsel %vm5741_vm2, %v1764_v27, %v1768_v56  ;;  %v1985_v58 = vsel %vm5935_vm5, %v1983_v2, %v1984_v42  ;;  %v1774_v37 = vshll.u32 %v7178_v51, 16 }
 0x128   : > { %5421 = vmatprep.mubr.bf16.mxu0 %v4677_v6  ;;  %v1780_v33 = vshll.u32 %v7191_v10, 16  ;;  %v4666_v0 = vcombine.low %v1759_v28, %v1769_v53  ;;  %v4678_v61 = vcombine.low %v1982_v48, %v1985_v58  ;;  %v7212_v36 = vadd.f32 %v5060_v41, %v7046_v62  ;;  %v7230_v53 = vld [vmem:[%s5699_s6 + $0xb4] sm:$0xf] }
 0x129   : > { %v1784_v35 = vshrl.u32 %v7191_v10, 16  ;;  %v1776_v30 = vrot.slane %v1774_v37, 5  ;;  %v1790_v56 = vshll.u32 %v7202_v57, 16  ;;  %v4535_v55 = vrot.slane %v4519_v49, 9 }
 0x12a   : > { %v1782_v16 = vrot.slane %v1780_v33, 5  ;;  %3845 = vmatprep.mubr.bf16.mxu1 %v4666_v0  ;;  %5422 = vmatmul.mubr.bf16.gmra.mrb[124].mxu0 %v4678_v61  ;;  %v1988_v9 = vrot.slane %v7012_v13, 5  ;;  %v1991_v45 = vrot.slane %v7027_v1, 5  ;;  %v7219_v28 = vadd.f32 %v4971_v47, %v4970_v46  ;;  %v5061_v44 = vpop.f32.mrb[24].mxu1  ;;  %v7237_v0 = vld [vmem:[%s5699_s6 + $0xb8] sm:$0xf] }
 0x12b   : > { %v1786_v42 = vrot.slane %v1784_v35, 4  ;;  %3846 = vmatmul.mubr.bf16.gmra.mrb[124].mxu1 %v4650_v3  ;;  %v1777_v62 = vor.u32 %v1776_v30, %v1773_v31  ;;  %v1792_v14 = vrot.slane %v1790_v56, 5  ;;  %v4651_v18 = vcombine.low %v7178_v51, %v7191_v10  ;;  %v5062_v27 = vpop.f32.mrb[25].mxu1  ;;  %v7245_v56 = vld [vmem:[%s5699_s6 + $0xbc] sm:$0x1] }
 0x12c   : > { %v4536_v32 = vrot.slane %v4520_v52, 9  ;;  %v4973_v6 = vpop.f32.mrb[24].mxu0  ;;  %v1989_v2 = vsel %vm5935_vm5, %v4535_v55, %v1988_v9  ;;  %v1990_v13 = vrot.slane %v1988_v9, 4  ;;  %v1995_v1 = vrot.slane %v7065_v24, 5  ;;  %v5064_v4 = vpop.f32.mrb[26].mxu1 }
 0x12d   : > { %v1787_v48 = vor.u32 %v1786_v42, %v1782_v16  ;;  %v4974_v46 = vpop.f32.mrb[25].mxu0  ;;  %v1778_v3 = vrot.slane %v1777_v62, 4  ;;  %v1998_v41 = vrot.slane %v7068_v38, 5  ;;  %v5063_v31 = vadd.f32 %v5062_v27, %v5061_v44  ;;  %v5065_v49 = vpop.f32.mrb[27].mxu1  ;;  %v4521_v44 = vld [vmem:[%s5699_s6 + $0x90] sm:$0xe] }
 0x12e   : > { %v7227_v51 = vadd.f32 %v4974_v46, %v4973_v6  ;;  %v4976_v47 = vpop.f32.mrb[26].mxu0  ;;  %v1992_v37 = vsel %vm5935_vm5, %v1990_v13, %v1991_v45  ;;  %v1996_v24 = vsel %vm5935_vm5, %v4536_v32, %v1995_v1  ;;  %v1997_v33 = vrot.slane %v1995_v1, 4  ;;  %v4522_v27 = vld [vmem:[%s5699_s6 + $0x9c] sm:$0xe] }
 0x12f   : > { %v1788_v58 = vrot.slane %v1787_v48, 4  ;;  %v4977_v38 = vpop.f32.mrb[27].mxu0  ;;  %v1783_v61 = vsel %vm5741_vm2, %v1778_v3, %v1782_v16  ;;  %v4679_v35 = vcombine.low %v1989_v2, %v1992_v37  ;;  %v7242_v52 = vadd.f32 %v5063_v31, %v7056_v17 }
 0x130   : > { %v5066_v30 = vadd.f32 %v5065_v49, %v5064_v4  ;;  %v1999_v42 = vsel %vm5935_vm5, %v1997_v33, %v1998_v41  ;;  %v1795_v9 = vshrl.u32 %v7230_v53, 16  ;;  %v1798_v45 = vshll.u32 %v7230_v53, 16 }
 0x131   : > { %v1793_v55 = vsel %vm5741_vm2, %v1788_v58, %v1792_v14  ;;  %5425 = vmatprep.mubr.bf16.mxu0 %v4679_v35  ;;  %v4680_v16 = vcombine.low %v1996_v24, %v1999_v42  ;;  %v1804_v32 = vshll.u32 %v7237_v0, 16  ;;  %v1808_v14 = vshrl.u32 %v7237_v0, 16 }
 0x132   : > { %v4667_v62 = vcombine.low %v1783_v61, %v1793_v55  ;;  %v7255_v17 = vadd.f32 %v5066_v30, %v7091_v59  ;;  %v1797_v6 = vrot.slane %v1795_v9, 4  ;;  %v1800_v48 = vrot.slane %v1798_v45, 5  ;;  %v5067_v13 = vpop.f32.mrb[28].mxu1 }
 0x133   : > { %v1814_v2 = vshll.u32 %v7245_v56, 16  ;;  %5426 = vmatmul.mubr.bf16.gmra.mrb[128].mxu0 %v4680_v16  ;;  %v1806_v1 = vrot.slane %v1804_v32, 5  ;;  %v4537_v4 = vrot.slane %v4521_v44, 9  ;;  %v2002_v46 = vrot.slane %v7100_v8, 5  ;;  %v5068_v59 = vpop.f32.mrb[29].mxu1 }
 0x134   : > { %3853 = vmatprep.mubr.bf16.mxu1 %v4667_v62  ;;  %v2005_v3 = vrot.slane %v7112_v15, 5  ;;  %v4979_v41 = vpop.f32.mrb[28].mxu0  ;;  %v1801_v31 = vor.u32 %v1800_v48, %v1797_v6  ;;  %v1810_v49 = vrot.slane %v1808_v14, 4  ;;  %v7263_v37 = vadd.f32 %v4977_v38, %v4976_v47  ;;  %v5070_v24 = vpop.f32.mrb[30].mxu1  ;;  %v7272_v38 = vld [vmem:[%s5699_s6 + $0xc0] sm:$0xf] }
 0x135   : > { %3854 = vmatmul.mubr.bf16.gmra.mrb[128].mxu1 %v4651_v18  ;;  %v1816_v58 = vrot.slane %v1814_v2, 5  ;;  %v4980_v33 = vpop.f32.mrb[29].mxu0  ;;  %v2003_v61 = vsel %vm5935_vm5, %v4537_v4, %v2002_v46  ;;  %v2004_v35 = vrot.slane %v2002_v46, 4  ;;  %v4652_v8 = vcombine.low %v7230_v53, %v7237_v0  ;;  %v5071_v30 = vpop.f32.mrb[31].mxu1  ;;  %v7279_v32 = vld [vmem:[%s5699_s6 + $0xc4] sm:$0xf] }
 0x136   : > { %v4538_v15 = vrot.slane %v4522_v27, 9  ;;  %v4982_v55 = vpop.f32.mrb[30].mxu0  ;;  %v1802_v18 = vrot.slane %v1801_v31, 4  ;;  %v1811_v42 = vor.u32 %v1810_v49, %v1806_v1  ;;  %v2009_v9 = vrot.slane %v7139_v39, 5  ;;  %v7286_v48 = vld [vmem:[%s5699_s6 + $0xc8] sm:$0x1] }
 0x137   : > { %v2012_v47 = vrot.slane %v7157_v54, 5  ;;  %v4983_v45 = vpop.f32.mrb[31].mxu0  ;;  %v2006_v44 = vsel %vm5935_vm5, %v2004_v35, %v2005_v3  ;;  %v5069_v62 = vadd.f32 %v5068_v59, %v5067_v13  ;;  %v7276_v16 = vadd.f32 %v4980_v33, %v4979_v41  ;;  %v4523_v41 = vld [vmem:[%s5699_s6 + $0xa8] sm:$0xe]  ;;  %v4524_v33 = vld [vmem:[%s5699_s6 + $0xb4] sm:$0xe] }
 0x138   : > { %v5072_v53 = vadd.f32 %v5071_v30, %v5070_v24  ;;  %v1807_v27 = vsel %vm5741_vm2, %v1802_v18, %v1806_v1  ;;  %v1812_v6 = vrot.slane %v1811_v42, 4  ;;  %v4681_v39 = vcombine.low %v2003_v61, %v2006_v44 }
 0x139   : > { %v2010_v54 = vsel %vm5935_vm5, %v4538_v15, %v2009_v9  ;;  %v2011_v14 = vrot.slane %v2009_v9, 4  ;;  %v7289_v2 = vadd.f32 %v5069_v62, %v7105_v5  ;;  %v1819_v4 = vshrl.u32 %v7272_v38, 16 }
 0x13a   : > { %v7292_v13 = vadd.f32 %v5072_v53, %v7134_v25  ;;  %v1817_v1 = vsel %vm5741_vm2, %v1812_v6, %v1816_v58  ;;  %5429 = vmatprep.mubr.bf16.mxu0 %v4681_v39  ;;  %v1822_v46 = vshll.u32 %v7272_v38, 16  ;;  %v1828_v3 = vshll.u32 %v7279_v32, 16  ;;  %v5073_v31 = vpop.f32.mrb[32].mxu1 }
 0x13b   : > { %v1832_v59 = vshrl.u32 %v7279_v32, 16  ;;  %v4668_v49 = vcombine.low %v1807_v27, %v1817_v1  ;;  %v2013_v5 = vsel %vm5935_vm5, %v2011_v14, %v2012_v47  ;;  %v1821_v25 = vrot.slane %v1819_v4, 4  ;;  %v5074_v61 = vpop.f32.mrb[33].mxu1 }
 0x13c   : > { %v1838_v24 = vshll.u32 %v7286_v48, 16  ;;  %v4985_v35 = vpop.f32.mrb[32].mxu0  ;;  %v4682_v58 = vcombine.low %v2010_v54, %v2013_v5  ;;  %v1824_v15 = vrot.slane %v1822_v46, 5  ;;  %v1830_v30 = vrot.slane %v1828_v3, 5  ;;  %v5076_v42 = vpop.f32.mrb[34].mxu1 }
 0x13d   : > { %v1834_v18 = vrot.slane %v1832_v59, 4  ;;  %v4986_v9 = vpop.f32.mrb[33].mxu0  ;;  %3861 = vmatprep.mubr.bf16.mxu1 %v4668_v49  ;;  %v4539_v62 = vrot.slane %v4523_v41, 9  ;;  %v2016_v53 = vrot.slane %v7191_v10, 5  ;;  %v2019_v27 = vrot.slane %v7202_v57, 5  ;;  %v5077_v47 = vpop.f32.mrb[35].mxu1 }
 0x13e   : > { %v1840_v44 = vrot.slane %v1838_v24, 5  ;;  %v4988_v6 = vpop.f32.mrb[34].mxu0  ;;  %3862 = vmatmul.mubr.bf16.gmra.mrb[132].mxu1 %v4652_v8  ;;  %5430 = vmatmul.mubr.bf16.gmra.mrb[132].mxu0 %v4682_v58  ;;  %v1825_v39 = vor.u32 %v1824_v15, %v1821_v25  ;;  %v7307_v54 = vadd.f32 %v4983_v45, %v4982_v55  ;;  %v4540_v4 = vrot.slane %v4524_v33, 9  ;;  %v7316_v45 = vld [vmem:[%s5699_s6 + $0xcc] sm:$0xf] }
 0x13f   : > { %v1835_v14 = vor.u32 %v1834_v18, %v1830_v30  ;;  %v4989_v1 = vpop.f32.mrb[35].mxu0  ;;  %v2017_v46 = vsel %vm5935_vm5, %v4539_v62, %v2016_v53  ;;  %v2018_v3 = vrot.slane %v2016_v53, 4  ;;  %v4653_v10 = vcombine.low %v7272_v38, %v7279_v32  ;;  %v7325_v38 = vld [vmem:[%s5699_s6 + $0xd0] sm:$0xf]  ;;  %v4525_v58 = vld [vmem:[%s5699_s6 + $0xc0] sm:$0xe] }
 0x140   : > { %v2023_v57 = vrot.slane %v7237_v0, 5  ;;  %v1826_v8 = vrot.slane %v1825_v39, 4  ;;  %v2026_v41 = vrot.slane %v7245_v56, 5  ;;  %v5075_v55 = vadd.f32 %v5074_v61, %v5073_v31  ;;  %v7335_v61 = vld [vmem:[%s5699_s6 + $0xd4] sm:$0x1] }
 0x141   : > { %v1836_v59 = vrot.slane %v1835_v14, 4  ;;  %v2020_v49 = vsel %vm5935_vm5, %v2018_v3, %v2019_v27  ;;  %v7322_v24 = vadd.f32 %v4986_v9, %v4985_v35  ;;  %v5078_v9 = vadd.f32 %v5077_v47, %v5076_v42  ;;  %v4526_v14 = vld [vmem:[%s5699_s6 + $0xcc] sm:$0xe]  ;;  %s4793_s6 = sshll.u32 %s7691_s9, 7 }
 0x142   : > { %v2024_v5 = vsel %vm5935_vm5, %v4540_v4, %v2023_v57  ;;  %v2025_v25 = vrot.slane %v2023_v57, 4  ;;  %v1831_v0 = vsel %vm5741_vm2, %v1826_v8, %v1830_v30  ;;  %v4683_v31 = vcombine.low %v2017_v46, %v2020_v49  ;;  %v5079_v15 = vpop.f32.mrb[36].mxu1  ;;  %s7605_s24 = scalar_lea.vmem %s7671_s2, %s4793_s6 }
 0x143   : > { %v1841_v56 = vsel %vm5741_vm2, %v1836_v59, %v1840_v44  ;;  %v7332_v33 = vadd.f32 %v5075_v55, %v7159_v50  ;;  %v1843_v62 = vshrl.u32 %v7316_v45, 16  ;;  %v5080_v30 = vpop.f32.mrb[37].mxu1  ;;  %v1846_v27 = vshll.u32 %v7316_v45, 16 }
 0x144   : > { %v4669_v18 = vcombine.low %v1831_v0, %v1841_v56  ;;  %v2027_v35 = vsel %vm5935_vm5, %v2025_v25, %v2026_v41  ;;  %v4991_v53 = vpop.f32.mrb[36].mxu0  ;;  %5433 = vmatprep.mubr.bf16.mxu0 %v4683_v31  ;;  %v1852_v50 = vshll.u32 %v7325_v38, 16  ;;  %v1856_v39 = vshrl.u32 %v7325_v38, 16  ;;  %v5082_v4 = vpop.f32.mrb[38].mxu1 }
 0x145   : > { %v4684_v44 = vcombine.low %v2024_v5, %v2027_v35  ;;  %v4992_v46 = vpop.f32.mrb[37].mxu0  ;;  %v7346_v3 = vadd.f32 %v5078_v9, %v7175_v11  ;;  %v1845_v42 = vrot.slane %v1843_v62, 4  ;;  %v1862_v47 = vshll.u32 %v7335_v61, 16  ;;  %v5083_v8 = vpop.f32.mrb[39].mxu1 }
 0x146   : > { %3869 = vmatprep.mubr.bf16.mxu1 %v4669_v18  ;;  %v4541_v57 = vrot.slane %v4525_v58, 9  ;;  %v4994_v59 = vpop.f32.mrb[38].mxu0  ;;  %v1848_v41 = vrot.slane %v1846_v27, 5  ;;  %v1854_v55 = vrot.slane %v1852_v50, 5  ;;  %v1858_v49 = vrot.slane %v1856_v39, 4 }
 0x147   : > { %3870 = vmatmul.mubr.bf16.gmra.mrb[136].mxu1 %v4653_v10  ;;  %5434 = vmatmul.mubr.bf16.gmra.mrb[136].mxu0 %v4684_v44  ;;  %v2030_v5 = vrot.slane %v7279_v32, 5  ;;  %v4995_v25 = vpop.f32.mrb[39].mxu0  ;;  %v1864_v0 = vrot.slane %v1862_v47, 5  ;;  %v2033_v56 = vrot.slane %v7286_v48, 5  ;;  %v7351_v31 = vadd.f32 %v4989_v1, %v4988_v6 }
 0x148   : > { %v4654_v11 = vcombine.low %v7316_v45, %v7325_v38  ;;  %v1849_v18 = vor.u32 %v1848_v41, %v1845_v42  ;;  %v1859_v58 = vor.u32 %v1858_v49, %v1854_v55  ;;  %v4542_v9 = vrot.slane %v4526_v14, 9 }
 0x149   : > { %v2031_v10 = vsel %vm5935_vm5, %v4541_v57, %v2030_v5  ;;  %v2032_v35 = vrot.slane %v2030_v5, 4  ;;  %v2037_v62 = vrot.slane %v7325_v38, 5  ;;  %v2040_v32 = vrot.slane %v7335_v61, 5 }
 0x14a   : > { %v5081_v44 = vadd.f32 %v5080_v30, %v5079_v15  ;;  %v1850_v27 = vrot.slane %v1849_v18, 4  ;;  %v1860_v50 = vrot.slane %v1859_v58, 4  ;;  %v7361_v6 = vadd.f32 %v4992_v46, %v4991_v53  ;;  %v5085_v1 = vpop.f32.mrb[40].mxu1 }
 0x14b   : > { %v2034_v48 = vsel %vm5935_vm5, %v2032_v35, %v2033_v56  ;;  %v2038_v39 = vsel %vm5935_vm5, %v4542_v9, %v2037_v62  ;;  %v2039_v42 = vrot.slane %v2037_v62, 4  ;;  %v5086_v38 = vpop.f32.mrb[41].mxu1  ;;  %v5084_v30 = vadd.f32 %v5083_v8, %v5082_v4 }
 0x14c   : > { %v4685_v45 = vcombine.low %v2031_v10, %v2034_v48  ;;  %v7366_v14 = vadd.f32 %v5081_v44, %v7199_v63  ;;  %v4997_v47 = vpop.f32.mrb[40].mxu0  ;;  %v1855_v61 = vsel %vm5741_vm2, %v1850_v27, %v1854_v55  ;;  %v1865_v15 = vsel %vm5741_vm2, %v1860_v50, %v1864_v0  ;;  %v5088_v46 = vpop.f32.mrb[42].mxu1 }
 0x14d   : > { %v7372_v53 = vadd.f32 %v4995_v25, %v4994_v59  ;;  %v4998_v57 = vpop.f32.mrb[41].mxu0  ;;  %v4670_v41 = vcombine.low %v1855_v61, %v1865_v15  ;;  %v2041_v49 = vsel %vm5935_vm5, %v2039_v42, %v2040_v32  ;;  %v5087_v63 = vadd.f32 %v5086_v38, %v5085_v1  ;;  %v5089_v56 = vpop.f32.mrb[43].mxu1 }
 0x14e   : > { %5437 = vmatprep.mubr.bf16.mxu0 %v4685_v45  ;;  %v7376_v5 = vadd.f32 %v4998_v57, %v4997_v47  ;;  %v5000_v18 = vpop.f32.mrb[42].mxu0  ;;  %v4686_v58 = vcombine.low %v2038_v39, %v2041_v49  ;;  %v7379_v55 = vadd.f32 %v5084_v30, %v7219_v28  ;;  %v5090_v34 = vadd.f32 %v5089_v56, %v5088_v46 }
 0x14f   : > { %v5001_v4 = vpop.f32.mrb[43].mxu0  ;;  %3877 = vmatprep.mubr.bf16.mxu1 %v4670_v41  ;;  %v7382_v8 = vadd.f32 %v5087_v63, %v7227_v51 }
 0x150   : > { %v7384_v59 = vadd.f32 %v5001_v4, %v5000_v18  ;;  %3878 = vmatmul.mubr.bf16.gmra.mrb[140].mxu1 %v4654_v11  ;;  %5438 = vmatmul.mubr.bf16.gmra.mrb[140].mxu0 %v4686_v58  ;;  %v7387_v22 = vadd.f32 %v5090_v34, %v7263_v37 }
 0x152   : > { %v5091_v25 = vpop.f32.mrb[44].mxu1 }
 0x153   : > { %v5092_v0 = vpop.f32.mrb[45].mxu1 }
 0x154   : > { %v5003_v10 = vpop.f32.mrb[44].mxu0  ;;  %v5093_v35 = vadd.f32 %v5092_v0, %v5091_v25  ;;  %v5094_v9 = vpop.f32.mrb[46].mxu1 }
 0x155   : > { %v5004_v28 = vpop.f32.mrb[45].mxu0  ;;  %v5095_v32 = vpop.f32.mrb[47].mxu1 }
 0x156   : > { %v7389_v62 = vadd.f32 %v5004_v28, %v5003_v10  ;;  %v5006_v44 = vpop.f32.mrb[46].mxu0  ;;  %v7392_v51 = vadd.f32 %v5093_v35, %v7276_v16  ;;  %v5096_v27 = vadd.f32 %v5095_v32, %v5094_v9 }
 0x157   : > { %v5007_v50 = vpop.f32.mrb[47].mxu0 }
 0x158   : > { %v7394_v11 = vadd.f32 %v5007_v50, %v5006_v44  ;;  %v7397_v37 = vadd.f32 %v5096_v27, %v7307_v54 }
 0x15a   : > { %v5097_v48 = vpop.f32.mrb[48].mxu1 }
 0x15b   : > { %v5098_v45 = vpop.f32.mrb[49].mxu1 }
 0x15c   : > { %v5161_v1 = vpop.f32.mrb[48].mxu0  ;;  %v5099_v39 = vadd.f32 %v5098_v45, %v5097_v48  ;;  %v5100_v38 = vpop.f32.mrb[50].mxu1 }
 0x15d   : > { %v5162_v42 = vpop.f32.mrb[49].mxu0  ;;  %v5101_v15 = vpop.f32.mrb[51].mxu1 }
 0x15e   : > { %v5163_v47 = vadd.f32 %v5162_v42, %v5161_v1  ;;  %v5164_v61 = vpop.f32.mrb[50].mxu0  ;;  %v7400_v30 = vadd.f32 %v5099_v39, %v7322_v24  ;;  %v5102_v16 = vadd.f32 %v5101_v15, %v5100_v38 }
 0x15f   : > { %v5165_v46 = vpop.f32.mrb[51].mxu0 }
 0x160   : > { %v7403_v57 = vadd.f32 %v5163_v47, %v7165_v7  ;;  %v5166_v41 = vadd.f32 %v5165_v46, %v5164_v61  ;;  %v7406_v54 = vadd.f32 %v5102_v16, %v7351_v31 }
 0x162   : > { %v7409_v49 = vadd.f32 %v5166_v41, %v7170_v20  ;;  %v5103_v63 = vpop.f32.mrb[52].mxu1 }
 0x163   : > { %v5104_v18 = vpop.f32.mrb[53].mxu1 }
 0x164   : > { %v5167_v56 = vpop.f32.mrb[52].mxu0  ;;  %v5105_v58 = vadd.f32 %v5104_v18, %v5103_v63  ;;  %v5106_v4 = vpop.f32.mrb[54].mxu1 }
 0x165   : > { %v5168_v34 = vpop.f32.mrb[53].mxu0  ;;  %v5107_v0 = vpop.f32.mrb[55].mxu1 }
 0x166   : > { %v5169_v24 = vadd.f32 %v5168_v34, %v5167_v56  ;;  %v5170_v25 = vpop.f32.mrb[54].mxu0  ;;  %v7412_v10 = vadd.f32 %v5105_v58, %v7361_v6  ;;  %v5108_v7 = vadd.f32 %v5107_v0, %v5106_v4 }
 0x167   : > { %v5171_v35 = vpop.f32.mrb[55].mxu0 }
 0x168   : > { %v7415_v31 = vadd.f32 %v5169_v24, %v7197_v26  ;;  %v5172_v9 = vadd.f32 %v5171_v35, %v5170_v25  ;;  %v7418_v20 = vadd.f32 %v5108_v7, %v7372_v53 }
 0x16a   : > { %v7421_v28 = vadd.f32 %v5172_v9, %v7212_v36  ;;  %v5109_v32 = vpop.f32.mrb[56].mxu1 }
 0x16b   : > { %v5110_v27 = vpop.f32.mrb[57].mxu1 }
 0x16c   : > { %v5173_v44 = vpop.f32.mrb[56].mxu0  ;;  %v5111_v50 = vadd.f32 %v5110_v27, %v5109_v32  ;;  %v5112_v1 = vpop.f32.mrb[58].mxu1 }
 0x16d   : > { %v5174_v48 = vpop.f32.mrb[57].mxu0  ;;  %v5113_v39 = vpop.f32.mrb[59].mxu1 }
 0x16e   : > { %v5175_v6 = vadd.f32 %v5174_v48, %v5173_v44  ;;  %v5176_v45 = vpop.f32.mrb[58].mxu0  ;;  %v7424_v42 = vadd.f32 %v5111_v50, %v7376_v5  ;;  %v5114_v26 = vadd.f32 %v5113_v39, %v5112_v1 }
 0x16f   : > { %v5177_v38 = vpop.f32.mrb[59].mxu0 }
 0x170   : > { %v7427_v53 = vadd.f32 %v5175_v6, %v7242_v52  ;;  %v5178_v47 = vadd.f32 %v5177_v38, %v5176_v45  ;;  %v7430_v36 = vadd.f32 %v5114_v26, %v7384_v59 }
 0x172   : > { %v7433_v61 = vadd.f32 %v5178_v47, %v7255_v17  ;;  %v5115_v15 = vpop.f32.mrb[60].mxu1 }
 0x173   : > { %v5116_v46 = vpop.f32.mrb[61].mxu1 }
 0x174   : > { %v5179_v16 = vpop.f32.mrb[60].mxu0  ;;  %v5117_v41 = vadd.f32 %v5116_v46, %v5115_v15  ;;  %v5118_v56 = vpop.f32.mrb[62].mxu1 }
 0x175   : > { %v5180_v63 = vpop.f32.mrb[61].mxu0  ;;  %v5119_v58 = vpop.f32.mrb[63].mxu1 }
 0x176   : > { %v5181_v5 = vadd.f32 %v5180_v63, %v5179_v16  ;;  %v5182_v18 = vpop.f32.mrb[62].mxu0  ;;  %v7436_v34 = vadd.f32 %v5117_v41, %v7389_v62  ;;  %v5120_v52 = vadd.f32 %v5119_v58, %v5118_v56 }
 0x177   : > { %v5183_v4 = vpop.f32.mrb[63].mxu0 }
 0x178   : > { %v7439_v59 = vadd.f32 %v5181_v5, %v7289_v2  ;;  %v5184_v24 = vadd.f32 %v5183_v4, %v5182_v18  ;;  %v7442_v17 = vadd.f32 %v5120_v52, %v7394_v11 }
 0x17a   : > { %v7445_v25 = vadd.f32 %v5184_v24, %v7292_v13  ;;  %v5121_v0 = vpop.f32.mrb[64].mxu1 }
 0x17b   : > { %v5122_v35 = vpop.f32.mrb[65].mxu1 }
 0x17c   : > { %v5185_v7 = vpop.f32.mrb[64].mxu0  ;;  %v5123_v9 = vadd.f32 %v5122_v35, %v5121_v0  ;;  %v5124_v44 = vpop.f32.mrb[66].mxu1 }
 0x17d   : > { %v5186_v32 = vpop.f32.mrb[65].mxu0  ;;  %v5125_v50 = vpop.f32.mrb[67].mxu1 }
 0x17e   : > { %v5187_v62 = vadd.f32 %v5186_v32, %v5185_v7  ;;  %v5188_v27 = vpop.f32.mrb[66].mxu0  ;;  %v7448_v48 = vadd.f32 %v5123_v9, %v6975_v21  ;;  %v5126_v2 = vadd.f32 %v5125_v50, %v5124_v44 }
 0x17f   : > { %v5189_v1 = vpop.f32.mrb[67].mxu0 }
 0x180   : > { %v7451_v11 = vadd.f32 %v5187_v62, %v7332_v33  ;;  %v5190_v6 = vadd.f32 %v5189_v1, %v5188_v27  ;;  %v7454_v13 = vadd.f32 %v5126_v2, %v6979_v12 }
 0x182   : > { %v7457_v45 = vadd.f32 %v5190_v6, %v7346_v3  ;;  %v5127_v39 = vpop.f32.mrb[68].mxu1 }
 0x183   : > { %v5128_v38 = vpop.f32.mrb[69].mxu1 }
 0x184   : > { %v5191_v26 = vpop.f32.mrb[68].mxu0  ;;  %v5129_v47 = vadd.f32 %v5128_v38, %v5127_v39  ;;  %v5130_v16 = vpop.f32.mrb[70].mxu1 }
 0x185   : > { %v5192_v15 = vpop.f32.mrb[69].mxu0  ;;  %v5131_v41 = vpop.f32.mrb[71].mxu1 }
 0x186   : > { %v5193_v21 = vadd.f32 %v5192_v15, %v5191_v26  ;;  %v5194_v46 = vpop.f32.mrb[70].mxu0  ;;  %v7460_v63 = vadd.f32 %v5129_v47, %v7020_v40  ;;  %v5132_v33 = vadd.f32 %v5131_v41, %v5130_v16 }
 0x187   : > { %v5195_v56 = vpop.f32.mrb[71].mxu0 }
 0x188   : > { %v7463_v12 = vadd.f32 %v5193_v21, %v7366_v14  ;;  %v5196_v5 = vadd.f32 %v5195_v56, %v5194_v46  ;;  %v7466_v3 = vadd.f32 %v5132_v33, %v7030_v23 }
 0x18a   : > { %v7469_v18 = vadd.f32 %v5196_v5, %v7379_v55  ;;  %v5133_v58 = vpop.f32.mrb[72].mxu1 }
 0x18b   : > { %v5134_v4 = vpop.f32.mrb[73].mxu1 }
 0x18c   : > { %v5197_v52 = vpop.f32.mrb[72].mxu0  ;;  %v5135_v24 = vadd.f32 %v5134_v4, %v5133_v58  ;;  %v5136_v7 = vpop.f32.mrb[74].mxu1 }
 0x18d   : > { %v5198_v0 = vpop.f32.mrb[73].mxu0  ;;  %v5137_v9 = vpop.f32.mrb[75].mxu1 }
 0x18e   : > { %v5199_v40 = vadd.f32 %v5198_v0, %v5197_v52  ;;  %v5200_v35 = vpop.f32.mrb[74].mxu0  ;;  %v7472_v32 = vadd.f32 %v5135_v24, %v7062_v60  ;;  %v5138_v14 = vadd.f32 %v5137_v9, %v5136_v7 }
 0x18f   : > { %v5201_v44 = vpop.f32.mrb[75].mxu0 }
 0x190   : > { %v7475_v23 = vadd.f32 %v5199_v40, %v7382_v8  ;;  %v5202_v62 = vadd.f32 %v5201_v44, %v5200_v35  ;;  %v7478_v55 = vadd.f32 %v5138_v14, %v7076_v29 }
 0x192   : > { %v7481_v27 = vadd.f32 %v5202_v62, %v7387_v22  ;;  %v5139_v50 = vpop.f32.mrb[76].mxu1 }
 0x193   : > { %v5140_v1 = vpop.f32.mrb[77].mxu1 }
 0x194   : > { %v5203_v2 = vpop.f32.mrb[76].mxu0  ;;  %v5141_v6 = vadd.f32 %v5140_v1, %v5139_v50  ;;  %v5142_v26 = vpop.f32.mrb[78].mxu1 }
 0x195   : > { %v5204_v39 = vpop.f32.mrb[77].mxu0  ;;  %v5143_v47 = vpop.f32.mrb[79].mxu1 }
 0x196   : > { %v5205_v60 = vadd.f32 %v5204_v39, %v5203_v2  ;;  %v5206_v38 = vpop.f32.mrb[78].mxu0  ;;  %v7484_v15 = vadd.f32 %v5141_v6, %v7121_v43  ;;  %v5144_v8 = vadd.f32 %v5143_v47, %v5142_v26 }
 0x197   : > { %v5207_v16 = vpop.f32.mrb[79].mxu0 }
 0x198   : > { %v7487_v29 = vadd.f32 %v5205_v60, %v7392_v51  ;;  %v5208_v21 = vadd.f32 %v5207_v16, %v5206_v38  ;;  %v7490_v22 = vadd.f32 %v5144_v8, %v7125_v19 }
 0x19a   : > { %v7493_v46 = vadd.f32 %v5208_v21, %v7397_v37  ;;  %v5273_v41 = vpop.f32.mrb[80].mxu1 }
 0x19b   : > { %v5274_v56 = vpop.f32.mrb[81].mxu1 }
 0x19c   : > { %v5209_v33 = vpop.f32.mrb[80].mxu0  ;;  %v5275_v58 = vadd.f32 %v5274_v56, %v5273_v41  ;;  %v5276_v52 = vpop.f32.mrb[82].mxu1 }
 0x19d   : > { %v5210_v5 = vpop.f32.mrb[81].mxu0  ;;  %v5277_v24 = vpop.f32.mrb[83].mxu1 }
 0x19e   : > { %v5211_v43 = vadd.f32 %v5210_v5, %v5209_v33  ;;  %v5212_v4 = vpop.f32.mrb[82].mxu0  ;;  %v5278_v7 = vadd.f32 %v5277_v24, %v5276_v52  ;;  %v7496_v51 = vadd.f32 %v5275_v58, %v7403_v57 }
 0x19f   : > { %v5213_v0 = vpop.f32.mrb[83].mxu0 }
 0x1a0   : > { %v7499_v19 = vadd.f32 %v5211_v43, %v7400_v30  ;;  %v5214_v40 = vadd.f32 %v5213_v0, %v5212_v4  ;;  %v7502_v37 = vadd.f32 %v5278_v7, %v7409_v49 }
 0x1a2   : > { %v7505_v35 = vadd.f32 %v5214_v40, %v7406_v54  ;;  %v5279_v9 = vpop.f32.mrb[84].mxu1 }
 0x1a3   : > { %v5280_v44 = vpop.f32.mrb[85].mxu1 }
 0x1a4   : > { %v5215_v14 = vpop.f32.mrb[84].mxu0  ;;  %v5281_v50 = vadd.f32 %v5280_v44, %v5279_v9  ;;  %v5282_v2 = vpop.f32.mrb[86].mxu1 }
 0x1a5   : > { %v5216_v62 = vpop.f32.mrb[85].mxu0  ;;  %v5283_v57 = vpop.f32.mrb[87].mxu1 }
 0x1a6   : > { %v5217_v1 = vadd.f32 %v5216_v62, %v5215_v14  ;;  %v5218_v6 = vpop.f32.mrb[86].mxu0  ;;  %v5284_v26 = vadd.f32 %v5283_v57, %v5282_v2  ;;  %v7508_v30 = vadd.f32 %v5281_v50, %v7415_v31 }
 0x1a7   : > { %v5219_v39 = vpop.f32.mrb[87].mxu0 }
 0x1a8   : > { %v7511_v49 = vadd.f32 %v5217_v1, %v7412_v10  ;;  %v5220_v60 = vadd.f32 %v5219_v39, %v5218_v6  ;;  %v7514_v54 = vadd.f32 %v5284_v26, %v7421_v28 }
 0x1aa   : > { %v7517_v38 = vadd.f32 %v5220_v60, %v7418_v20  ;;  %v5285_v47 = vpop.f32.mrb[88].mxu1 }
 0x1ab   : > { %v5286_v8 = vpop.f32.mrb[89].mxu1 }
 0x1ac   : > { %v5221_v16 = vpop.f32.mrb[88].mxu0  ;;  %v5287_v21 = vadd.f32 %v5286_v8, %v5285_v47  ;;  %v5288_v41 = vpop.f32.mrb[90].mxu1 }
 0x1ad   : > { %v5222_v33 = vpop.f32.mrb[89].mxu0  ;;  %v5289_v56 = vpop.f32.mrb[91].mxu1 }
 0x1ae   : > { %v5223_v5 = vadd.f32 %v5222_v33, %v5221_v16  ;;  %v5224_v31 = vpop.f32.mrb[90].mxu0  ;;  %v5290_v58 = vadd.f32 %v5289_v56, %v5288_v41  ;;  %v7520_v10 = vadd.f32 %v5287_v21, %v7427_v53 }
 0x1af   : > { %v5225_v52 = vpop.f32.mrb[91].mxu0 }
 0x1b0   : > { %v7523_v28 = vadd.f32 %v5223_v5, %v7424_v42  ;;  %v5226_v43 = vadd.f32 %v5225_v52, %v5224_v31  ;;  %v7526_v20 = vadd.f32 %v5290_v58, %v7433_v61 }
 0x1b2   : > { %v7529_v4 = vadd.f32 %v5226_v43, %v7430_v36 }
 0x1b3   : > { %v5291_v24 = vpop.f32.mrb[92].mxu1 }
 0x1b4   : > { %v5292_v0 = vpop.f32.mrb[93].mxu1 }
 0x1b5   : > { %v5227_v7 = vpop.f32.mrb[92].mxu0  ;;  %v5293_v40 = vadd.f32 %v5292_v0, %v5291_v24  ;;  %v5294_v9 = vpop.f32.mrb[94].mxu1 }
 0x1b6   : > { %v5228_v14 = vpop.f32.mrb[93].mxu0  ;;  %v5295_v44 = vpop.f32.mrb[95].mxu1 }
 0x1b7   : > { %v5229_v53 = vadd.f32 %v5228_v14, %v5227_v7  ;;  %v5230_v62 = vpop.f32.mrb[94].mxu0  ;;  %v5296_v50 = vadd.f32 %v5295_v44, %v5294_v9  ;;  %v7532_v42 = vadd.f32 %v5293_v40, %v7439_v59 }
 0x1b8   : > { %v5231_v2 = vpop.f32.mrb[95].mxu0 }
 0x1b9   : > { %v7535_v61 = vadd.f32 %v5229_v53, %v7436_v34  ;;  %v5232_v1 = vadd.f32 %v5231_v2, %v5230_v62  ;;  %v7538_v36 = vadd.f32 %v5296_v50, %v7445_v25 }
 0x1bb   : > { %v7541_v6 = vadd.f32 %v5232_v1, %v7442_v17 }
 0x1bc   : > { %v5297_v57 = vpop.f32.mrb[96].mxu1 }
 0x1bd   : > { %v5298_v39 = vpop.f32.mrb[97].mxu1  ;;  %v5233_v26 = vpop.f32.mrb[96].mxu0 }
 0x1be   : > { %v5299_v60 = vadd.f32 %v5298_v39, %v5297_v57  ;;  %v5300_v47 = vpop.f32.mrb[98].mxu1  ;;  %v5234_v8 = vpop.f32.mrb[97].mxu0 }
 0x1bf   : > { %v5301_v16 = vpop.f32.mrb[99].mxu1  ;;  %v5235_v59 = vadd.f32 %v5234_v8, %v5233_v26  ;;  %v5236_v21 = vpop.f32.mrb[98].mxu0 }
 0x1c0   : > { %v5302_v41 = vadd.f32 %v5301_v16, %v5300_v47  ;;  %v7544_v34 = vadd.f32 %v5299_v60, %v7451_v11  ;;  %v5237_v33 = vpop.f32.mrb[99].mxu0 }
 0x1c1   : > { %v7547_v25 = vadd.f32 %v5235_v59, %v7448_v48  ;;  %v5238_v56 = vadd.f32 %v5237_v33, %v5236_v21 }
 0x1c2   : > { %v7550_v17 = vadd.f32 %v5302_v41, %v7457_v45 }
 0x1c3   : > { %v7553_v5 = vadd.f32 %v5238_v56, %v7454_v13 }
 0x1c5   : > { %v5303_v31 = vpop.f32.mrb[100].mxu1 }
 0x1c6   : > { %v5304_v58 = vpop.f32.mrb[101].mxu1 }
 0x1c7   : > { %v5239_v52 = vpop.f32.mrb[100].mxu0  ;;  %v5305_v43 = vadd.f32 %v5304_v58, %v5303_v31  ;;  %v5306_v24 = vpop.f32.mrb[102].mxu1 }
 0x1c8   : > { %v5240_v0 = vpop.f32.mrb[101].mxu0  ;;  %v5307_v7 = vpop.f32.mrb[103].mxu1 }
 0x1c9   : > { %v5241_v11 = vadd.f32 %v5240_v0, %v5239_v52  ;;  %v5242_v40 = vpop.f32.mrb[102].mxu0  ;;  %v5308_v9 = vadd.f32 %v5307_v7, %v5306_v24  ;;  %v7556_v48 = vadd.f32 %v5305_v43, %v7463_v12 }
 0x1ca   : > { %v5243_v14 = vpop.f32.mrb[103].mxu0 }
 0x1cb   : > { %v7559_v45 = vadd.f32 %v5241_v11, %v7460_v63  ;;  %v5244_v44 = vadd.f32 %v5243_v14, %v5242_v40  ;;  %v7562_v13 = vadd.f32 %v5308_v9, %v7469_v18 }
 0x1cd   : > { %v7565_v53 = vadd.f32 %v5244_v44, %v7466_v3 }
 0x1cf   : > { %v5309_v62 = vpop.f32.mrb[104].mxu1 }
 0x1d0   : > { %v5310_v50 = vpop.f32.mrb[105].mxu1 }
 0x1d1   : > { %v5311_v2 = vadd.f32 %v5310_v50, %v5309_v62  ;;  %v5312_v1 = vpop.f32.mrb[106].mxu1 }
 0x1d2   : > { %v5313_v39 = vpop.f32.mrb[107].mxu1 }
 0x1d3   : > { %v5245_v57 = vpop.f32.mrb[104].mxu0  ;;  %v5314_v12 = vadd.f32 %v5313_v39, %v5312_v1  ;;  %v7568_v60 = vadd.f32 %v5311_v2, %v7475_v23 }
 0x1d4   : > { %v5246_v26 = vpop.f32.mrb[105].mxu0 }
 0x1d5   : > { %v5247_v63 = vadd.f32 %v5246_v26, %v5245_v57  ;;  %v5248_v47 = vpop.f32.mrb[106].mxu0  ;;  %v7571_v18 = vadd.f32 %v5314_v12, %v7481_v27 }
 0x1d6   : > { %v5249_v8 = vpop.f32.mrb[107].mxu0 }
 0x1d7   : > { %v7574_v3 = vadd.f32 %v5247_v63, %v7472_v32  ;;  %v5250_v16 = vadd.f32 %v5249_v8, %v5248_v47 }
 0x1d9   : > { %v7577_v59 = vadd.f32 %v5250_v16, %v7478_v55 }
 0x1dc   : > { %v5315_v21 = vpop.f32.mrb[108].mxu1  ;;  %v5251_v33 = vpop.f32.mrb[108].mxu0 }
 0x1dd   : > { %v5316_v41 = vpop.f32.mrb[109].mxu1  ;;  %v5252_v23 = vpop.f32.mrb[109].mxu0 }
 0x1de   : > { %v5317_v56 = vadd.f32 %v5316_v41, %v5315_v21  ;;  %v5318_v31 = vpop.f32.mrb[110].mxu1  ;;  %v5253_v52 = vadd.f32 %v5252_v23, %v5251_v33  ;;  %v5254_v43 = vpop.f32.mrb[110].mxu0 }
 0x1df   : > { %v5319_v58 = vpop.f32.mrb[111].mxu1  ;;  %v5255_v0 = vpop.f32.mrb[111].mxu0 }
 0x1e0   : > { %v5320_v24 = vadd.f32 %v5319_v58, %v5318_v31  ;;  %v7580_v27 = vadd.f32 %v5317_v56, %v7487_v29  ;;  %v7583_v32 = vadd.f32 %v5253_v52, %v7484_v15  ;;  %v5256_v55 = vadd.f32 %v5255_v0, %v5254_v43 }
 0x1e2   : > { %v7586_v7 = vadd.f32 %v5320_v24, %v7493_v46  ;;  %v7589_v11 = vadd.f32 %v5256_v55, %v7490_v22 }
 0x1e4   : > { %v5321_v40 = vpop.f32.mrb[112].mxu1  ;;  %v5411_v14 = vpop.f32.mrb[112].mxu0 }
 0x1e5   : > { %v5322_v9 = vpop.f32.mrb[113].mxu1  ;;  %v3929_v29 = vadd.f32 %v5411_v14, %v7508_v30  ;;  %v3920_v50 = vpop.f32.mrb[113].mxu0 }
 0x1e6   : > { %v5323_v44 = vadd.f32 %v5322_v9, %v5321_v40  ;;  %v5324_v62 = vpop.f32.mrb[114].mxu1  ;;  %v3921_v15 = vadd.f32 %v3920_v50, %v7496_v51  ;;  %v5412_v1 = vpop.f32.mrb[114].mxu0 }
 0x1e7   : > { %v5325_v2 = vpop.f32.mrb[115].mxu1  ;;  %v3932_v22 = vadd.f32 %v5412_v1, %v7514_v54  ;;  %v3923_v46 = vpop.f32.mrb[115].mxu0  ;;  %v4049_v63 = vmax.f32 %v3929_v29, 0.0 }
 0x1e8   : > { %v5326_v57 = vadd.f32 %v5325_v2, %v5324_v62  ;;  %v7594_v39 = vadd.f32 %v5323_v44, %v7499_v19  ;;  %v3924_v26 = vadd.f32 %v3923_v46, %v7502_v37  ;;  %v4047_v47 = vmax.f32 %v3921_v15, 0.0 }
 0x1e9   : > { %v4050_v30 = vmax.f32 %v3932_v22, 0.0 }
 0x1ea   : > { %v7600_v12 = vadd.f32 %v5326_v57, %v7505_v35  ;;  %v4048_v51 = vmax.f32 %v3924_v26, 0.0 }
 0x1eb   : > { %v4834_v19 = vpack.c.bf16 %v4050_v30, %v4049_v63 }
 0x1ec   : > { %v5327_v8 = vpop.f32.mrb[116].mxu1  ;;  %v4829_v54 = vpack.c.bf16 %v4048_v51, %v4047_v47  ;;  %v5415_v16 = vpop.f32.mrb[116].mxu0 }
 0x1ed   : > { %v5328_v21 = vpop.f32.mrb[117].mxu1  ;;  %4906 = vst [vmem:[%s7605_s24 + $0x8] sm:$0xff] %v4834_v19   ;;  %v3945_v37 = vadd.f32 %v5415_v16, %v7532_v42  ;;  %v3936_v41 = vpop.f32.mrb[117].mxu0 }
 0x1ee   : > { %v5329_v35 = vadd.f32 %v5328_v21, %v5327_v8  ;;  %v5330_v33 = vpop.f32.mrb[118].mxu1  ;;  %4830 = vst [vmem:[%s7605_s24] sm:$0xff] %v4829_v54   ;;  %v3937_v56 = vadd.f32 %v3936_v41, %v7520_v10  ;;  %v5416_v31 = vpop.f32.mrb[118].mxu0 }
 0x1ef   : > { %v5331_v23 = vpop.f32.mrb[119].mxu1  ;;  %v3948_v58 = vadd.f32 %v5416_v31, %v7538_v36  ;;  %v3939_v43 = vpop.f32.mrb[119].mxu0  ;;  %v4053_v55 = vmax.f32 %v3945_v37, 0.0 }
 0x1f0   : > { %v5332_v52 = vadd.f32 %v5331_v23, %v5330_v33  ;;  %v3832_v24 = vadd.f32 %v5329_v35, %v7511_v49  ;;  %v3940_v0 = vadd.f32 %v3939_v43, %v7526_v20  ;;  %v4051_v9 = vmax.f32 %v3937_v56, 0.0 }
 0x1f1   : > { %v4054_v42 = vmax.f32 %v3948_v58, 0.0 }
 0x1f2   : > { %v7615_v40 = vadd.f32 %v5332_v52, %v7517_v38  ;;  %v4052_v14 = vmax.f32 %v3940_v0, 0.0 }
 0x1f3   : > { %v4844_v10 = vpack.c.bf16 %v4054_v42, %v4053_v55 }
 0x1f4   : > { %v5333_v44 = vpop.f32.mrb[120].mxu1  ;;  %v4839_v62 = vpack.c.bf16 %v4052_v14, %v4051_v9 }
 0x1f5   : > { %v5419_v29 = vpop.f32.mrb[120].mxu0  ;;  %v5334_v50 = vpop.f32.mrb[121].mxu1  ;;  %4908 = vst [vmem:[%s7605_s24 + $0x18] sm:$0xff] %v4844_v10  }
 0x1f6   : > { %v3961_v36 = vadd.f32 %v5419_v29, %v7556_v48  ;;  %v5335_v2 = vadd.f32 %v5334_v50, %v5333_v44  ;;  %v3952_v49 = vpop.f32.mrb[121].mxu0  ;;  %v5336_v15 = vpop.f32.mrb[122].mxu1  ;;  %4907 = vst [vmem:[%s7605_s24 + $0x10] sm:$0xff] %v4839_v62  }
 0x1f7   : > { %v3953_v20 = vadd.f32 %v3952_v49, %v7544_v34  ;;  %v5420_v1 = vpop.f32.mrb[122].mxu0  ;;  %v5337_v38 = vpop.f32.mrb[123].mxu1 }
 0x1f8   : > { %v3964_v57 = vadd.f32 %v5420_v1, %v7562_v13  ;;  %v5338_v22 = vadd.f32 %v5337_v38, %v5336_v15  ;;  %v3955_v46 = vpop.f32.mrb[123].mxu0  ;;  %v7623_v26 = vadd.f32 %v5335_v2, %v7523_v28  ;;  %v4057_v48 = vmax.f32 %v3961_v36, 0.0 }
 0x1f9   : > { %v3956_v63 = vadd.f32 %v3955_v46, %v7550_v17  ;;  %v4055_v51 = vmax.f32 %v3953_v20, 0.0 }
 0x1fa   : > { %v4058_v30 = vmax.f32 %v3964_v57, 0.0  ;;  %v7627_v47 = vadd.f32 %v5338_v22, %v7529_v4 }
 0x1fb   : > { %v4056_v19 = vmax.f32 %v3956_v63, 0.0 }
 0x1fc   : > { %v4854_v34 = vpack.c.bf16 %v4058_v30, %v4057_v48 }
 0x1fd   : > { %v4849_v8 = vpack.c.bf16 %v4056_v19, %v4055_v51  ;;  %v5423_v54 = vpop.f32.mrb[124].mxu0 }
 0x1fe   : > { %4910 = vst [vmem:[%s7605_s24 + $0x28] sm:$0xff] %v4854_v34   ;;  %v5339_v13 = vpop.f32.mrb[124].mxu1  ;;  %v3977_v16 = vadd.f32 %v5423_v54, %v7580_v27  ;;  %v3968_v21 = vpop.f32.mrb[125].mxu0 }
 0x1ff   : > { %4909 = vst [vmem:[%s7605_s24 + $0x20] sm:$0xff] %v4849_v8   ;;  %v5340_v28 = vpop.f32.mrb[125].mxu1  ;;  %v3969_v37 = vadd.f32 %v3968_v21, %v7568_v60  ;;  %v5424_v17 = vpop.f32.mrb[126].mxu0 }
 0x200   : > { %v5341_v35 = vadd.f32 %v5340_v28, %v5339_v13  ;;  %v5342_v41 = vpop.f32.mrb[126].mxu1  ;;  %v3980_v4 = vadd.f32 %v5424_v17, %v7586_v7  ;;  %v3971_v33 = vpop.f32.mrb[127].mxu0  ;;  %v4061_v23 = vmax.f32 %v3977_v16, 0.0 }
 0x201   : > { %v5343_v56 = vpop.f32.mrb[127].mxu1  ;;  %v3972_v31 = vadd.f32 %v3971_v33, %v7571_v18  ;;  %v4059_v43 = vmax.f32 %v3969_v37, 0.0 }
 0x202   : > { %v4062_v58 = vmax.f32 %v3980_v4, 0.0  ;;  %v5344_v52 = vadd.f32 %v5343_v56, %v5342_v41  ;;  %v3848_v27 = vadd.f32 %v5341_v35, %v7535_v61 }
 0x203   : > { %v4060_v0 = vmax.f32 %v3972_v31, 0.0 }
 0x204   : > { %v4864_v55 = vpack.c.bf16 %v4062_v58, %v4061_v23  ;;  %v3851_v60 = vadd.f32 %v5344_v52, %v7541_v6 }
 0x205   : > { %v4859_v42 = vpack.c.bf16 %v4060_v0, %v4059_v43 }
 0x206   : > { %4912 = vst [vmem:[%s7605_s24 + $0x38] sm:$0xff] %v4864_v55   ;;  %v5427_v9 = vpop.f32.mrb[128].mxu0 }
 0x207   : > { %4911 = vst [vmem:[%s7605_s24 + $0x30] sm:$0xff] %v4859_v42   ;;  %v3993_v7 = vadd.f32 %v5427_v9, %v3832_v24  ;;  %v3984_v10 = vpop.f32.mrb[129].mxu0 }
 0x208   : > { %v5345_v14 = vpop.f32.mrb[128].mxu1  ;;  %v3985_v18 = vadd.f32 %v3984_v10, %v7594_v39  ;;  %v5428_v62 = vpop.f32.mrb[130].mxu0 }
 0x209   : > { %v5346_v44 = vpop.f32.mrb[129].mxu1  ;;  %v3996_v50 = vadd.f32 %v5428_v62, %v7615_v40  ;;  %v3987_v36 = vpop.f32.mrb[131].mxu0  ;;  %v4065_v49 = vmax.f32 %v3993_v7, 0.0 }
 0x20a   : > { %v5347_v29 = vadd.f32 %v5346_v44, %v5345_v14  ;;  %v5348_v61 = vpop.f32.mrb[130].mxu1  ;;  %v3988_v6 = vadd.f32 %v3987_v36, %v7600_v12  ;;  %v4063_v1 = vmax.f32 %v3985_v18, 0.0 }
 0x20b   : > { %v5349_v2 = vpop.f32.mrb[131].mxu1  ;;  %v4066_v15 = vmax.f32 %v3996_v50, 0.0 }
 0x20c   : > { %v5350_v20 = vadd.f32 %v5349_v2, %v5348_v61  ;;  %v3856_v24 = vadd.f32 %v5347_v29, %v7547_v25  ;;  %v4064_v38 = vmax.f32 %v3988_v6, 0.0 }
 0x20d   : > { %v4874_v57 = vpack.c.bf16 %v4066_v15, %v4065_v49 }
 0x20e   : > { %v3859_v39 = vadd.f32 %v5350_v20, %v7553_v5  ;;  %v4869_v22 = vpack.c.bf16 %v4064_v38, %v4063_v1 }
 0x20f   : > { %4914 = vst [vmem:[%s7605_s24 + $0x48] sm:$0xff] %v4874_v57  }
 0x210   : > { %4913 = vst [vmem:[%s7605_s24 + $0x40] sm:$0xff] %v4869_v22  }
 0x211   : > { %v5351_v46 = vpop.f32.mrb[132].mxu1  ;;  %v5431_v63 = vpop.f32.mrb[132].mxu0 }
 0x212   : > { %v4009_v40 = vadd.f32 %v5431_v63, %v3848_v27  ;;  %v5352_v48 = vpop.f32.mrb[133].mxu1  ;;  %v4000_v30 = vpop.f32.mrb[133].mxu0 }
 0x213   : > { %v5353_v51 = vadd.f32 %v5352_v48, %v5351_v46  ;;  %v4001_v12 = vadd.f32 %v4000_v30, %v7623_v26  ;;  %v5354_v19 = vpop.f32.mrb[134].mxu1  ;;  %v5432_v34 = vpop.f32.mrb[134].mxu0 }
 0x214   : > { %v4012_v25 = vadd.f32 %v5432_v34, %v3851_v60  ;;  %v5355_v8 = vpop.f32.mrb[135].mxu1  ;;  %v4003_v54 = vpop.f32.mrb[135].mxu0  ;;  %v4069_v21 = vmax.f32 %v4009_v40, 0.0 }
 0x215   : > { %v5356_v13 = vadd.f32 %v5355_v8, %v5354_v19  ;;  %v4004_v5 = vadd.f32 %v4003_v54, %v7627_v47  ;;  %v3864_v16 = vadd.f32 %v5353_v51, %v7559_v45  ;;  %v4067_v37 = vmax.f32 %v4001_v12, 0.0 }
 0x216   : > { %v4070_v28 = vmax.f32 %v4012_v25, 0.0 }
 0x217   : > { %v4068_v17 = vmax.f32 %v4004_v5, 0.0  ;;  %v3867_v35 = vadd.f32 %v5356_v13, %v7565_v53 }
 0x218   : > { %v4884_v41 = vpack.c.bf16 %v4070_v28, %v4069_v21 }
 0x219   : > { %v4879_v26 = vpack.c.bf16 %v4068_v17, %v4067_v37 }
 0x21a   : > { %v5357_v4 = vpop.f32.mrb[136].mxu1  ;;  %v5435_v33 = vpop.f32.mrb[136].mxu0  ;;  %4916 = vst [vmem:[%s7605_s24 + $0x58] sm:$0xff] %v4884_v41  }
 0x21b   : > { %v4025_v56 = vadd.f32 %v5435_v33, %v3864_v16  ;;  %v5358_v31 = vpop.f32.mrb[137].mxu1  ;;  %v4016_v23 = vpop.f32.mrb[137].mxu0  ;;  %4915 = vst [vmem:[%s7605_s24 + $0x50] sm:$0xff] %v4879_v26  }
 0x21c   : > { %v5359_v58 = vadd.f32 %v5358_v31, %v5357_v4  ;;  %v4017_v52 = vadd.f32 %v4016_v23, %v3856_v24  ;;  %v5360_v47 = vpop.f32.mrb[138].mxu1  ;;  %v5436_v45 = vpop.f32.mrb[138].mxu0 }
 0x21d   : > { %v4028_v27 = vadd.f32 %v5436_v45, %v3867_v35  ;;  %v5361_v43 = vpop.f32.mrb[139].mxu1  ;;  %v4019_v0 = vpop.f32.mrb[139].mxu0  ;;  %v4073_v42 = vmax.f32 %v4025_v56, 0.0 }
 0x21e   : > { %v5362_v55 = vadd.f32 %v5361_v43, %v5360_v47  ;;  %v4020_v53 = vadd.f32 %v4019_v0, %v3859_v39  ;;  %v3872_v60 = vadd.f32 %v5359_v58, %v7574_v3  ;;  %v4071_v14 = vmax.f32 %v4017_v52, 0.0 }
 0x21f   : > { %v4074_v9 = vmax.f32 %v4028_v27, 0.0 }
 0x220   : > { %v4072_v7 = vmax.f32 %v4020_v53, 0.0  ;;  %v3875_v10 = vadd.f32 %v5362_v55, %v7577_v59 }
 0x221   : > { %v4894_v44 = vpack.c.bf16 %v4074_v9, %v4073_v42 }
 0x222   : > { %v4889_v18 = vpack.c.bf16 %v4072_v7, %v4071_v14 }
 0x223   : > { %4918 = vst [vmem:[%s7605_s24 + $0x68] sm:$0xff] %v4894_v44   ;;  %v5363_v62 = vpop.f32.mrb[140].mxu1  ;;  %v5439_v29 = vpop.f32.mrb[140].mxu0 }
 0x224   : > { %4917 = vst [vmem:[%s7605_s24 + $0x60] sm:$0xff] %v4889_v18   ;;  %v5364_v61 = vpop.f32.mrb[141].mxu1  ;;  %v4032_v50 = vpop.f32.mrb[141].mxu0 }
 0x225   : > { %v5365_v36 = vadd.f32 %v5364_v61, %v5363_v62  ;;  %v4033_v2 = vadd.f32 %v4032_v50, %v3872_v60  ;;  %v5366_v6 = vpop.f32.mrb[142].mxu1  ;;  %v5440_v49 = vpop.f32.mrb[142].mxu0 }
 0x226   : > { %v5367_v3 = vpop.f32.mrb[143].mxu1  ;;  %v4035_v15 = vpop.f32.mrb[143].mxu0 }
 0x227   : > { %v3880_v20 = vadd.f32 %v5365_v36, %v7583_v32  ;;  %v5368_v24 = vadd.f32 %v5367_v3, %v5366_v6  ;;  %v4036_v59 = vadd.f32 %v4035_v15, %v3875_v10  ;;  %v4075_v38 = vmax.f32 %v4033_v2, 0.0 }
 0x229   : > { %v4041_v1 = vadd.f32 %v5439_v29, %v3880_v20  ;;  %v3883_v57 = vadd.f32 %v5368_v24, %v7589_v11  ;;  %v4076_v39 = vmax.f32 %v4036_v59, 0.0 }
 0x22b   : > { %v4044_v22 = vadd.f32 %v5440_v49, %v3883_v57  ;;  %v4899_v46 = vpack.c.bf16 %v4076_v39, %v4075_v38  ;;  %v4077_v63 = vmax.f32 %v4041_v1, 0.0 }
 0x22d   : > { %v4078_v40 = vmax.f32 %v4044_v22, 0.0  ;;  %4919 = vst [vmem:[%s7605_s24 + $0x70] sm:$0xff] %v4899_v46  }
 0x22f   : > { %v4904_v48 = vpack.c.bf16 %v4078_v40, %v4077_v63 }
 0x231   : > { %4920 = vst [vmem:[%s7605_s24 + $0x78] sm:$0xff] %v4904_v48  }
 0x232 PF: > { %s12_s11 = sadd.s32 1, %s5631_s11   ;;  %s7686_s9 = smov %s5627_s10 }
 0x233   : > { %p9_p5 = scmp.ge.s32.totalorder %s12_s11, 4   ;;  %s7687_s10 = smov %s7689_s12 }
 0x235   :  { %11 = sbr.rel (!%p9_p5) target bundleno = 2 (0x2), region = 64 }

// kernel: basicblock_forward.3
= control target key start
LH: loop header
LB: loop body
LE: loop exit
PB: predicated region body
PF: predicated region fallthrough
CT: control target
= control target key end

     0   :  { %s5361_s9 = smov 0   ;;  %s5363_s10 = smov 0   ;;  %s7398_s0 = inlined_call_operand.vmem [shape: bf16[2,18,18,128], index: 0, kind: input, shape index: {}]   ;;  %s7399_s1 = inlined_call_operand.vmem [shape: bf16[1152,128], index: 1, kind: input, shape index: {}]   ;;  %s7400_s2 = inlined_call_operand.vmem [shape: f32[2,256,128], index: 2, kind: output, shape index: {}]  }
   0x1   :  { %s5365_s11 = smov 0  }
   0x2 LB: > { %s31_s12 = sadd.s32 1, %s5340_s10  ;;  %p4235_p0 = scmp.ge.s32.totalorder %s5344_s11, 1  ;;  %s5344_s11 = sphi %s5365_s11, %s12_s11   ;;  %s5340_s10 = sphi %s5363_s10, %s7416_s10   ;;  %s5336_s9 = sphi %s5361_s9, %s7415_s9  }
   0x3   : > { %p33_p1 = scmp.ge.s32.totalorder %s31_s12, 2  ;;  %p144_p2 = scmp.lt.s32.totalorder %s5344_s11, 3 }
   0x5   : > { %s7418_s12 = smov (%p33_p1, %s31_s12), 0  ;;  %p145_p3 = pnand %p4235_p0, %p144_p2 }
   0x6   : > { %v5195_v0 = vld [vmem:[%s7399_s1 + $0x40] sm:$0xff] (!%p145_p3)   ;;  %p177_p4 = scmp.lt.s32.totalorder (!%p145_p3), %s5336_s9, 1  ;;  %v5197_v2 = vld [vmem:[%s7399_s1 + $0x48] sm:$0xff] (!%p145_p3)   ;;  %v5199_v4 = vld [vmem:[%s7399_s1 + $0x50] sm:$0xff] (!%p145_p3)   ;;  %vm252_vm0 = vsmask.f32 (!%p145_p3), 3328 }
   0x7   : > { %148 = sbr.rel (%p145_p3) target bundleno = 560 (0x230), region = 28  ;;  %v5196_v1 = vld [vmem:[%s7399_s1] sm:$0xff] (!%p145_p3)   ;;  %4634 = vmatprep.subr.bf16.mxu0 (!%p145_p3), %v5195_v0  ;;  %5154 = vmatprep.subr.bf16.mxu1 (!%p145_p3), %v5195_v0  ;;  %v5198_v3 = vld [vmem:[%s7399_s1 + $0x8] sm:$0xff] (!%p145_p3)   ;;  %v5200_v5 = vld [vmem:[%s7399_s1 + $0x10] sm:$0xff] (!%p145_p3)   ;;  %vm253_vm1 = vsmask.f32 (!%p145_p3), 7440 }
   0x8   : > { %4635 = vmatpush3.bf16.msra.mxu0 (!%p145_p3), %v5196_v1  ;;  %5162 = vmatpush3.bf16.msra.mxu1 (!%p145_p3), %v5196_v1  ;;  %v5201_v6 = vld [vmem:[%s7399_s1 + $0x58] sm:$0xff] (!%p145_p3)   ;;  %v5203_v8 = vld [vmem:[%s7399_s1 + $0x60] sm:$0xff] (!%p145_p3)   ;;  %v5205_v10 = vld [vmem:[%s7399_s1 + $0x68] sm:$0xff] (!%p145_p3)   ;;  %vm703_vm3 = vcmask (!%p145_p3), 1042432   ;;  %vm704_vm4 = vcmask (!%p145_p3), 1046532  }
   0x9   : > { %4636 = vmatprep.subr.bf16.mxu0 (!%p145_p3), %v5197_v2  ;;  %5155 = vmatprep.subr.bf16.mxu1 (!%p145_p3), %v5197_v2  ;;  %v5202_v7 = vld [vmem:[%s7399_s1 + $0x18] sm:$0xff] (!%p145_p3)   ;;  %v5204_v9 = vld [vmem:[%s7399_s1 + $0x20] sm:$0xff] (!%p145_p3)   ;;  %v5206_v20 = vld [vmem:[%s7399_s1 + $0x28] sm:$0xff] (!%p145_p3)  }
   0xa   : > { %v5207_v25 = vld [vmem:[%s7399_s1 + $0x70] sm:$0xff] (!%p145_p3)   ;;  %vm5454_vm2 = vmor (!%p145_p3), %vm252_vm0, %vm253_vm1  ;;  %v5209_v42 = vld [vmem:[%s7399_s1 + $0x78] sm:$0xff] (!%p145_p3)  }
   0xb   : > { %v5208_v38 = vld [vmem:[%s7399_s1 + $0x30] sm:$0xff] (!%p145_p3)   ;;  %v5210_v45 = vld [vmem:[%s7399_s1 + $0x38] sm:$0xff] (!%p145_p3)   ;;  %v5213_v55 = vld [vmem:[%s7399_s1 + $0xc0] sm:$0xff] (!%p145_p3)  }
   0xc   : > { %4637 = vmatpush3.bf16.msra.mxu0 (!%p145_p3), %v5198_v3  ;;  %5163 = vmatpush3.bf16.msra.mxu1 (!%p145_p3), %v5198_v3  ;;  %v5216_v58 = vld [vmem:[%s7399_s1 + $0x140] sm:$0xff] (!%p145_p3)   ;;  %vm5648_vm5 = vmor (!%p145_p3), %vm703_vm3, %vm704_vm4 }
   0xd   : > { %4638 = vmatprep.subr.bf16.mxu0 (!%p145_p3), %v5199_v4  ;;  %5156 = vmatprep.subr.bf16.mxu1 (!%p145_p3), %v5199_v4  ;;  %v5214_v62 = vld [vmem:[%s7399_s1 + $0x80] sm:$0xff] (!%p145_p3)   ;;  %v5215_v4 = vld [vmem:[%s7399_s1 + $0xc8] sm:$0xff] (!%p145_p3)  }
   0xe   : > { %s7420_s9 = smov (!%p177_p4, %s5336_s9), 1 }
   0xf   : > { %s5170_s27 = smul.u32 216, %s7420_s9 }
  0x10   : > { %4639 = vmatpush3.bf16.msra.mxu0 %v5200_v5  ;;  %5164 = vmatpush3.bf16.msra.mxu1 %v5200_v5  ;;  %v5218_v5 = vld [vmem:[%s7399_s1 + $0x100] sm:$0xff]  }
  0x11   : > { %4640 = vmatprep.subr.bf16.mxu0 %v5201_v6  ;;  %5157 = vmatprep.subr.bf16.mxu1 %v5201_v6  ;;  %s5412_s6 = scalar_lea.vmem %s7398_s0, %s5170_s27 }
  0x12   : > { %v5421_v11 = vld [vmem:[%s5412_s6] sm:$0xf]  ;;  %v5424_v12 = vld [vmem:[%s5412_s6 + $0x4] sm:$0xf]  ;;  %v5427_v13 = vld [vmem:[%s5412_s6 + $0x8] sm:$0x1] }
  0x13   : > { %v256_v14 = vshrl.u32 %v5421_v11, 16  ;;  %v259_v15 = vshll.u32 %v5421_v11, 16  ;;  %v265_v16 = vshll.u32 %v5424_v12, 16  ;;  %v269_v17 = vshrl.u32 %v5424_v12, 16  ;;  %v5435_v19 = vld [vmem:[%s5412_s6 + $0x90] sm:$0xf] }
  0x14   : > { %4641 = vmatpush3.bf16.msra.mxu0 %v5202_v7  ;;  %5165 = vmatpush3.bf16.msra.mxu1 %v5202_v7  ;;  %v275_v18 = vshll.u32 %v5427_v13, 16  ;;  %v5441_v23 = vld [vmem:[%s5412_s6 + $0x94] sm:$0xf]  ;;  %v544_v24 = vshrl.u32 %v5435_v19, 16  ;;  %v5448_v29 = vld [vmem:[%s5412_s6 + $0x98] sm:$0x1]  ;;  %v4415_v57 = vcombine.low %v5421_v11, %v5424_v12 }
  0x15   : > { %4642 = vmatprep.subr.bf16.mxu0 %v5203_v8  ;;  %5158 = vmatprep.subr.bf16.mxu1 %v5203_v8  ;;  %v258_v21 = vrot.slane %v256_v14, 4  ;;  %v261_v22 = vrot.slane %v259_v15, 5  ;;  %v267_v26 = vrot.slane %v265_v16, 5  ;;  %v271_v27 = vrot.slane %v269_v17, 4  ;;  %v5484_v59 = vld [vmem:[%s5412_s6 + $0xc] sm:$0xf] }
  0x16   : > { %v277_v28 = vrot.slane %v275_v18, 5  ;;  %v546_v31 = vrot.slane %v544_v24, 4  ;;  %v547_v32 = vshll.u32 %v5435_v19, 16  ;;  %v553_v33 = vshll.u32 %v5441_v23, 16  ;;  %v5494_v63 = vld [vmem:[%s5412_s6 + $0x10] sm:$0xf] }
  0x17   : > { %v262_v30 = vor.u32 %v261_v22, %v258_v21  ;;  %v272_v35 = vor.u32 %v271_v27, %v267_v26  ;;  %v557_v36 = vshrl.u32 %v5441_v23, 16  ;;  %v563_v37 = vshll.u32 %v5448_v29, 16  ;;  %v5497_v0 = vld [vmem:[%s5412_s6 + $0x14] sm:$0x1]  ;;  %v5516_v15 = vld [vmem:[%s5412_s6 + $0xa0] sm:$0xf] }
  0x18   : > { %4643 = vmatpush3.bf16.msra.mxu0 %v5204_v9  ;;  %5166 = vmatpush3.bf16.msra.mxu1 %v5204_v9  ;;  %v549_v40 = vrot.slane %v547_v32, 5  ;;  %v555_v41 = vrot.slane %v553_v33, 5  ;;  %v708_v47 = vrot.slane %v5424_v12, 5  ;;  %v711_v50 = vrot.slane %v5427_v13, 5  ;;  %v5513_v9 = vld [vmem:[%s5412_s6 + $0x9c] sm:$0xf] }
  0x19   : > { %4644 = vmatprep.subr.bf16.mxu0 %v5205_v10  ;;  %5159 = vmatprep.subr.bf16.mxu1 %v5205_v10  ;;  %v263_v39 = vrot.slane %v262_v30, 4  ;;  %v273_v43 = vrot.slane %v272_v35, 4  ;;  %v559_v44 = vrot.slane %v557_v36, 4  ;;  %v565_v52 = vrot.slane %v563_v37, 5  ;;  %v249_v16 = vld [vmem:[%s5412_s6 + $0xa4] sm:$0x1] }
  0x1a   : > { %v550_v48 = vor.u32 %v549_v40, %v546_v31  ;;  %v4427_v61 = vcombine.low %v5435_v19, %v5441_v23  ;;  %v280_v1 = vshrl.u32 %v5484_v59, 16  ;;  %v283_v2 = vshll.u32 %v5484_v59, 16  ;;  %v5217_v21 = vld [vmem:[%s7399_s1 + $0x88] sm:$0xff]   ;;  %v5680_v13 = vld [vmem:[%s5412_s6 + $0x34] sm:$0xf] }
  0x1b   : > { %v268_v46 = vsel %vm5454_vm2, %v263_v39, %v267_v26  ;;  %v278_v49 = vsel %vm5454_vm2, %v273_v43, %v277_v28  ;;  %v560_v51 = vor.u32 %v559_v44, %v555_v41  ;;  %v289_v6 = vshll.u32 %v5494_v63, 16  ;;  %v5222_v43 = vld [vmem:[%s7399_s1 + $0x90] sm:$0xff]   ;;  %v5541_v44 = vld [vmem:[%s5412_s6 + $0x18] sm:$0xf] }
  0x1c   : > { %4645 = vmatpush3.bf16.msra.mxu0 %v5206_v20  ;;  %5167 = vmatpush3.bf16.msra.mxu1 %v5206_v20  ;;  %v4431_v53 = vcombine.low %v268_v46, %v278_v49  ;;  %v551_v54 = vrot.slane %v550_v48, 4  ;;  %v293_v7 = vshrl.u32 %v5494_v63, 16  ;;  %v299_v8 = vshll.u32 %v5497_v0, 16  ;;  %v5548_v48 = vld [vmem:[%s5412_s6 + $0x1c] sm:$0xf] }
  0x1d   : > { %4646 = vmatprep.subr.bf16.mxu0 %v5207_v25  ;;  %5160 = vmatprep.subr.bf16.mxu1 %v5207_v25  ;;  %v561_v56 = vrot.slane %v560_v51, 4  ;;  %v282_v11 = vrot.slane %v280_v1, 4  ;;  %v285_v14 = vrot.slane %v283_v2, 5  ;;  %v291_v17 = vrot.slane %v289_v6, 5  ;;  %v5551_v49 = vld [vmem:[%s5412_s6 + $0x20] sm:$0x1] }
  0x1e   : > { %3274 = vmatprep.mubr.bf16.mxu0 %v4431_v53  ;;  %v556_v60 = vsel %vm5454_vm2, %v551_v54, %v555_v41  ;;  %v295_v18 = vrot.slane %v293_v7, 4  ;;  %v301_v19 = vrot.slane %v299_v8, 5  ;;  %v568_v20 = vshrl.u32 %v5513_v9, 16  ;;  %v5565_v1 = vld [vmem:[%s5412_s6 + $0xac] sm:$0xf] }
  0x1f   : > { %v566_v3 = vsel %vm5454_vm2, %v561_v56, %v565_v52  ;;  %v286_v22 = vor.u32 %v285_v14, %v282_v11  ;;  %v571_v23 = vshll.u32 %v5513_v9, 16  ;;  %v577_v24 = vshll.u32 %v5516_v15, 16  ;;  %v5223_v56 = vld [vmem:[%s7399_s1 + $0xd8] sm:$0xff]   ;;  %v250_v6 = vld [vmem:[%s5412_s6 + $0xb0] sm:$0x1]  ;;  %v5227_v11 = vld [vmem:[%s7399_s1 + $0xe0] sm:$0xff]  }
  0x20   : > { %4647 = vmatpush3.bf16.msra.mxu0 %v5208_v38  ;;  %5168 = vmatpush3.bf16.msra.mxu1 %v5208_v38  ;;  %v4443_v10 = vcombine.low %v556_v60, %v566_v3  ;;  %v581_v25 = vshrl.u32 %v5516_v15, 16  ;;  %v296_v26 = vor.u32 %v295_v18, %v291_v17  ;;  %v570_v27 = vrot.slane %v568_v20, 4  ;;  %v5221_v38 = vld [vmem:[%s7399_s1 + $0xd0] sm:$0xff]  }
  0x21   : > { %4648 = vmatprep.subr.bf16.mxu0 %v5209_v42  ;;  %5161 = vmatprep.subr.bf16.mxu1 %v5209_v42  ;;  %v587_v28 = vshll.u32 %v249_v16, 16  ;;  %v287_v30 = vrot.slane %v286_v22, 4  ;;  %v573_v31 = vrot.slane %v571_v23, 5  ;;  %v579_v32 = vrot.slane %v577_v24, 5  ;;  %v5228_v22 = vld [vmem:[%s7399_s1 + $0x148] sm:$0xff]  }
  0x22   : > { %3370 = vmatprep.mubr.bf16.mxu1 %v4443_v10  ;;  %v583_v33 = vrot.slane %v581_v25, 4  ;;  %v5528_v35 = vrot.slane %v708_v47, 4  ;;  %v297_v36 = vrot.slane %v296_v26, 4  ;;  %v4416_v42 = vcombine.low %v5484_v59, %v5494_v63  ;;  %v5230_v26 = vld [vmem:[%s7399_s1 + $0x108] sm:$0xff]  }
  0x23   : > { %v589_v37 = vrot.slane %v587_v28, 5  ;;  %v292_v39 = vsel %vm5454_vm2, %v287_v30, %v291_v17  ;;  %v574_v40 = vor.u32 %v573_v31, %v570_v27  ;;  %v4428_v46 = vcombine.low %v5513_v9, %v5516_v15  ;;  %v645_v27 = vld [vmem:[%s5412_s6 + $0x48] sm:$0xe] }
  0x24   : > { %4649 = vmatpush3.bf16.msra.mxu0 %v5210_v45  ;;  %5169 = vmatpush3.bf16.msra.mxu1 %v5210_v45  ;;  %v584_v41 = vor.u32 %v583_v33, %v579_v32  ;;  %v302_v45 = vsel %vm5454_vm2, %v297_v36, %v301_v19  ;;  %v304_v51 = vshrl.u32 %v5541_v44, 16  ;;  %v307_v52 = vshll.u32 %v5541_v44, 16  ;;  %v5229_v36 = vld [vmem:[%s7399_s1 + $0xa0] sm:$0xff]  }
  0x25   : > { %4746 = vmatprep.subr.bf16.mxu1 %v5213_v55  ;;  %4858 = vmatprep.subr.bf16.mxu0 %v5216_v58  ;;  %v4432_v53 = vcombine.low %v292_v39, %v302_v45  ;;  %v575_v54 = vrot.slane %v574_v40, 4  ;;  %v5560_v58 = vld [vmem:[%s5412_s6 + $0xa8] sm:$0xf]  ;;  %v601_v16 = vshll.u32 %v5565_v1, 16  ;;  %v605_v17 = vshrl.u32 %v5565_v1, 16 }
  0x26   : > { %v585_v55 = vrot.slane %v584_v41, 4  ;;  %v306_v59 = vrot.slane %v304_v51, 4  ;;  %v309_v60 = vrot.slane %v307_v52, 5  ;;  %v592_v7 = vshrl.u32 %v5560_v58, 16  ;;  %v5231_v39 = vld [vmem:[%s7399_s1 + $0xe8] sm:$0xff]  }
  0x27   : > { %3275 = vmatmul.mubr.bf16.vlgmr.msra.gmra.mrb[0].mxu0 %v4415_v57  ;;  %3371 = vmatmul.mubr.bf16.vlgmr.msra.gmra.mrb[0].mxu1 %v4427_v61  ;;  %v313_v57 = vshll.u32 %v5548_v48, 16  ;;  %v317_v61 = vshrl.u32 %v5548_v48, 16  ;;  %v580_v2 = vsel %vm5454_vm2, %v575_v54, %v579_v32  ;;  %v595_v15 = vshll.u32 %v5560_v58, 16  ;;  %v5608_v51 = vld [vmem:[%s5412_s6 + $0x28] sm:$0xf] }
  0x28   : > { %4747 = vmatpush3.bf16.msra.mxu1 %v5214_v62  ;;  %4859 = vmatpush3.bf16.msra.mxu0 %v5218_v5  ;;  %v323_v62 = vshll.u32 %v5551_v49, 16  ;;  %v590_v3 = vsel %vm5454_vm2, %v585_v55, %v589_v37  ;;  %v310_v9 = vor.u32 %v309_v60, %v306_v59  ;;  %v594_v14 = vrot.slane %v592_v7, 4  ;;  %v5614_v52 = vld [vmem:[%s5412_s6 + $0x2c] sm:$0x1]  ;;  %v5626_v60 = vld [vmem:[%s5412_s6 + $0xb4] sm:$0xf] }
  0x29   : > { %4748 = vmatprep.subr.bf16.mxu1 %v5215_v4  ;;  %3282 = vmatprep.mubr.bf16.mxu0 %v4432_v53  ;;  %v5224_v4 = vld [vmem:[%s7399_s1 + $0x98] sm:$0xff]   ;;  %v315_v5 = vrot.slane %v313_v57, 5  ;;  %v4444_v8 = vcombine.low %v580_v2, %v590_v3  ;;  %v319_v10 = vrot.slane %v317_v61, 4  ;;  %v597_v23 = vrot.slane %v595_v15, 5 }
  0x2a   : > { %v311_v18 = vrot.slane %v310_v9, 4  ;;  %v325_v20 = vrot.slane %v323_v62, 5  ;;  %v603_v24 = vrot.slane %v601_v16, 5  ;;  %v607_v25 = vrot.slane %v605_v17, 4  ;;  %4860 = vmatprep.subr.bf16.mxu0 %v5228_v22  ;;  %v5629_v61 = vld [vmem:[%s5412_s6 + $0xb8] sm:$0xf] }
  0x2b   : > { %3378 = vmatprep.mubr.bf16.mxu1 %v4444_v8  ;;  %v320_v19 = vor.u32 %v319_v10, %v315_v5  ;;  %v598_v31 = vor.u32 %v597_v23, %v594_v14  ;;  %v715_v40 = vrot.slane %v5494_v63, 5  ;;  %v4429_v45 = vcombine.low %v5560_v58, %v5565_v1  ;;  %v5236_v17 = vld [vmem:[%s7399_s1 + $0xb0] sm:$0xff]  }
  0x2c   : > { %4749 = vmatpush3.bf16.msra.mxu1 %v5217_v21  ;;  %v611_v21 = vshll.u32 %v250_v6, 16  ;;  %v316_v28 = vsel %vm5454_vm2, %v311_v18, %v315_v5  ;;  %v608_v32 = vor.u32 %v607_v25, %v603_v24  ;;  %4861 = vmatpush3.bf16.msra.mxu0 %v5230_v26  ;;  %v337_v55 = vshll.u32 %v5608_v51, 16  ;;  %v251_v5 = vld [vmem:[%s5412_s6 + $0xbc] sm:$0x1]  ;;  %v5235_v6 = vld [vmem:[%s7399_s1 + $0xf0] sm:$0xff]  }
  0x2d   : > { %4750 = vmatprep.subr.bf16.mxu1 %v5221_v38  ;;  %v321_v30 = vrot.slane %v320_v19, 4  ;;  %v4417_v38 = vcombine.low %v5541_v44, %v5548_v48  ;;  %v5232_v44 = vld [vmem:[%s7399_s1 + $0xa8] sm:$0xff]   ;;  %v347_v59 = vshll.u32 %v5614_v52, 16  ;;  %v718_v62 = vrot.slane %v5497_v0, 5 }
  0x2e   : > { %v613_v33 = vrot.slane %v611_v21, 5  ;;  %v616_v9 = vshrl.u32 %v5626_v60, 16  ;;  %v619_v10 = vshll.u32 %v5626_v60, 16  ;;  %v625_v14 = vshll.u32 %v5629_v61, 16  ;;  %v5237_v21 = vld [vmem:[%s7399_s1 + $0xf8] sm:$0xff]  }
  0x2f   : > { %3283 = vmatmul.mubr.bf16.gmra.mrb[4].mxu0 %v4416_v42  ;;  %3379 = vmatmul.mubr.bf16.gmra.mrb[4].mxu1 %v4428_v46  ;;  %v326_v37 = vsel %vm5454_vm2, %v321_v30, %v325_v20  ;;  %v599_v42 = vrot.slane %v598_v31, 4  ;;  %v5605_v46 = vld [vmem:[%s5412_s6 + $0x24] sm:$0xf]  ;;  %v349_v8 = vrot.slane %v347_v59, 5  ;;  %v629_v15 = vshrl.u32 %v5629_v61, 16  ;;  %v5238_v31 = vld [vmem:[%s7399_s1 + $0x150] sm:$0xff]  }
  0x30   : > { %4751 = vmatpush3.bf16.msra.mxu1 %v5222_v43  ;;  %v4433_v41 = vcombine.low %v316_v28, %v326_v37  ;;  %v609_v43 = vrot.slane %v608_v32, 4  ;;  %v328_v53 = vshrl.u32 %v5605_v46, 16  ;;  %v331_v54 = vshll.u32 %v5605_v46, 16  ;;  %4862 = vmatprep.subr.bf16.mxu0 %v5238_v31 }
  0x31   : > { %4752 = vmatprep.subr.bf16.mxu1 %v5223_v56  ;;  %v341_v56 = vshrl.u32 %v5608_v51, 16  ;;  %v604_v57 = vsel %vm5454_vm2, %v599_v42, %v603_v24  ;;  %v635_v16 = vshll.u32 %v251_v5, 16  ;;  %v618_v19 = vrot.slane %v616_v9, 4 }
  0x32   : > { %3290 = vmatprep.mubr.bf16.mxu0 %v4433_v41  ;;  %v614_v58 = vsel %vm5454_vm2, %v609_v43, %v613_v33  ;;  %v330_v2 = vrot.slane %v328_v53, 4  ;;  %v333_v3 = vrot.slane %v331_v54, 5  ;;  %v621_v20 = vrot.slane %v619_v10, 5 }
  0x33   : > { %v4445_v1 = vcombine.low %v604_v57, %v614_v58  ;;  %v343_v7 = vrot.slane %v341_v56, 4  ;;  %v627_v24 = vrot.slane %v625_v14, 5  ;;  %v631_v25 = vrot.slane %v629_v15, 4  ;;  %v5243_v56 = vld [vmem:[%s7399_s1 + $0x1c0] sm:$0xff]  }
  0x34   : > { %4753 = vmatpush3.bf16.msra.mxu1 %v5224_v4  ;;  %v339_v4 = vrot.slane %v337_v55, 5  ;;  %v637_v26 = vrot.slane %v635_v16, 5  ;;  %v622_v30 = vor.u32 %v621_v20, %v618_v19  ;;  %v5669_v41 = vsel %vm5648_vm5, %v5528_v35, %v711_v50  ;;  %v5685_v35 = vld [vmem:[%s5412_s6 + $0x38] sm:$0x1] }
  0x35   : > { %4754 = vmatprep.subr.bf16.mxu1 %v5227_v11  ;;  %3386 = vmatprep.mubr.bf16.mxu1 %v4445_v1  ;;  %v334_v11 = vor.u32 %v333_v3, %v330_v2  ;;  %v632_v33 = vor.u32 %v631_v25, %v627_v24  ;;  %v361_v55 = vshll.u32 %v5680_v13, 16  ;;  %v365_v58 = vshrl.u32 %v5680_v13, 16 }
  0x36   : > { %v344_v18 = vor.u32 %v343_v7, %v339_v4  ;;  %v623_v37 = vrot.slane %v622_v30, 4  ;;  %v371_v59 = vshll.u32 %v5685_v35, 16 }
  0x37   : > { %3291 = vmatmul.mubr.bf16.gmra.mrb[8].mxu0 %v4417_v38  ;;  %3387 = vmatmul.mubr.bf16.gmra.mrb[8].mxu1 %v4429_v45  ;;  %v335_v23 = vrot.slane %v334_v11, 4  ;;  %v4418_v38 = vcombine.low %v5605_v46, %v5608_v51  ;;  %v633_v43 = vrot.slane %v632_v33, 4  ;;  %v4430_v45 = vcombine.low %v5626_v60, %v5629_v61  ;;  %v5240_v46 = vld [vmem:[%s7399_s1 + $0x110] sm:$0xff]   ;;  %v4255_v60 = vld [vmem:[%s5412_s6 + $0xc] sm:$0xf] }
  0x38   : > { %4755 = vmatpush3.bf16.msra.mxu1 %v5229_v36  ;;  %v345_v28 = vrot.slane %v344_v18, 4  ;;  %v628_v50 = vsel %vm5454_vm2, %v623_v37, %v627_v24  ;;  %4863 = vmatpush3.bf16.msra.mxu0 %v5240_v46  ;;  %v5699_v61 = vld [vmem:[%s5412_s6 + $0x10] sm:$0xf]  ;;  %v363_v5 = vrot.slane %v361_v55, 5  ;;  %v367_v7 = vrot.slane %v365_v58, 4 }
  0x39   : > { %4756 = vmatprep.subr.bf16.mxu1 %v5231_v39  ;;  %v340_v32 = vsel %vm5454_vm2, %v335_v23, %v339_v4  ;;  %v5239_v39 = vld [vmem:[%s7399_s1 + $0xb8] sm:$0xff]   ;;  %v638_v57 = vsel %vm5454_vm2, %v633_v43, %v637_v26  ;;  %v871_v9 = vshrl.u32 %v4255_v60, 16  ;;  %v874_v10 = vshll.u32 %v4255_v60, 16  ;;  %v5722_v33 = vld [vmem:[%s5412_s6 + $0x40] sm:$0xf] }
  0x3a   : > { %v350_v36 = vsel %vm5454_vm2, %v345_v28, %v349_v8  ;;  %v4446_v2 = vcombine.low %v628_v50, %v638_v57  ;;  %v373_v8 = vrot.slane %v371_v59, 5  ;;  %v880_v14 = vshll.u32 %v5699_v61, 16  ;;  %v5713_v26 = vld [vmem:[%s5412_s6 + $0x3c] sm:$0xf]  ;;  %v4257_v43 = vld [vmem:[%s5412_s6 + $0x18] sm:$0xf] }
  0x3b   : > { %v4434_v42 = vcombine.low %v340_v32, %v350_v36  ;;  %v884_v15 = vshrl.u32 %v5699_v61, 16  ;;  %v4463_v16 = vcombine.low %v4255_v60, %v5699_v61  ;;  %v873_v18 = vrot.slane %v871_v9, 4  ;;  %v5725_v36 = vld [vmem:[%s5412_s6 + $0x44] sm:$0x1]  ;;  %v640_v55 = vld [vmem:[%s5412_s6 + $0xc] sm:$0xe] }
  0x3c   : > { %4757 = vmatpush3.bf16.msra.mxu1 %v5232_v44  ;;  %v5677_v44 = vld [vmem:[%s5412_s6 + $0x30] sm:$0xf]  ;;  %3394 = vmatprep.mubr.bf16.mxu1 %v4446_v2  ;;  %v876_v19 = vrot.slane %v874_v10, 5  ;;  %v5710_v24 = vrot.slane %v880_v14, 5  ;;  %v717_v28 = vrot.slane %v715_v40, 4  ;;  %v376_v37 = vshrl.u32 %v5713_v26, 16 }
  0x3d   : > { %4758 = vmatprep.subr.bf16.mxu1 %v5235_v6  ;;  %v352_v53 = vshrl.u32 %v5677_v44, 16  ;;  %v355_v54 = vshll.u32 %v5677_v44, 16  ;;  %3298 = vmatprep.mubr.bf16.mxu0 %v4434_v42  ;;  %v4419_v1 = vcombine.low %v5677_v44, %v5680_v13  ;;  %v639_v6 = vld [vmem:[%s5412_s6] sm:$0xe]  ;;  %v886_v25 = vrot.slane %v884_v15, 4  ;;  %v5251_v60 = vld [vmem:[%s7399_s1 + $0x1c8] sm:$0xff]  }
  0x3e   : > { %v4239_v20 = vrot.slane %v639_v6, 9  ;;  %v877_v31 = vor.u32 %v876_v19, %v873_v18  ;;  %v379_v12 = vshll.u32 %v5713_v26, 16  ;;  %v389_v59 = vshrl.u32 %v5722_v33, 16  ;;  %v5252_v10 = vld [vmem:[%s7399_s1 + $0x188] sm:$0xff]   ;;  %v5253_v18 = vld [vmem:[%s7399_s1 + $0x160] sm:$0xff]  }
  0x3f   : > { %3299 = vmatmul.mubr.bf16.gmra.mrb[12].mxu0 %v4418_v38  ;;  %v354_v3 = vrot.slane %v352_v53, 4  ;;  %v357_v4 = vrot.slane %v355_v54, 5  ;;  %3395 = vmatmul.mubr.bf16.gmra.mrb[12].mxu1 %v4430_v45  ;;  %v5735_v45 = vld [vmem:[%s5412_s6 + $0x1c] sm:$0xf]  ;;  %v5244_v53 = vld [vmem:[%s7399_s1 + $0x180] sm:$0xff]   ;;  %v378_v54 = vrot.slane %v376_v37, 4 }
  0x40   : > { %4759 = vmatpush3.bf16.msra.mxu1 %v5236_v17  ;;  %v368_v17 = vor.u32 %v367_v7, %v363_v5  ;;  %3435 = vmatprep.mubr.bf16.mxu1 %v4463_v16  ;;  %v709_v32 = vsel %vm5648_vm5, %v4239_v20, %v708_v47  ;;  %v5248_v47 = vld [vmem:[%s7399_s1 + $0x118] sm:$0xff]   ;;  %v5742_v50 = vrot.slane %v877_v31, 4  ;;  %v381_v58 = vrot.slane %v379_v12, 5 }
  0x41   : > { %4760 = vmatprep.subr.bf16.mxu1 %v5237_v21  ;;  %v358_v11 = vor.u32 %v357_v4, %v354_v3  ;;  %v5247_v21 = vld [vmem:[%s7399_s1 + $0x158] sm:$0xff]   ;;  %v4447_v42 = vcombine.low %v709_v32, %v5669_v41  ;;  %v385_v41 = vshll.u32 %v5722_v33, 16  ;;  %v395_v3 = vshll.u32 %v5725_v36, 16  ;;  %v4259_v32 = vld [vmem:[%s5412_s6 + $0x24] sm:$0xf] }
  0x42   : > { %v369_v30 = vrot.slane %v368_v17, 4  ;;  %4864 = vmatprep.subr.bf16.mxu0 %v5247_v21  ;;  %v895_v4 = vshrl.u32 %v4257_v43, 16  ;;  %v382_v6 = vor.u32 %v381_v58, %v378_v54  ;;  %v391_v7 = vrot.slane %v389_v59, 4  ;;  %v5771_v17 = vld [vmem:[%s5412_s6 + $0x48] sm:$0xf] }
  0x43   : > { %v359_v23 = vrot.slane %v358_v11, 4  ;;  %4865 = vmatpush3.bf16.msra.mxu0 %v5248_v47  ;;  %v387_v2 = vrot.slane %v385_v41, 5  ;;  %v4464_v9 = vcombine.low %v4257_v43, %v5735_v45  ;;  %v397_v11 = vrot.slane %v395_v3, 5  ;;  %v5781_v21 = vld [vmem:[%s5412_s6 + $0x4c] sm:$0xf] }
  0x44   : > { %4761 = vmatpush3.bf16.msra.mxu1 %v5239_v39  ;;  %v887_v39 = vor.u32 %v886_v25, %v5710_v24  ;;  %v374_v46 = vsel %vm5454_vm2, %v369_v30, %v373_v8  ;;  %v5764_v14 = vrot.slane %v895_v4, 4  ;;  %v4420_v16 = vcombine.low %v5713_v26, %v5722_v33  ;;  %4866 = vmatprep.subr.bf16.mxu0 %v5253_v18  ;;  %v5824_v18 = vld [vmem:[%s5412_s6 + $0x54] sm:$0xf] }
  0x45   : > { %4970 = vmatprep.subr.bf16.mxu1 %v5243_v56  ;;  %v364_v38 = vsel %vm5454_vm2, %v359_v23, %v363_v5  ;;  %v898_v5 = vshll.u32 %v4257_v43, 16  ;;  %v383_v44 = vrot.slane %v382_v6, 4  ;;  %v392_v19 = vor.u32 %v391_v7, %v387_v2  ;;  %v5784_v23 = vld [vmem:[%s5412_s6 + $0x50] sm:$0x1] }
  0x46   : > { %v4435_v56 = vcombine.low %v364_v38, %v374_v46  ;;  %v5749_v57 = vrot.slane %v887_v39, 4  ;;  %v719_v20 = vsel %vm5648_vm5, %v717_v28, %v718_v62  ;;  %v400_v25 = vshrl.u32 %v5771_v17, 16  ;;  %v5799_v38 = vld [vmem:[%s5412_s6 + $0x28] sm:$0xf]  ;;  %v641_v39 = vld [vmem:[%s5412_s6 + $0x18] sm:$0xe] }
  0x47   : > { %3436 = vmatmul.mubr.bf16.vlgmr.msra.gmra.mrb[16].mxu1 %v4447_v42  ;;  %v5766_v15 = vrot.slane %v898_v5, 5  ;;  %v403_v26 = vshll.u32 %v5771_v17, 16  ;;  %v409_v30 = vshll.u32 %v5781_v21, 16  ;;  %v413_v31 = vshrl.u32 %v5781_v21, 16  ;;  %v5254_v46 = vld [vmem:[%s7399_s1 + $0x120] sm:$0xff]   ;;  %v5260_v5 = vld [vmem:[%s7399_s1 + $0x1d0] sm:$0xff]  }
  0x48   : > { %3306 = vmatprep.mubr.bf16.mxu0 %v4435_v56  ;;  %4971 = vmatpush3.bf16.msra.mxu1 %v5244_v53  ;;  %v388_v0 = vsel %vm5454_vm2, %v383_v44, %v387_v2  ;;  %v393_v37 = vrot.slane %v392_v19, 4  ;;  %v419_v28 = vshll.u32 %v5784_v23, 16  ;;  %v402_v12 = vrot.slane %v400_v25, 4  ;;  %v4287_v19 = vld [vmem:[%s5412_s6 + $0x14] sm:$0x1] }
  0x49   : > { %3307 = vmatmul.mubr.bf16.gmra.mrb[16].mxu0 %v4419_v1  ;;  %3443 = vmatprep.mubr.bf16.mxu1 %v4464_v9  ;;  %v4240_v1 = vrot.slane %v640_v55, 9  ;;  %v405_v43 = vrot.slane %v403_v26, 5  ;;  %v411_v47 = vrot.slane %v409_v30, 5  ;;  %v415_v63 = vrot.slane %v413_v31, 4  ;;  %v4303_v44 = vld [vmem:[%s5412_s6 + $0xc] sm:$0xe] }
  0x4a   : > { %4972 = vmatprep.subr.bf16.mxu1 %v5251_v60  ;;  %v398_v53 = vsel %vm5454_vm2, %v393_v37, %v397_v11  ;;  %v421_v54 = vrot.slane %v419_v28, 5  ;;  %v919_v41 = vshrl.u32 %v4259_v32, 16  ;;  %v922_v58 = vshll.u32 %v4259_v32, 16  ;;  %4867 = vmatpush3.bf16.msra.mxu0 %v5254_v46 }
  0x4b   : > { %v716_v62 = vsel %vm5648_vm5, %v4240_v1, %v715_v40  ;;  %v5259_v40 = vld [vmem:[%s7399_s1 + $0x168] sm:$0xff]   ;;  %v4436_v55 = vcombine.low %v388_v0, %v398_v53  ;;  %v406_v56 = vor.u32 %v405_v43, %v402_v12  ;;  %v416_v60 = vor.u32 %v415_v63, %v411_v47  ;;  %v5856_v12 = vld [vmem:[%s5412_s6 + $0x34] sm:$0xf]  ;;  %v642_v63 = vld [vmem:[%s5412_s6 + $0x24] sm:$0xe] }
  0x4c   : > { %v4448_v42 = vcombine.low %v716_v62, %v719_v20  ;;  %4973 = vmatpush3.bf16.msra.mxu1 %v5252_v10  ;;  %v5811_v2 = vrot.slane %v919_v41, 4  ;;  %v4465_v3 = vcombine.low %v4259_v32, %v5799_v38  ;;  %v4421_v4 = vcombine.low %v5771_v17, %v5781_v21  ;;  %4868 = vmatprep.subr.bf16.mxu0 %v5259_v40  ;;  %v5840_v20 = vld [vmem:[%s5412_s6 + $0x5c] sm:$0x1]  ;;  %v5261_v0 = vld [vmem:[%s7399_s1 + $0x128] sm:$0xff]  }
  0x4d   : > { %3314 = vmatprep.mubr.bf16.mxu0 %v4436_v55  ;;  %v407_v6 = vrot.slane %v406_v56, 4  ;;  %v5819_v7 = vrot.slane %v922_v58, 5  ;;  %v4241_v9 = vrot.slane %v641_v39, 9  ;;  %v722_v10 = vrot.slane %v5548_v48, 5  ;;  %4974 = vmatprep.subr.bf16.mxu1 %v5260_v5  ;;  %v5864_v58 = vld [vmem:[%s5412_s6 + $0x60] sm:$0xf] }
  0x4e   : > { %v417_v11 = vrot.slane %v416_v60, 4  ;;  %v725_v17 = vrot.slane %v5551_v49, 5  ;;  %v5837_v49 = vld [vmem:[%s5412_s6 + $0x58] sm:$0xf]  ;;  %v424_v25 = vshrl.u32 %v5824_v18, 16  ;;  %v427_v30 = vshll.u32 %v5824_v18, 16  ;;  %4869 = vmatpush3.bf16.msra.mxu0 %v5261_v0 }
  0x4f   : > { %3444 = vmatmul.mubr.bf16.gmra.mrb[20].mxu1 %v4448_v42  ;;  %v412_v1 = vsel %vm5454_vm2, %v407_v6, %v411_v47  ;;  %v723_v48 = vsel %vm5648_vm5, %v4241_v9, %v722_v10  ;;  %v433_v31 = vshll.u32 %v5837_v49, 16  ;;  %v437_v32 = vshrl.u32 %v5837_v49, 16  ;;  %v4261_v42 = vld [vmem:[%s5412_s6 + $0x30] sm:$0xf]  ;;  %v5870_v9 = vld [vmem:[%s5412_s6 + $0x64] sm:$0xf] }
  0x50   : > { %3451 = vmatprep.mubr.bf16.mxu1 %v4465_v3  ;;  %v422_v26 = vsel %vm5454_vm2, %v417_v11, %v421_v54  ;;  %v426_v28 = vrot.slane %v424_v25, 4  ;;  %v443_v39 = vshll.u32 %v5840_v20, 16  ;;  %v429_v47 = vrot.slane %v427_v30, 5  ;;  %v5262_v54 = vld [vmem:[%s7399_s1 + $0x190] sm:$0xff]   ;;  %v4263_v30 = vld [vmem:[%s5412_s6 + $0x3c] sm:$0xf] }
  0x51   : > { %3315 = vmatmul.mubr.bf16.gmra.mrb[20].mxu0 %v4420_v16  ;;  %v724_v16 = vrot.slane %v722_v10, 4  ;;  %v4437_v37 = vcombine.low %v412_v1, %v422_v26  ;;  %v435_v46 = vrot.slane %v433_v31, 5  ;;  %v439_v53 = vrot.slane %v437_v32, 4  ;;  %4975 = vmatpush3.bf16.msra.mxu1 %v5262_v54  ;;  %v5884_v31 = vld [vmem:[%s5412_s6 + $0x40] sm:$0xf] }
  0x52   : > { %v445_v41 = vrot.slane %v443_v39, 5  ;;  %v943_v40 = vshrl.u32 %v4261_v42, 16  ;;  %v946_v55 = vshll.u32 %v4261_v42, 16  ;;  %v430_v60 = vor.u32 %v429_v47, %v426_v28  ;;  %v5997_v56 = vld [vmem:[%s5412_s6 + $0x84] sm:$0xf] }
  0x53   : > { %v726_v62 = vsel %vm5648_vm5, %v724_v16, %v725_v17  ;;  %3322 = vmatprep.mubr.bf16.mxu0 %v4437_v37  ;;  %v440_v3 = vor.u32 %v439_v53, %v435_v46  ;;  %v4466_v5 = vcombine.low %v4261_v42, %v5856_v12  ;;  %v4422_v6 = vcombine.low %v5824_v18, %v5837_v49  ;;  %v643_v42 = vld [vmem:[%s5412_s6 + $0x30] sm:$0xe] }
  0x54   : > { %v4449_v43 = vcombine.low %v723_v48, %v726_v62  ;;  %v5872_v10 = vrot.slane %v943_v40, 4  ;;  %v5874_v11 = vrot.slane %v946_v55, 5  ;;  %v4242_v17 = vrot.slane %v642_v63, 9  ;;  %v5878_v48 = vld [vmem:[%s5412_s6 + $0x68] sm:$0x1] }
  0x55   : > { %v729_v1 = vrot.slane %v5608_v51, 5  ;;  %v431_v16 = vrot.slane %v430_v60, 4  ;;  %v441_v25 = vrot.slane %v440_v3, 4  ;;  %v732_v18 = vrot.slane %v5614_v52, 5 }
  0x56   : > { %v448_v26 = vshrl.u32 %v5864_v58, 16  ;;  %v451_v51 = vshll.u32 %v5864_v58, 16  ;;  %v457_v37 = vshll.u32 %v5870_v9, 16  ;;  %v461_v39 = vshrl.u32 %v5870_v9, 16 }
  0x57   : > { %3452 = vmatmul.mubr.bf16.gmra.mrb[24].mxu1 %v4449_v43  ;;  %v730_v32 = vsel %vm5648_vm5, %v4242_v17, %v729_v1  ;;  %v731_v0 = vrot.slane %v729_v1, 4  ;;  %v436_v52 = vsel %vm5454_vm2, %v431_v16, %v435_v46  ;;  %v446_v62 = vsel %vm5454_vm2, %v441_v25, %v445_v41  ;;  %v5266_v41 = vld [vmem:[%s7399_s1 + $0x130] sm:$0xff]   ;;  %v5908_v1 = vld [vmem:[%s5412_s6 + $0x6c] sm:$0xf] }
  0x58   : > { %3459 = vmatprep.mubr.bf16.mxu1 %v4466_v5  ;;  %v450_v28 = vrot.slane %v448_v26, 4  ;;  %v4438_v43 = vcombine.low %v436_v52, %v446_v62  ;;  %v453_v53 = vrot.slane %v451_v51, 5  ;;  %v459_v63 = vrot.slane %v457_v37, 5 }
  0x59   : > { %3323 = vmatmul.mubr.bf16.gmra.mrb[24].mxu0 %v4421_v4  ;;  %v5265_v4 = vld [vmem:[%s7399_s1 + $0x170] sm:$0xff]   ;;  %v733_v47 = vsel %vm5648_vm5, %v731_v0, %v732_v18  ;;  %v463_v40 = vrot.slane %v461_v39, 4  ;;  %v467_v46 = vshll.u32 %v5878_v48, 16  ;;  %v967_v55 = vshrl.u32 %v4263_v30, 16  ;;  %v4265_v39 = vld [vmem:[%s5412_s6 + $0x48] sm:$0xf] }
  0x5a   : > { %4870 = vmatprep.subr.bf16.mxu0 %v5265_v4  ;;  %v4450_v54 = vcombine.low %v730_v32, %v733_v47  ;;  %3330 = vmatprep.mubr.bf16.mxu0 %v4438_v43  ;;  %v454_v60 = vor.u32 %v453_v53, %v450_v28  ;;  %v970_v3 = vshll.u32 %v4263_v30, 16  ;;  %v4467_v17 = vcombine.low %v4263_v30, %v5884_v31  ;;  %v5915_v32 = vld [vmem:[%s5412_s6 + $0x70] sm:$0xf]  ;;  %v5921_v4 = vld [vmem:[%s5412_s6 + $0x74] sm:$0x1] }
  0x5b   : > { %v464_v16 = vor.u32 %v463_v40, %v459_v63  ;;  %v469_v25 = vrot.slane %v467_v46, 5  ;;  %v5910_v18 = vrot.slane %v967_v55, 4  ;;  %v4423_v26 = vcombine.low %v5864_v58, %v5870_v9  ;;  %4871 = vmatpush3.bf16.msra.mxu0 %v5266_v41 }
  0x5c   : > { %v455_v0 = vrot.slane %v454_v60, 4  ;;  %v5917_v51 = vrot.slane %v970_v3, 5  ;;  %v4243_v37 = vrot.slane %v643_v42, 9  ;;  %v736_v30 = vrot.slane %v5680_v13, 5 }
  0x5d   : > { %v465_v52 = vrot.slane %v464_v16, 4  ;;  %v739_v62 = vrot.slane %v5685_v35, 5  ;;  %v472_v58 = vshrl.u32 %v5908_v1, 16  ;;  %v475_v28 = vshll.u32 %v5908_v1, 16 }
  0x5e   : > { %v460_v43 = vsel %vm5454_vm2, %v455_v0, %v459_v63  ;;  %v737_v42 = vsel %vm5648_vm5, %v4243_v37, %v736_v30  ;;  %v738_v47 = vrot.slane %v736_v30, 4  ;;  %v481_v13 = vshll.u32 %v5915_v32, 16  ;;  %v5269_v63 = vld [vmem:[%s7399_s1 + $0x1d8] sm:$0xff]  }
  0x5f   : > { %3460 = vmatmul.mubr.bf16.gmra.mrb[28].mxu1 %v4450_v54  ;;  %v470_v35 = vsel %vm5454_vm2, %v465_v52, %v469_v25  ;;  %v474_v53 = vrot.slane %v472_v58, 4  ;;  %v477_v54 = vrot.slane %v475_v28, 5  ;;  %v485_v40 = vshrl.u32 %v5915_v32, 16  ;;  %v644_v0 = vld [vmem:[%s5412_s6 + $0x3c] sm:$0xe]  ;;  %4976 = vmatprep.subr.bf16.mxu1 %v5269_v63 }
  0x60   : > { %3467 = vmatprep.mubr.bf16.mxu1 %v4467_v17  ;;  %v4439_v46 = vcombine.low %v460_v43, %v470_v35  ;;  %v740_v55 = vsel %vm5648_vm5, %v738_v47, %v739_v62  ;;  %v483_v41 = vrot.slane %v481_v13, 5  ;;  %v491_v60 = vshll.u32 %v5921_v4, 16  ;;  %v5948_v28 = vld [vmem:[%s5412_s6 + $0x78] sm:$0xf]  ;;  %v5958_v35 = vld [vmem:[%s5412_s6 + $0x7c] sm:$0xf] }
  0x61   : > { %3331 = vmatmul.mubr.bf16.gmra.mrb[28].mxu0 %v4422_v6  ;;  %v5933_v6 = vld [vmem:[%s5412_s6 + $0x4c] sm:$0xf]  ;;  %v4451_v3 = vcombine.low %v737_v42, %v740_v55  ;;  %v478_v17 = vor.u32 %v477_v54, %v474_v53  ;;  %v487_v16 = vrot.slane %v485_v40, 4  ;;  %v991_v25 = vshrl.u32 %v4265_v39, 16  ;;  %v5270_v62 = vld [vmem:[%s7399_s1 + $0x198] sm:$0xff]  }
  0x62   : > { %3338 = vmatprep.mubr.bf16.mxu0 %v4439_v46  ;;  %v493_v37 = vrot.slane %v491_v60, 5  ;;  %v994_v30 = vshll.u32 %v4265_v39, 16  ;;  %v4468_v58 = vcombine.low %v4265_v39, %v5933_v6  ;;  %v4424_v13 = vcombine.low %v5908_v1, %v5915_v32  ;;  %v5965_v63 = vld [vmem:[%s5412_s6 + $0x80] sm:$0x1]  ;;  %4977 = vmatpush3.bf16.msra.mxu1 %v5270_v62 }
  0x63   : > { %v479_v43 = vrot.slane %v478_v17, 4  ;;  %v488_v42 = vor.u32 %v487_v16, %v483_v41  ;;  %v5953_v47 = vrot.slane %v991_v25, 4  ;;  %v4244_v39 = vrot.slane %v644_v0, 9  ;;  %v5973_v17 = vld [vmem:[%s5412_s6 + $0x58] sm:$0xf] }
  0x64   : > { %v5960_v53 = vrot.slane %v994_v30, 5  ;;  %v743_v54 = vrot.slane %v5722_v33, 5  ;;  %v746_v40 = vrot.slane %v5725_v36, 5  ;;  %v496_v1 = vshrl.u32 %v5948_v28, 16  ;;  %v5273_v33 = vld [vmem:[%s7399_s1 + $0x178] sm:$0xff]  }
  0x65   : > { %v484_v46 = vsel %vm5454_vm2, %v479_v43, %v483_v41  ;;  %v489_v55 = vrot.slane %v488_v42, 4  ;;  %v499_v60 = vshll.u32 %v5948_v28, 16  ;;  %v505_v41 = vshll.u32 %v5958_v35, 16  ;;  %v5274_v25 = vld [vmem:[%s7399_s1 + $0x138] sm:$0xff]   ;;  %4872 = vmatprep.subr.bf16.mxu0 %v5273_v33  ;;  %v5276_v42 = vld [vmem:[%s7399_s1 + $0x1e0] sm:$0xff]  }
  0x66   : > { %v744_v36 = vsel %vm5648_vm5, %v4244_v39, %v743_v54  ;;  %v509_v16 = vshrl.u32 %v5958_v35, 16  ;;  %v498_v30 = vrot.slane %v496_v1, 4  ;;  %v515_v43 = vshll.u32 %v5965_v63, 16  ;;  %4873 = vmatpush3.bf16.msra.mxu0 %v5274_v25  ;;  %4978 = vmatprep.subr.bf16.mxu1 %v5276_v42  ;;  %v6007_v25 = vld [vmem:[%s5412_s6 + $0x8c] sm:$0x1] }
  0x67   : > { %3468 = vmatmul.mubr.bf16.gmra.mrb[32].mxu1 %v4451_v3  ;;  %v4267_v3 = vld [vmem:[%s5412_s6 + $0x54] sm:$0xf]  ;;  %v494_v0 = vsel %vm5454_vm2, %v489_v55, %v493_v37 }
  0x68   : > { %3475 = vmatprep.mubr.bf16.mxu1 %v4468_v58  ;;  %v501_v58 = vrot.slane %v499_v60, 5  ;;  %v4440_v39 = vcombine.low %v484_v46, %v494_v0  ;;  %v511_v52 = vrot.slane %v509_v16, 4  ;;  %v517_v1 = vrot.slane %v515_v43, 5  ;;  %v6048_v46 = vld [vmem:[%s5412_s6 + $0x6c] sm:$0xf] }
  0x69   : > { %3339 = vmatmul.mubr.bf16.gmra.mrb[32].mxu0 %v4423_v26  ;;  %v745_v26 = vrot.slane %v743_v54, 4  ;;  %v507_v54 = vrot.slane %v505_v41, 5  ;;  %v1015_v60 = vshrl.u32 %v4267_v3, 16  ;;  %v1018_v5 = vshll.u32 %v4267_v3, 16 }
  0x6a   : > { %v502_v55 = vor.u32 %v501_v58, %v498_v30  ;;  %3346 = vmatprep.mubr.bf16.mxu0 %v4440_v39  ;;  %v4469_v0 = vcombine.low %v4267_v3, %v5973_v17  ;;  %v4245_v16 = vrot.slane %v645_v27, 9  ;;  %v750_v58 = vrot.slane %v5781_v21, 5 }
  0x6b   : > { %v747_v62 = vsel %vm5648_vm5, %v745_v26, %v746_v40  ;;  %v512_v33 = vor.u32 %v511_v52, %v507_v54  ;;  %v6000_v40 = vld [vmem:[%s5412_s6 + $0x88] sm:$0xf]  ;;  %v6002_v41 = vrot.slane %v1015_v60, 4  ;;  %v5277_v52 = vld [vmem:[%s7399_s1 + $0x1a0] sm:$0xff]   ;;  %v6012_v30 = vrot.slane %v1018_v5, 5 }
  0x6c   : > { %v4452_v37 = vcombine.low %v744_v36, %v747_v62  ;;  %v503_v26 = vrot.slane %v502_v55, 4  ;;  %v4425_v36 = vcombine.low %v5948_v28, %v5958_v35  ;;  %v753_v43 = vrot.slane %v5784_v23, 5  ;;  %v4269_v62 = vld [vmem:[%s5412_s6 + $0x60] sm:$0xf]  ;;  %4979 = vmatpush3.bf16.msra.mxu1 %v5277_v52 }
  0x6d   : > { %v513_v3 = vrot.slane %v512_v33, 4  ;;  %v520_v27 = vshrl.u32 %v5997_v56, 16  ;;  %v523_v28 = vshll.u32 %v5997_v56, 16  ;;  %v529_v39 = vshll.u32 %v6000_v40, 16  ;;  %v6025_v5 = vld [vmem:[%s7399_s1 + $0x200] sm:$0xff]  }
  0x6e   : > { %v508_v42 = vsel %vm5454_vm2, %v503_v26, %v507_v54  ;;  %v751_v23 = vsel %vm5648_vm5, %v4245_v16, %v750_v58  ;;  %v533_v54 = vshrl.u32 %v6000_v40, 16  ;;  %5106 = vmatprep.subr.bf16.mxu0 %v6025_v5  ;;  %v539_v52 = vshll.u32 %v6007_v25, 16 }
  0x6f   : > { %3476 = vmatmul.mubr.bf16.gmra.mrb[36].mxu1 %v4452_v37  ;;  %v518_v21 = vsel %vm5454_vm2, %v513_v3, %v517_v1  ;;  %v522_v55 = vrot.slane %v520_v27, 4  ;;  %v525_v60 = vrot.slane %v523_v28, 5  ;;  %v531_v33 = vrot.slane %v529_v39, 5  ;;  %v5281_v1 = vld [vmem:[%s7399_s1 + $0x1e8] sm:$0xff]  }
  0x70   : > { %3483 = vmatprep.mubr.bf16.mxu1 %v4469_v0  ;;  %v4441_v37 = vcombine.low %v508_v42, %v518_v21  ;;  %v6033_v0 = vld [vmem:[%s5412_s6 + $0x64] sm:$0xf]  ;;  %v535_v16 = vrot.slane %v533_v54, 4  ;;  %v1039_v3 = vshrl.u32 %v4269_v62, 16  ;;  %v5282_v42 = vld [vmem:[%s7399_s1 + $0x1a8] sm:$0xff]   ;;  %v1042_v39 = vshll.u32 %v4269_v62, 16  ;;  %4980 = vmatprep.subr.bf16.mxu1 %v5281_v1 }
  0x71   : > { %3347 = vmatmul.mubr.bf16.gmra.mrb[36].mxu0 %v4424_v13  ;;  %v752_v13 = vrot.slane %v750_v58, 4  ;;  %v646_v58 = vld [vmem:[%s5412_s6 + $0x54] sm:$0xe]  ;;  %v526_v28 = vor.u32 %v525_v60, %v522_v55  ;;  %v541_v54 = vrot.slane %v539_v52, 5  ;;  %v4470_v8 = vcombine.low %v4269_v62, %v6033_v0  ;;  %4981 = vmatpush3.bf16.msra.mxu1 %v5282_v42 }
  0x72   : > { %3354 = vmatprep.mubr.bf16.mxu0 %v4441_v37  ;;  %v6053_v59 = vrot.slane %v1039_v3, 4  ;;  %v6058_v37 = vrot.slane %v1042_v39, 5  ;;  %v4426_v55 = vcombine.low %v5997_v56, %v6000_v40  ;;  %v4246_v60 = vrot.slane %v646_v58, 9  ;;  %v5286_v39 = vld [vmem:[%s7399_s1 + $0x1f0] sm:$0xff]  }
  0x73   : > { %v754_v26 = vsel %vm5648_vm5, %v752_v13, %v753_v43  ;;  %v6051_v43 = vld [vmem:[%s5412_s6 + $0x70] sm:$0xf]  ;;  %v536_v13 = vor.u32 %v535_v16, %v531_v33  ;;  %v757_v1 = vrot.slane %v5837_v49, 5  ;;  %v760_v16 = vrot.slane %v5840_v20, 5  ;;  %4982 = vmatprep.subr.bf16.mxu1 %v5286_v39 }
  0x74   : > { %v4453_v27 = vcombine.low %v751_v23, %v754_v26  ;;  %v527_v23 = vrot.slane %v526_v28, 4  ;;  %v647_v26 = vld [vmem:[%s5412_s6 + $0x60] sm:$0xe]  ;;  %v1063_v52 = vshrl.u32 %v6048_v46, 16  ;;  %v1066_v3 = vshll.u32 %v6048_v46, 16 }
  0x75   : > { %v537_v21 = vrot.slane %v536_v13, 4  ;;  %v1076_v56 = vshrl.u32 %v6051_v43, 16  ;;  %v4471_v58 = vcombine.low %v6048_v46, %v6051_v43  ;;  %v758_v20 = vsel %vm5648_vm5, %v4246_v60, %v757_v1  ;;  %v5287_v60 = vld [vmem:[%s7399_s1 + $0x1b0] sm:$0xff]  }
  0x76   : > { %v532_v62 = vsel %vm5454_vm2, %v527_v23, %v531_v33  ;;  %v759_v42 = vrot.slane %v757_v1, 4  ;;  %v890_v33 = vshll.u32 %v4287_v19, 16  ;;  %v4319_v28 = vrot.slane %v4303_v44, 9  ;;  %v6087_v23 = vld [vmem:[%s5412_s6 + $0x78] sm:$0xf]  ;;  %4983 = vmatpush3.bf16.msra.mxu1 %v5287_v60 }
  0x77   : > { %3484 = vmatmul.mubr.bf16.gmra.mrb[40].mxu1 %v4453_v27  ;;  %v542_v49 = vsel %vm5454_vm2, %v537_v21, %v541_v54  ;;  %v1320_v21 = vrot.slane %v5699_v61, 5  ;;  %v1323_v13 = vrot.slane %v4287_v19, 5  ;;  %v4247_v54 = vrot.slane %v647_v26, 9 }
  0x78   : > { %3491 = vmatprep.mubr.bf16.mxu1 %v4470_v8  ;;  %v4442_v27 = vcombine.low %v532_v62, %v542_v49  ;;  %v6078_v8 = vrot.slane %v1066_v3, 5  ;;  %v761_v46 = vsel %vm5648_vm5, %v759_v42, %v760_v16  ;;  %v892_v1 = vrot.slane %v890_v33, 5  ;;  %v6095_v62 = vld [vmem:[%s5412_s6 + $0x7c] sm:$0xf]  ;;  %v4304_v49 = vld [vmem:[%s5412_s6 + $0x18] sm:$0xe] }
  0x79   : > { %3355 = vmatmul.mubr.bf16.gmra.mrb[40].mxu0 %v4425_v36  ;;  %v6076_v36 = vrot.slane %v1063_v52, 4  ;;  %v4454_v44 = vcombine.low %v758_v20, %v761_v46  ;;  %v764_v52 = vrot.slane %v5870_v9, 5  ;;  %v767_v16 = vrot.slane %v5878_v48, 5  ;;  %v5291_v9 = vld [vmem:[%s7399_s1 + $0x1f8] sm:$0xff]   ;;  %v4288_v33 = vld [vmem:[%s5412_s6 + $0x20] sm:$0x1] }
  0x7a   : > { %3362 = vmatprep.mubr.bf16.mxu0 %v4442_v27  ;;  %v1321_v61 = vsel %vm5648_vm5, %v4319_v28, %v1320_v21  ;;  %v1322_v19 = vrot.slane %v1320_v21, 4  ;;  %v1087_v26 = vshrl.u32 %v6087_v23, 16  ;;  %v1090_v3 = vshll.u32 %v6087_v23, 16  ;;  %v648_v28 = vld [vmem:[%s5412_s6 + $0x6c] sm:$0xe]  ;;  %4984 = vmatprep.subr.bf16.mxu1 %v5291_v9 }
  0x7b   : > { %v765_v48 = vsel %vm5648_vm5, %v4247_v54, %v764_v52  ;;  %v766_v20 = vrot.slane %v764_v52, 4  ;;  %v893_v42 = vsel %vm5454_vm2, %v5749_v57, %v892_v1  ;;  %v1100_v27 = vshrl.u32 %v6095_v62, 16 }
  0x7c   : > { %v1324_v39 = vsel %vm5648_vm5, %v1322_v19, %v1323_v13  ;;  %v7405_v46 = vsel %vm5454_vm2, %v5742_v50, %v5710_v24  ;;  %v6120_v54 = vrot.slane %v1087_v26, 4  ;;  %v6122_v60 = vrot.slane %v1090_v3, 5  ;;  %v5292_v24 = vld [vmem:[%s7399_s1 + $0x1b8] sm:$0xff]   ;;  %v6133_v19 = vld [vmem:[%s5412_s6 + $0x84] sm:$0xf] }
  0x7d   : > { %v4479_v21 = vcombine.low %v7405_v46, %v893_v42  ;;  %v4495_v57 = vcombine.low %v1321_v61, %v1324_v39  ;;  %v4472_v13 = vcombine.low %v6087_v23, %v6095_v62  ;;  %v4320_v1 = vrot.slane %v4304_v49, 9  ;;  %v6142_v49 = vld [vmem:[%s5412_s6 + $0x88] sm:$0xf]  ;;  %4985 = vmatpush3.bf16.msra.mxu1 %v5292_v24 }
  0x7e   : > { %v1327_v52 = vrot.slane %v5735_v45, 5  ;;  %v774_v61 = vrot.slane %v5921_v4, 5  ;;  %v7406_v23 = vor.u32 %v5766_v15, %v5764_v14  ;;  %v904_v3 = vshll.u32 %v5735_v45, 16  ;;  %v4305_v4 = vld [vmem:[%s5412_s6 + $0x24] sm:$0xe] }
  0x7f   : > { %3492 = vmatmul.mubr.bf16.gmra.mrb[44].mxu1 %v4454_v44  ;;  %v768_v44 = vsel %vm5648_vm5, %v766_v20, %v767_v16  ;;  %v771_v16 = vrot.slane %v5915_v32, 5  ;;  %v7407_v20 = vshrl.u32 %v5735_v45, 16  ;;  %v914_v32 = vshll.u32 %v4288_v33, 16 }
  0x80   : > { %3499 = vmatprep.mubr.bf16.mxu1 %v4471_v58  ;;  %v4455_v50 = vcombine.low %v765_v48, %v768_v44  ;;  %v4248_v58 = vrot.slane %v648_v28, 9  ;;  %v902_v26 = vrot.slane %v7406_v23, 4  ;;  %v1328_v9 = vsel %vm5648_vm5, %v4320_v1, %v1327_v52  ;;  %v4289_v28 = vld [vmem:[%s5412_s6 + $0x2c] sm:$0x1] }
  0x81   : > { %3363 = vmatmul.mubr.bf16.gmra.mrb[44].mxu0 %v4426_v55  ;;  %v1330_v55 = vrot.slane %v4288_v33, 5  ;;  %v1329_v48 = vrot.slane %v1327_v52, 4  ;;  %v910_v42 = vrot.slane %v7407_v20, 4  ;;  %v773_v15 = vrot.slane %v771_v16, 4  ;;  %v5283_v23 = vld [vmem:[%s7399_s1 + $0x208] sm:$0xff]  }
  0x82   : > { %3596 = vmatprep.mubr.bf16.mxu0 %v4495_v57  ;;  %v772_v14 = vsel %vm5648_vm5, %v4248_v58, %v771_v16  ;;  %v906_v39 = vrot.slane %v904_v3, 5  ;;  %v1111_v46 = vshrl.u32 %v6133_v19, 16  ;;  %v916_v44 = vrot.slane %v914_v32, 5  ;;  %v649_v16 = vld [vmem:[%s5412_s6 + $0x78] sm:$0xe] }
  0x83   : > { %v1331_v57 = vsel %vm5648_vm5, %v1329_v48, %v1330_v55  ;;  %v1114_v1 = vshll.u32 %v6133_v19, 16  ;;  %v1124_v45 = vshrl.u32 %v6142_v49, 16  ;;  %v775_v33 = vsel %vm5648_vm5, %v773_v15, %v774_v61  ;;  %v6186_v15 = vld [vmem:[%s5412_s6 + $0x90] sm:$0xf] }
  0x84   : > { %v4496_v24 = vcombine.low %v1328_v9, %v1331_v57  ;;  %v907_v52 = vsel %vm5454_vm2, %v902_v26, %v906_v39  ;;  %v911_v58 = vor.u32 %v910_v42, %v906_v39  ;;  %v4456_v55 = vcombine.low %v772_v14, %v775_v33  ;;  %v4290_v57 = vld [vmem:[%s5412_s6 + $0x38] sm:$0x1] }
  0x85   : > { %v6165_v3 = vrot.slane %v1111_v46, 4  ;;  %v6167_v48 = vrot.slane %v1114_v1, 5  ;;  %v4473_v9 = vcombine.low %v6133_v19, %v6142_v49  ;;  %v4321_v26 = vrot.slane %v4305_v4, 9 }
  0x86   : > { %v912_v61 = vrot.slane %v911_v58, 4  ;;  %v1334_v20 = vrot.slane %v5799_v38, 5  ;;  %v1337_v42 = vrot.slane %v4289_v28, 5  ;;  %v778_v32 = vrot.slane %v5958_v35, 5 }
  0x87   : > { %3500 = vmatmul.mubr.bf16.gmra.mrb[48].mxu1 %v4455_v50  ;;  %v4249_v50 = vrot.slane %v649_v16, 9  ;;  %v781_v14 = vrot.slane %v5965_v63, 5  ;;  %v928_v35 = vshll.u32 %v5799_v38, 16  ;;  %v6189_v63 = vld [vmem:[%s5412_s6 + $0x94] sm:$0xf]  ;;  %v7408_v33 = vshrl.u32 %v5799_v38, 16 }
  0x88   : > { %3507 = vmatprep.mubr.bf16.mxu1 %v4472_v13  ;;  %v5288_v13 = vld [vmem:[%s7399_s1 + $0x210] sm:$0xff]   ;;  %v917_v19 = vsel %vm5454_vm2, %v912_v61, %v916_v44  ;;  %v1336_v4 = vrot.slane %v1334_v20, 4  ;;  %v780_v39 = vrot.slane %v778_v32, 4  ;;  %v938_v16 = vshll.u32 %v4289_v28, 16  ;;  %v650_v61 = vld [vmem:[%s5412_s6 + $0x84] sm:$0xe] }
  0x89   : > { %3597 = vmatmul.mubr.bf16.vlgmr.msra.gmra.mrb[48].mxu0 %v4479_v21  ;;  %v925_v21 = vor.u32 %v5819_v7, %v5811_v2  ;;  %v4480_v2 = vcombine.low %v907_v52, %v917_v19  ;;  %v6193_v7 = vsel %vm5648_vm5, %v4249_v50, %v778_v32  ;;  %v4306_v44 = vld [vmem:[%s5412_s6 + $0x30] sm:$0xe]  ;;  %v934_v58 = vrot.slane %v7408_v33, 4  ;;  %v5293_v38 = vld [vmem:[%s7399_s1 + $0x218] sm:$0xff]  }
  0x8a   : > { %5107 = vmatpush3.bf16.msra.mxu0 %v6025_v5  ;;  %3604 = vmatprep.mubr.bf16.mxu0 %v4496_v24  ;;  %v1335_v5 = vsel %vm5648_vm5, %v4321_v26, %v1334_v20  ;;  %v1338_v1 = vsel %vm5648_vm5, %v1336_v4, %v1337_v42  ;;  %v930_v24 = vrot.slane %v928_v35, 5  ;;  %v782_v52 = vsel %vm5648_vm5, %v780_v39, %v781_v14  ;;  %v6237_v33 = vld [vmem:[%s5412_s6 + $0x9c] sm:$0xf] }
  0x8b   : > { %5108 = vmatprep.subr.bf16.mxu0 %v5283_v23  ;;  %v926_v46 = vrot.slane %v925_v21, 4  ;;  %v4497_v26 = vcombine.low %v1335_v5, %v1338_v1  ;;  %v1135_v20 = vshrl.u32 %v6186_v15, 16  ;;  %v1138_v50 = vshll.u32 %v6186_v15, 16 }
  0x8c   : > { %v4457_v32 = vcombine.low %v6193_v7, %v782_v52  ;;  %v935_v21 = vor.u32 %v934_v58, %v930_v24  ;;  %v940_v19 = vrot.slane %v938_v16, 5  ;;  %v1148_v14 = vshrl.u32 %v6189_v63, 16  ;;  %v6240_v58 = vld [vmem:[%s5412_s6 + $0xa0] sm:$0xf] }
  0x8d   : > { %v931_v42 = vsel %vm5454_vm2, %v926_v46, %v930_v24  ;;  %v6212_v28 = vrot.slane %v1135_v20, 4  ;;  %v4474_v5 = vcombine.low %v6186_v15, %v6189_v63  ;;  %v4322_v35 = vrot.slane %v4306_v44, 9 }
  0x8e   : > { %5109 = vmatpush3.bf16.msra.mxu0 %v5283_v23  ;;  %v6214_v23 = vrot.slane %v1138_v50, 5  ;;  %v936_v4 = vrot.slane %v935_v21, 4  ;;  %v1341_v7 = vrot.slane %v5856_v12, 5  ;;  %v1344_v39 = vrot.slane %v4290_v57, 5  ;;  %v4291_v50 = vld [vmem:[%s5412_s6 + $0x44] sm:$0x1] }
  0x8f   : > { %5110 = vmatprep.subr.bf16.mxu0 %v5288_v13  ;;  %3508 = vmatmul.mubr.bf16.gmra.mrb[52].mxu1 %v4456_v55  ;;  %v4250_v46 = vrot.slane %v650_v61, 9  ;;  %v785_v55 = vrot.slane %v6000_v40, 5  ;;  %v788_v1 = vrot.slane %v6007_v25, 5  ;;  %v949_v24 = vor.u32 %v5874_v11, %v5872_v10  ;;  %v5296_v40 = vld [vmem:[%s7399_s1 + $0x220] sm:$0xff]  }
  0x90   : > { %3515 = vmatprep.mubr.bf16.mxu1 %v4473_v9  ;;  %v941_v9 = vsel %vm5454_vm2, %v936_v4, %v940_v19  ;;  %v1342_v15 = vsel %vm5648_vm5, %v4322_v35, %v1341_v7  ;;  %v952_v44 = vshll.u32 %v5856_v12, 16  ;;  %v962_v20 = vshll.u32 %v4290_v57, 16  ;;  %v4307_v35 = vld [vmem:[%s5412_s6 + $0x3c] sm:$0xe]  ;;  %v5299_v57 = vld [vmem:[%s7399_s1 + $0x228] sm:$0xff]  }
  0x91   : > { %3605 = vmatmul.mubr.bf16.gmra.mrb[52].mxu0 %v4480_v2  ;;  %v1343_v2 = vrot.slane %v1341_v7, 4  ;;  %v4481_v25 = vcombine.low %v931_v42, %v941_v9  ;;  %v6234_v10 = vsel %vm5648_vm5, %v4250_v46, %v785_v55  ;;  %v787_v11 = vrot.slane %v785_v55, 4  ;;  %v651_v7 = vld [vmem:[%s5412_s6 + $0x90] sm:$0xe] }
  0x92   : > { %3612 = vmatprep.mubr.bf16.mxu0 %v4497_v26  ;;  %5111 = vmatpush3.bf16.msra.mxu0 %v5288_v13  ;;  %v950_v13 = vrot.slane %v949_v24, 4  ;;  %v954_v61 = vrot.slane %v952_v44, 5  ;;  %v7409_v26 = vshrl.u32 %v5856_v12, 16  ;;  %v1159_v19 = vshrl.u32 %v6237_v33, 16 }
  0x93   : > { %5112 = vmatprep.subr.bf16.mxu0 %v5293_v38  ;;  %v1345_v16 = vsel %vm5648_vm5, %v1343_v2, %v1344_v39  ;;  %v789_v21 = vsel %vm5648_vm5, %v787_v11, %v788_v1  ;;  %v1162_v4 = vshll.u32 %v6237_v33, 16  ;;  %v964_v55 = vrot.slane %v962_v20, 5  ;;  %v5302_v20 = vld [vmem:[%s7399_s1 + $0x230] sm:$0xff]  }
  0x94   : > { %v958_v52 = vrot.slane %v7409_v26, 4  ;;  %v4498_v42 = vcombine.low %v1342_v15, %v1345_v16  ;;  %v4458_v46 = vcombine.low %v6234_v10, %v789_v21  ;;  %v955_v39 = vsel %vm5454_vm2, %v950_v13, %v954_v61  ;;  %v6285_v21 = vld [vmem:[%s5412_s6 + $0xa8] sm:$0xf] }
  0x95   : > { %v6259_v1 = vrot.slane %v1159_v19, 4  ;;  %v6261_v24 = vrot.slane %v1162_v4, 5  ;;  %v4475_v9 = vcombine.low %v6237_v33, %v6240_v58  ;;  %v4323_v2 = vrot.slane %v4307_v35, 9  ;;  %v6288_v19 = vld [vmem:[%s5412_s6 + $0xac] sm:$0xf] }
  0x96   : > { %5113 = vmatpush3.bf16.msra.mxu0 %v5293_v38  ;;  %v959_v12 = vor.u32 %v958_v52, %v954_v61  ;;  %v1172_v38 = vshrl.u32 %v6240_v58, 16  ;;  %v1348_v44 = vrot.slane %v5884_v31, 5  ;;  %v1351_v10 = vrot.slane %v4291_v50, 5 }
  0x97   : > { %5114 = vmatprep.subr.bf16.mxu0 %v5296_v40  ;;  %3516 = vmatmul.mubr.bf16.gmra.mrb[56].mxu1 %v4457_v32  ;;  %v4251_v11 = vrot.slane %v651_v7, 9  ;;  %v5315_v32 = vld [vmem:[%s5412_s6 + $0x94] sm:$0xf]  ;;  %v973_v16 = vor.u32 %v5917_v51, %v5910_v18  ;;  %v976_v61 = vshll.u32 %v5884_v31, 16  ;;  %v7410_v26 = vshrl.u32 %v5884_v31, 16 }
  0x98   : > { %3523 = vmatprep.mubr.bf16.mxu1 %v4474_v5  ;;  %v960_v15 = vrot.slane %v959_v12, 4  ;;  %v792_v13 = vrot.slane %v5315_v32, 5  ;;  %v1350_v33 = vrot.slane %v1348_v44, 4  ;;  %v986_v35 = vshll.u32 %v4291_v50, 16  ;;  %v4308_v12 = vld [vmem:[%s5412_s6 + $0x48] sm:$0xe] }
  0x99   : > { %3613 = vmatmul.mubr.bf16.gmra.mrb[56].mxu0 %v4481_v25  ;;  %v1349_v25 = vsel %vm5648_vm5, %v4323_v2, %v1348_v44  ;;  %v982_v52 = vrot.slane %v7410_v26, 4  ;;  %v978_v4 = vrot.slane %v976_v61, 5  ;;  %v1183_v7 = vshrl.u32 %v6285_v21, 16  ;;  %v652_v32 = vld [vmem:[%s5412_s6 + $0x9c] sm:$0xe] }
  0x9a   : > { %3620 = vmatprep.mubr.bf16.mxu0 %v4498_v42  ;;  %5115 = vmatpush3.bf16.msra.mxu0 %v5296_v40  ;;  %v965_v5 = vsel %vm5454_vm2, %v960_v15, %v964_v55  ;;  %v6282_v51 = vsel %vm5648_vm5, %v4251_v11, %v792_v13  ;;  %v794_v40 = vrot.slane %v792_v13, 4  ;;  %v974_v42 = vrot.slane %v973_v16, 4  ;;  %v4292_v11 = vld [vmem:[%s5412_s6 + $0x50] sm:$0x1] }
  0x9b   : > { %5116 = vmatprep.subr.bf16.mxu0 %v5299_v57  ;;  %v4482_v18 = vcombine.low %v955_v39, %v965_v5  ;;  %v1352_v31 = vsel %vm5648_vm5, %v1350_v33, %v1351_v10  ;;  %v7411_v55 = vrot.slane %v5448_v29, 5  ;;  %v1186_v2 = vshll.u32 %v6285_v21, 16  ;;  %v5305_v29 = vld [vmem:[%s7399_s1 + $0x238] sm:$0xff]  }
  0x9c   : > { %v4499_v39 = vcombine.low %v1349_v25, %v1352_v31  ;;  %v1196_v44 = vshrl.u32 %v6288_v19, 16  ;;  %v979_v50 = vsel %vm5454_vm2, %v974_v42, %v978_v4  ;;  %v983_v13 = vor.u32 %v982_v52, %v978_v4 }
  0x9d   : > { %v796_v15 = vsel %vm5648_vm5, %v794_v40, %v7411_v55  ;;  %v988_v16 = vrot.slane %v986_v35, 5  ;;  %v6308_v61 = vrot.slane %v1183_v7, 4  ;;  %v6310_v5 = vrot.slane %v1186_v2, 5  ;;  %v5316_v40 = vld [vmem:[%s5412_s6 + $0xa0] sm:$0xf] }
  0x9e   : > { %5117 = vmatpush3.bf16.msra.mxu0 %v5299_v57  ;;  %v4459_v10 = vcombine.low %v6282_v51, %v796_v15  ;;  %v4476_v57 = vcombine.low %v6285_v21, %v6288_v19  ;;  %v4324_v25 = vrot.slane %v4308_v12, 9  ;;  %v984_v33 = vrot.slane %v983_v13, 4  ;;  %v6331_v55 = vld [vmem:[%s5412_s6 + $0xb4] sm:$0xf]  ;;  %v6334_v15 = vld [vmem:[%s5412_s6 + $0xb8] sm:$0xf] }
  0x9f   : > { %5118 = vmatprep.subr.bf16.mxu0 %v5302_v20  ;;  %3524 = vmatmul.mubr.bf16.gmra.mrb[60].mxu1 %v4458_v46  ;;  %v1355_v26 = vrot.slane %v5933_v6, 5  ;;  %v1358_v52 = vrot.slane %v4292_v11, 5  ;;  %v4252_v51 = vrot.slane %v652_v32, 9  ;;  %v799_v42 = vrot.slane %v5316_v40, 5  ;;  %v5317_v46 = vld [vmem:[%s5412_s6 + $0xa4] sm:$0x1] }
  0xa0   : > { %3531 = vmatprep.mubr.bf16.mxu1 %v4475_v9  ;;  %v802_v31 = vrot.slane %v5317_v46, 5  ;;  %v997_v4 = vor.u32 %v5960_v53, %v5953_v47  ;;  %v1000_v21 = vshll.u32 %v5933_v6, 16  ;;  %v989_v9 = vsel %vm5454_vm2, %v984_v33, %v988_v16  ;;  %v4309_v16 = vld [vmem:[%s5412_s6 + $0x54] sm:$0xe]  ;;  %v653_v40 = vld [vmem:[%s5412_s6 + $0xa8] sm:$0xe] }
  0xa1   : > { %3621 = vmatmul.mubr.bf16.gmra.mrb[60].mxu0 %v4482_v18  ;;  %v1356_v18 = vsel %vm5648_vm5, %v4324_v25, %v1355_v26  ;;  %v1357_v35 = vrot.slane %v1355_v26, 4  ;;  %v7412_v7 = vshrl.u32 %v5933_v6, 16  ;;  %v6328_v47 = vsel %vm5648_vm5, %v4252_v51, %v799_v42  ;;  %v4293_v51 = vld [vmem:[%s5412_s6 + $0x5c] sm:$0x1] }
  0xa2   : > { %3628 = vmatprep.mubr.bf16.mxu0 %v4499_v39  ;;  %5119 = vmatpush3.bf16.msra.mxu0 %v5302_v20  ;;  %v4483_v39 = vcombine.low %v979_v50, %v989_v9  ;;  %v801_v53 = vrot.slane %v799_v42, 4  ;;  %v998_v20 = vrot.slane %v997_v4, 4  ;;  %v1002_v32 = vrot.slane %v1000_v21, 5 }
  0xa3   : > { %v1006_v12 = vrot.slane %v7412_v7, 4  ;;  %5120 = vmatprep.subr.bf16.mxu0 %v5305_v29  ;;  %v1359_v2 = vsel %vm5648_vm5, %v1357_v35, %v1358_v52  ;;  %v1010_v6 = vshll.u32 %v4292_v11, 16  ;;  %v1207_v13 = vshrl.u32 %v6331_v55, 16 }
  0xa4   : > { %v4500_v50 = vcombine.low %v1356_v18, %v1359_v2  ;;  %v803_v25 = vsel %vm5648_vm5, %v801_v53, %v802_v31  ;;  %v1210_v33 = vshll.u32 %v6331_v55, 16  ;;  %v1220_v26 = vshrl.u32 %v6334_v15, 16 }
  0xa5   : > { %v4460_v42 = vcombine.low %v6328_v47, %v803_v25  ;;  %v1003_v11 = vsel %vm5454_vm2, %v998_v20, %v1002_v32  ;;  %v1007_v52 = vor.u32 %v1006_v12, %v1002_v32  ;;  %v1012_v46 = vrot.slane %v1010_v6, 5  ;;  %v5318_v12 = vld [vmem:[%s5412_s6 + $0xac] sm:$0xf]  ;;  %v5319_v47 = vld [vmem:[%s5412_s6 + $0xb0] sm:$0x1] }
  0xa6   : > { %5121 = vmatpush3.bf16.msra.mxu0 %v5305_v29  ;;  %v6349_v4 = vrot.slane %v1207_v13, 4  ;;  %v6351_v31 = vrot.slane %v1210_v33, 5  ;;  %v4477_v21 = vcombine.low %v6331_v55, %v6334_v15  ;;  %v4325_v9 = vrot.slane %v4309_v16, 9  ;;  %v6375_v25 = vld [vmem:[%s5412_s6 + $0xc4] sm:$0xf] }
  0xa7   : > { %3532 = vmatmul.mubr.bf16.gmra.mrb[64].mxu1 %v4459_v10  ;;  %v1008_v29 = vrot.slane %v1007_v52, 4  ;;  %v1362_v18 = vrot.slane %v5973_v17, 5  ;;  %v1365_v35 = vrot.slane %v4293_v51, 5  ;;  %v4253_v7 = vrot.slane %v653_v40, 9 }
  0xa8   : > { %3539 = vmatprep.mubr.bf16.mxu1 %v4476_v57  ;;  %v806_v10 = vrot.slane %v5318_v12, 5  ;;  %v809_v53 = vrot.slane %v5319_v47, 5  ;;  %v1021_v20 = vor.u32 %v6012_v30, %v6002_v41  ;;  %v1024_v55 = vshll.u32 %v5973_v17, 16  ;;  %v654_v12 = vld [vmem:[%s5412_s6 + $0xb4] sm:$0xe] }
  0xa9   : > { %3629 = vmatmul.mubr.bf16.gmra.mrb[64].mxu0 %v4483_v39  ;;  %v1013_v57 = vsel %vm5454_vm2, %v1008_v29, %v1012_v46  ;;  %v1363_v39 = vsel %vm5648_vm5, %v4325_v9, %v1362_v18  ;;  %v1364_v2 = vrot.slane %v1362_v18, 4  ;;  %v7413_v32 = vshrl.u32 %v5973_v17, 16  ;;  %v4310_v46 = vld [vmem:[%s5412_s6 + $0x60] sm:$0xe] }
  0xaa   : > { %3636 = vmatprep.mubr.bf16.mxu0 %v4500_v50  ;;  %v4484_v13 = vcombine.low %v1003_v11, %v1013_v57  ;;  %v6369_v16 = vsel %vm5648_vm5, %v4253_v7, %v806_v10  ;;  %v808_v41 = vrot.slane %v806_v10, 4  ;;  %v1022_v30 = vrot.slane %v1021_v20, 4  ;;  %v6372_v50 = vld [vmem:[%s5412_s6 + $0xc0] sm:$0xf]  ;;  %v4294_v7 = vld [vmem:[%s5412_s6 + $0x68] sm:$0x1] }
  0xab   : > { %v1030_v6 = vrot.slane %v7413_v32, 4  ;;  %v1366_v33 = vsel %vm5648_vm5, %v1364_v2, %v1365_v35  ;;  %v1026_v40 = vrot.slane %v1024_v55, 5  ;;  %v1034_v52 = vshll.u32 %v4293_v51, 16 }
  0xac   : > { %v1231_v17 = vshrl.u32 %v6372_v50, 16  ;;  %v4501_v11 = vcombine.low %v1363_v39, %v1366_v33  ;;  %v810_v9 = vsel %vm5648_vm5, %v808_v41, %v809_v53  ;;  %v1234_v29 = vshll.u32 %v6372_v50, 16  ;;  %v5320_v41 = vld [vmem:[%s5412_s6 + $0xb8] sm:$0xf] }
  0xad   : > { %v1244_v18 = vshrl.u32 %v6375_v25, 16  ;;  %v4461_v10 = vcombine.low %v6369_v16, %v810_v9  ;;  %v1027_v35 = vsel %vm5454_vm2, %v1022_v30, %v1026_v40  ;;  %v1031_v51 = vor.u32 %v1030_v6, %v1026_v40  ;;  %v4311_v6 = vld [vmem:[%s5412_s6 + $0x6c] sm:$0xe]  ;;  %v5321_v30 = vld [vmem:[%s5412_s6 + $0xbc] sm:$0x1] }
  0xae   : > { %v1036_v47 = vrot.slane %v1034_v52, 5  ;;  %v6390_v20 = vrot.slane %v1231_v17, 4  ;;  %v6392_v53 = vrot.slane %v1234_v29, 5  ;;  %v4478_v55 = vcombine.low %v6372_v50, %v6375_v25 }
  0xaf   : > { %3540 = vmatmul.mubr.bf16.gmra.mrb[68].mxu1 %v4460_v42  ;;  %v4326_v57 = vrot.slane %v4310_v46, 9  ;;  %v1032_v39 = vrot.slane %v1031_v51, 4  ;;  %v1369_v2 = vrot.slane %v6033_v0, 5  ;;  %v1372_v32 = vrot.slane %v4294_v7, 5 }
  0xb0   : > { %3547 = vmatprep.mubr.bf16.mxu1 %v4477_v21  ;;  %v4254_v16 = vrot.slane %v654_v12, 9  ;;  %v813_v42 = vrot.slane %v5320_v41, 5  ;;  %v816_v33 = vrot.slane %v5321_v30, 5  ;;  %v1045_v40 = vor.u32 %v6058_v37, %v6053_v59  ;;  %v6421_v30 = vld [vmem:[%s5412_s6 + $0x1c] sm:$0xf] }
  0xb1   : > { %3637 = vmatmul.mubr.bf16.gmra.mrb[68].mxu0 %v4484_v13  ;;  %v1048_v50 = vshll.u32 %v6033_v0, 16  ;;  %v1037_v21 = vsel %vm5454_vm2, %v1032_v39, %v1036_v47  ;;  %v1370_v13 = vsel %vm5648_vm5, %v4326_v57, %v1369_v2  ;;  %v1371_v52 = vrot.slane %v1369_v2, 4  ;;  %v6415_v57 = vld [vmem:[%s5412_s6 + $0x18] sm:$0xf] }
  0xb2   : > { %3644 = vmatprep.mubr.bf16.mxu0 %v4501_v11  ;;  %v7414_v17 = vshrl.u32 %v6033_v0, 16  ;;  %v4295_v11 = vld [vmem:[%s5412_s6 + $0x74] sm:$0x1]  ;;  %v4485_v9 = vcombine.low %v1027_v35, %v1037_v21  ;;  %v814_v29 = vsel %vm5648_vm5, %v4254_v16, %v813_v42  ;;  %v815_v59 = vrot.slane %v813_v42, 4  ;;  %v6424_v16 = vld [vmem:[%s5412_s6 + $0x20] sm:$0x1] }
  0xb3   : > { %v1046_v37 = vrot.slane %v1045_v40, 4  ;;  %v1373_v12 = vsel %vm5648_vm5, %v1371_v52, %v1372_v32  ;;  %v1050_v51 = vrot.slane %v1048_v50, 5  ;;  %v1058_v47 = vshll.u32 %v4294_v7, 16 }
  0xb4   : > { %v1054_v46 = vrot.slane %v7414_v17, 4  ;;  %v4327_v39 = vrot.slane %v4311_v6, 9  ;;  %v4502_v2 = vcombine.low %v1370_v13, %v1373_v12  ;;  %v817_v0 = vsel %vm5648_vm5, %v815_v59, %v816_v33 }
  0xb5   : > { %v1376_v41 = vrot.slane %v6051_v43, 5  ;;  %v1379_v35 = vrot.slane %v4295_v11, 5  ;;  %v4462_v42 = vcombine.low %v814_v29, %v817_v0  ;;  %v1051_v32 = vsel %vm5454_vm2, %v1046_v37, %v1050_v51 }
  0xb6   : > { %v1055_v40 = vor.u32 %v1054_v46, %v1050_v51  ;;  %v1060_v7 = vrot.slane %v1058_v47, 5  ;;  %v1483_v33 = vshrl.u32 %v6415_v57, 16  ;;  %v1486_v21 = vshll.u32 %v6415_v57, 16  ;;  %v4312_v47 = vld [vmem:[%s5412_s6 + $0x78] sm:$0xe] }
  0xb7   : > { %3548 = vmatmul.mubr.bf16.gmra.mrb[72].mxu1 %v4461_v10  ;;  %v1377_v6 = vsel %vm5648_vm5, %v4327_v39, %v1376_v41  ;;  %v1378_v50 = vrot.slane %v1376_v41, 4  ;;  %v1492_v52 = vshll.u32 %v6421_v30, 16  ;;  %v1496_v17 = vshrl.u32 %v6421_v30, 16 }
  0xb8   : > { %3555 = vmatprep.mubr.bf16.mxu1 %v4478_v55  ;;  %v1056_v13 = vrot.slane %v1055_v40, 4  ;;  %v1502_v46 = vshll.u32 %v6424_v16, 16  ;;  %v1485_v29 = vrot.slane %v1483_v33, 4  ;;  %v1488_v59 = vrot.slane %v1486_v21, 5  ;;  %v6443_v40 = vld [vmem:[%s5412_s6 + $0x80] sm:$0x1] }
  0xb9   : > { %3645 = vmatmul.mubr.bf16.gmra.mrb[72].mxu0 %v4485_v9  ;;  %v1380_v10 = vsel %vm5648_vm5, %v1378_v50, %v1379_v35  ;;  %v1069_v37 = vor.u32 %v6078_v8, %v6076_v36  ;;  %v1494_v12 = vrot.slane %v1492_v52, 5  ;;  %v1498_v51 = vrot.slane %v1496_v17, 4  ;;  %v6449_v33 = vld [vmem:[%s5412_s6 + $0x24] sm:$0xf] }
  0xba   : > { %3652 = vmatprep.mubr.bf16.mxu0 %v4502_v2  ;;  %v1061_v55 = vsel %vm5454_vm2, %v1056_v13, %v1060_v7  ;;  %v4503_v9 = vcombine.low %v1377_v6, %v1380_v10  ;;  %v1489_v0 = vor.u32 %v1488_v59, %v1485_v29  ;;  %v1504_v41 = vrot.slane %v1502_v46, 5  ;;  %v6456_v10 = vld [vmem:[%s5412_s6 + $0x28] sm:$0xf] }
  0xbb   : > { %v4486_v39 = vcombine.low %v1051_v32, %v1061_v55  ;;  %v1070_v2 = vrot.slane %v1069_v37, 4  ;;  %v1499_v35 = vor.u32 %v1498_v51, %v1494_v12  ;;  %v1072_v50 = vshll.u32 %v6051_v43, 16  ;;  %v6468_v55 = vld [vmem:[%s5412_s6 + $0x2c] sm:$0x1] }
  0xbc   : > { %v1078_v36 = vrot.slane %v1076_v56, 4  ;;  %v1082_v8 = vshll.u32 %v4295_v11, 16  ;;  %v1490_v7 = vrot.slane %v1489_v0, 4  ;;  %v4511_v6 = vcombine.low %v6415_v57, %v6421_v30 }
  0xbd   : > { %v4328_v32 = vrot.slane %v4312_v47, 9  ;;  %v1383_v21 = vrot.slane %v6095_v62, 5  ;;  %v1500_v13 = vrot.slane %v1499_v35, 4  ;;  %v1074_v52 = vrot.slane %v1072_v50, 5 }
  0xbe   : > { %v1084_v17 = vrot.slane %v1082_v8, 5  ;;  %v1386_v46 = vrot.slane %v6443_v40, 5  ;;  %v1495_v43 = vsel %vm5454_vm2, %v1490_v7, %v1494_v12  ;;  %v1507_v57 = vshrl.u32 %v6449_v33, 16 }
  0xbf   : > { %3556 = vmatmul.mubr.bf16.gmra.mrb[76].mxu1 %v4462_v42  ;;  %v1384_v56 = vsel %vm5648_vm5, %v4328_v32, %v1383_v21  ;;  %v1385_v11 = vrot.slane %v1383_v21, 4  ;;  %v1505_v29 = vsel %vm5454_vm2, %v1500_v13, %v1504_v41  ;;  %v1075_v59 = vsel %vm5454_vm2, %v1070_v2, %v1074_v52 }
  0xc0   : > { %v1079_v37 = vor.u32 %v1078_v36, %v1074_v52  ;;  %v1510_v42 = vshll.u32 %v6449_v33, 16  ;;  %v4527_v12 = vcombine.low %v1495_v43, %v1505_v29  ;;  %v1509_v47 = vrot.slane %v1507_v57, 4  ;;  %v4297_v52 = vld [vmem:[%s5412_s6 + $0x8c] sm:$0x1] }
  0xc1   : > { %3653 = vmatmul.mubr.bf16.gmra.mrb[76].mxu0 %v4486_v39  ;;  %v1387_v51 = vsel %vm5648_vm5, %v1385_v11, %v1386_v46  ;;  %v1516_v39 = vshll.u32 %v6456_v10, 16  ;;  %v1520_v2 = vshrl.u32 %v6456_v10, 16  ;;  %v1526_v36 = vshll.u32 %v6468_v55, 16  ;;  %v4313_v46 = vld [vmem:[%s5412_s6 + $0x84] sm:$0xe] }
  0xc2   : > { %3660 = vmatprep.mubr.bf16.mxu0 %v4503_v9  ;;  %v1080_v0 = vrot.slane %v1079_v37, 4  ;;  %v4504_v41 = vcombine.low %v1384_v56, %v1387_v51  ;;  %v1512_v35 = vrot.slane %v1510_v42, 5  ;;  %3757 = vmatprep.mubr.bf16.mxu1 %v4527_v12  ;;  %v1942_v9 = vrot.slane %v6468_v55, 5 }
  0xc3   : > { %v1518_v50 = vrot.slane %v1516_v39, 5  ;;  %v1093_v8 = vor.u32 %v6122_v60, %v6120_v54  ;;  %v1522_v21 = vrot.slane %v1520_v2, 4  ;;  %v1096_v13 = vshll.u32 %v6095_v62, 16  ;;  %v6488_v60 = vld [vmem:[%s5412_s6 + $0x30] sm:$0xf] }
  0xc4   : > { %v1085_v7 = vsel %vm5454_vm2, %v1080_v0, %v1084_v17  ;;  %v1513_v32 = vor.u32 %v1512_v35, %v1509_v47  ;;  %v1528_v56 = vrot.slane %v1526_v36, 5  ;;  %v1102_v57 = vrot.slane %v1100_v27, 4  ;;  %v6494_v47 = vld [vmem:[%s5412_s6 + $0x34] sm:$0xf] }
  0xc5   : > { %v4487_v43 = vcombine.low %v1075_v59, %v1085_v7  ;;  %v1094_v11 = vrot.slane %v1093_v8, 4  ;;  %v1523_v37 = vor.u32 %v1522_v21, %v1518_v50  ;;  %v1098_v42 = vrot.slane %v1096_v13, 5  ;;  %v6506_v8 = vld [vmem:[%s5412_s6 + $0x38] sm:$0x1] }
  0xc6   : > { %v1514_v29 = vrot.slane %v1513_v32, 4  ;;  %v1106_v54 = vshll.u32 %v6443_v40, 16  ;;  %v4512_v17 = vcombine.low %v6449_v33, %v6456_v10  ;;  %v4329_v12 = vrot.slane %v4313_v46, 9 }
  0xc7   : > { %3758 = vmatmul.mubr.bf16.vlgmr.msra.gmra.mrb[80].mxu1 %v4511_v6  ;;  %v1390_v59 = vrot.slane %v6142_v49, 5  ;;  %v1393_v51 = vrot.slane %v4297_v52, 5  ;;  %v1524_v27 = vrot.slane %v1523_v37, 4  ;;  %v1099_v40 = vsel %vm5454_vm2, %v1094_v11, %v1098_v42 }
  0xc8   : > { %v1519_v62 = vsel %vm5454_vm2, %v1514_v29, %v1518_v50  ;;  %v1103_v39 = vor.u32 %v1102_v57, %v1098_v42  ;;  %v1108_v6 = vrot.slane %v1106_v54, 5  ;;  %v1531_v35 = vshrl.u32 %v6488_v60, 16  ;;  %v6519_v54 = vld [vmem:[%s5412_s6 + $0x98] sm:$0x1] }
  0xc9   : > { %3661 = vmatmul.mubr.bf16.gmra.mrb[80].mxu0 %v4487_v43  ;;  %v1391_v33 = vsel %vm5648_vm5, %v4329_v12, %v1390_v59  ;;  %v1392_v0 = vrot.slane %v1390_v59, 4  ;;  %v1529_v2 = vsel %vm5454_vm2, %v1524_v27, %v1528_v56  ;;  %v1534_v50 = vshll.u32 %v6488_v60, 16  ;;  %v4314_v12 = vld [vmem:[%s5412_s6 + $0x90] sm:$0xe] }
  0xca   : > { %3668 = vmatprep.mubr.bf16.mxu0 %v4504_v41  ;;  %v1104_v36 = vrot.slane %v1103_v39, 4  ;;  %v1540_v7 = vshll.u32 %v6494_v47, 16  ;;  %v4528_v41 = vcombine.low %v1519_v62, %v1529_v2  ;;  %v1533_v21 = vrot.slane %v1531_v35, 4  ;;  %v6526_v39 = vld [vmem:[%s5412_s6 + $0x3c] sm:$0xf] }
  0xcb   : > { %v1394_v32 = vsel %vm5648_vm5, %v1392_v0, %v1393_v51  ;;  %v1544_v13 = vshrl.u32 %v6494_v47, 16  ;;  %v1536_v56 = vrot.slane %v1534_v50, 5  ;;  %v1550_v37 = vshll.u32 %v6506_v8, 16 }
  0xcc   : > { %v1109_v46 = vsel %vm5454_vm2, %v1104_v36, %v1108_v6  ;;  %v4505_v43 = vcombine.low %v1391_v33, %v1394_v32  ;;  %v1542_v11 = vrot.slane %v1540_v7, 5  ;;  %3765 = vmatprep.mubr.bf16.mxu1 %v4528_v41  ;;  %v1117_v42 = vor.u32 %v6167_v48, %v6165_v3  ;;  %v6533_v36 = vld [vmem:[%s5412_s6 + $0x40] sm:$0xf]  ;;  %v6541_v41 = vld [vmem:[%s5412_s6 + $0x44] sm:$0x1] }
  0xcd   : > { %v4488_v57 = vcombine.low %v1099_v40, %v1109_v46  ;;  %v1546_v29 = vrot.slane %v1544_v13, 4  ;;  %v1537_v59 = vor.u32 %v1536_v56, %v1533_v21  ;;  %v1120_v51 = vshll.u32 %v6142_v49, 16 }
  0xce   : > { %v1126_v62 = vrot.slane %v1124_v45, 4  ;;  %v1130_v27 = vshll.u32 %v4297_v52, 16  ;;  %v1552_v6 = vrot.slane %v1550_v37, 5  ;;  %v1118_v33 = vrot.slane %v1117_v42, 4 }
  0xcf   : > { %3766 = vmatmul.mubr.bf16.gmra.mrb[84].mxu1 %v4512_v17  ;;  %v1547_v40 = vor.u32 %v1546_v29, %v1542_v11  ;;  %v4513_v3 = vcombine.low %v6488_v60, %v6494_v47  ;;  %v1538_v48 = vrot.slane %v1537_v59, 4  ;;  %v1122_v0 = vrot.slane %v1120_v51, 5 }
  0xd0   : > { %v1132_v35 = vrot.slane %v1130_v27, 5  ;;  %v4330_v2 = vrot.slane %v4314_v12, 9  ;;  %v1397_v45 = vrot.slane %v6189_v63, 5  ;;  %v1400_v52 = vrot.slane %v6519_v54, 5 }
  0xd1   : > { %3669 = vmatmul.mubr.bf16.gmra.mrb[84].mxu0 %v4488_v57  ;;  %v1548_v49 = vrot.slane %v1547_v40, 4  ;;  %v1555_v17 = vshrl.u32 %v6526_v39, 16  ;;  %v1543_v50 = vsel %vm5454_vm2, %v1538_v48, %v1542_v11  ;;  %v1123_v60 = vsel %vm5454_vm2, %v1118_v33, %v1122_v0 }
  0xd2   : > { %3676 = vmatprep.mubr.bf16.mxu0 %v4505_v43  ;;  %v1127_v7 = vor.u32 %v1126_v62, %v1122_v0  ;;  %v1558_v32 = vshll.u32 %v6526_v39, 16  ;;  %v1398_v13 = vsel %vm5648_vm5, %v4330_v2, %v1397_v45  ;;  %v1399_v46 = vrot.slane %v1397_v45, 4 }
  0xd3   : > { %v1553_v21 = vsel %vm5454_vm2, %v1548_v49, %v1552_v6  ;;  %v1557_v43 = vrot.slane %v1555_v17, 4  ;;  %v1564_v29 = vshll.u32 %v6533_v36, 16  ;;  %v1568_v42 = vshrl.u32 %v6533_v36, 16  ;;  %v4315_v6 = vld [vmem:[%s5412_s6 + $0x9c] sm:$0xe] }
  0xd4   : > { %v4529_v56 = vcombine.low %v1543_v50, %v1553_v21  ;;  %v1128_v57 = vrot.slane %v1127_v7, 4  ;;  %v1560_v11 = vrot.slane %v1558_v32, 5  ;;  %v1401_v37 = vsel %vm5648_vm5, %v1399_v46, %v1400_v52  ;;  %v6559_v49 = vld [vmem:[%s5412_s6 + $0xa4] sm:$0x1]  ;;  %v6566_v52 = vld [vmem:[%s5412_s6 + $0x48] sm:$0xf] }
  0xd5   : > { %v1574_v12 = vshll.u32 %v6541_v41, 16  ;;  %v1141_v59 = vor.u32 %v6214_v23, %v6212_v28  ;;  %v4506_v62 = vcombine.low %v1398_v13, %v1401_v37  ;;  %v1566_v40 = vrot.slane %v1564_v29, 5  ;;  %v6572_v7 = vld [vmem:[%s5412_s6 + $0x4c] sm:$0xf] }
  0xd6   : > { %3773 = vmatprep.mubr.bf16.mxu1 %v4529_v56  ;;  %v1133_v51 = vsel %vm5454_vm2, %v1128_v57, %v1132_v35  ;;  %v1561_v27 = vor.u32 %v1560_v11, %v1557_v43  ;;  %v1570_v48 = vrot.slane %v1568_v42, 4  ;;  %v1144_v28 = vshll.u32 %v6189_v63, 16  ;;  %v6583_v57 = vld [vmem:[%s5412_s6 + $0x50] sm:$0x1] }
  0xd7   : > { %v4489_v33 = vcombine.low %v1123_v60, %v1133_v51  ;;  %3774 = vmatmul.mubr.bf16.gmra.mrb[88].mxu1 %v4513_v3  ;;  %v1576_v0 = vrot.slane %v1574_v12, 5  ;;  %v1142_v2 = vrot.slane %v1141_v59, 4  ;;  %v1150_v23 = vrot.slane %v1148_v14, 4 }
  0xd8   : > { %v1562_v45 = vrot.slane %v1561_v27, 4  ;;  %v1154_v35 = vshll.u32 %v6519_v54, 16  ;;  %v1571_v17 = vor.u32 %v1570_v48, %v1566_v40  ;;  %v4514_v3 = vcombine.low %v6526_v39, %v6533_v36 }
  0xd9   : > { %3677 = vmatmul.mubr.bf16.gmra.mrb[88].mxu0 %v4489_v33  ;;  %v4331_v50 = vrot.slane %v4315_v6, 9  ;;  %v1404_v60 = vrot.slane %v6240_v58, 5  ;;  %v1146_v14 = vrot.slane %v1144_v28, 5  ;;  %v1407_v54 = vrot.slane %v6559_v49, 5 }
  0xda   : > { %3684 = vmatprep.mubr.bf16.mxu0 %v4506_v62  ;;  %v1567_v63 = vsel %vm5454_vm2, %v1562_v45, %v1566_v40  ;;  %v1156_v32 = vrot.slane %v1154_v35, 5  ;;  %v1572_v21 = vrot.slane %v1571_v17, 4  ;;  %v1579_v39 = vshrl.u32 %v6566_v52, 16  ;;  %v4300_v35 = vld [vmem:[%s5412_s6 + $0xb0] sm:$0x1] }
  0xdb   : > { %v1405_v13 = vsel %vm5648_vm5, %v4331_v50, %v1404_v60  ;;  %v1406_v46 = vrot.slane %v1404_v60, 4  ;;  %v1147_v43 = vsel %vm5454_vm2, %v1142_v2, %v1146_v14  ;;  %v1151_v56 = vor.u32 %v1150_v23, %v1146_v14  ;;  %v4316_v17 = vld [vmem:[%s5412_s6 + $0xa8] sm:$0xe] }
  0xdc   : > { %v1582_v11 = vshll.u32 %v6566_v52, 16  ;;  %v1588_v29 = vshll.u32 %v6572_v7, 16  ;;  %v1577_v37 = vsel %vm5454_vm2, %v1572_v21, %v1576_v0  ;;  %v1581_v12 = vrot.slane %v1579_v39, 4  ;;  %v6606_v21 = vld [vmem:[%s5412_s6 + $0x54] sm:$0xf] }
  0xdd   : > { %v1408_v42 = vsel %vm5648_vm5, %v1406_v46, %v1407_v54  ;;  %v1592_v59 = vshrl.u32 %v6572_v7, 16  ;;  %v4530_v51 = vcombine.low %v1567_v63, %v1577_v37  ;;  %v1152_v62 = vrot.slane %v1151_v56, 4 }
  0xde   : > { %v4507_v27 = vcombine.low %v1405_v13, %v1408_v42  ;;  %v1584_v40 = vrot.slane %v1582_v11, 5  ;;  %v1590_v6 = vrot.slane %v1588_v29, 5  ;;  %v1598_v48 = vshll.u32 %v6583_v57, 16 }
  0xdf   : > { %v1594_v33 = vrot.slane %v1592_v59, 4  ;;  %v1165_v2 = vor.u32 %v6261_v24, %v6259_v1  ;;  %3781 = vmatprep.mubr.bf16.mxu1 %v4530_v51  ;;  %v1157_v0 = vsel %vm5454_vm2, %v1152_v62, %v1156_v32  ;;  %v1168_v28 = vshll.u32 %v6240_v58, 16 }
  0xe0   : > { %v1585_v45 = vor.u32 %v1584_v40, %v1581_v12  ;;  %v1174_v23 = vrot.slane %v1172_v38, 4  ;;  %v4490_v50 = vcombine.low %v1147_v43, %v1157_v0  ;;  %3782 = vmatmul.mubr.bf16.gmra.mrb[92].mxu1 %v4514_v3  ;;  %v1600_v63 = vrot.slane %v1598_v48, 5  ;;  %v6610_v3 = vld [vmem:[%s5412_s6 + $0x58] sm:$0xf] }
  0xe1   : > { %v1595_v60 = vor.u32 %v1594_v33, %v1590_v6  ;;  %v1166_v14 = vrot.slane %v1165_v2, 4  ;;  %v1170_v24 = vrot.slane %v1168_v28, 5  ;;  %v1178_v54 = vshll.u32 %v6559_v49, 16  ;;  %v4317_v28 = vld [vmem:[%s5412_s6 + $0xb4] sm:$0xe] }
  0xe2   : > { %v1586_v1 = vrot.slane %v1585_v45, 4  ;;  %v4515_v32 = vcombine.low %v6566_v52, %v6572_v7  ;;  %3685 = vmatmul.mubr.bf16.gmra.mrb[92].mxu0 %v4490_v50  ;;  %v4332_v38 = vrot.slane %v4316_v17, 9  ;;  %v1411_v13 = vrot.slane %v6288_v19, 5  ;;  %v6617_v52 = vld [vmem:[%s5412_s6 + $0x5c] sm:$0x1] }
  0xe3   : > { %v1596_v58 = vrot.slane %v1595_v60, 4  ;;  %v1414_v46 = vrot.slane %v4300_v35, 5  ;;  %3692 = vmatprep.mubr.bf16.mxu0 %v4507_v27  ;;  %v1171_v49 = vsel %vm5454_vm2, %v1166_v14, %v1170_v24  ;;  %v1175_v43 = vor.u32 %v1174_v23, %v1170_v24 }
  0xe4   : > { %v1591_v39 = vsel %vm5454_vm2, %v1586_v1, %v1590_v6  ;;  %v1180_v56 = vrot.slane %v1178_v54, 5  ;;  %v1412_v29 = vsel %vm5648_vm5, %v4332_v38, %v1411_v13  ;;  %v1413_v37 = vrot.slane %v1411_v13, 4 }
  0xe5   : > { %v1601_v11 = vsel %vm5454_vm2, %v1596_v58, %v1600_v63  ;;  %v1603_v42 = vshrl.u32 %v6606_v21, 16  ;;  %v1176_v59 = vrot.slane %v1175_v43, 4  ;;  %v1606_v51 = vshll.u32 %v6606_v21, 16  ;;  %v6636_v63 = vld [vmem:[%s5412_s6 + $0xbc] sm:$0x1] }
  0xe6   : > { %v4531_v12 = vcombine.low %v1591_v39, %v1601_v11  ;;  %v1612_v62 = vshll.u32 %v6610_v3, 16  ;;  %v1415_v27 = vsel %vm5648_vm5, %v1413_v37, %v1414_v46  ;;  %v1616_v6 = vshrl.u32 %v6610_v3, 16  ;;  %v6642_v58 = vld [vmem:[%s5412_s6 + $0x60] sm:$0xf] }
  0xe7   : > { %v1605_v40 = vrot.slane %v1603_v42, 4  ;;  %v1622_v33 = vshll.u32 %v6617_v52, 16  ;;  %v1181_v48 = vsel %vm5454_vm2, %v1176_v59, %v1180_v56  ;;  %v4508_v2 = vcombine.low %v1412_v29, %v1415_v27  ;;  %v6660_v42 = vld [vmem:[%s5412_s6 + $0x68] sm:$0x1] }
  0xe8   : > { %3789 = vmatprep.mubr.bf16.mxu1 %v4531_v12  ;;  %v1608_v0 = vrot.slane %v1606_v51, 5  ;;  %v1614_v45 = vrot.slane %v1612_v62, 5  ;;  %v4491_v23 = vcombine.low %v1171_v49, %v1181_v48  ;;  %v1618_v17 = vrot.slane %v1616_v6, 4 }
  0xe9   : > { %3790 = vmatmul.mubr.bf16.gmra.mrb[96].mxu1 %v4515_v32  ;;  %v1624_v50 = vrot.slane %v1622_v33, 5  ;;  %v1189_v60 = vor.u32 %v6310_v5, %v6308_v61  ;;  %v1192_v1 = vshll.u32 %v6288_v19, 16  ;;  %v1198_v24 = vrot.slane %v1196_v44, 4 }
  0xea   : > { %v1609_v14 = vor.u32 %v1608_v0, %v1605_v40  ;;  %v1202_v54 = vshll.u32 %v4300_v35, 16  ;;  %3693 = vmatmul.mubr.bf16.gmra.mrb[96].mxu0 %v4491_v23  ;;  %v1619_v38 = vor.u32 %v1618_v17, %v1614_v45  ;;  %v4516_v13 = vcombine.low %v6606_v21, %v6610_v3  ;;  %v6649_v35 = vld [vmem:[%s5412_s6 + $0x64] sm:$0xf] }
  0xeb   : > { %v1190_v32 = vrot.slane %v1189_v60, 4  ;;  %v4333_v61 = vrot.slane %v4317_v28, 9  ;;  %3700 = vmatprep.mubr.bf16.mxu0 %v4508_v2  ;;  %v1194_v46 = vrot.slane %v1192_v1, 5  ;;  %v1418_v49 = vrot.slane %v6334_v15, 5  ;;  %v6674_v1 = vld [vmem:[%s5412_s6 + $0xc8] sm:$0x1] }
  0xec   : > { %v1610_v5 = vrot.slane %v1609_v14, 4  ;;  %v1204_v39 = vrot.slane %v1202_v54, 5  ;;  %v1620_v19 = vrot.slane %v1619_v38, 4  ;;  %v1421_v44 = vrot.slane %v6636_v63, 5  ;;  %v6678_v54 = vld [vmem:[%s5412_s6 + $0x6c] sm:$0xf] }
  0xed   : > { %v1627_v43 = vshrl.u32 %v6642_v58, 16  ;;  %v1630_v56 = vshll.u32 %v6642_v58, 16  ;;  %v1195_v11 = vsel %vm5454_vm2, %v1190_v32, %v1194_v46  ;;  %v1199_v29 = vor.u32 %v1198_v24, %v1194_v46  ;;  %v4318_v24 = vld [vmem:[%s5412_s6 + $0xc0] sm:$0xe] }
  0xee   : > { %v1615_v21 = vsel %vm5454_vm2, %v1610_v5, %v1614_v45  ;;  %v1419_v37 = vsel %vm5648_vm5, %v4333_v61, %v1418_v49  ;;  %v1625_v12 = vsel %vm5454_vm2, %v1620_v19, %v1624_v50  ;;  %v1420_v59 = vrot.slane %v1418_v49, 4 }
  0xef   : > { %v1629_v51 = vrot.slane %v1627_v43, 4  ;;  %v1632_v62 = vrot.slane %v1630_v56, 5  ;;  %v4532_v27 = vcombine.low %v1615_v21, %v1625_v12  ;;  %v1200_v40 = vrot.slane %v1199_v29, 4 }
  0xf0   : > { %v1636_v6 = vshll.u32 %v6649_v35, 16  ;;  %v1640_v33 = vshrl.u32 %v6649_v35, 16  ;;  %v1422_v48 = vsel %vm5648_vm5, %v1420_v59, %v1421_v44  ;;  %v1646_v0 = vshll.u32 %v6660_v42, 16 }
  0xf1   : > { %v1633_v2 = vor.u32 %v1632_v62, %v1629_v51  ;;  %v1213_v45 = vor.u32 %v6351_v31, %v6349_v4  ;;  %3797 = vmatprep.mubr.bf16.mxu1 %v4532_v27  ;;  %v1205_v28 = vsel %vm5454_vm2, %v1200_v40, %v1204_v39  ;;  %v4509_v23 = vcombine.low %v1419_v37, %v1422_v48  ;;  %v6697_v27 = vld [vmem:[%s5412_s6 + $0x70] sm:$0xf]  ;;  %v6705_v48 = vld [vmem:[%s5412_s6 + $0x74] sm:$0x1] }
  0xf2   : > { %v1638_v17 = vrot.slane %v1636_v6, 5  ;;  %v1642_v50 = vrot.slane %v1640_v33, 4  ;;  %v4492_v38 = vcombine.low %v1195_v11, %v1205_v28  ;;  %3798 = vmatmul.mubr.bf16.gmra.mrb[100].mxu1 %v4516_v13  ;;  %v1648_v61 = vrot.slane %v1646_v0, 5 }
  0xf3   : > { %v1634_v32 = vrot.slane %v1633_v2, 4  ;;  %v1214_v5 = vrot.slane %v1213_v45, 4  ;;  %v1216_v39 = vshll.u32 %v6334_v15, 16  ;;  %v1222_v49 = vrot.slane %v1220_v26, 4 }
  0xf4   : > { %v1643_v46 = vor.u32 %v1642_v50, %v1638_v17  ;;  %v1226_v19 = vshll.u32 %v6636_v63, 16  ;;  %3701 = vmatmul.mubr.bf16.gmra.mrb[100].mxu0 %v4492_v38  ;;  %v4517_v56 = vcombine.low %v6642_v58, %v6649_v35  ;;  %v4334_v59 = vrot.slane %v4318_v24, 9 }
  0xf5   : > { %v1639_v13 = vsel %vm5454_vm2, %v1634_v32, %v1638_v17  ;;  %3708 = vmatprep.mubr.bf16.mxu0 %v4509_v23  ;;  %v1218_v63 = vrot.slane %v1216_v39, 5  ;;  %v1425_v51 = vrot.slane %v6375_v25, 5  ;;  %v1428_v62 = vrot.slane %v6674_v1, 5 }
  0xf6   : > { %v1644_v26 = vrot.slane %v1643_v46, 4  ;;  %v1228_v37 = vrot.slane %v1226_v19, 5  ;;  %v1651_v58 = vshrl.u32 %v6678_v54, 16  ;;  %v1654_v2 = vshll.u32 %v6678_v54, 16 }
  0xf7   : > { %v1219_v6 = vsel %vm5454_vm2, %v1214_v5, %v1218_v63  ;;  %v1223_v33 = vor.u32 %v1222_v49, %v1218_v63  ;;  %v1426_v45 = vsel %vm5648_vm5, %v4334_v59, %v1425_v51  ;;  %v1427_v28 = vrot.slane %v1425_v51, 4 }
  0xf8   : > { %v1649_v40 = vsel %vm5454_vm2, %v1644_v26, %v1648_v61  ;;  %v1653_v23 = vrot.slane %v1651_v58, 4  ;;  %v1656_v50 = vrot.slane %v1654_v2, 5  ;;  %v1670_v32 = vshll.u32 %v6705_v48, 16 }
  0xf9   : > { %v4533_v0 = vcombine.low %v1639_v13, %v1649_v40  ;;  %v1224_v17 = vrot.slane %v1223_v33, 4  ;;  %v1429_v38 = vsel %vm5648_vm5, %v1427_v28, %v1428_v62  ;;  %v1237_v5 = vor.u32 %v6392_v53, %v6390_v20  ;;  %v6725_v13 = vld [vmem:[%s5412_s6 + $0x7c] sm:$0xf] }
  0xfa   : > { %v4722_v60 = vpop.f32.mrb[0].mxu1  ;;  %v4650_v14 = vpop.f32.mrb[0].mxu0  ;;  %v4510_v46 = vcombine.low %v1426_v45, %v1429_v38  ;;  %v1657_v39 = vor.u32 %v1656_v50, %v1653_v23  ;;  %v1240_v53 = vshll.u32 %v6375_v25, 16  ;;  %v4518_v58 = vcombine.low %v6678_v54, %v6697_v27  ;;  %v4383_v50 = vld [vmem:[%s5412_s6 + $0x18] sm:$0xe] }
  0xfb   : > { %v4723_v4 = vpop.f32.mrb[1].mxu1  ;;  %v4651_v31 = vpop.f32.mrb[1].mxu0  ;;  %3805 = vmatprep.mubr.bf16.mxu1 %v4533_v0  ;;  %v1688_v38 = vshrl.u32 %v6725_v13, 16 }
  0xfc   : > { %v4725_v44 = vpop.f32.mrb[2].mxu1  ;;  %v4653_v43 = vpop.f32.mrb[2].mxu0  ;;  %v6688_v21 = vadd.f32 %v4723_v4, %v4722_v60  ;;  %v6690_v11 = vadd.f32 %v4651_v31, %v4650_v14  ;;  %v1660_v60 = vshll.u32 %v6697_v27, 16  ;;  %v1664_v14 = vshrl.u32 %v6697_v27, 16  ;;  %3806 = vmatmul.mubr.bf16.gmra.mrb[104].mxu1 %v4517_v56 }
  0xfd   : > { %v4726_v29 = vpop.f32.mrb[3].mxu1  ;;  %v4654_v15 = vpop.f32.mrb[3].mxu0  ;;  %v1229_v31 = vsel %vm5454_vm2, %v1224_v17, %v1228_v37  ;;  %v1658_v20 = vrot.slane %v1657_v39, 4  ;;  %v1246_v56 = vrot.slane %v1244_v18, 4  ;;  %v1250_v37 = vshll.u32 %v6674_v1, 16 }
  0xfe   : > { %v6692_v12 = vadd.f32 %v4726_v29, %v4725_v44  ;;  %v6715_v61 = vadd.f32 %v4654_v15, %v4653_v43  ;;  %v1662_v49 = vrot.slane %v1660_v60, 5  ;;  %v6722_v44 = vld [vmem:[%s5412_s6 + $0x78] sm:$0xf]  ;;  %v4493_v29 = vcombine.low %v1219_v6, %v1229_v31  ;;  %v6740_v1 = vld [vmem:[%s5412_s6 + $0x80] sm:$0x1] }
  0xff   : > { %v1666_v26 = vrot.slane %v1664_v14, 4  ;;  %v1672_v43 = vrot.slane %v1670_v32, 5  ;;  %v1238_v15 = vrot.slane %v1237_v5, 4  ;;  %v1242_v25 = vrot.slane %v1240_v53, 5 }
 0x100   : > { %3709 = vmatmul.mubr.bf16.gmra.mrb[104].mxu0 %v4493_v29  ;;  %v1663_v2 = vsel %vm5454_vm2, %v1658_v20, %v1662_v49  ;;  %v1252_v18 = vrot.slane %v1250_v37, 5  ;;  %v1675_v45 = vshrl.u32 %v6722_v44, 16  ;;  %v1678_v54 = vshll.u32 %v6722_v44, 16 }
 0x101   : > { %v1667_v62 = vor.u32 %v1666_v26, %v1662_v49  ;;  %3716 = vmatprep.mubr.bf16.mxu0 %v4510_v46  ;;  %v1684_v17 = vshll.u32 %v6725_v13, 16  ;;  %v1243_v60 = vsel %vm5454_vm2, %v1238_v15, %v1242_v25  ;;  %v1247_v14 = vor.u32 %v1246_v56, %v1242_v25  ;;  %v4384_v56 = vld [vmem:[%s5412_s6 + $0x24] sm:$0xe] }
 0x102   : > { %v4656_v24 = vpop.f32.mrb[4].mxu0  ;;  %v4728_v63 = vpop.f32.mrb[4].mxu1  ;;  %v1680_v5 = vrot.slane %v1678_v54, 5  ;;  %v1694_v31 = vshll.u32 %v6740_v1, 16  ;;  %v1690_v49 = vrot.slane %v1688_v38, 4  ;;  %v4399_v29 = vrot.slane %v4383_v50, 9 }
 0x103   : > { %v4657_v4 = vpop.f32.mrb[5].mxu0  ;;  %v4729_v51 = vpop.f32.mrb[5].mxu1  ;;  %v1668_v28 = vrot.slane %v1667_v62, 4  ;;  %v1248_v39 = vrot.slane %v1247_v14, 4  ;;  %v1932_v20 = vrot.slane %v6421_v30, 5  ;;  %v1935_v53 = vrot.slane %v6424_v16, 5 }
 0x104   : > { %v4659_v19 = vpop.f32.mrb[6].mxu0  ;;  %v6733_v40 = vadd.f32 %v4729_v51, %v4728_v63  ;;  %v4731_v6 = vpop.f32.mrb[6].mxu1  ;;  %v6735_v33 = vadd.f32 %v4657_v4, %v4656_v24  ;;  %v1677_v24 = vrot.slane %v1675_v45, 4  ;;  %v1686_v4 = vrot.slane %v1684_v17, 5  ;;  %v6764_v25 = vld [vmem:[%s5412_s6 + $0x84] sm:$0xf] }
 0x105   : > { %v4660_v59 = vpop.f32.mrb[7].mxu0  ;;  %v4732_v0 = vpop.f32.mrb[7].mxu1  ;;  %v1673_v32 = vsel %vm5454_vm2, %v1668_v28, %v1672_v43  ;;  %v1696_v15 = vrot.slane %v1694_v31, 5  ;;  %v1253_v43 = vsel %vm5454_vm2, %v1248_v39, %v1252_v18  ;;  %v1933_v16 = vsel %vm5648_vm5, %v4399_v29, %v1932_v20  ;;  %v6781_v38 = vld [vmem:[%s5412_s6 + $0x8c] sm:$0x1] }
 0x106   : > { %v6743_v23 = vadd.f32 %v4732_v0, %v4731_v6  ;;  %v4534_v46 = vcombine.low %v1663_v2, %v1673_v32  ;;  %v1681_v63 = vor.u32 %v1680_v5, %v1677_v24  ;;  %v1691_v51 = vor.u32 %v1690_v49, %v1686_v4  ;;  %v6778_v24 = vld [vmem:[%s5412_s6 + $0x88] sm:$0xf]  ;;  %v4385_v39 = vld [vmem:[%s5412_s6 + $0x30] sm:$0xe] }
 0x107   : > { %v6759_v62 = vadd.f32 %v4660_v59, %v4659_v19  ;;  %v4519_v6 = vcombine.low %v6722_v44, %v6725_v13  ;;  %v4494_v0 = vcombine.low %v1243_v60, %v1253_v43  ;;  %v1934_v45 = vrot.slane %v1932_v20, 4 }
 0x108   : > { %3813 = vmatprep.mubr.bf16.mxu1 %v4534_v46  ;;  %v1682_v30 = vrot.slane %v1681_v63, 4  ;;  %v1692_v54 = vrot.slane %v1691_v51, 4  ;;  %v4400_v19 = vrot.slane %v4384_v56, 9  ;;  %v1939_v59 = vrot.slane %v6456_v10, 5 }
 0x109   : > { %3814 = vmatmul.mubr.bf16.gmra.mrb[108].mxu1 %v4518_v58  ;;  %3717 = vmatmul.mubr.bf16.gmra.mrb[108].mxu0 %v4494_v0  ;;  %v1936_v50 = vsel %vm5648_vm5, %v1934_v45, %v1935_v53  ;;  %v1699_v10 = vshrl.u32 %v6764_v25, 16  ;;  %v1702_v63 = vshll.u32 %v6764_v25, 16  ;;  %v1708_v20 = vshll.u32 %v6778_v24, 16 }
 0x10a   : > { %v4662_v26 = vpop.f32.mrb[8].mxu0  ;;  %v4734_v28 = vpop.f32.mrb[8].mxu1  ;;  %v1687_v58 = vsel %vm5454_vm2, %v1682_v30, %v1686_v4  ;;  %v1697_v32 = vsel %vm5454_vm2, %v1692_v54, %v1696_v15  ;;  %v4543_v5 = vcombine.low %v1933_v16, %v1936_v50  ;;  %v1940_v31 = vsel %vm5648_vm5, %v4400_v19, %v1939_v59  ;;  %v4386_v30 = vld [vmem:[%s5412_s6 + $0x3c] sm:$0xe] }
 0x10b   : > { %v4663_v37 = vpop.f32.mrb[9].mxu0  ;;  %v4735_v44 = vpop.f32.mrb[9].mxu1  ;;  %v1941_v4 = vrot.slane %v1939_v59, 4  ;;  %v4535_v49 = vcombine.low %v1687_v58, %v1697_v32  ;;  %v1712_v53 = vshrl.u32 %v6778_v24, 16  ;;  %v1718_v56 = vshll.u32 %v6781_v38, 16 }
 0x10c   : > { %v4665_v2 = vpop.f32.mrb[10].mxu0  ;;  %v6769_v17 = vadd.f32 %v4663_v37, %v4662_v26  ;;  %v6775_v60 = vadd.f32 %v4735_v44, %v4734_v28  ;;  %v4737_v14 = vpop.f32.mrb[10].mxu1  ;;  %v1701_v26 = vrot.slane %v1699_v10, 4  ;;  %5122 = vmatprep.mubr.bf16.mxu0 %v4543_v5  ;;  %v1704_v43 = vrot.slane %v1702_v63, 5  ;;  %v6807_v58 = vld [vmem:[%s5412_s6 + $0x90] sm:$0xf] }
 0x10d   : > { %v4666_v18 = vpop.f32.mrb[11].mxu0  ;;  %v4738_v46 = vpop.f32.mrb[11].mxu1  ;;  %v1943_v15 = vsel %vm5648_vm5, %v1941_v4, %v1942_v9  ;;  %3821 = vmatprep.mubr.bf16.mxu1 %v4535_v49  ;;  %v4401_v51 = vrot.slane %v4385_v39, 9  ;;  %v1946_v0 = vrot.slane %v6494_v47, 5  ;;  %v1710_v16 = vrot.slane %v1708_v20, 5 }
 0x10e   : > { %v6789_v29 = vadd.f32 %v4738_v46, %v4737_v14  ;;  %v4544_v37 = vcombine.low %v1940_v31, %v1943_v15  ;;  %v1714_v55 = vrot.slane %v1712_v53, 4  ;;  %v1720_v45 = vrot.slane %v1718_v56, 5  ;;  %v6825_v15 = vld [vmem:[%s5412_s6 + $0x98] sm:$0x1] }
 0x10f   : > { %v1949_v9 = vrot.slane %v6506_v8, 5  ;;  %v1705_v28 = vor.u32 %v1704_v43, %v1701_v26  ;;  %v1947_v54 = vsel %vm5648_vm5, %v4401_v51, %v1946_v0  ;;  %v1948_v19 = vrot.slane %v1946_v0, 4  ;;  %v6813_v8 = vld [vmem:[%s5412_s6 + $0x94] sm:$0xf] }
 0x110   : > { %v6804_v59 = vadd.f32 %v4666_v18, %v4665_v2  ;;  %v1715_v50 = vor.u32 %v1714_v55, %v1710_v16  ;;  %v4520_v47 = vcombine.low %v6764_v25, %v6778_v24  ;;  %v4402_v14 = vrot.slane %v4386_v30, 9  ;;  %v4387_v30 = vld [vmem:[%s5412_s6 + $0x48] sm:$0xe] }
 0x111   : > { %3822 = vmatmul.mubr.bf16.gmra.mrb[112].mxu1 %v4519_v6  ;;  %v1953_v10 = vrot.slane %v6533_v36, 5  ;;  %5123 = vmatmul.mubr.bf16.vlgmr.msra.gmra.mrb[112].mxu0 %v4544_v37  ;;  %v1706_v6 = vrot.slane %v1705_v28, 4  ;;  %v1950_v2 = vsel %vm5648_vm5, %v1948_v19, %v1949_v9  ;;  %v1956_v18 = vrot.slane %v6541_v41, 5 }
 0x112   : > { %v4668_v44 = vpop.f32.mrb[12].mxu0  ;;  %v1716_v4 = vrot.slane %v1715_v50, 4  ;;  %v4545_v46 = vcombine.low %v1947_v54, %v1950_v2  ;;  %v4740_v39 = vpop.f32.mrb[12].mxu1  ;;  %v1723_v41 = vshrl.u32 %v6807_v58, 16  ;;  %v1726_v20 = vshll.u32 %v6807_v58, 16 }
 0x113   : > { %v4669_v32 = vpop.f32.mrb[13].mxu0  ;;  %v1954_v25 = vsel %vm5648_vm5, %v4402_v14, %v1953_v10  ;;  %v1955_v36 = vrot.slane %v1953_v10, 4  ;;  %v1711_v26 = vsel %vm5454_vm2, %v1706_v6, %v1710_v16  ;;  %v4741_v63 = vpop.f32.mrb[13].mxu1  ;;  %v1732_v53 = vshll.u32 %v6813_v8, 16  ;;  %v4388_v14 = vld [vmem:[%s5412_s6 + $0x54] sm:$0xe] }
 0x114   : > { %v6818_v5 = vadd.f32 %v4669_v32, %v4668_v44  ;;  %v4671_v31 = vpop.f32.mrb[14].mxu0  ;;  %v1721_v56 = vsel %vm5454_vm2, %v1716_v4, %v1720_v45  ;;  %5126 = vmatprep.mubr.bf16.mxu0 %v4545_v46  ;;  %v6834_v43 = vadd.f32 %v4741_v63, %v4740_v39  ;;  %v4743_v51 = vpop.f32.mrb[14].mxu1  ;;  %v1736_v0 = vshrl.u32 %v6813_v8, 16  ;;  %v6852_v39 = vld [vmem:[%s5412_s6 + $0xa0] sm:$0xf] }
 0x115   : > { %v4672_v49 = vpop.f32.mrb[15].mxu0  ;;  %v1957_v37 = vsel %vm5648_vm5, %v1955_v36, %v1956_v18  ;;  %v4536_v16 = vcombine.low %v1711_v26, %v1721_v56  ;;  %v4744_v9 = vpop.f32.mrb[15].mxu1  ;;  %v1725_v28 = vrot.slane %v1723_v41, 4  ;;  %v1728_v54 = vrot.slane %v1726_v20, 5  ;;  %v6845_v18 = vld [vmem:[%s5412_s6 + $0x9c] sm:$0xf] }
 0x116   : > { %v4546_v55 = vcombine.low %v1954_v25, %v1957_v37  ;;  %v6838_v19 = vadd.f32 %v4744_v9, %v4743_v51  ;;  %v1734_v45 = vrot.slane %v1732_v53, 5  ;;  %v1738_v44 = vrot.slane %v1736_v0, 4 }
 0x117   : > { %v1742_v50 = vshll.u32 %v6825_v15, 16  ;;  %3829 = vmatprep.mubr.bf16.mxu1 %v4536_v16  ;;  %v1729_v10 = vor.u32 %v1728_v54, %v1725_v28  ;;  %v4403_v32 = vrot.slane %v4387_v30, 9  ;;  %v1960_v6 = vrot.slane %v6572_v7, 5  ;;  %v6870_v54 = vld [vmem:[%s5412_s6 + $0xa4] sm:$0x1] }
 0x118   : > { %v1963_v2 = vrot.slane %v6583_v57, 5  ;;  %v1739_v4 = vor.u32 %v1738_v44, %v1734_v45  ;;  %v6847_v25 = vadd.f32 %v4672_v49, %v4671_v31  ;;  %v4521_v36 = vcombine.low %v6807_v58, %v6813_v8 }
 0x119   : > { %3830 = vmatmul.mubr.bf16.gmra.mrb[116].mxu1 %v4520_v47  ;;  %v1744_v46 = vrot.slane %v1742_v50, 5  ;;  %5127 = vmatmul.mubr.bf16.gmra.mrb[116].mxu0 %v4546_v55  ;;  %v1730_v26 = vrot.slane %v1729_v10, 4  ;;  %v1961_v63 = vsel %vm5648_vm5, %v4403_v32, %v1960_v6  ;;  %v1962_v7 = vrot.slane %v1960_v6, 4  ;;  %v4389_v32 = vld [vmem:[%s5412_s6 + $0x60] sm:$0xe] }
 0x11a   : > { %v4404_v41 = vrot.slane %v4388_v14, 9  ;;  %v1740_v57 = vrot.slane %v1739_v4, 4  ;;  %v1967_v20 = vrot.slane %v6610_v3, 5  ;;  %v1970_v47 = vrot.slane %v6617_v52, 5  ;;  %v4762_v31 = vpop.f32.mrb[16].mxu1 }
 0x11b   : > { %v1747_v53 = vshrl.u32 %v6845_v18, 16  ;;  %v1735_v58 = vsel %vm5454_vm2, %v1730_v26, %v1734_v45  ;;  %v1964_v56 = vsel %vm5648_vm5, %v1962_v7, %v1963_v2  ;;  %v4763_v37 = vpop.f32.mrb[17].mxu1  ;;  %v1750_v0 = vshll.u32 %v6845_v18, 16 }
 0x11c   : > { %v4674_v49 = vpop.f32.mrb[16].mxu0  ;;  %v1756_v3 = vshll.u32 %v6852_v39, 16  ;;  %v1745_v52 = vsel %vm5454_vm2, %v1740_v57, %v1744_v46  ;;  %v4547_v30 = vcombine.low %v1961_v63, %v1964_v56  ;;  %v1968_v16 = vsel %vm5648_vm5, %v4404_v41, %v1967_v20  ;;  %v4765_v9 = vpop.f32.mrb[18].mxu1 }
 0x11d   : > { %v4675_v51 = vpop.f32.mrb[17].mxu0  ;;  %v1969_v55 = vrot.slane %v1967_v20, 4  ;;  %v4537_v45 = vcombine.low %v1735_v58, %v1745_v52  ;;  %v4764_v44 = vadd.f32 %v4763_v37, %v4762_v31  ;;  %v4766_v14 = vpop.f32.mrb[19].mxu1  ;;  %v1749_v10 = vrot.slane %v1747_v53, 4  ;;  %v4390_v53 = vld [vmem:[%s5412_s6 + $0x6c] sm:$0xe] }
 0x11e   : > { %v4677_v28 = vpop.f32.mrb[18].mxu0  ;;  %v6872_v50 = vadd.f32 %v4675_v51, %v4674_v49  ;;  %5130 = vmatprep.mubr.bf16.mxu0 %v4547_v30  ;;  %v4767_v4 = vadd.f32 %v4766_v14, %v4765_v9  ;;  %v1752_v46 = vrot.slane %v1750_v0, 5  ;;  %v1758_v26 = vrot.slane %v1756_v3, 5  ;;  %v6891_v51 = vld [vmem:[%s5412_s6 + $0xa8] sm:$0xf] }
 0x11f   : > { %v4678_v6 = vpop.f32.mrb[19].mxu0  ;;  %v1971_v2 = vsel %vm5648_vm5, %v1969_v55, %v1970_v47  ;;  %3837 = vmatprep.mubr.bf16.mxu1 %v4537_v45  ;;  %v6878_v7 = vadd.f32 %v4764_v44, %v6690_v11  ;;  %v1760_v41 = vshrl.u32 %v6852_v39, 16  ;;  %v1766_v57 = vshll.u32 %v6870_v54, 16 }
 0x120   : > { %v4548_v63 = vcombine.low %v1968_v16, %v1971_v2  ;;  %v6883_v20 = vadd.f32 %v4767_v4, %v6715_v61  ;;  %v1753_v31 = vor.u32 %v1752_v46, %v1749_v10  ;;  %v4405_v49 = vrot.slane %v4389_v32, 9  ;;  %v6904_v10 = vld [vmem:[%s5412_s6 + $0xac] sm:$0xf] }
 0x121   : > { %3838 = vmatmul.mubr.bf16.gmra.mrb[120].mxu1 %v4521_v36  ;;  %v1974_v47 = vrot.slane %v6649_v35, 5  ;;  %v1762_v58 = vrot.slane %v1760_v41, 4  ;;  %v1768_v56 = vrot.slane %v1766_v57, 5  ;;  %v1977_v37 = vrot.slane %v6660_v42, 5  ;;  %v6915_v57 = vld [vmem:[%s5412_s6 + $0xb0] sm:$0x1] }
 0x122   : > { %5131 = vmatmul.mubr.bf16.gmra.mrb[120].mxu0 %v4548_v63  ;;  %v6888_v11 = vadd.f32 %v4678_v6, %v4677_v28  ;;  %v1754_v0 = vrot.slane %v1753_v31, 4  ;;  %v4522_v3 = vcombine.low %v6845_v18, %v6852_v39  ;;  %v4768_v35 = vpop.f32.mrb[20].mxu1  ;;  %v4406_v30 = vrot.slane %v4390_v53, 9 }
 0x123   : > { %v1975_v61 = vsel %vm5648_vm5, %v4405_v49, %v1974_v47  ;;  %v1976_v36 = vrot.slane %v1974_v47, 4  ;;  %v1763_v52 = vor.u32 %v1762_v58, %v1758_v26  ;;  %v1981_v16 = vrot.slane %v6697_v27, 5  ;;  %v4769_v55 = vpop.f32.mrb[21].mxu1  ;;  %v4391_v49 = vld [vmem:[%s5412_s6 + $0x78] sm:$0xe] }
 0x124   : > { %v1984_v42 = vrot.slane %v6705_v48, 5  ;;  %v4680_v9 = vpop.f32.mrb[20].mxu0  ;;  %v1759_v28 = vsel %vm5454_vm2, %v1754_v0, %v1758_v26  ;;  %v4770_v44 = vadd.f32 %v4769_v55, %v4768_v35  ;;  %v4771_v14 = vpop.f32.mrb[22].mxu1  ;;  %v1771_v32 = vshrl.u32 %v6891_v51, 16 }
 0x125   : > { %v1978_v45 = vsel %vm5648_vm5, %v1976_v36, %v1977_v37  ;;  %v4681_v18 = vpop.f32.mrb[21].mxu0  ;;  %v1764_v27 = vrot.slane %v1763_v52, 4  ;;  %v1982_v48 = vsel %vm5648_vm5, %v4406_v30, %v1981_v16  ;;  %v1983_v2 = vrot.slane %v1981_v16, 4  ;;  %v4772_v4 = vpop.f32.mrb[23].mxu1  ;;  %v4392_v52 = vld [vmem:[%s5412_s6 + $0x84] sm:$0xe] }
 0x126   : > { %v4549_v6 = vcombine.low %v1975_v61, %v1978_v45  ;;  %v4683_v46 = vpop.f32.mrb[22].mxu0  ;;  %v6910_v26 = vadd.f32 %v4770_v44, %v6735_v33  ;;  %v6912_v63 = vadd.f32 %v4681_v18, %v4680_v9  ;;  %v4773_v41 = vadd.f32 %v4772_v4, %v4771_v14 }
 0x127   : > { %v1773_v31 = vrot.slane %v1771_v32, 4  ;;  %v4684_v47 = vpop.f32.mrb[23].mxu0  ;;  %v1769_v53 = vsel %vm5454_vm2, %v1764_v27, %v1768_v56  ;;  %v1985_v58 = vsel %vm5648_vm5, %v1983_v2, %v1984_v42  ;;  %v1774_v37 = vshll.u32 %v6891_v51, 16 }
 0x128   : > { %5134 = vmatprep.mubr.bf16.mxu0 %v4549_v6  ;;  %v1780_v33 = vshll.u32 %v6904_v10, 16  ;;  %v4538_v0 = vcombine.low %v1759_v28, %v1769_v53  ;;  %v4550_v61 = vcombine.low %v1982_v48, %v1985_v58  ;;  %v6925_v36 = vadd.f32 %v4773_v41, %v6759_v62  ;;  %v6943_v53 = vld [vmem:[%s5412_s6 + $0xb4] sm:$0xf] }
 0x129   : > { %v1784_v35 = vshrl.u32 %v6904_v10, 16  ;;  %v1776_v30 = vrot.slane %v1774_v37, 5  ;;  %v1790_v56 = vshll.u32 %v6915_v57, 16  ;;  %v4407_v55 = vrot.slane %v4391_v49, 9 }
 0x12a   : > { %v1782_v16 = vrot.slane %v1780_v33, 5  ;;  %3845 = vmatprep.mubr.bf16.mxu1 %v4538_v0  ;;  %5135 = vmatmul.mubr.bf16.gmra.mrb[124].mxu0 %v4550_v61  ;;  %v1988_v9 = vrot.slane %v6725_v13, 5  ;;  %v1991_v45 = vrot.slane %v6740_v1, 5  ;;  %v6932_v28 = vadd.f32 %v4684_v47, %v4683_v46  ;;  %v4774_v44 = vpop.f32.mrb[24].mxu1  ;;  %v6950_v0 = vld [vmem:[%s5412_s6 + $0xb8] sm:$0xf] }
 0x12b   : > { %v1786_v42 = vrot.slane %v1784_v35, 4  ;;  %3846 = vmatmul.mubr.bf16.gmra.mrb[124].mxu1 %v4522_v3  ;;  %v1777_v62 = vor.u32 %v1776_v30, %v1773_v31  ;;  %v1792_v14 = vrot.slane %v1790_v56, 5  ;;  %v4523_v18 = vcombine.low %v6891_v51, %v6904_v10  ;;  %v4775_v27 = vpop.f32.mrb[25].mxu1  ;;  %v6958_v56 = vld [vmem:[%s5412_s6 + $0xbc] sm:$0x1] }
 0x12c   : > { %v4408_v32 = vrot.slane %v4392_v52, 9  ;;  %v4686_v6 = vpop.f32.mrb[24].mxu0  ;;  %v1989_v2 = vsel %vm5648_vm5, %v4407_v55, %v1988_v9  ;;  %v1990_v13 = vrot.slane %v1988_v9, 4  ;;  %v1995_v1 = vrot.slane %v6778_v24, 5  ;;  %v4777_v4 = vpop.f32.mrb[26].mxu1 }
 0x12d   : > { %v1787_v48 = vor.u32 %v1786_v42, %v1782_v16  ;;  %v4687_v46 = vpop.f32.mrb[25].mxu0  ;;  %v1778_v3 = vrot.slane %v1777_v62, 4  ;;  %v1998_v41 = vrot.slane %v6781_v38, 5  ;;  %v4776_v31 = vadd.f32 %v4775_v27, %v4774_v44  ;;  %v4778_v49 = vpop.f32.mrb[27].mxu1  ;;  %v4393_v44 = vld [vmem:[%s5412_s6 + $0x90] sm:$0xe] }
 0x12e   : > { %v6940_v51 = vadd.f32 %v4687_v46, %v4686_v6  ;;  %v4689_v47 = vpop.f32.mrb[26].mxu0  ;;  %v1992_v37 = vsel %vm5648_vm5, %v1990_v13, %v1991_v45  ;;  %v1996_v24 = vsel %vm5648_vm5, %v4408_v32, %v1995_v1  ;;  %v1997_v33 = vrot.slane %v1995_v1, 4  ;;  %v4394_v27 = vld [vmem:[%s5412_s6 + $0x9c] sm:$0xe] }
 0x12f   : > { %v1788_v58 = vrot.slane %v1787_v48, 4  ;;  %v4690_v38 = vpop.f32.mrb[27].mxu0  ;;  %v1783_v61 = vsel %vm5454_vm2, %v1778_v3, %v1782_v16  ;;  %v4551_v35 = vcombine.low %v1989_v2, %v1992_v37  ;;  %v6955_v52 = vadd.f32 %v4776_v31, %v6769_v17 }
 0x130   : > { %v4779_v30 = vadd.f32 %v4778_v49, %v4777_v4  ;;  %v1999_v42 = vsel %vm5648_vm5, %v1997_v33, %v1998_v41  ;;  %v1795_v9 = vshrl.u32 %v6943_v53, 16  ;;  %v1798_v45 = vshll.u32 %v6943_v53, 16 }
 0x131   : > { %v1793_v55 = vsel %vm5454_vm2, %v1788_v58, %v1792_v14  ;;  %5138 = vmatprep.mubr.bf16.mxu0 %v4551_v35  ;;  %v4552_v16 = vcombine.low %v1996_v24, %v1999_v42  ;;  %v1804_v32 = vshll.u32 %v6950_v0, 16  ;;  %v1808_v14 = vshrl.u32 %v6950_v0, 16 }
 0x132   : > { %v4539_v62 = vcombine.low %v1783_v61, %v1793_v55  ;;  %v6968_v17 = vadd.f32 %v4779_v30, %v6804_v59  ;;  %v1797_v6 = vrot.slane %v1795_v9, 4  ;;  %v1800_v48 = vrot.slane %v1798_v45, 5  ;;  %v4780_v13 = vpop.f32.mrb[28].mxu1 }
 0x133   : > { %v1814_v2 = vshll.u32 %v6958_v56, 16  ;;  %5139 = vmatmul.mubr.bf16.gmra.mrb[128].mxu0 %v4552_v16  ;;  %v1806_v1 = vrot.slane %v1804_v32, 5  ;;  %v4409_v4 = vrot.slane %v4393_v44, 9  ;;  %v2002_v46 = vrot.slane %v6813_v8, 5  ;;  %v4781_v59 = vpop.f32.mrb[29].mxu1 }
 0x134   : > { %3853 = vmatprep.mubr.bf16.mxu1 %v4539_v62  ;;  %v2005_v3 = vrot.slane %v6825_v15, 5  ;;  %v4692_v41 = vpop.f32.mrb[28].mxu0  ;;  %v1801_v31 = vor.u32 %v1800_v48, %v1797_v6  ;;  %v1810_v49 = vrot.slane %v1808_v14, 4  ;;  %v6976_v37 = vadd.f32 %v4690_v38, %v4689_v47  ;;  %v4783_v24 = vpop.f32.mrb[30].mxu1  ;;  %v6985_v38 = vld [vmem:[%s5412_s6 + $0xc0] sm:$0xf] }
 0x135   : > { %3854 = vmatmul.mubr.bf16.gmra.mrb[128].mxu1 %v4523_v18  ;;  %v1816_v58 = vrot.slane %v1814_v2, 5  ;;  %v4693_v33 = vpop.f32.mrb[29].mxu0  ;;  %v2003_v61 = vsel %vm5648_vm5, %v4409_v4, %v2002_v46  ;;  %v2004_v35 = vrot.slane %v2002_v46, 4  ;;  %v4524_v8 = vcombine.low %v6943_v53, %v6950_v0  ;;  %v4784_v30 = vpop.f32.mrb[31].mxu1  ;;  %v6992_v32 = vld [vmem:[%s5412_s6 + $0xc4] sm:$0xf] }
 0x136   : > { %v4410_v15 = vrot.slane %v4394_v27, 9  ;;  %v4695_v55 = vpop.f32.mrb[30].mxu0  ;;  %v1802_v18 = vrot.slane %v1801_v31, 4  ;;  %v1811_v42 = vor.u32 %v1810_v49, %v1806_v1  ;;  %v2009_v9 = vrot.slane %v6852_v39, 5  ;;  %v6999_v48 = vld [vmem:[%s5412_s6 + $0xc8] sm:$0x1] }
 0x137   : > { %v2012_v47 = vrot.slane %v6870_v54, 5  ;;  %v4696_v45 = vpop.f32.mrb[31].mxu0  ;;  %v2006_v44 = vsel %vm5648_vm5, %v2004_v35, %v2005_v3  ;;  %v4782_v62 = vadd.f32 %v4781_v59, %v4780_v13  ;;  %v6989_v16 = vadd.f32 %v4693_v33, %v4692_v41  ;;  %v4395_v41 = vld [vmem:[%s5412_s6 + $0xa8] sm:$0xe]  ;;  %v4396_v33 = vld [vmem:[%s5412_s6 + $0xb4] sm:$0xe] }
 0x138   : > { %v4785_v53 = vadd.f32 %v4784_v30, %v4783_v24  ;;  %v1807_v27 = vsel %vm5454_vm2, %v1802_v18, %v1806_v1  ;;  %v1812_v6 = vrot.slane %v1811_v42, 4  ;;  %v4553_v39 = vcombine.low %v2003_v61, %v2006_v44 }
 0x139   : > { %v2010_v54 = vsel %vm5648_vm5, %v4410_v15, %v2009_v9  ;;  %v2011_v14 = vrot.slane %v2009_v9, 4  ;;  %v7002_v2 = vadd.f32 %v4782_v62, %v6818_v5  ;;  %v1819_v4 = vshrl.u32 %v6985_v38, 16 }
 0x13a   : > { %v7005_v13 = vadd.f32 %v4785_v53, %v6847_v25  ;;  %v1817_v1 = vsel %vm5454_vm2, %v1812_v6, %v1816_v58  ;;  %5142 = vmatprep.mubr.bf16.mxu0 %v4553_v39  ;;  %v1822_v46 = vshll.u32 %v6985_v38, 16  ;;  %v1828_v3 = vshll.u32 %v6992_v32, 16  ;;  %v4786_v31 = vpop.f32.mrb[32].mxu1 }
 0x13b   : > { %v1832_v59 = vshrl.u32 %v6992_v32, 16  ;;  %v4540_v49 = vcombine.low %v1807_v27, %v1817_v1  ;;  %v2013_v5 = vsel %vm5648_vm5, %v2011_v14, %v2012_v47  ;;  %v1821_v25 = vrot.slane %v1819_v4, 4  ;;  %v4787_v61 = vpop.f32.mrb[33].mxu1 }
 0x13c   : > { %v1838_v24 = vshll.u32 %v6999_v48, 16  ;;  %v4698_v35 = vpop.f32.mrb[32].mxu0  ;;  %v4554_v58 = vcombine.low %v2010_v54, %v2013_v5  ;;  %v1824_v15 = vrot.slane %v1822_v46, 5  ;;  %v1830_v30 = vrot.slane %v1828_v3, 5  ;;  %v4789_v42 = vpop.f32.mrb[34].mxu1 }
 0x13d   : > { %v1834_v18 = vrot.slane %v1832_v59, 4  ;;  %v4699_v9 = vpop.f32.mrb[33].mxu0  ;;  %3861 = vmatprep.mubr.bf16.mxu1 %v4540_v49  ;;  %v4411_v62 = vrot.slane %v4395_v41, 9  ;;  %v2016_v53 = vrot.slane %v6904_v10, 5  ;;  %v2019_v27 = vrot.slane %v6915_v57, 5  ;;  %v4790_v47 = vpop.f32.mrb[35].mxu1 }
 0x13e   : > { %v1840_v44 = vrot.slane %v1838_v24, 5  ;;  %v4701_v6 = vpop.f32.mrb[34].mxu0  ;;  %3862 = vmatmul.mubr.bf16.gmra.mrb[132].mxu1 %v4524_v8  ;;  %5143 = vmatmul.mubr.bf16.gmra.mrb[132].mxu0 %v4554_v58  ;;  %v1825_v39 = vor.u32 %v1824_v15, %v1821_v25  ;;  %v7020_v54 = vadd.f32 %v4696_v45, %v4695_v55  ;;  %v4412_v4 = vrot.slane %v4396_v33, 9  ;;  %v7029_v45 = vld [vmem:[%s5412_s6 + $0xcc] sm:$0xf] }
 0x13f   : > { %v1835_v14 = vor.u32 %v1834_v18, %v1830_v30  ;;  %v4702_v1 = vpop.f32.mrb[35].mxu0  ;;  %v2017_v46 = vsel %vm5648_vm5, %v4411_v62, %v2016_v53  ;;  %v2018_v3 = vrot.slane %v2016_v53, 4  ;;  %v4525_v10 = vcombine.low %v6985_v38, %v6992_v32  ;;  %v7038_v38 = vld [vmem:[%s5412_s6 + $0xd0] sm:$0xf]  ;;  %v4397_v58 = vld [vmem:[%s5412_s6 + $0xc0] sm:$0xe] }
 0x140   : > { %v2023_v57 = vrot.slane %v6950_v0, 5  ;;  %v1826_v8 = vrot.slane %v1825_v39, 4  ;;  %v2026_v41 = vrot.slane %v6958_v56, 5  ;;  %v4788_v55 = vadd.f32 %v4787_v61, %v4786_v31  ;;  %v7048_v61 = vld [vmem:[%s5412_s6 + $0xd4] sm:$0x1] }
 0x141   : > { %v1836_v59 = vrot.slane %v1835_v14, 4  ;;  %v2020_v49 = vsel %vm5648_vm5, %v2018_v3, %v2019_v27  ;;  %v7035_v24 = vadd.f32 %v4699_v9, %v4698_v35  ;;  %v4791_v9 = vadd.f32 %v4790_v47, %v4789_v42  ;;  %v4398_v14 = vld [vmem:[%s5412_s6 + $0xcc] sm:$0xe]  ;;  %s4633_s6 = sshll.u32 %s7420_s9, 8 }
 0x142   : > { %v2024_v5 = vsel %vm5648_vm5, %v4412_v4, %v2023_v57  ;;  %v2025_v25 = vrot.slane %v2023_v57, 4  ;;  %v1831_v0 = vsel %vm5454_vm2, %v1826_v8, %v1830_v30  ;;  %v4555_v31 = vcombine.low %v2017_v46, %v2020_v49  ;;  %v4792_v15 = vpop.f32.mrb[36].mxu1  ;;  %s7309_s24 = scalar_lea.vmem %s7400_s2, %s4633_s6 }
 0x143   : > { %v1841_v56 = vsel %vm5454_vm2, %v1836_v59, %v1840_v44  ;;  %v7045_v33 = vadd.f32 %v4788_v55, %v6872_v50  ;;  %v1843_v62 = vshrl.u32 %v7029_v45, 16  ;;  %v4793_v30 = vpop.f32.mrb[37].mxu1  ;;  %v1846_v27 = vshll.u32 %v7029_v45, 16 }
 0x144   : > { %v4541_v18 = vcombine.low %v1831_v0, %v1841_v56  ;;  %v2027_v35 = vsel %vm5648_vm5, %v2025_v25, %v2026_v41  ;;  %v4704_v53 = vpop.f32.mrb[36].mxu0  ;;  %5146 = vmatprep.mubr.bf16.mxu0 %v4555_v31  ;;  %v1852_v50 = vshll.u32 %v7038_v38, 16  ;;  %v1856_v39 = vshrl.u32 %v7038_v38, 16  ;;  %v4795_v4 = vpop.f32.mrb[38].mxu1 }
 0x145   : > { %v4556_v44 = vcombine.low %v2024_v5, %v2027_v35  ;;  %v4705_v46 = vpop.f32.mrb[37].mxu0  ;;  %v7059_v3 = vadd.f32 %v4791_v9, %v6888_v11  ;;  %v1845_v42 = vrot.slane %v1843_v62, 4  ;;  %v1862_v47 = vshll.u32 %v7048_v61, 16  ;;  %v4796_v8 = vpop.f32.mrb[39].mxu1 }
 0x146   : > { %3869 = vmatprep.mubr.bf16.mxu1 %v4541_v18  ;;  %v4413_v57 = vrot.slane %v4397_v58, 9  ;;  %v4707_v59 = vpop.f32.mrb[38].mxu0  ;;  %v1848_v41 = vrot.slane %v1846_v27, 5  ;;  %v1854_v55 = vrot.slane %v1852_v50, 5  ;;  %v1858_v49 = vrot.slane %v1856_v39, 4 }
 0x147   : > { %3870 = vmatmul.mubr.bf16.gmra.mrb[136].mxu1 %v4525_v10  ;;  %5147 = vmatmul.mubr.bf16.gmra.mrb[136].mxu0 %v4556_v44  ;;  %v2030_v5 = vrot.slane %v6992_v32, 5  ;;  %v4708_v25 = vpop.f32.mrb[39].mxu0  ;;  %v1864_v0 = vrot.slane %v1862_v47, 5  ;;  %v2033_v56 = vrot.slane %v6999_v48, 5  ;;  %v7064_v31 = vadd.f32 %v4702_v1, %v4701_v6 }
 0x148   : > { %v4526_v11 = vcombine.low %v7029_v45, %v7038_v38  ;;  %v1849_v18 = vor.u32 %v1848_v41, %v1845_v42  ;;  %v1859_v58 = vor.u32 %v1858_v49, %v1854_v55  ;;  %v4414_v9 = vrot.slane %v4398_v14, 9 }
 0x149   : > { %v2031_v10 = vsel %vm5648_vm5, %v4413_v57, %v2030_v5  ;;  %v2032_v35 = vrot.slane %v2030_v5, 4  ;;  %v2037_v62 = vrot.slane %v7038_v38, 5  ;;  %v2040_v32 = vrot.slane %v7048_v61, 5 }
 0x14a   : > { %v4794_v44 = vadd.f32 %v4793_v30, %v4792_v15  ;;  %v1850_v27 = vrot.slane %v1849_v18, 4  ;;  %v1860_v50 = vrot.slane %v1859_v58, 4  ;;  %v7074_v6 = vadd.f32 %v4705_v46, %v4704_v53  ;;  %v4798_v1 = vpop.f32.mrb[40].mxu1 }
 0x14b   : > { %v2034_v48 = vsel %vm5648_vm5, %v2032_v35, %v2033_v56  ;;  %v2038_v39 = vsel %vm5648_vm5, %v4414_v9, %v2037_v62  ;;  %v2039_v42 = vrot.slane %v2037_v62, 4  ;;  %v4799_v38 = vpop.f32.mrb[41].mxu1  ;;  %v4797_v30 = vadd.f32 %v4796_v8, %v4795_v4 }
 0x14c   : > { %v4557_v45 = vcombine.low %v2031_v10, %v2034_v48  ;;  %v7079_v14 = vadd.f32 %v4794_v44, %v6912_v63  ;;  %v4710_v47 = vpop.f32.mrb[40].mxu0  ;;  %v1855_v61 = vsel %vm5454_vm2, %v1850_v27, %v1854_v55  ;;  %v1865_v15 = vsel %vm5454_vm2, %v1860_v50, %v1864_v0  ;;  %v4801_v46 = vpop.f32.mrb[42].mxu1 }
 0x14d   : > { %v7085_v53 = vadd.f32 %v4708_v25, %v4707_v59  ;;  %v4711_v57 = vpop.f32.mrb[41].mxu0  ;;  %v4542_v41 = vcombine.low %v1855_v61, %v1865_v15  ;;  %v2041_v49 = vsel %vm5648_vm5, %v2039_v42, %v2040_v32  ;;  %v4800_v63 = vadd.f32 %v4799_v38, %v4798_v1  ;;  %v4802_v56 = vpop.f32.mrb[43].mxu1 }
 0x14e   : > { %5150 = vmatprep.mubr.bf16.mxu0 %v4557_v45  ;;  %v7089_v5 = vadd.f32 %v4711_v57, %v4710_v47  ;;  %v4713_v18 = vpop.f32.mrb[42].mxu0  ;;  %v4558_v58 = vcombine.low %v2038_v39, %v2041_v49  ;;  %v7092_v55 = vadd.f32 %v4797_v30, %v6932_v28  ;;  %v4803_v34 = vadd.f32 %v4802_v56, %v4801_v46 }
 0x14f   : > { %v4714_v4 = vpop.f32.mrb[43].mxu0  ;;  %3877 = vmatprep.mubr.bf16.mxu1 %v4542_v41  ;;  %v7095_v8 = vadd.f32 %v4800_v63, %v6940_v51 }
 0x150   : > { %v7097_v59 = vadd.f32 %v4714_v4, %v4713_v18  ;;  %3878 = vmatmul.mubr.bf16.gmra.mrb[140].mxu1 %v4526_v11  ;;  %5151 = vmatmul.mubr.bf16.gmra.mrb[140].mxu0 %v4558_v58  ;;  %v7100_v22 = vadd.f32 %v4803_v34, %v6976_v37 }
 0x152   : > { %v4804_v25 = vpop.f32.mrb[44].mxu1 }
 0x153   : > { %v4805_v0 = vpop.f32.mrb[45].mxu1 }
 0x154   : > { %v4716_v10 = vpop.f32.mrb[44].mxu0  ;;  %v4806_v35 = vadd.f32 %v4805_v0, %v4804_v25  ;;  %v4807_v9 = vpop.f32.mrb[46].mxu1 }
 0x155   : > { %v4717_v28 = vpop.f32.mrb[45].mxu0  ;;  %v4808_v32 = vpop.f32.mrb[47].mxu1 }
 0x156   : > { %v7102_v62 = vadd.f32 %v4717_v28, %v4716_v10  ;;  %v4719_v44 = vpop.f32.mrb[46].mxu0  ;;  %v7105_v51 = vadd.f32 %v4806_v35, %v6989_v16  ;;  %v4809_v27 = vadd.f32 %v4808_v32, %v4807_v9 }
 0x157   : > { %v4720_v50 = vpop.f32.mrb[47].mxu0 }
 0x158   : > { %v7107_v11 = vadd.f32 %v4720_v50, %v4719_v44  ;;  %v7110_v37 = vadd.f32 %v4809_v27, %v7020_v54 }
 0x15a   : > { %v4810_v48 = vpop.f32.mrb[48].mxu1 }
 0x15b   : > { %v4811_v45 = vpop.f32.mrb[49].mxu1 }
 0x15c   : > { %v4874_v1 = vpop.f32.mrb[48].mxu0  ;;  %v4812_v39 = vadd.f32 %v4811_v45, %v4810_v48  ;;  %v4813_v38 = vpop.f32.mrb[50].mxu1 }
 0x15d   : > { %v4875_v42 = vpop.f32.mrb[49].mxu0  ;;  %v4814_v15 = vpop.f32.mrb[51].mxu1 }
 0x15e   : > { %v4876_v47 = vadd.f32 %v4875_v42, %v4874_v1  ;;  %v4877_v61 = vpop.f32.mrb[50].mxu0  ;;  %v7113_v30 = vadd.f32 %v4812_v39, %v7035_v24  ;;  %v4815_v16 = vadd.f32 %v4814_v15, %v4813_v38 }
 0x15f   : > { %v4878_v46 = vpop.f32.mrb[51].mxu0 }
 0x160   : > { %v7116_v57 = vadd.f32 %v4876_v47, %v6878_v7  ;;  %v4879_v41 = vadd.f32 %v4878_v46, %v4877_v61  ;;  %v7119_v54 = vadd.f32 %v4815_v16, %v7064_v31 }
 0x162   : > { %v7122_v49 = vadd.f32 %v4879_v41, %v6883_v20  ;;  %v4816_v63 = vpop.f32.mrb[52].mxu1 }
 0x163   : > { %v4817_v18 = vpop.f32.mrb[53].mxu1 }
 0x164   : > { %v4880_v56 = vpop.f32.mrb[52].mxu0  ;;  %v4818_v58 = vadd.f32 %v4817_v18, %v4816_v63  ;;  %v4819_v4 = vpop.f32.mrb[54].mxu1 }
 0x165   : > { %v4881_v34 = vpop.f32.mrb[53].mxu0  ;;  %v4820_v0 = vpop.f32.mrb[55].mxu1 }
 0x166   : > { %v4882_v24 = vadd.f32 %v4881_v34, %v4880_v56  ;;  %v4883_v25 = vpop.f32.mrb[54].mxu0  ;;  %v7125_v10 = vadd.f32 %v4818_v58, %v7074_v6  ;;  %v4821_v7 = vadd.f32 %v4820_v0, %v4819_v4 }
 0x167   : > { %v4884_v35 = vpop.f32.mrb[55].mxu0 }
 0x168   : > { %v7128_v31 = vadd.f32 %v4882_v24, %v6910_v26  ;;  %v4885_v9 = vadd.f32 %v4884_v35, %v4883_v25  ;;  %v7131_v20 = vadd.f32 %v4821_v7, %v7085_v53 }
 0x16a   : > { %v7134_v28 = vadd.f32 %v4885_v9, %v6925_v36  ;;  %v4822_v32 = vpop.f32.mrb[56].mxu1 }
 0x16b   : > { %v4823_v27 = vpop.f32.mrb[57].mxu1 }
 0x16c   : > { %v4886_v44 = vpop.f32.mrb[56].mxu0  ;;  %v4824_v50 = vadd.f32 %v4823_v27, %v4822_v32  ;;  %v4825_v1 = vpop.f32.mrb[58].mxu1 }
 0x16d   : > { %v4887_v48 = vpop.f32.mrb[57].mxu0  ;;  %v4826_v39 = vpop.f32.mrb[59].mxu1 }
 0x16e   : > { %v4888_v6 = vadd.f32 %v4887_v48, %v4886_v44  ;;  %v4889_v45 = vpop.f32.mrb[58].mxu0  ;;  %v7137_v42 = vadd.f32 %v4824_v50, %v7089_v5  ;;  %v4827_v26 = vadd.f32 %v4826_v39, %v4825_v1 }
 0x16f   : > { %v4890_v38 = vpop.f32.mrb[59].mxu0 }
 0x170   : > { %v7140_v53 = vadd.f32 %v4888_v6, %v6955_v52  ;;  %v4891_v47 = vadd.f32 %v4890_v38, %v4889_v45  ;;  %v7143_v36 = vadd.f32 %v4827_v26, %v7097_v59 }
 0x172   : > { %v7146_v61 = vadd.f32 %v4891_v47, %v6968_v17  ;;  %v4828_v15 = vpop.f32.mrb[60].mxu1 }
 0x173   : > { %v4829_v46 = vpop.f32.mrb[61].mxu1 }
 0x174   : > { %v4892_v16 = vpop.f32.mrb[60].mxu0  ;;  %v4830_v41 = vadd.f32 %v4829_v46, %v4828_v15  ;;  %v4831_v56 = vpop.f32.mrb[62].mxu1 }
 0x175   : > { %v4893_v63 = vpop.f32.mrb[61].mxu0  ;;  %v4832_v58 = vpop.f32.mrb[63].mxu1 }
 0x176   : > { %v4894_v5 = vadd.f32 %v4893_v63, %v4892_v16  ;;  %v4895_v18 = vpop.f32.mrb[62].mxu0  ;;  %v7149_v34 = vadd.f32 %v4830_v41, %v7102_v62  ;;  %v4833_v52 = vadd.f32 %v4832_v58, %v4831_v56 }
 0x177   : > { %v4896_v4 = vpop.f32.mrb[63].mxu0 }
 0x178   : > { %v7152_v59 = vadd.f32 %v4894_v5, %v7002_v2  ;;  %v4897_v24 = vadd.f32 %v4896_v4, %v4895_v18  ;;  %v7155_v17 = vadd.f32 %v4833_v52, %v7107_v11 }
 0x17a   : > { %v7158_v25 = vadd.f32 %v4897_v24, %v7005_v13  ;;  %v4834_v0 = vpop.f32.mrb[64].mxu1 }
 0x17b   : > { %v4835_v35 = vpop.f32.mrb[65].mxu1 }
 0x17c   : > { %v4898_v7 = vpop.f32.mrb[64].mxu0  ;;  %v4836_v9 = vadd.f32 %v4835_v35, %v4834_v0  ;;  %v4837_v44 = vpop.f32.mrb[66].mxu1 }
 0x17d   : > { %v4899_v32 = vpop.f32.mrb[65].mxu0  ;;  %v4838_v50 = vpop.f32.mrb[67].mxu1 }
 0x17e   : > { %v4900_v62 = vadd.f32 %v4899_v32, %v4898_v7  ;;  %v4901_v27 = vpop.f32.mrb[66].mxu0  ;;  %v7161_v48 = vadd.f32 %v4836_v9, %v6688_v21  ;;  %v4839_v2 = vadd.f32 %v4838_v50, %v4837_v44 }
 0x17f   : > { %v4902_v1 = vpop.f32.mrb[67].mxu0 }
 0x180   : > { %v7164_v11 = vadd.f32 %v4900_v62, %v7045_v33  ;;  %v4903_v6 = vadd.f32 %v4902_v1, %v4901_v27  ;;  %v7167_v13 = vadd.f32 %v4839_v2, %v6692_v12 }
 0x182   : > { %v7170_v45 = vadd.f32 %v4903_v6, %v7059_v3  ;;  %v4840_v39 = vpop.f32.mrb[68].mxu1 }
 0x183   : > { %v4841_v38 = vpop.f32.mrb[69].mxu1 }
 0x184   : > { %v4904_v26 = vpop.f32.mrb[68].mxu0  ;;  %v4842_v47 = vadd.f32 %v4841_v38, %v4840_v39  ;;  %v4843_v16 = vpop.f32.mrb[70].mxu1 }
 0x185   : > { %v4905_v15 = vpop.f32.mrb[69].mxu0  ;;  %v4844_v41 = vpop.f32.mrb[71].mxu1 }
 0x186   : > { %v4906_v21 = vadd.f32 %v4905_v15, %v4904_v26  ;;  %v4907_v46 = vpop.f32.mrb[70].mxu0  ;;  %v7173_v63 = vadd.f32 %v4842_v47, %v6733_v40  ;;  %v4845_v33 = vadd.f32 %v4844_v41, %v4843_v16 }
 0x187   : > { %v4908_v56 = vpop.f32.mrb[71].mxu0 }
 0x188   : > { %v7176_v12 = vadd.f32 %v4906_v21, %v7079_v14  ;;  %v4909_v5 = vadd.f32 %v4908_v56, %v4907_v46  ;;  %v7179_v3 = vadd.f32 %v4845_v33, %v6743_v23 }
 0x18a   : > { %v7182_v18 = vadd.f32 %v4909_v5, %v7092_v55  ;;  %v4846_v58 = vpop.f32.mrb[72].mxu1 }
 0x18b   : > { %v4847_v4 = vpop.f32.mrb[73].mxu1 }
 0x18c   : > { %v4910_v52 = vpop.f32.mrb[72].mxu0  ;;  %v4848_v24 = vadd.f32 %v4847_v4, %v4846_v58  ;;  %v4849_v7 = vpop.f32.mrb[74].mxu1 }
 0x18d   : > { %v4911_v0 = vpop.f32.mrb[73].mxu0  ;;  %v4850_v9 = vpop.f32.mrb[75].mxu1 }
 0x18e   : > { %v4912_v40 = vadd.f32 %v4911_v0, %v4910_v52  ;;  %v4913_v35 = vpop.f32.mrb[74].mxu0  ;;  %v7185_v32 = vadd.f32 %v4848_v24, %v6775_v60  ;;  %v4851_v14 = vadd.f32 %v4850_v9, %v4849_v7 }
 0x18f   : > { %v4914_v44 = vpop.f32.mrb[75].mxu0 }
 0x190   : > { %v7188_v23 = vadd.f32 %v4912_v40, %v7095_v8  ;;  %v4915_v62 = vadd.f32 %v4914_v44, %v4913_v35  ;;  %v7191_v55 = vadd.f32 %v4851_v14, %v6789_v29 }
 0x192   : > { %v7194_v27 = vadd.f32 %v4915_v62, %v7100_v22  ;;  %v4852_v50 = vpop.f32.mrb[76].mxu1 }
 0x193   : > { %v4853_v1 = vpop.f32.mrb[77].mxu1 }
 0x194   : > { %v4916_v2 = vpop.f32.mrb[76].mxu0  ;;  %v4854_v6 = vadd.f32 %v4853_v1, %v4852_v50  ;;  %v4855_v26 = vpop.f32.mrb[78].mxu1 }
 0x195   : > { %v4917_v39 = vpop.f32.mrb[77].mxu0  ;;  %v4856_v47 = vpop.f32.mrb[79].mxu1 }
 0x196   : > { %v4918_v60 = vadd.f32 %v4917_v39, %v4916_v2  ;;  %v4919_v38 = vpop.f32.mrb[78].mxu0  ;;  %v7197_v15 = vadd.f32 %v4854_v6, %v6834_v43  ;;  %v4857_v8 = vadd.f32 %v4856_v47, %v4855_v26 }
 0x197   : > { %v4920_v16 = vpop.f32.mrb[79].mxu0 }
 0x198   : > { %v7200_v29 = vadd.f32 %v4918_v60, %v7105_v51  ;;  %v4921_v21 = vadd.f32 %v4920_v16, %v4919_v38  ;;  %v7203_v22 = vadd.f32 %v4857_v8, %v6838_v19 }
 0x19a   : > { %v7206_v46 = vadd.f32 %v4921_v21, %v7110_v37  ;;  %v4986_v41 = vpop.f32.mrb[80].mxu1 }
 0x19b   : > { %v4987_v56 = vpop.f32.mrb[81].mxu1 }
 0x19c   : > { %v4922_v33 = vpop.f32.mrb[80].mxu0  ;;  %v4988_v58 = vadd.f32 %v4987_v56, %v4986_v41  ;;  %v4989_v52 = vpop.f32.mrb[82].mxu1 }
 0x19d   : > { %v4923_v5 = vpop.f32.mrb[81].mxu0  ;;  %v4990_v24 = vpop.f32.mrb[83].mxu1 }
 0x19e   : > { %v4924_v43 = vadd.f32 %v4923_v5, %v4922_v33  ;;  %v4925_v4 = vpop.f32.mrb[82].mxu0  ;;  %v4991_v7 = vadd.f32 %v4990_v24, %v4989_v52  ;;  %v7209_v51 = vadd.f32 %v4988_v58, %v7116_v57 }
 0x19f   : > { %v4926_v0 = vpop.f32.mrb[83].mxu0 }
 0x1a0   : > { %v7212_v19 = vadd.f32 %v4924_v43, %v7113_v30  ;;  %v4927_v40 = vadd.f32 %v4926_v0, %v4925_v4  ;;  %v7215_v37 = vadd.f32 %v4991_v7, %v7122_v49 }
 0x1a2   : > { %v7218_v35 = vadd.f32 %v4927_v40, %v7119_v54  ;;  %v4992_v9 = vpop.f32.mrb[84].mxu1 }
 0x1a3   : > { %v4993_v44 = vpop.f32.mrb[85].mxu1 }
 0x1a4   : > { %v4928_v14 = vpop.f32.mrb[84].mxu0  ;;  %v4994_v50 = vadd.f32 %v4993_v44, %v4992_v9  ;;  %v4995_v2 = vpop.f32.mrb[86].mxu1 }
 0x1a5   : > { %v4929_v62 = vpop.f32.mrb[85].mxu0  ;;  %v4996_v57 = vpop.f32.mrb[87].mxu1 }
 0x1a6   : > { %v4930_v1 = vadd.f32 %v4929_v62, %v4928_v14  ;;  %v4931_v6 = vpop.f32.mrb[86].mxu0  ;;  %v4997_v26 = vadd.f32 %v4996_v57, %v4995_v2  ;;  %v7221_v30 = vadd.f32 %v4994_v50, %v7128_v31 }
 0x1a7   : > { %v4932_v39 = vpop.f32.mrb[87].mxu0 }
 0x1a8   : > { %v7224_v49 = vadd.f32 %v4930_v1, %v7125_v10  ;;  %v4933_v60 = vadd.f32 %v4932_v39, %v4931_v6  ;;  %v7227_v54 = vadd.f32 %v4997_v26, %v7134_v28 }
 0x1aa   : > { %v7230_v38 = vadd.f32 %v4933_v60, %v7131_v20  ;;  %v4998_v47 = vpop.f32.mrb[88].mxu1 }
 0x1ab   : > { %v4999_v8 = vpop.f32.mrb[89].mxu1 }
 0x1ac   : > { %v4934_v16 = vpop.f32.mrb[88].mxu0  ;;  %v5000_v21 = vadd.f32 %v4999_v8, %v4998_v47  ;;  %v5001_v41 = vpop.f32.mrb[90].mxu1 }
 0x1ad   : > { %v4935_v33 = vpop.f32.mrb[89].mxu0  ;;  %v5002_v56 = vpop.f32.mrb[91].mxu1 }
 0x1ae   : > { %v4936_v5 = vadd.f32 %v4935_v33, %v4934_v16  ;;  %v4937_v31 = vpop.f32.mrb[90].mxu0  ;;  %v5003_v58 = vadd.f32 %v5002_v56, %v5001_v41  ;;  %v7233_v10 = vadd.f32 %v5000_v21, %v7140_v53 }
 0x1af   : > { %v4938_v52 = vpop.f32.mrb[91].mxu0 }
 0x1b0   : > { %v7236_v28 = vadd.f32 %v4936_v5, %v7137_v42  ;;  %v4939_v43 = vadd.f32 %v4938_v52, %v4937_v31  ;;  %v7239_v20 = vadd.f32 %v5003_v58, %v7146_v61 }
 0x1b2   : > { %v7242_v4 = vadd.f32 %v4939_v43, %v7143_v36 }
 0x1b3   : > { %v5004_v24 = vpop.f32.mrb[92].mxu1 }
 0x1b4   : > { %v5005_v0 = vpop.f32.mrb[93].mxu1 }
 0x1b5   : > { %v4940_v7 = vpop.f32.mrb[92].mxu0  ;;  %v5006_v40 = vadd.f32 %v5005_v0, %v5004_v24  ;;  %v5007_v9 = vpop.f32.mrb[94].mxu1 }
 0x1b6   : > { %v4941_v14 = vpop.f32.mrb[93].mxu0  ;;  %v5008_v44 = vpop.f32.mrb[95].mxu1 }
 0x1b7   : > { %v4942_v53 = vadd.f32 %v4941_v14, %v4940_v7  ;;  %v4943_v62 = vpop.f32.mrb[94].mxu0  ;;  %v5009_v50 = vadd.f32 %v5008_v44, %v5007_v9  ;;  %v7245_v42 = vadd.f32 %v5006_v40, %v7152_v59 }
 0x1b8   : > { %v4944_v2 = vpop.f32.mrb[95].mxu0 }
 0x1b9   : > { %v7248_v61 = vadd.f32 %v4942_v53, %v7149_v34  ;;  %v4945_v1 = vadd.f32 %v4944_v2, %v4943_v62  ;;  %v7251_v36 = vadd.f32 %v5009_v50, %v7158_v25 }
 0x1bb   : > { %v7254_v6 = vadd.f32 %v4945_v1, %v7155_v17 }
 0x1bc   : > { %v5010_v57 = vpop.f32.mrb[96].mxu1 }
 0x1bd   : > { %v5011_v39 = vpop.f32.mrb[97].mxu1  ;;  %v4946_v26 = vpop.f32.mrb[96].mxu0 }
 0x1be   : > { %v5012_v60 = vadd.f32 %v5011_v39, %v5010_v57  ;;  %v5013_v47 = vpop.f32.mrb[98].mxu1  ;;  %v4947_v8 = vpop.f32.mrb[97].mxu0 }
 0x1bf   : > { %v5014_v16 = vpop.f32.mrb[99].mxu1  ;;  %v4948_v59 = vadd.f32 %v4947_v8, %v4946_v26  ;;  %v4949_v21 = vpop.f32.mrb[98].mxu0 }
 0x1c0   : > { %v5015_v41 = vadd.f32 %v5014_v16, %v5013_v47  ;;  %v7257_v34 = vadd.f32 %v5012_v60, %v7164_v11  ;;  %v4950_v33 = vpop.f32.mrb[99].mxu0 }
 0x1c1   : > { %v7260_v25 = vadd.f32 %v4948_v59, %v7161_v48  ;;  %v4951_v56 = vadd.f32 %v4950_v33, %v4949_v21 }
 0x1c2   : > { %v7263_v17 = vadd.f32 %v5015_v41, %v7170_v45 }
 0x1c3   : > { %v7266_v5 = vadd.f32 %v4951_v56, %v7167_v13 }
 0x1c5   : > { %v5016_v31 = vpop.f32.mrb[100].mxu1 }
 0x1c6   : > { %v5017_v58 = vpop.f32.mrb[101].mxu1 }
 0x1c7   : > { %v4952_v52 = vpop.f32.mrb[100].mxu0  ;;  %v5018_v43 = vadd.f32 %v5017_v58, %v5016_v31  ;;  %v5019_v24 = vpop.f32.mrb[102].mxu1 }
 0x1c8   : > { %v4953_v0 = vpop.f32.mrb[101].mxu0  ;;  %v5020_v7 = vpop.f32.mrb[103].mxu1 }
 0x1c9   : > { %v4954_v11 = vadd.f32 %v4953_v0, %v4952_v52  ;;  %v4955_v40 = vpop.f32.mrb[102].mxu0  ;;  %v5021_v9 = vadd.f32 %v5020_v7, %v5019_v24  ;;  %v7269_v48 = vadd.f32 %v5018_v43, %v7176_v12 }
 0x1ca   : > { %v4956_v14 = vpop.f32.mrb[103].mxu0 }
 0x1cb   : > { %v7272_v45 = vadd.f32 %v4954_v11, %v7173_v63  ;;  %v4957_v44 = vadd.f32 %v4956_v14, %v4955_v40  ;;  %v7275_v13 = vadd.f32 %v5021_v9, %v7182_v18 }
 0x1cd   : > { %v7278_v53 = vadd.f32 %v4957_v44, %v7179_v3 }
 0x1cf   : > { %v5022_v62 = vpop.f32.mrb[104].mxu1 }
 0x1d0   : > { %v5023_v50 = vpop.f32.mrb[105].mxu1 }
 0x1d1   : > { %v5024_v2 = vadd.f32 %v5023_v50, %v5022_v62  ;;  %v5025_v1 = vpop.f32.mrb[106].mxu1 }
 0x1d2   : > { %v5026_v39 = vpop.f32.mrb[107].mxu1 }
 0x1d3   : > { %v4958_v57 = vpop.f32.mrb[104].mxu0  ;;  %v5027_v12 = vadd.f32 %v5026_v39, %v5025_v1  ;;  %v7281_v60 = vadd.f32 %v5024_v2, %v7188_v23 }
 0x1d4   : > { %v4959_v26 = vpop.f32.mrb[105].mxu0 }
 0x1d5   : > { %v4960_v63 = vadd.f32 %v4959_v26, %v4958_v57  ;;  %v4961_v47 = vpop.f32.mrb[106].mxu0  ;;  %v7284_v18 = vadd.f32 %v5027_v12, %v7194_v27 }
 0x1d6   : > { %v4962_v8 = vpop.f32.mrb[107].mxu0 }
 0x1d7   : > { %v7287_v3 = vadd.f32 %v4960_v63, %v7185_v32  ;;  %v4963_v16 = vadd.f32 %v4962_v8, %v4961_v47 }
 0x1d9   : > { %v7290_v59 = vadd.f32 %v4963_v16, %v7191_v55 }
 0x1dc   : > { %v5028_v21 = vpop.f32.mrb[108].mxu1  ;;  %v4964_v33 = vpop.f32.mrb[108].mxu0 }
 0x1dd   : > { %v5029_v41 = vpop.f32.mrb[109].mxu1  ;;  %v4965_v31 = vpop.f32.mrb[109].mxu0 }
 0x1de   : > { %v5030_v56 = vadd.f32 %v5029_v41, %v5028_v21  ;;  %v5031_v23 = vpop.f32.mrb[110].mxu1  ;;  %v4966_v52 = vadd.f32 %v4965_v31, %v4964_v33  ;;  %v4967_v43 = vpop.f32.mrb[110].mxu0 }
 0x1df   : > { %v5032_v58 = vpop.f32.mrb[111].mxu1  ;;  %v4968_v32 = vpop.f32.mrb[111].mxu0 }
 0x1e0   : > { %v5033_v24 = vadd.f32 %v5032_v58, %v5031_v23  ;;  %v7293_v27 = vadd.f32 %v5030_v56, %v7200_v29  ;;  %v7296_v0 = vadd.f32 %v4966_v52, %v7197_v15  ;;  %v4969_v55 = vadd.f32 %v4968_v32, %v4967_v43 }
 0x1e2   : > { %v7299_v7 = vadd.f32 %v5033_v24, %v7206_v46  ;;  %v7302_v11 = vadd.f32 %v4969_v55, %v7203_v22 }
 0x1e4   : > { %v5034_v40 = vpop.f32.mrb[112].mxu1  ;;  %v5124_v14 = vpop.f32.mrb[112].mxu0 }
 0x1e5   : > { %v5035_v9 = vpop.f32.mrb[113].mxu1  ;;  %v3929_v29 = vadd.f32 %v5124_v14, %v7221_v30  ;;  %v3920_v50 = vpop.f32.mrb[113].mxu0 }
 0x1e6   : > { %v5036_v44 = vadd.f32 %v5035_v9, %v5034_v40  ;;  %v5037_v62 = vpop.f32.mrb[114].mxu1  ;;  %v3921_v15 = vadd.f32 %v3920_v50, %v7209_v51  ;;  %v5125_v22 = vpop.f32.mrb[114].mxu0 }
 0x1e7   : > { %v5038_v2 = vpop.f32.mrb[115].mxu1  ;;  %v4049_v57 = vmax.f32 %v3929_v29, 0.0  ;;  %v3932_v30 = vadd.f32 %v5125_v22, %v7227_v54  ;;  %v3923_v39 = vpop.f32.mrb[115].mxu0 }
 0x1e8   : > { %v5039_v46 = vadd.f32 %v5038_v2, %v5037_v62  ;;  %v7313_v1 = vadd.f32 %v5036_v44, %v7212_v19  ;;  %v4047_v26 = vmax.f32 %v3921_v15, 0.0  ;;  %v3924_v12 = vadd.f32 %v3923_v39, %v7215_v37 }
 0x1e9   : > { %4081 = vst [vmem:[%s7309_s24 + $0x10] sm:$0xff] %v4049_v57  ;;  %v4050_v47 = vmax.f32 %v3932_v30, 0.0 }
 0x1ea   : > { %v7318_v63 = vadd.f32 %v5039_v46, %v7218_v35  ;;  %4079 = vst [vmem:[%s7309_s24] sm:$0xff] %v4047_v26  ;;  %v4048_v51 = vmax.f32 %v3924_v12, 0.0 }
 0x1eb   : > { %4082 = vst [vmem:[%s7309_s24 + $0x18] sm:$0xff] %v4050_v47 }
 0x1ec   : > { %v5040_v8 = vpop.f32.mrb[116].mxu1  ;;  %4080 = vst [vmem:[%s7309_s24 + $0x8] sm:$0xff] %v4048_v51  ;;  %v5128_v16 = vpop.f32.mrb[116].mxu0 }
 0x1ed   : > { %v5041_v19 = vpop.f32.mrb[117].mxu1  ;;  %v3945_v21 = vadd.f32 %v5128_v16, %v7245_v42  ;;  %v3936_v41 = vpop.f32.mrb[117].mxu0 }
 0x1ee   : > { %v5042_v54 = vadd.f32 %v5041_v19, %v5040_v8  ;;  %v5043_v33 = vpop.f32.mrb[118].mxu1  ;;  %v3937_v37 = vadd.f32 %v3936_v41, %v7233_v10  ;;  %v5129_v35 = vpop.f32.mrb[118].mxu0 }
 0x1ef   : > { %v5044_v56 = vpop.f32.mrb[119].mxu1  ;;  %v4053_v23 = vmax.f32 %v3945_v21, 0.0  ;;  %v3948_v31 = vadd.f32 %v5129_v35, %v7251_v36  ;;  %v3939_v52 = vpop.f32.mrb[119].mxu0 }
 0x1f0   : > { %v5045_v58 = vadd.f32 %v5044_v56, %v5043_v33  ;;  %v3832_v43 = vadd.f32 %v5042_v54, %v7224_v49  ;;  %v4051_v24 = vmax.f32 %v3937_v37, 0.0  ;;  %v3940_v42 = vadd.f32 %v3939_v52, %v7239_v20 }
 0x1f1   : > { %4085 = vst [vmem:[%s7309_s24 + $0x30] sm:$0xff] %v4053_v23  ;;  %v4054_v32 = vmax.f32 %v3948_v31, 0.0 }
 0x1f2   : > { %v7331_v55 = vadd.f32 %v5045_v58, %v7230_v38  ;;  %4083 = vst [vmem:[%s7309_s24 + $0x20] sm:$0xff] %v4051_v24  ;;  %v4052_v10 = vmax.f32 %v3940_v42, 0.0 }
 0x1f3   : > { %4086 = vst [vmem:[%s7309_s24 + $0x38] sm:$0xff] %v4054_v32 }
 0x1f4   : > { %v5046_v40 = vpop.f32.mrb[120].mxu1  ;;  %4084 = vst [vmem:[%s7309_s24 + $0x28] sm:$0xff] %v4052_v10 }
 0x1f5   : > { %v5132_v9 = vpop.f32.mrb[120].mxu0  ;;  %v5047_v36 = vpop.f32.mrb[121].mxu1 }
 0x1f6   : > { %v3961_v14 = vadd.f32 %v5132_v9, %v7269_v48  ;;  %v5048_v44 = vadd.f32 %v5047_v36, %v5046_v40  ;;  %v3952_v49 = vpop.f32.mrb[121].mxu0  ;;  %v5049_v62 = vpop.f32.mrb[122].mxu1 }
 0x1f7   : > { %v3953_v20 = vadd.f32 %v3952_v49, %v7257_v34  ;;  %v5133_v38 = vpop.f32.mrb[122].mxu0  ;;  %v5050_v29 = vpop.f32.mrb[123].mxu1 }
 0x1f8   : > { %v4057_v50 = vmax.f32 %v3961_v14, 0.0  ;;  %v3964_v2 = vadd.f32 %v5133_v38, %v7275_v13  ;;  %v5051_v15 = vadd.f32 %v5050_v29, %v5049_v62  ;;  %v3955_v22 = vpop.f32.mrb[123].mxu0  ;;  %v7340_v46 = vadd.f32 %v5048_v44, %v7236_v28 }
 0x1f9   : > { %v4055_v57 = vmax.f32 %v3953_v20, 0.0  ;;  %v3956_v48 = vadd.f32 %v3955_v22, %v7263_v17 }
 0x1fa   : > { %4089 = vst [vmem:[%s7309_s24 + $0x50] sm:$0xff] %v4057_v50  ;;  %v4058_v30 = vmax.f32 %v3964_v2, 0.0  ;;  %v7345_v39 = vadd.f32 %v5051_v15, %v7242_v4 }
 0x1fb   : > { %4087 = vst [vmem:[%s7309_s24 + $0x40] sm:$0xff] %v4055_v57  ;;  %v4056_v34 = vmax.f32 %v3956_v48, 0.0 }
 0x1fc   : > { %4090 = vst [vmem:[%s7309_s24 + $0x58] sm:$0xff] %v4058_v30 }
 0x1fd   : > { %4088 = vst [vmem:[%s7309_s24 + $0x48] sm:$0xff] %v4056_v34  ;;  %v5136_v26 = vpop.f32.mrb[124].mxu0 }
 0x1fe   : > { %v5052_v13 = vpop.f32.mrb[124].mxu1  ;;  %v3977_v12 = vadd.f32 %v5136_v26, %v7293_v27  ;;  %v3968_v47 = vpop.f32.mrb[125].mxu0 }
 0x1ff   : > { %v5053_v28 = vpop.f32.mrb[125].mxu1  ;;  %v3969_v51 = vadd.f32 %v3968_v47, %v7281_v60  ;;  %v5137_v17 = vpop.f32.mrb[126].mxu0 }
 0x200   : > { %v4061_v8 = vmax.f32 %v3977_v12, 0.0  ;;  %v5054_v4 = vadd.f32 %v5053_v28, %v5052_v13  ;;  %v5055_v16 = vpop.f32.mrb[126].mxu1  ;;  %v3980_v19 = vadd.f32 %v5137_v17, %v7299_v7  ;;  %v3971_v21 = vpop.f32.mrb[127].mxu0 }
 0x201   : > { %v4059_v54 = vmax.f32 %v3969_v51, 0.0  ;;  %v5056_v41 = vpop.f32.mrb[127].mxu1  ;;  %v3972_v33 = vadd.f32 %v3971_v21, %v7284_v18 }
 0x202   : > { %4093 = vst [vmem:[%s7309_s24 + $0x70] sm:$0xff] %v4061_v8  ;;  %v4062_v27 = vmax.f32 %v3980_v19, 0.0  ;;  %v5057_v37 = vadd.f32 %v5056_v41, %v5055_v16  ;;  %v3848_v35 = vadd.f32 %v5054_v4, %v7248_v61 }
 0x203   : > { %4091 = vst [vmem:[%s7309_s24 + $0x60] sm:$0xff] %v4059_v54  ;;  %v4060_v60 = vmax.f32 %v3972_v33, 0.0 }
 0x204   : > { %4094 = vst [vmem:[%s7309_s24 + $0x78] sm:$0xff] %v4062_v27  ;;  %v3851_v56 = vadd.f32 %v5057_v37, %v7254_v6 }
 0x205   : > { %4092 = vst [vmem:[%s7309_s24 + $0x68] sm:$0xff] %v4060_v60 }
 0x206   : > { %v5140_v23 = vpop.f32.mrb[128].mxu0 }
 0x207   : > { %v3993_v7 = vadd.f32 %v5140_v23, %v3832_v43  ;;  %v3984_v58 = vpop.f32.mrb[129].mxu0 }
 0x208   : > { %v5058_v31 = vpop.f32.mrb[128].mxu1  ;;  %v3985_v18 = vadd.f32 %v3984_v58, %v7313_v1  ;;  %v5141_v24 = vpop.f32.mrb[130].mxu0 }
 0x209   : > { %v5059_v52 = vpop.f32.mrb[129].mxu1  ;;  %v4065_v42 = vmax.f32 %v3993_v7, 0.0  ;;  %v3996_v10 = vadd.f32 %v5141_v24, %v7331_v55  ;;  %v3987_v40 = vpop.f32.mrb[131].mxu0 }
 0x20a   : > { %v5060_v61 = vadd.f32 %v5059_v52, %v5058_v31  ;;  %v5061_v32 = vpop.f32.mrb[130].mxu1  ;;  %v4063_v6 = vmax.f32 %v3985_v18, 0.0  ;;  %v3988_v36 = vadd.f32 %v3987_v40, %v7318_v63 }
 0x20b   : > { %v5062_v9 = vpop.f32.mrb[131].mxu1  ;;  %4097 = vst [vmem:[%s7309_s24 + $0x90] sm:$0xff] %v4065_v42  ;;  %v4066_v43 = vmax.f32 %v3996_v10, 0.0 }
 0x20c   : > { %v5063_v14 = vadd.f32 %v5062_v9, %v5061_v32  ;;  %v3856_v44 = vadd.f32 %v5060_v61, %v7260_v25  ;;  %4095 = vst [vmem:[%s7309_s24 + $0x80] sm:$0xff] %v4063_v6  ;;  %v4064_v1 = vmax.f32 %v3988_v36, 0.0 }
 0x20d   : > { %4098 = vst [vmem:[%s7309_s24 + $0x98] sm:$0xff] %v4066_v43 }
 0x20e   : > { %v3859_v49 = vadd.f32 %v5063_v14, %v7266_v5  ;;  %4096 = vst [vmem:[%s7309_s24 + $0x88] sm:$0xff] %v4064_v1 }
 0x211   : > { %v5064_v62 = vpop.f32.mrb[132].mxu1  ;;  %v5144_v20 = vpop.f32.mrb[132].mxu0 }
 0x212   : > { %v4009_v55 = vadd.f32 %v5144_v20, %v3848_v35  ;;  %v5065_v38 = vpop.f32.mrb[133].mxu1  ;;  %v4000_v29 = vpop.f32.mrb[133].mxu0 }
 0x213   : > { %v5066_v50 = vadd.f32 %v5065_v38, %v5064_v62  ;;  %v4001_v63 = vadd.f32 %v4000_v29, %v7340_v46  ;;  %v5067_v2 = vpop.f32.mrb[134].mxu1  ;;  %v5145_v25 = vpop.f32.mrb[134].mxu0 }
 0x214   : > { %v4069_v15 = vmax.f32 %v4009_v55, 0.0  ;;  %v4012_v22 = vadd.f32 %v5145_v25, %v3851_v56  ;;  %v5068_v57 = vpop.f32.mrb[135].mxu1  ;;  %v4003_v48 = vpop.f32.mrb[135].mxu0 }
 0x215   : > { %v4067_v5 = vmax.f32 %v4001_v63, 0.0  ;;  %v5069_v30 = vadd.f32 %v5068_v57, %v5067_v2  ;;  %v4004_v34 = vadd.f32 %v4003_v48, %v7345_v39  ;;  %v3864_v26 = vadd.f32 %v5066_v50, %v7272_v45 }
 0x216   : > { %4101 = vst [vmem:[%s7309_s24 + $0xb0] sm:$0xff] %v4069_v15  ;;  %v4070_v13 = vmax.f32 %v4012_v22, 0.0 }
 0x217   : > { %4099 = vst [vmem:[%s7309_s24 + $0xa0] sm:$0xff] %v4067_v5  ;;  %v4068_v12 = vmax.f32 %v4004_v34, 0.0  ;;  %v3867_v46 = vadd.f32 %v5069_v30, %v7278_v53 }
 0x218   : > { %4102 = vst [vmem:[%s7309_s24 + $0xb8] sm:$0xff] %v4070_v13 }
 0x219   : > { %4100 = vst [vmem:[%s7309_s24 + $0xa8] sm:$0xff] %v4068_v12 }
 0x21a   : > { %v5070_v47 = vpop.f32.mrb[136].mxu1  ;;  %v5148_v28 = vpop.f32.mrb[136].mxu0 }
 0x21b   : > { %v4025_v51 = vadd.f32 %v5148_v28, %v3864_v26  ;;  %v5071_v17 = vpop.f32.mrb[137].mxu1  ;;  %v4016_v8 = vpop.f32.mrb[137].mxu0 }
 0x21c   : > { %v5072_v4 = vadd.f32 %v5071_v17, %v5070_v47  ;;  %v4017_v16 = vadd.f32 %v4016_v8, %v3856_v44  ;;  %v5073_v39 = vpop.f32.mrb[138].mxu1  ;;  %v5149_v45 = vpop.f32.mrb[138].mxu0 }
 0x21d   : > { %v4073_v19 = vmax.f32 %v4025_v51, 0.0  ;;  %v4028_v21 = vadd.f32 %v5149_v45, %v3867_v46  ;;  %v5074_v54 = vpop.f32.mrb[139].mxu1  ;;  %v4019_v41 = vpop.f32.mrb[139].mxu0 }
 0x21e   : > { %v4071_v53 = vmax.f32 %v4017_v16, 0.0  ;;  %v5075_v33 = vadd.f32 %v5074_v54, %v5073_v39  ;;  %v4020_v27 = vadd.f32 %v4019_v41, %v3859_v49  ;;  %v3872_v37 = vadd.f32 %v5072_v4, %v7287_v3 }
 0x21f   : > { %4105 = vst [vmem:[%s7309_s24 + $0xd0] sm:$0xff] %v4073_v19  ;;  %v4074_v35 = vmax.f32 %v4028_v21, 0.0 }
 0x220   : > { %4103 = vst [vmem:[%s7309_s24 + $0xc0] sm:$0xff] %v4071_v53  ;;  %v4072_v60 = vmax.f32 %v4020_v27, 0.0  ;;  %v3875_v56 = vadd.f32 %v5075_v33, %v7290_v59 }
 0x221   : > { %4106 = vst [vmem:[%s7309_s24 + $0xd8] sm:$0xff] %v4074_v35 }
 0x222   : > { %4104 = vst [vmem:[%s7309_s24 + $0xc8] sm:$0xff] %v4072_v60 }
 0x223   : > { %v5076_v23 = vpop.f32.mrb[140].mxu1  ;;  %v5152_v31 = vpop.f32.mrb[140].mxu0 }
 0x224   : > { %v5077_v7 = vpop.f32.mrb[141].mxu1  ;;  %v4032_v58 = vpop.f32.mrb[141].mxu0 }
 0x225   : > { %v5078_v52 = vadd.f32 %v5077_v7, %v5076_v23  ;;  %v4033_v18 = vadd.f32 %v4032_v58, %v3872_v37  ;;  %v5079_v24 = vpop.f32.mrb[142].mxu1  ;;  %v5153_v42 = vpop.f32.mrb[142].mxu0 }
 0x226   : > { %v5080_v3 = vpop.f32.mrb[143].mxu1  ;;  %v4035_v61 = vpop.f32.mrb[143].mxu0 }
 0x227   : > { %v3880_v32 = vadd.f32 %v5078_v52, %v7296_v0  ;;  %v4075_v10 = vmax.f32 %v4033_v18, 0.0  ;;  %v5081_v59 = vadd.f32 %v5080_v3, %v5079_v24  ;;  %v4036_v40 = vadd.f32 %v4035_v61, %v3875_v56 }
 0x229   : > { %v4041_v6 = vadd.f32 %v5152_v31, %v3880_v32  ;;  %4107 = vst [vmem:[%s7309_s24 + $0xe0] sm:$0xff] %v4075_v10  ;;  %v3883_v9 = vadd.f32 %v5081_v59, %v7302_v11  ;;  %v4076_v36 = vmax.f32 %v4036_v40, 0.0 }
 0x22b   : > { %v4077_v43 = vmax.f32 %v4041_v6, 0.0  ;;  %v4044_v14 = vadd.f32 %v5153_v42, %v3883_v9  ;;  %4108 = vst [vmem:[%s7309_s24 + $0xe8] sm:$0xff] %v4076_v36 }
 0x22d   : > { %4109 = vst [vmem:[%s7309_s24 + $0xf0] sm:$0xff] %v4077_v43  ;;  %v4078_v44 = vmax.f32 %v4044_v14, 0.0 }
 0x22f   : > { %4110 = vst [vmem:[%s7309_s24 + $0xf8] sm:$0xff] %v4078_v44 }
 0x230 PF: > { %s12_s11 = sadd.s32 1, %s5344_s11   ;;  %s7415_s9 = smov %s5340_s10 }
 0x231   : > { %p9_p5 = scmp.ge.s32.totalorder %s12_s11, 4   ;;  %s7416_s10 = smov %s7418_s12 }
 0x233   :  { %11 = sbr.rel (!%p9_p5) target bundleno = 2 (0x2), region = 64 }

</bundles_post_ra>
